<compile_context>
chip_gen: v7x
topology: tpu7x:2x2x1
jax: 0.10.0
libtpu: 0.0.40
codegen_flags: <defaults>
</compile_context>

<pallas_src>
import functools
import math

import jax
import jax.numpy as jnp
from jax import lax
from jax.experimental import pallas as pl
from jax.experimental.pallas import tpu as pltpu

# ----------------------------- model hyper-params (small) -----------------------------
VOCAB = 40
D_MODEL = 32          # encoder_hidden == decoder_hidden
N_HEADS = 2
D_HEAD = D_MODEL // N_HEADS
D_FF = 64             # FFT conv filter size
FFT_KERNEL = 3
N_ENC_LAYERS = 2
N_DEC_LAYERS = 2
N_MEL = 16            # n_mel_channels
DUR_FILTER = 32
DUR_KERNEL = 3
VAE_HIDDEN = 32
VAE_LATENT = 8
PN_DIM = 32           # postnet embedding dim
PN_KERNEL = 5
MAX_SEQ_LEN = 64
LN_EPS = 1e-5

MM_DTYPE = jnp.bfloat16        # MXU operand dtype; accumulation stays f32

# ---- packed weight-buffer layout (per FFT layer) ----
W_ROWS = 2 * D_MODEL + FFT_KERNEL * D_MODEL + D_FF     # 224
W_COLS = 3 * D_MODEL                                    # 96
V_ROWS = 8
_ROW_QKV = 0
_ROW_WO = D_MODEL                                        # 32
_ROW_W1 = 2 * D_MODEL                                    # 64
_ROW_W2 = 2 * D_MODEL + FFT_KERNEL * D_MODEL             # 160
DW_ROWS = FFT_KERNEL * (D_MODEL + DUR_FILTER)            # 192


# =============================== small helpers ===============================


def _full_spec(shape):
    """BlockSpec covering the whole array (grid=(1,))."""
    n = len(shape)
    return pl.BlockSpec(shape, lambda i, _n=n: (0,) * _n)


def get_mask_from_lengths(lengths, max_len):
    ids = jnp.arange(max_len)[None, :]
    return ids >= lengths[:, None]  # True == padded


def sinusoid_table(n_pos, d):
    pos = jnp.arange(n_pos, dtype=jnp.float32)[:, None]
    i = jnp.arange(d)[None, :]
    angle = pos / jnp.power(10000.0, (2.0 * (i // 2)).astype(jnp.float32) / float(d))
    tbl = jnp.where(i % 2 == 0, jnp.sin(angle), jnp.cos(angle))
    return tbl.astype(jnp.float32)


# =============================== in-kernel mask builders ===============================


def _build_pos(batch, seq):
    """row index (BT,1) and within-utterance position (BT,1) from iota (no DMA'd masks)."""
    bt = batch * seq
    row = lax.broadcasted_iota(jnp.int32, (bt, 1), 0)
    pos = row
    for b in range(1, batch):
        pos = jnp.where(row >= b * seq, row - b * seq, pos)
    return row, pos


def _build_keep(lens_ref, row, pos, batch, seq):
    """(BT,1) f32: 1 for valid frames, 0 for padded frames (from SMEM lengths)."""
    ok = None
    for b in range(batch):
        in_b = (row >= b * seq) & (row < (b + 1) * seq)
        t = in_b & (pos < lens_ref[b])
        ok = t if ok is None else (ok | t)
    return ok.astype(jnp.float32)


def _build_attn_bias(lens_ref, batch, seq):
    """(BT,BT) additive bias: 0 where key is a valid frame of the query's utterance, -1e9 else."""
    bt = batch * seq
    ri = lax.broadcasted_iota(jnp.int32, (bt, bt), 0)
    ci = lax.broadcasted_iota(jnp.int32, (bt, bt), 1)
    ok = None
    for b in range(batch):
        in_row = (ri >= b * seq) & (ri < (b + 1) * seq)
        in_col = (ci >= b * seq) & (ci < b * seq + lens_ref[b])
        t = in_row & in_col
        ok = t if ok is None else (ok | t)
    return jnp.where(ok, 0.0, -1e9).astype(jnp.float32)


def _layernorm(v, g, b):
    mu = jnp.mean(v, axis=-1, keepdims=True)
    var = jnp.mean(jnp.square(v - mu), axis=-1, keepdims=True)
    return (v - mu) * lax.rsqrt(var + LN_EPS) * g + b


# =============================== fused FFT-stack kernels ===============================


def _fft_layer_step(x, w_ref, v_ref, bias, keep, e_prev, e_next, pack):
    """One FFT block: MHA + residual/LN + conv-FFN(k=3)/ReLU/conv(k=1) + residual/LN + mask."""
    f32 = jnp.float32
    c = MM_DTYPE
    bt = x.shape[0]
    d = D_MODEL
    dh = D_HEAD
    scale = 1.0 / math.sqrt(dh)

    # packed per-layer weight slab (bf16) and vector slab (f32)
    wqkv = w_ref[0, _ROW_QKV:_ROW_QKV + d, 0:3 * d]          # (32, 96)
    wo = w_ref[0, _ROW_WO:_ROW_WO + d, 0:d]                  # (32, 32)
    w1 = w_ref[0, _ROW_W1:_ROW_W1 + FFT_KERNEL * d, 0:D_FF]  # (96, 64)
    w2 = w_ref[0, _ROW_W2:_ROW_W2 + D_FF, 0:d]               # (64, 32)
    bqkv = v_ref[0, 0:1, 0:3 * d]
    bo = v_ref[0, 1:2, 0:d]
    ln1g = v_ref[0, 2:3, 0:d]
    ln1b = v_ref[0, 3:4, 0:d]
    b1 = v_ref[0, 4:5, 0:D_FF]
    b2 = v_ref[0, 5:6, 0:d]
    ln2g = v_ref[0, 6:7, 0:d]
    ln2b = v_ref[0, 7:8, 0:d]

    # ---- fused QKV projection: single (BT,32)x(32,96) dot ----
    qkv = jnp.dot(x.astype(c), wqkv.astype(c), preferred_element_type=f32) + bqkv

    # ---- per-head block-diagonal attention over the flattened (BT,BT) score matrix ----
    for h in range(N_HEADS):
        q = qkv[:, h * dh:(h + 1) * dh]
        k = qkv[:, d + h * dh:d + (h + 1) * dh]
        v = qkv[:, 2 * d + h * dh:2 * d + (h + 1) * dh]
        s = lax.dot_general(q.astype(c), k.astype(c), (((1,), (1,)), ((), ())),
                            preferred_element_type=f32) * scale + bias
        s = s - jnp.max(s, axis=-1, keepdims=True)
        p = jnp.exp(s)
        p = p * pl.reciprocal(jnp.sum(p, axis=-1, keepdims=True), approx=True)
        pack[:, h * dh:(h + 1) * dh] = jnp.dot(p.astype(c), v.astype(c),
                                               preferred_element_type=f32)

    # ---- packed out-projection + residual + LN1 + padding zeroing ----
    attn = jnp.dot(pack[:, 0:d].astype(c), wo.astype(c), preferred_element_type=f32) + bo
    y = _layernorm(attn + x, ln1g, ln1b) * keep

    # ---- conv1d(k=3) as ONE K=96 dot via lane-packed shifted copies, ReLU, conv(k=1) ----
    pack[:, 0:d] = pltpu.roll(y, 1, axis=0) * e_prev          # row t <- y[t-1]
    pack[:, d:2 * d] = y
    pack[:, 2 * d:3 * d] = pltpu.roll(y, bt - 1, axis=0) * e_next   # row t <- y[t+1]
    h1 = jnp.maximum(jnp.dot(pack[...].astype(c), w1.astype(c),
                             preferred_element_type=f32) + b1, 0.0)
    z = jnp.dot(h1.astype(c), w2.astype(c), preferred_element_type=f32) + b2

    # ---- residual + LN2 + padding zeroing ----
    return _layernorm(z + y, ln2g, ln2b) * keep


def _duration_step(x, dw_ref, dv_ref, keep, e_prev, e_next, pack):
    """Duration predictor: 2x (conv k=3 -> ReLU -> LN) + linear + mask, packed-K conv dots."""
    f32 = jnp.float32
    c = MM_DTYPE
    bt = x.shape[0]
    f = DUR_FILTER

    b1 = dv_ref[0:1, :]
    g1 = dv_ref[1:2, :]
    be1 = dv_ref[2:3, :]
    b2 = dv_ref[3:4, :]
    g2 = dv_ref[4:5, :]
    be2 = dv_ref[5:6, :]
    wout = dv_ref[6:7, :]
    bout = dv_ref[7:8, 0:1]

    def conv3(inp, r0):
        pack[:, 0:f] = pltpu.roll(inp, 1, axis=0) * e_prev
        pack[:, f:2 * f] = inp
        pack[:, 2 * f:3 * f] = pltpu.roll(inp, bt - 1, axis=0) * e_next
        w = dw_ref[r0:r0 + 3 * f, :]
        return jnp.dot(pack[:, 0:3 * f].astype(c), w.astype(c), preferred_element_type=f32)

    h = _layernorm(jnp.maximum(conv3(x, 0) + b1, 0.0), g1, be1)
    h = _layernorm(jnp.maximum(conv3(h, 3 * f) + b2, 0.0), g2, be2)
    return (jnp.sum(h * wout, axis=-1, keepdims=True) + bout) * keep


def _encoder_stack_kernel(lens_ref, x_ref, w_ref, v_ref, dw_ref, dv_ref,
                          out_ref, dur_ref, state, pack, *, batch, seq):
    l = pl.program_id(0)

    @pl.when(l == 0)
    def _():
        state[...] = x_ref[...]

    row, pos = _build_pos(batch, seq)
    keep = _build_keep(lens_ref, row, pos, batch, seq)
    e_prev = (pos >= 1).astype(jnp.float32)
    e_next = (pos <= seq - 2).astype(jnp.float32)
    bias = _build_attn_bias(lens_ref, batch, seq)

    z = _fft_layer_step(state[...], w_ref, v_ref, bias, keep, e_prev, e_next, pack)
    state[...] = z
    out_ref[...] = z

    # duration predictor folded into the last layer of the encoder stack
    @pl.when(l == pl.num_programs(0) - 1)
    def _():
        dur_ref[...] = _duration_step(z, dw_ref, dv_ref, keep, e_prev, e_next, pack)


def _decoder_stack_kernel(lens_ref, x_ref, w_ref, v_ref, out_ref, state, pack,
                          *, batch, seq):
    l = pl.program_id(0)

    @pl.when(l == 0)
    def _():
        state[...] = x_ref[...]

    row, pos = _build_pos(batch, seq)
    keep = _build_keep(lens_ref, row, pos, batch, seq)
    e_prev = (pos >= 1).astype(jnp.float32)
    e_next = (pos <= seq - 2).astype(jnp.float32)
    bias = _build_attn_bias(lens_ref, batch, seq)

    z = _fft_layer_step(state[...], w_ref, v_ref, bias, keep, e_prev, e_next, pack)
    state[...] = z
    out_ref[...] = z


def fft_encoder_call(enc_p, dur_p, x2, src_lens, batch, seq):
    bt = batch * seq
    n_layers = enc_p["wbuf"].shape[0]
    kernel = functools.partial(_encoder_stack_kernel, batch=batch, seq=seq)
    gs = pltpu.PrefetchScalarGridSpec(
        num_scalar_prefetch=1,
        grid=(n_layers,),
        in_specs=[
            pl.BlockSpec((bt, D_MODEL), lambda l, lens: (0, 0)),
            pl.BlockSpec((1, W_ROWS, W_COLS), lambda l, lens: (l, 0, 0)),
            pl.BlockSpec((1, V_ROWS, W_COLS), lambda l, lens: (l, 0, 0)),
            pl.BlockSpec((DW_ROWS, DUR_FILTER), lambda l, lens: (0, 0)),
            pl.BlockSpec((8, DUR_FILTER), lambda l, lens: (0, 0)),
        ],
        out_specs=[
            pl.BlockSpec((bt, D_MODEL), lambda l, lens: (0, 0)),
            pl.BlockSpec((bt, 1), lambda l, lens: (0, 0)),
        ],
        scratch_shapes=[pltpu.VMEM((bt, D_MODEL), jnp.float32),
                        pltpu.VMEM((bt, 3 * D_MODEL), jnp.float32)],
    )
    out, dur = pl.pallas_call(
        kernel,
        grid_spec=gs,
        out_shape=(jax.ShapeDtypeStruct((bt, D_MODEL), jnp.float32),
                   jax.ShapeDtypeStruct((bt, 1), jnp.float32)),
        compiler_params=pltpu.CompilerParams(dimension_semantics=("arbitrary",)),
    )(src_lens, x2, enc_p["wbuf"], enc_p["vbuf"], dur_p["wbuf"], dur_p["vbuf"])
    return out, dur


def fft_decoder_call(dec_p, x2, mel_lens, batch, seq):
    bt = batch * seq
    n_layers = dec_p["wbuf"].shape[0]
    kernel = functools.partial(_decoder_stack_kernel, batch=batch, seq=seq)
    gs = pltpu.PrefetchScalarGridSpec(
        num_scalar_prefetch=1,
        grid=(n_layers,),
        in_specs=[
            pl.BlockSpec((bt, D_MODEL), lambda l, lens: (0, 0)),
            pl.BlockSpec((1, W_ROWS, W_COLS), lambda l, lens: (l, 0, 0)),
            pl.BlockSpec((1, V_ROWS, W_COLS), lambda l, lens: (l, 0, 0)),
        ],
        out_specs=[pl.BlockSpec((bt, D_MODEL), lambda l, lens: (0, 0))],
        scratch_shapes=[pltpu.VMEM((bt, D_MODEL), jnp.float32),
                        pltpu.VMEM((bt, 3 * D_MODEL), jnp.float32)],
    )
    (out,) = pl.pallas_call(
        kernel,
        grid_spec=gs,
        out_shape=(jax.ShapeDtypeStruct((bt, D_MODEL), jnp.float32),),
        compiler_params=pltpu.CompilerParams(dimension_semantics=("arbitrary",)),
    )(mel_lens, x2, dec_p["wbuf"], dec_p["vbuf"])
    return out


# =============================== mel_linear + PostNet kernel ===============================


def _mel_postnet_kernel(dec_ref, melw_ref, melb_ref, pnw_ref, pnb_ref,
                        mel_ref, post_ref, pack, *, batch, seq):
    f32 = jnp.float32
    c = MM_DTYPE
    bt = batch * seq

    row, pos = _build_pos(batch, seq)
    masks = [(pos >= 2).astype(f32), (pos >= 1).astype(f32), None,
             (pos <= seq - 2).astype(f32), (pos <= seq - 3).astype(f32)]
    shifts = [2, 1, 0, bt - 1, bt - 2]       # row t reads t-2, t-1, t, t+1, t+2

    dec = dec_ref[...]
    mel = jnp.dot(dec.astype(c), melw_ref[...].astype(c),
                  preferred_element_type=f32) + melb_ref[...]
    mel_ref[...] = mel

    def conv5(inp, j, cin, cout):
        for k in range(PN_KERNEL):
            v = inp if k == 2 else pltpu.roll(inp, shifts[k], axis=0) * masks[k]
            pack[:, k * cin:(k + 1) * cin] = v
        w = pnw_ref[j, 0:PN_KERNEL * cin, 0:cout]
        b = pnb_ref[j:j + 1, 0:cout]
        return jnp.dot(pack[:, 0:PN_KERNEL * cin].astype(c), w.astype(c),
                       preferred_element_type=f32) + b

    x = jnp.tanh(conv5(mel, 0, N_MEL, PN_DIM))
    x = jnp.tanh(conv5(x, 1, PN_DIM, PN_DIM))
    x = jnp.tanh(conv5(x, 2, PN_DIM, PN_DIM))
    x = jnp.tanh(conv5(x, 3, PN_DIM, PN_DIM))
    x = conv5(x, 4, PN_DIM, N_MEL)
    post_ref[...] = x + mel


def mel_and_postnet(params, dec2, batch, seq):
    bt = batch * seq
    kernel = functools.partial(_mel_postnet_kernel, batch=batch, seq=seq)
    args = (dec2, params["mel_w"], params["mel_b"], params["pn_w"], params["pn_b"])
    mel2, post2 = pl.pallas_call(
        kernel,
        grid=(1,),
        in_specs=[_full_spec(a.shape) for a in args],
        out_specs=(_full_spec((bt, N_MEL)), _full_spec((bt, N_MEL))),
        out_shape=(jax.ShapeDtypeStruct((bt, N_MEL), jnp.float32),
                   jax.ShapeDtypeStruct((bt, N_MEL), jnp.float32)),
        scratch_shapes=[pltpu.VMEM((bt, PN_KERNEL * PN_DIM), jnp.float32)],
    )(*args)
    return mel2.reshape(batch, seq, N_MEL), post2.reshape(batch, seq, N_MEL)


# =============================== plain-JAX pieces ===============================
# TODO(synk): embedding gather, length regulation and RNG reparameterization have no clean
# Pallas equivalent; they stay in plain JAX and are fused by XLA into the same program.


def vae_forward(vae_p, mean_mels, text_output3, key):
    b, t, _ = text_output3.shape
    pooled = jnp.mean(text_output3, axis=1)                    # (B, D)
    xin = jnp.concatenate([mean_mels, pooled], axis=-1)        # (B, N_MEL + D)
    h = jax.nn.relu(xin @ vae_p["w_enc"] + vae_p["b_enc"])
    mu = h @ vae_p["w_mu"] + vae_p["b_mu"]
    logvar = h @ vae_p["w_lv"] + vae_p["b_lv"]
    eps = jax.random.normal(key, mu.shape, dtype=jnp.float32)
    z = mu + jnp.exp(0.5 * logvar) * eps
    emb = z @ vae_p["w_out"] + vae_p["b_out"]
    return jnp.broadcast_to(emb[:, None, :], (b, t, D_MODEL)), mu, logvar


def vae_inference(vae_p, b, t):
    mu = jnp.zeros((b, VAE_LATENT), jnp.float32)
    logvar = jnp.zeros((b, VAE_LATENT), jnp.float32)
    emb = jnp.broadcast_to(vae_p["b_out"], (b, D_MODEL))       # z = 0 -> emb = b_out
    return jnp.broadcast_to(emb[:, None, :], (b, t, D_MODEL)), mu, logvar


def length_regulate(x, durations, max_len):
    """Repeat each token by its duration, pad/truncate to max_len (plain JAX gather)."""
    b, t, _ = x.shape
    cum = jnp.cumsum(durations, axis=1)                        # (B, T)
    mel_len = cum[:, -1]
    t_idx = jnp.arange(max_len)[None, :]
    tok = jnp.sum(t_idx[:, :, None] >= cum[:, None, :], axis=-1)
    tok = jnp.clip(tok, 0, t - 1)
    out = jnp.take_along_axis(x, tok[:, :, None], axis=1)
    valid = t_idx < mel_len[:, None]
    return jnp.where(valid[:, :, None], out, 0.0), mel_len


# =============================== forward ===============================


def fastspeech2_forward(params, speakers, texts, src_lens, max_src_len,
                        mels=None, mel_lens=None, max_mel_len=None,
                        d_targets=None, mean_mels=None, d_control=1.0, vae_key=None):
    batch, t_src = texts.shape
    src_masks = get_mask_from_lengths(src_lens, max_src_len)
    mel_masks = get_mask_from_lengths(mel_lens, max_mel_len) if mel_lens is not None else None

    # ---- encoder stack + duration predictor: one fused pallas_call ----
    enc_p = params["encoder"]
    emb = jnp.take(enc_p["word_emb"], texts, axis=0)           # (B, T, D)
    x2 = (emb + enc_p["pos_enc"][:t_src][None, :, :]).reshape(batch * t_src, D_MODEL)
    enc2, logd2 = fft_encoder_call(enc_p, params["dur"], x2,
                                   src_lens.astype(jnp.int32), batch, t_src)
    output = enc2.reshape(batch, t_src, D_MODEL)
    log_d_predictions = logd2.reshape(batch, t_src)
    # speaker_emb is None (multi_speaker = False): no speaker embedding added.

    # ---- VAE (plain JAX; a handful of tiny matmuls fused by XLA) ----
    if mean_mels is None:
        vae_embedding, mu, logvar = vae_inference(params["vae"], batch, t_src)
    else:
        vae_embedding, mu, logvar = vae_forward(params["vae"], mean_mels, output, vae_key)

    # ---- length regulation (variance adaptor) ----
    if d_targets is not None:
        d_rounded = d_targets
        x_exp, mel_len_pred = length_regulate(output, d_targets, max_mel_len)
        vae_exp, _ = length_regulate(vae_embedding, d_targets, max_mel_len)
        dec_lens = mel_lens if mel_lens is not None else mel_len_pred
        mel_masks_out = (mel_masks if mel_masks is not None
                         else get_mask_from_lengths(mel_len_pred, max_mel_len))
        mel_lens_out = mel_len_pred
    else:
        d_rounded = jnp.clip(jnp.round((jnp.exp(log_d_predictions) - 1.0) * d_control),
                             0.0).astype(jnp.int32)
        d_rounded = jnp.where(src_masks, 0, d_rounded)
        x_exp, mel_len_pred = length_regulate(output, d_rounded, max_mel_len)
        vae_exp, _ = length_regulate(vae_embedding, d_rounded, max_mel_len)
        dec_lens = mel_len_pred
        mel_masks_out = get_mask_from_lengths(mel_len_pred, max_mel_len)
        mel_lens_out = mel_len_pred

    # ---- decoder stack: one fused pallas_call ----
    dec_p = params["decoder"]
    dec_in = x_exp + vae_exp + dec_p["pos_enc"][:max_mel_len][None, :, :]
    dec2 = fft_decoder_call(dec_p, dec_in.reshape(batch * max_mel_len, D_MODEL),
                            dec_lens.astype(jnp.int32), batch, max_mel_len)

    # ---- mel_linear + PostNet + residual: one fused pallas_call ----
    mel_out, postnet_output = mel_and_postnet(params, dec2, batch, max_mel_len)

    return (mel_out, mu, logvar, postnet_output, log_d_predictions, d_rounded,
            src_masks, mel_masks_out, src_lens, mel_lens_out)


# =============================== parameter init / packing ===============================


def init_params(key):
    keys = iter(jax.random.split(key, 64))

    def w(shape, scale=0.05):
        return (scale * jax.random.normal(next(keys), shape)).astype(jnp.float32)

    def zeros(shape):
        return jnp.zeros(shape, jnp.float32)

    def ones(shape):
        return jnp.ones(shape, jnp.float32)

    def attn_p():
        return dict(wq=w((D_MODEL, D_MODEL)), bq=zeros((D_MODEL,)),
                    wk=w((D_MODEL, D_MODEL)), bk=zeros((D_MODEL,)),
                    wv=w((D_MODEL, D_MODEL)), bv=zeros((D_MODEL,)),
                    wo=w((D_MODEL, D_MODEL)), bo=zeros((D_MODEL,)),
                    ln_g=ones((D_MODEL,)), ln_b=zeros((D_MODEL,)))

    def ffn_p():
        return dict(w1=w((D_FF, D_MODEL, FFT_KERNEL)), b1=zeros((D_FF,)),
                    w2=w((D_MODEL, D_FF, 1)), b2=zeros((D_MODEL,)),
                    ln_g=ones((D_MODEL,)), ln_b=zeros((D_MODEL,)))

    def fft_p():
        return dict(attn=attn_p(), ffn=ffn_p())

    word_emb = w((VOCAB, D_MODEL))
    word_emb = word_emb.at[0].set(0.0)  # padding_idx = 0

    pn_in = [N_MEL] + [PN_DIM] * 4
    pn_out = [PN_DIM] * 4 + [N_MEL]
    pn_convs = [dict(w=w((co, ci, PN_KERNEL)), b=zeros((co,)),
                     bn_g=ones((co,)), bn_b=zeros((co,)),
                     bn_mean=zeros((co,)), bn_var=ones((co,)))
                for ci, co in zip(pn_in, pn_out)]

    return dict(
        encoder=dict(word_emb=word_emb,
                     pos_enc=sinusoid_table(MAX_SEQ_LEN, D_MODEL),
                     layers=[fft_p() for _ in range(N_ENC_LAYERS)]),
        decoder=dict(pos_enc=sinusoid_table(MAX_SEQ_LEN, D_MODEL),
                     layers=[fft_p() for _ in range(N_DEC_LAYERS)]),
        va=dict(dur=dict(w1=w((DUR_FILTER, D_MODEL, DUR_KERNEL)), b1=zeros((DUR_FILTER,)),
                         ln1_g=ones((DUR_FILTER,)), ln1_b=zeros((DUR_FILTER,)),
                         w2=w((DUR_FILTER, DUR_FILTER, DUR_KERNEL)), b2=zeros((DUR_FILTER,)),
                         ln2_g=ones((DUR_FILTER,)), ln2_b=zeros((DUR_FILTER,)),
                         wout=w((DUR_FILTER, 1)), bout=zeros((1,)))),
        vae=dict(w_enc=w((N_MEL + D_MODEL, VAE_HIDDEN)), b_enc=zeros((VAE_HIDDEN,)),
                 w_mu=w((VAE_HIDDEN, VAE_LATENT)), b_mu=zeros((VAE_LATENT,)),
                 w_lv=w((VAE_HIDDEN, VAE_LATENT)), b_lv=zeros((VAE_LATENT,)),
                 w_out=w((VAE_LATENT, D_MODEL)), b_out=zeros((D_MODEL,))),
        mel_w=w((D_MODEL, N_MEL)), mel_b=zeros((N_MEL,)),
        postnet=dict(convs=pn_convs),
    )


def _pack_fft_layer(lp):
    """Pack one FFT layer into a (224,96) matrix slab and an (8,96) vector slab."""
    a, f = lp["attn"], lp["ffn"]
    d = D_MODEL
    w_slab = jnp.zeros((W_ROWS, W_COLS), jnp.float32)
    w_slab = w_slab.at[0:d, :].set(jnp.concatenate([a["wq"], a["wk"], a["wv"]], axis=1))
    w_slab = w_slab.at[_ROW_WO:_ROW_WO + d, 0:d].set(a["wo"])
    w1p = jnp.concatenate([f["w1"][:, :, k].T for k in range(FFT_KERNEL)], axis=0)   # (96, 64)
    w_slab = w_slab.at[_ROW_W1:_ROW_W1 + FFT_KERNEL * d, 0:D_FF].set(w1p)
    w_slab = w_slab.at[_ROW_W2:_ROW_W2 + D_FF, 0:d].set(f["w2"][:, :, 0].T)

    v_slab = jnp.zeros((V_ROWS, W_COLS), jnp.float32)
    v_slab = v_slab.at[0, :].set(jnp.concatenate([a["bq"], a["bk"], a["bv"]]))
    v_slab = v_slab.at[1, 0:d].set(a["bo"])
    v_slab = v_slab.at[2, 0:d].set(a["ln_g"])
    v_slab = v_slab.at[3, 0:d].set(a["ln_b"])
    v_slab = v_slab.at[4, 0:D_FF].set(f["b1"])
    v_slab = v_slab.at[5, 0:d].set(f["b2"])
    v_slab = v_slab.at[6, 0:d].set(f["ln_g"])
    v_slab = v_slab.at[7, 0:d].set(f["ln_b"])
    return w_slab, v_slab


def _pack_fft_stack(layers):
    packed = [_pack_fft_layer(lp) for lp in layers]
    wbuf = jnp.stack([p[0] for p in packed], axis=0).astype(MM_DTYPE)   # (L, 224, 96)
    vbuf = jnp.stack([p[1] for p in packed], axis=0)                    # (L, 8, 96) f32
    return dict(wbuf=wbuf, vbuf=vbuf)


def _pack_duration(dp):
    f = DUR_FILTER
    w1p = jnp.concatenate([dp["w1"][:, :, k].T for k in range(DUR_KERNEL)], axis=0)  # (96, 32)
    w2p = jnp.concatenate([dp["w2"][:, :, k].T for k in range(DUR_KERNEL)], axis=0)  # (96, 32)
    wbuf = jnp.concatenate([w1p, w2p], axis=0).astype(MM_DTYPE)                      # (192, 32)
    v_slab = jnp.zeros((8, f), jnp.float32)
    v_slab = v_slab.at[0].set(dp["b1"])
    v_slab = v_slab.at[1].set(dp["ln1_g"])
    v_slab = v_slab.at[2].set(dp["ln1_b"])
    v_slab = v_slab.at[3].set(dp["b2"])
    v_slab = v_slab.at[4].set(dp["ln2_g"])
    v_slab = v_slab.at[5].set(dp["ln2_b"])
    v_slab = v_slab.at[6].set(dp["wout"][:, 0])
    v_slab = v_slab.at[7, 0].set(dp["bout"][0])
    return dict(wbuf=wbuf, vbuf=v_slab)


def _pack_postnet(pn):
    n = len(pn["convs"])
    w_all = jnp.zeros((n, PN_KERNEL * PN_DIM, PN_DIM), jnp.float32)
    b_all = jnp.zeros((n, PN_DIM), jnp.float32)
    for j, cp in enumerate(pn["convs"]):
        scale = cp["bn_g"] * lax.rsqrt(cp["bn_var"] + 1e-5)              # fold eval BatchNorm
        wf = cp["w"] * scale[:, None, None]                               # (Cout, Cin, K)
        bf = (cp["b"] - cp["bn_mean"]) * scale + cp["bn_b"]
        cin = wf.shape[1]
        cout = wf.shape[0]
        wp = jnp.concatenate([wf[:, :, k].T for k in range(PN_KERNEL)], axis=0)  # (K*Cin, Cout)
        w_all = w_all.at[j, 0:PN_KERNEL * cin, 0:cout].set(wp)
        b_all = b_all.at[j, 0:cout].set(bf)
    return w_all.astype(MM_DTYPE), b_all


def prepare_params(raw):
    pn_w, pn_b = _pack_postnet(raw["postnet"])
    return dict(
        encoder=dict(word_emb=raw["encoder"]["word_emb"],
                     pos_enc=raw["encoder"]["pos_enc"],
                     **_pack_fft_stack(raw["encoder"]["layers"])),
        decoder=dict(pos_enc=raw["decoder"]["pos_enc"],
                     **_pack_fft_stack(raw["decoder"]["layers"])),
        dur=_pack_duration(raw["va"]["dur"]),
        vae=dict(w_enc=raw["vae"]["w_enc"], b_enc=raw["vae"]["b_enc"].reshape(1, -1),
                 w_mu=raw["vae"]["w_mu"], b_mu=raw["vae"]["b_mu"].reshape(1, -1),
                 w_lv=raw["vae"]["w_lv"], b_lv=raw["vae"]["b_lv"].reshape(1, -1),
                 w_out=raw["vae"]["w_out"], b_out=raw["vae"]["b_out"].reshape(1, -1)),
        mel_w=raw["mel_w"].astype(MM_DTYPE), mel_b=raw["mel_b"].reshape(1, -1),
        pn_w=pn_w, pn_b=pn_b,
    )


# =============================== main ===============================

if __name__ == "__main__":
    key = jax.random.PRNGKey(0)
    pkey, tkey, mkey, vkey = jax.random.split(key, 4)

    params = prepare_params(init_params(pkey))

    B, T_SRC = 2, 8
    MAX_MEL_LEN = 24
    src_lens = jnp.array([8, 6], dtype=jnp.int32)

    valid = jnp.arange(T_SRC)[None, :] < src_lens[:, None]
    texts = jax.random.randint(tkey, (B, T_SRC), 1, VOCAB)
    texts = jnp.where(valid, texts, 0).astype(jnp.int32)

    d_targets = jnp.where(valid, 3, 0).astype(jnp.int32)
    mel_lens = jnp.sum(d_targets, axis=1).astype(jnp.int32)      # [24, 18]
    mean_mels = jax.random.normal(mkey, (B, N_MEL), dtype=jnp.float32)
    speakers = jnp.zeros((B,), jnp.int32)

    fwd = jax.jit(fastspeech2_forward, static_argnames=("max_src_len", "max_mel_len"))

    outs = fwd(params, speakers, texts, src_lens, max_src_len=T_SRC,
               mel_lens=mel_lens, max_mel_len=MAX_MEL_LEN,
               d_targets=d_targets, mean_mels=mean_mels, d_control=1.0, vae_key=vkey)

    jax.block_until_ready(outs)
    print("KERNEL_OK")
</pallas_src>

<mosaic_0001>
module attributes {stable_mosaic.version = 11 : i64} {
  func.func @_encoder_stack_kernel(%arg0: i32, %arg1: memref<2xi32, #tpu.memory_space<smem>>, %arg2: memref<16x32xf32, #tpu.memory_space<vmem>>, %arg3: memref<1x224x96xbf16, #tpu.memory_space<vmem>>, %arg4: memref<1x8x96xf32, #tpu.memory_space<vmem>>, %arg5: memref<192x32xbf16, #tpu.memory_space<vmem>>, %arg6: memref<8x32xf32, #tpu.memory_space<vmem>>, %arg7: memref<16x32xf32, #tpu.memory_space<vmem>>, %arg8: memref<16x1xf32, #tpu.memory_space<vmem>>, %arg9: memref<16x32xf32, #tpu.memory_space<vmem>>, %arg10: memref<16x96xf32, #tpu.memory_space<vmem>>) attributes {dimension_semantics = [#tpu.dimension_semantics<arbitrary>], iteration_bounds = array<i64: 2>, scalar_prefetch = 1 : i64, scratch_operands = 2 : i64, tpu.core_type = #tpu.core_type<tc>, window_params = [{pipeline_mode = #tpu.pipeline_mode<synchronous>, transform_indices = @transform_0, window_bounds = array<i64: 16, 32>}, {transform_indices = @transform_1, window_bounds = array<i64: 1, 224, 96>}, {transform_indices = @transform_2, window_bounds = array<i64: 1, 8, 96>}, {pipeline_mode = #tpu.pipeline_mode<synchronous>, transform_indices = @transform_3, window_bounds = array<i64: 192, 32>}, {pipeline_mode = #tpu.pipeline_mode<synchronous>, transform_indices = @transform_4, window_bounds = array<i64: 8, 32>}, {pipeline_mode = #tpu.pipeline_mode<synchronous>, transform_indices = @transform_5, window_bounds = array<i64: 16, 32>}, {pipeline_mode = #tpu.pipeline_mode<synchronous>, transform_indices = @transform_6, window_bounds = array<i64: 16, 1>}]} {
    %c0_i32 = arith.constant 0 : i32
    %0 = arith.cmpi eq, %arg0, %c0_i32 : i32
    %1 = arith.extui %0 : i1 to i32
    %c0_i32_0 = arith.constant 0 : i32
    %2 = arith.cmpi ne, %1, %c0_i32_0 : i32
    scf.if %2 {
      %c0_90 = arith.constant 0 : index
      %c0_91 = arith.constant 0 : index
      %225 = vector.load %arg2[%c0_90, %c0_91] : memref<16x32xf32, #tpu.memory_space<vmem>>, vector<16x32xf32>
      %c0_92 = arith.constant 0 : index
      %c0_93 = arith.constant 0 : index
      %226 = vector.load %arg9[%c0_92, %c0_93] : memref<16x32xf32, #tpu.memory_space<vmem>>, vector<16x32xf32>
      tpu.vector_store %arg9[%c0_92, %c0_93], %225 {strides = array<i32>} : memref<16x32xf32, #tpu.memory_space<vmem>>, vector<16x32xf32>,
    } else {
    }
    %3 = tpu.iota {dimensions = array<i32: 0>} : vector<16x1xi32>
    %c8_i32 = arith.constant 8 : i32
    %4 = vector.broadcast %c8_i32 : i32 to vector<16x1xi32>
    %5 = arith.cmpi sge, %3, %4 : vector<16x1xi32>
    %c8_i32_1 = arith.constant 8 : i32
    %6 = vector.broadcast %c8_i32_1 : i32 to vector<16x1xi32>
    %7 = arith.subi %3, %6 : vector<16x1xi32>
    %8 = arith.select %5, %7, %3 : vector<16x1xi1>, vector<16x1xi32>
    %c0_i32_2 = arith.constant 0 : i32
    %9 = vector.broadcast %c0_i32_2 : i32 to vector<16x1xi32>
    %10 = arith.cmpi sge, %3, %9 : vector<16x1xi32>
    %c8_i32_3 = arith.constant 8 : i32
    %11 = vector.broadcast %c8_i32_3 : i32 to vector<16x1xi32>
    %12 = arith.cmpi slt, %3, %11 : vector<16x1xi32>
    %13 = arith.andi %10, %12 : vector<16x1xi1>
    %c0 = arith.constant 0 : index
    %14 = memref.load %arg1[%c0] : memref<2xi32, #tpu.memory_space<smem>>
    %15 = vector.broadcast %14 : i32 to vector<16x1xi32>
    %16 = arith.cmpi slt, %8, %15 : vector<16x1xi32>
    %17 = arith.andi %13, %16 : vector<16x1xi1>
    %c8_i32_4 = arith.constant 8 : i32
    %18 = vector.broadcast %c8_i32_4 : i32 to vector<16x1xi32>
    %19 = arith.cmpi sge, %3, %18 : vector<16x1xi32>
    %c16_i32 = arith.constant 16 : i32
    %20 = vector.broadcast %c16_i32 : i32 to vector<16x1xi32>
    %21 = arith.cmpi slt, %3, %20 : vector<16x1xi32>
    %22 = arith.andi %19, %21 : vector<16x1xi1>
    %c1 = arith.constant 1 : index
    %23 = memref.load %arg1[%c1] : memref<2xi32, #tpu.memory_space<smem>>
    %24 = vector.broadcast %23 : i32 to vector<16x1xi32>
    %25 = arith.cmpi slt, %8, %24 : vector<16x1xi32>
    %26 = arith.andi %22, %25 : vector<16x1xi1>
    %27 = arith.ori %17, %26 : vector<16x1xi1>
    %28 = arith.extui %27 : vector<16x1xi1> to vector<16x1xi32>
    %29 = arith.sitofp %28 : vector<16x1xi32> to vector<16x1xf32>
    %c1_i32 = arith.constant 1 : i32
    %30 = vector.broadcast %c1_i32 : i32 to vector<16x1xi32>
    %31 = arith.cmpi sge, %8, %30 : vector<16x1xi32>
    %32 = arith.extui %31 : vector<16x1xi1> to vector<16x1xi32>
    %33 = arith.sitofp %32 : vector<16x1xi32> to vector<16x1xf32>
    %c6_i32 = arith.constant 6 : i32
    %34 = vector.broadcast %c6_i32 : i32 to vector<16x1xi32>
    %35 = arith.cmpi sle, %8, %34 : vector<16x1xi32>
    %36 = arith.extui %35 : vector<16x1xi1> to vector<16x1xi32>
    %37 = arith.sitofp %36 : vector<16x1xi32> to vector<16x1xf32>
    %38 = tpu.iota {dimensions = array<i32: 0>} : vector<16x16xi32>
    %39 = tpu.iota {dimensions = array<i32: 1>} : vector<16x16xi32>
    %c0_i32_5 = arith.constant 0 : i32
    %40 = vector.broadcast %c0_i32_5 : i32 to vector<16x16xi32>
    %41 = arith.cmpi sge, %38, %40 : vector<16x16xi32>
    %c8_i32_6 = arith.constant 8 : i32
    %42 = vector.broadcast %c8_i32_6 : i32 to vector<16x16xi32>
    %43 = arith.cmpi slt, %38, %42 : vector<16x16xi32>
    %44 = arith.andi %41, %43 : vector<16x16xi1>
    %c0_i32_7 = arith.constant 0 : i32
    %45 = vector.broadcast %c0_i32_7 : i32 to vector<16x16xi32>
    %46 = arith.cmpi sge, %39, %45 : vector<16x16xi32>
    %c0_8 = arith.constant 0 : index
    %47 = memref.load %arg1[%c0_8] : memref<2xi32, #tpu.memory_space<smem>>
    %c0_i32_9 = arith.constant 0 : i32
    %48 = arith.addi %c0_i32_9, %47 : i32
    %49 = vector.broadcast %48 : i32 to vector<16x16xi32>
    %50 = arith.cmpi slt, %39, %49 : vector<16x16xi32>
    %51 = arith.andi %46, %50 : vector<16x16xi1>
    %52 = arith.andi %44, %51 : vector<16x16xi1>
    %c8_i32_10 = arith.constant 8 : i32
    %53 = vector.broadcast %c8_i32_10 : i32 to vector<16x16xi32>
    %54 = arith.cmpi sge, %38, %53 : vector<16x16xi32>
    %c16_i32_11 = arith.constant 16 : i32
    %55 = vector.broadcast %c16_i32_11 : i32 to vector<16x16xi32>
    %56 = arith.cmpi slt, %38, %55 : vector<16x16xi32>
    %57 = arith.andi %54, %56 : vector<16x16xi1>
    %c8_i32_12 = arith.constant 8 : i32
    %58 = vector.broadcast %c8_i32_12 : i32 to vector<16x16xi32>
    %59 = arith.cmpi sge, %39, %58 : vector<16x16xi32>
    %c1_13 = arith.constant 1 : index
    %60 = memref.load %arg1[%c1_13] : memref<2xi32, #tpu.memory_space<smem>>
    %c8_i32_14 = arith.constant 8 : i32
    %61 = arith.addi %c8_i32_14, %60 : i32
    %62 = vector.broadcast %61 : i32 to vector<16x16xi32>
    %63 = arith.cmpi slt, %39, %62 : vector<16x16xi32>
    %64 = arith.andi %59, %63 : vector<16x16xi1>
    %65 = arith.andi %57, %64 : vector<16x16xi1>
    %66 = arith.ori %52, %65 : vector<16x16xi1>
    %cst = arith.constant 0.000000e+00 : f32
    %cst_15 = arith.constant -1.000000e+09 : f32
    %67 = vector.broadcast %cst : f32 to vector<16x16xf32>
    %68 = vector.broadcast %cst_15 : f32 to vector<16x16xf32>
    %69 = arith.select %66, %67, %68 : vector<16x16xi1>, vector<16x16xf32>
    %c0_16 = arith.constant 0 : index
    %c0_17 = arith.constant 0 : index
    %70 = vector.load %arg9[%c0_16, %c0_17] : memref<16x32xf32, #tpu.memory_space<vmem>>, vector<16x32xf32>
    %c0_18 = arith.constant 0 : index
    %c0_19 = arith.constant 0 : index
    %c0_20 = arith.constant 0 : index
    %71 = vector.load %arg3[%c0_18, %c0_19, %c0_20] : memref<1x224x96xbf16, #tpu.memory_space<vmem>>, vector<1x32x96xbf16>
    %72 = vector.shape_cast %71 : vector<1x32x96xbf16> to vector<32x96xbf16>
    %c0_21 = arith.constant 0 : index
    %c32 = arith.constant 32 : index
    %c0_22 = arith.constant 0 : index
    %73 = vector.load %arg3[%c0_21, %c32, %c0_22] : memref<1x224x96xbf16, #tpu.memory_space<vmem>>, vector<1x32x32xbf16>
    %74 = vector.shape_cast %73 : vector<1x32x32xbf16> to vector<32x32xbf16>
    %c0_23 = arith.constant 0 : index
    %c64 = arith.constant 64 : index
    %c0_24 = arith.constant 0 : index
    %75 = vector.load %arg3[%c0_23, %c64, %c0_24] : memref<1x224x96xbf16, #tpu.memory_space<vmem>>, vector<1x96x64xbf16>
    %76 = vector.shape_cast %75 : vector<1x96x64xbf16> to vector<96x64xbf16>
    %c0_25 = arith.constant 0 : index
    %c160 = arith.constant 160 : index
    %c0_26 = arith.constant 0 : index
    %77 = vector.load %arg3[%c0_25, %c160, %c0_26] : memref<1x224x96xbf16, #tpu.memory_space<vmem>>, vector<1x64x32xbf16>
    %78 = vector.shape_cast %77 : vector<1x64x32xbf16> to vector<64x32xbf16>
    %c0_27 = arith.constant 0 : index
    %c0_28 = arith.constant 0 : index
    %c0_29 = arith.constant 0 : index
    %79 = vector.load %arg4[%c0_27, %c0_28, %c0_29] : memref<1x8x96xf32, #tpu.memory_space<vmem>>, vector<1x1x96xf32>
    %80 = vector.shape_cast %79 : vector<1x1x96xf32> to vector<1x96xf32>
    %c0_30 = arith.constant 0 : index
    %c1_31 = arith.constant 1 : index
    %c0_32 = arith.constant 0 : index
    %81 = vector.load %arg4[%c0_30, %c1_31, %c0_32] : memref<1x8x96xf32, #tpu.memory_space<vmem>>, vector<1x1x32xf32>
    %82 = vector.shape_cast %81 : vector<1x1x32xf32> to vector<1x32xf32>
    %c0_33 = arith.constant 0 : index
    %c2 = arith.constant 2 : index
    %c0_34 = arith.constant 0 : index
    %83 = vector.load %arg4[%c0_33, %c2, %c0_34] : memref<1x8x96xf32, #tpu.memory_space<vmem>>, vector<1x1x32xf32>
    %84 = vector.shape_cast %83 : vector<1x1x32xf32> to vector<1x32xf32>
    %c0_35 = arith.constant 0 : index
    %c3 = arith.constant 3 : index
    %c0_36 = arith.constant 0 : index
    %85 = vector.load %arg4[%c0_35, %c3, %c0_36] : memref<1x8x96xf32, #tpu.memory_space<vmem>>, vector<1x1x32xf32>
    %86 = vector.shape_cast %85 : vector<1x1x32xf32> to vector<1x32xf32>
    %c0_37 = arith.constant 0 : index
    %c4 = arith.constant 4 : index
    %c0_38 = arith.constant 0 : index
    %87 = vector.load %arg4[%c0_37, %c4, %c0_38] : memref<1x8x96xf32, #tpu.memory_space<vmem>>, vector<1x1x64xf32>
    %88 = vector.shape_cast %87 : vector<1x1x64xf32> to vector<1x64xf32>
    %c0_39 = arith.constant 0 : index
    %c5 = arith.constant 5 : index
    %c0_40 = arith.constant 0 : index
    %89 = vector.load %arg4[%c0_39, %c5, %c0_40] : memref<1x8x96xf32, #tpu.memory_space<vmem>>, vector<1x1x32xf32>
    %90 = vector.shape_cast %89 : vector<1x1x32xf32> to vector<1x32xf32>
    %c0_41 = arith.constant 0 : index
    %c6 = arith.constant 6 : index
    %c0_42 = arith.constant 0 : index
    %91 = vector.load %arg4[%c0_41, %c6, %c0_42] : memref<1x8x96xf32, #tpu.memory_space<vmem>>, vector<1x1x32xf32>
    %92 = vector.shape_cast %91 : vector<1x1x32xf32> to vector<1x32xf32>
    %c0_43 = arith.constant 0 : index
    %c7 = arith.constant 7 : index
    %c0_44 = arith.constant 0 : index
    %93 = vector.load %arg4[%c0_43, %c7, %c0_44] : memref<1x8x96xf32, #tpu.memory_space<vmem>>, vector<1x1x32xf32>
    %94 = vector.shape_cast %93 : vector<1x1x32xf32> to vector<1x32xf32>
    %95 = arith.truncf %70 : vector<16x32xf32> to vector<16x32xbf16>
    %cst_45 = arith.constant dense<0.000000e+00> : vector<16x96xf32>
    %96 = tpu.matmul %95, %72, %cst_45 {dimension_numbers = #tpu.dot_dimension_numbers<[1], [0], [0], [1], [0, 0, 1, 1], [], []>} : vector<16x32xbf16>, vector<32x96xbf16>, vector<16x96xf32> -> vector<16x96xf32>
    %97 = vector.broadcast %80 : vector<1x96xf32> to vector<16x96xf32>
    %98 = arith.addf %96, %97 : vector<16x96xf32>
    %99 = vector.extract_strided_slice %98 {offsets = [0, 0], sizes = [16, 16], strides = [1, 1]} : vector<16x96xf32> to vector<16x16xf32>
    %100 = vector.extract_strided_slice %98 {offsets = [0, 32], sizes = [16, 16], strides = [1, 1]} : vector<16x96xf32> to vector<16x16xf32>
    %101 = vector.extract_strided_slice %98 {offsets = [0, 64], sizes = [16, 16], strides = [1, 1]} : vector<16x96xf32> to vector<16x16xf32>
    %102 = arith.truncf %99 : vector<16x16xf32> to vector<16x16xbf16>
    %103 = arith.truncf %100 : vector<16x16xf32> to vector<16x16xbf16>
    %cst_46 = arith.constant dense<0.000000e+00> : vector<16x16xf32>
    %104 = tpu.matmul %102, %103, %cst_46 {dimension_numbers = #tpu.dot_dimension_numbers<[1], [1], [0], [0], [0, 0, 1, 0], [], []>} : vector<16x16xbf16>, vector<16x16xbf16>, vector<16x16xf32> -> vector<16x16xf32>
    %cst_47 = arith.constant 2.500000e-01 : f32
    %105 = vector.broadcast %cst_47 : f32 to vector<16x16xf32>
    %106 = arith.mulf %104, %105 : vector<16x16xf32>
    %107 = arith.addf %106, %69 : vector<16x16xf32>
    %cst_48 = arith.constant dense<0xFF800000> : vector<16xf32>
    %108 = vector.multi_reduction <maximumf>, %107, %cst_48 [1] : vector<16x16xf32> to vector<16xf32>
    %109 = vector.shape_cast %108 : vector<16xf32> to vector<16x1xf32>
    %110 = vector.broadcast %109 : vector<16x1xf32> to vector<16x16xf32>
    %111 = arith.subf %107, %110 : vector<16x16xf32>
    %112 = math.exp %111 : vector<16x16xf32>
    %cst_49 = arith.constant dense<0.000000e+00> : vector<16xf32>
    %113 = vector.multi_reduction <add>, %112, %cst_49 [1] : vector<16x16xf32> to vector<16xf32>
    %114 = vector.shape_cast %113 : vector<16xf32> to vector<16x1xf32>
    %115 = tpu.reciprocal %114 {approx = true} : vector<16x1xf32> -> vector<16x1xf32>
    %116 = vector.broadcast %115 : vector<16x1xf32> to vector<16x16xf32>
    %117 = arith.mulf %112, %116 : vector<16x16xf32>
    %118 = arith.truncf %117 : vector<16x16xf32> to vector<16x16xbf16>
    %119 = arith.truncf %101 : vector<16x16xf32> to vector<16x16xbf16>
    %cst_50 = arith.constant dense<0.000000e+00> : vector<16x16xf32>
    %120 = tpu.matmul %118, %119, %cst_50 {dimension_numbers = #tpu.dot_dimension_numbers<[1], [0], [0], [1], [0, 0, 1, 1], [], []>} : vector<16x16xbf16>, vector<16x16xbf16>, vector<16x16xf32> -> vector<16x16xf32>
    %c0_51 = arith.constant 0 : index
    %c0_52 = arith.constant 0 : index
    %121 = vector.load %arg10[%c0_51, %c0_52] : memref<16x96xf32, #tpu.memory_space<vmem>>, vector<16x16xf32>
    tpu.vector_store %arg10[%c0_51, %c0_52], %120 {strides = array<i32>} : memref<16x96xf32, #tpu.memory_space<vmem>>, vector<16x16xf32>,
    %122 = vector.extract_strided_slice %98 {offsets = [0, 16], sizes = [16, 16], strides = [1, 1]} : vector<16x96xf32> to vector<16x16xf32>
    %123 = vector.extract_strided_slice %98 {offsets = [0, 48], sizes = [16, 16], strides = [1, 1]} : vector<16x96xf32> to vector<16x16xf32>
    %124 = vector.extract_strided_slice %98 {offsets = [0, 80], sizes = [16, 16], strides = [1, 1]} : vector<16x96xf32> to vector<16x16xf32>
    %125 = arith.truncf %122 : vector<16x16xf32> to vector<16x16xbf16>
    %126 = arith.truncf %123 : vector<16x16xf32> to vector<16x16xbf16>
    %cst_53 = arith.constant dense<0.000000e+00> : vector<16x16xf32>
    %127 = tpu.matmul %125, %126, %cst_53 {dimension_numbers = #tpu.dot_dimension_numbers<[1], [1], [0], [0], [0, 0, 1, 0], [], []>} : vector<16x16xbf16>, vector<16x16xbf16>, vector<16x16xf32> -> vector<16x16xf32>
    %cst_54 = arith.constant 2.500000e-01 : f32
    %128 = vector.broadcast %cst_54 : f32 to vector<16x16xf32>
    %129 = arith.mulf %127, %128 : vector<16x16xf32>
    %130 = arith.addf %129, %69 : vector<16x16xf32>
    %cst_55 = arith.constant dense<0xFF800000> : vector<16xf32>
    %131 = vector.multi_reduction <maximumf>, %130, %cst_55 [1] : vector<16x16xf32> to vector<16xf32>
    %132 = vector.shape_cast %131 : vector<16xf32> to vector<16x1xf32>
    %133 = vector.broadcast %132 : vector<16x1xf32> to vector<16x16xf32>
    %134 = arith.subf %130, %133 : vector<16x16xf32>
    %135 = math.exp %134 : vector<16x16xf32>
    %cst_56 = arith.constant dense<0.000000e+00> : vector<16xf32>
    %136 = vector.multi_reduction <add>, %135, %cst_56 [1] : vector<16x16xf32> to vector<16xf32>
    %137 = vector.shape_cast %136 : vector<16xf32> to vector<16x1xf32>
    %138 = tpu.reciprocal %137 {approx = true} : vector<16x1xf32> -> vector<16x1xf32>
    %139 = vector.broadcast %138 : vector<16x1xf32> to vector<16x16xf32>
    %140 = arith.mulf %135, %139 : vector<16x16xf32>
    %141 = arith.truncf %140 : vector<16x16xf32> to vector<16x16xbf16>
    %142 = arith.truncf %124 : vector<16x16xf32> to vector<16x16xbf16>
    %cst_57 = arith.constant dense<0.000000e+00> : vector<16x16xf32>
    %143 = tpu.matmul %141, %142, %cst_57 {dimension_numbers = #tpu.dot_dimension_numbers<[1], [0], [0], [1], [0, 0, 1, 1], [], []>} : vector<16x16xbf16>, vector<16x16xbf16>, vector<16x16xf32> -> vector<16x16xf32>
    %c0_58 = arith.constant 0 : index
    %c16 = arith.constant 16 : index
    %144 = vector.load %arg10[%c0_58, %c16] : memref<16x96xf32, #tpu.memory_space<vmem>>, vector<16x16xf32>
    tpu.vector_store %arg10[%c0_58, %c16], %143 {strides = array<i32>} : memref<16x96xf32, #tpu.memory_space<vmem>>, vector<16x16xf32>,
    %c0_59 = arith.constant 0 : index
    %c0_60 = arith.constant 0 : index
    %145 = vector.load %arg10[%c0_59, %c0_60] : memref<16x96xf32, #tpu.memory_space<vmem>>, vector<16x32xf32>
    %146 = arith.truncf %145 : vector<16x32xf32> to vector<16x32xbf16>
    %cst_61 = arith.constant dense<0.000000e+00> : vector<16x32xf32>
    %147 = tpu.matmul %146, %74, %cst_61 {dimension_numbers = #tpu.dot_dimension_numbers<[1], [0], [0], [1], [0, 0, 1, 1], [], []>} : vector<16x32xbf16>, vector<32x32xbf16>, vector<16x32xf32> -> vector<16x32xf32>
    %148 = vector.broadcast %82 : vector<1x32xf32> to vector<16x32xf32>
    %149 = arith.addf %147, %148 : vector<16x32xf32>
    %150 = arith.addf %149, %70 : vector<16x32xf32>
    %cst_62 = arith.constant dense<0.000000e+00> : vector<16xf32>
    %151 = vector.multi_reduction <add>, %150, %cst_62 [1] : vector<16x32xf32> to vector<16xf32>
    %152 = vector.shape_cast %151 : vector<16xf32> to vector<16x1xf32>
    %cst_63 = arith.constant 3.200000e+01 : f32
    %153 = vector.broadcast %cst_63 : f32 to vector<16x1xf32>
    %154 = arith.divf %152, %153 : vector<16x1xf32>
    %155 = vector.broadcast %154 : vector<16x1xf32> to vector<16x32xf32>
    %156 = arith.subf %150, %155 : vector<16x32xf32>
    %157 = arith.mulf %156, %156 : vector<16x32xf32>
    %cst_64 = arith.constant dense<0.000000e+00> : vector<16xf32>
    %158 = vector.multi_reduction <add>, %157, %cst_64 [1] : vector<16x32xf32> to vector<16xf32>
    %159 = vector.shape_cast %158 : vector<16xf32> to vector<16x1xf32>
    %cst_65 = arith.constant 3.200000e+01 : f32
    %160 = vector.broadcast %cst_65 : f32 to vector<16x1xf32>
    %161 = arith.divf %159, %160 : vector<16x1xf32>
    %162 = vector.broadcast %154 : vector<16x1xf32> to vector<16x32xf32>
    %163 = arith.subf %150, %162 : vector<16x32xf32>
    %cst_66 = arith.constant 9.99999974E-6 : f32
    %164 = vector.broadcast %cst_66 : f32 to vector<16x1xf32>
    %165 = arith.addf %161, %164 : vector<16x1xf32>
    %166 = math.rsqrt %165 : vector<16x1xf32>
    %167 = vector.broadcast %166 : vector<16x1xf32> to vector<16x32xf32>
    %168 = arith.mulf %163, %167 : vector<16x32xf32>
    %169 = vector.broadcast %84 : vector<1x32xf32> to vector<16x32xf32>
    %170 = arith.mulf %168, %169 : vector<16x32xf32>
    %171 = vector.broadcast %86 : vector<1x32xf32> to vector<16x32xf32>
    %172 = arith.addf %170, %171 : vector<16x32xf32>
    %173 = vector.broadcast %29 : vector<16x1xf32> to vector<16x32xf32>
    %174 = arith.mulf %172, %173 : vector<16x32xf32>
    %c1_i32_67 = arith.constant 1 : i32
    %175 = tpu.dynamic_rotate %174 by %c1_i32_67 dim 0 : vector<16x32xf32>, i32 -> vector<16x32xf32>
    %176 = vector.broadcast %33 : vector<16x1xf32> to vector<16x32xf32>
    %177 = arith.mulf %175, %176 : vector<16x32xf32>
    %c0_68 = arith.constant 0 : index
    %c0_69 = arith.constant 0 : index
    %178 = vector.load %arg10[%c0_68, %c0_69] : memref<16x96xf32, #tpu.memory_space<vmem>>, vector<16x32xf32>
    tpu.vector_store %arg10[%c0_68, %c0_69], %177 {strides = array<i32>} : memref<16x96xf32, #tpu.memory_space<vmem>>, vector<16x32xf32>,
    %c0_70 = arith.constant 0 : index
    %c32_71 = arith.constant 32 : index
    %179 = vector.load %arg10[%c0_70, %c32_71] : memref<16x96xf32, #tpu.memory_space<vmem>>, vector<16x32xf32>
    tpu.vector_store %arg10[%c0_70, %c32_71], %174 {strides = array<i32>} : memref<16x96xf32, #tpu.memory_space<vmem>>, vector<16x32xf32>,
    %c15_i32 = arith.constant 15 : i32
    %180 = tpu.dynamic_rotate %174 by %c15_i32 dim 0 : vector<16x32xf32>, i32 -> vector<16x32xf32>
    %181 = vector.broadcast %37 : vector<16x1xf32> to vector<16x32xf32>
    %182 = arith.mulf %180, %181 : vector<16x32xf32>
    %c0_72 = arith.constant 0 : index
    %c64_73 = arith.constant 64 : index
    %183 = vector.load %arg10[%c0_72, %c64_73] : memref<16x96xf32, #tpu.memory_space<vmem>>, vector<16x32xf32>
    tpu.vector_store %arg10[%c0_72, %c64_73], %182 {strides = array<i32>} : memref<16x96xf32, #tpu.memory_space<vmem>>, vector<16x32xf32>,
    %c0_74 = arith.constant 0 : index
    %c0_75 = arith.constant 0 : index
    %184 = vector.load %arg10[%c0_74, %c0_75] : memref<16x96xf32, #tpu.memory_space<vmem>>, vector<16x96xf32>
    %185 = arith.truncf %184 : vector<16x96xf32> to vector<16x96xbf16>
    %cst_76 = arith.constant dense<0.000000e+00> : vector<16x64xf32>
    %186 = tpu.matmul %185, %76, %cst_76 {dimension_numbers = #tpu.dot_dimension_numbers<[1], [0], [0], [1], [0, 0, 1, 1], [], []>} : vector<16x96xbf16>, vector<96x64xbf16>, vector<16x64xf32> -> vector<16x64xf32>
    %187 = vector.broadcast %88 : vector<1x64xf32> to vector<16x64xf32>
    %188 = arith.addf %186, %187 : vector<16x64xf32>
    %cst_77 = arith.constant 0.000000e+00 : f32
    %189 = vector.broadcast %cst_77 : f32 to vector<16x64xf32>
    %190 = arith.maximumf %188, %189 : vector<16x64xf32>
    %191 = arith.truncf %190 : vector<16x64xf32> to vector<16x64xbf16>
    %cst_78 = arith.constant dense<0.000000e+00> : vector<16x32xf32>
    %192 = tpu.matmul %191, %78, %cst_78 {dimension_numbers = #tpu.dot_dimension_numbers<[1], [0], [0], [1], [0, 0, 1, 1], [], []>} : vector<16x64xbf16>, vector<64x32xbf16>, vector<16x32xf32> -> vector<16x32xf32>
    %193 = vector.broadcast %90 : vector<1x32xf32> to vector<16x32xf32>
    %194 = arith.addf %192, %193 : vector<16x32xf32>
    %195 = arith.addf %194, %174 : vector<16x32xf32>
    %cst_79 = arith.constant dense<0.000000e+00> : vector<16xf32>
    %196 = vector.multi_reduction <add>, %195, %cst_79 [1] : vector<16x32xf32> to vector<16xf32>
    %197 = vector.shape_cast %196 : vector<16xf32> to vector<16x1xf32>
    %cst_80 = arith.constant 3.200000e+01 : f32
    %198 = vector.broadcast %cst_80 : f32 to vector<16x1xf32>
    %199 = arith.divf %197, %198 : vector<16x1xf32>
    %200 = vector.broadcast %199 : vector<16x1xf32> to vector<16x32xf32>
    %201 = arith.subf %195, %200 : vector<16x32xf32>
    %202 = arith.mulf %201, %201 : vector<16x32xf32>
    %cst_81 = arith.constant dense<0.000000e+00> : vector<16xf32>
    %203 = vector.multi_reduction <add>, %202, %cst_81 [1] : vector<16x32xf32> to vector<16xf32>
    %204 = vector.shape_cast %203 : vector<16xf32> to vector<16x1xf32>
    %cst_82 = arith.constant 3.200000e+01 : f32
    %205 = vector.broadcast %cst_82 : f32 to vector<16x1xf32>
    %206 = arith.divf %204, %205 : vector<16x1xf32>
    %207 = vector.broadcast %199 : vector<16x1xf32> to vector<16x32xf32>
    %208 = arith.subf %195, %207 : vector<16x32xf32>
    %cst_83 = arith.constant 9.99999974E-6 : f32
    %209 = vector.broadcast %cst_83 : f32 to vector<16x1xf32>
    %210 = arith.addf %206, %209 : vector<16x1xf32>
    %211 = math.rsqrt %210 : vector<16x1xf32>
    %212 = vector.broadcast %211 : vector<16x1xf32> to vector<16x32xf32>
    %213 = arith.mulf %208, %212 : vector<16x32xf32>
    %214 = vector.broadcast %92 : vector<1x32xf32> to vector<16x32xf32>
    %215 = arith.mulf %213, %214 : vector<16x32xf32>
    %216 = vector.broadcast %94 : vector<1x32xf32> to vector<16x32xf32>
    %217 = arith.addf %215, %216 : vector<16x32xf32>
    %218 = vector.broadcast %29 : vector<16x1xf32> to vector<16x32xf32>
    %219 = arith.mulf %217, %218 : vector<16x32xf32>
    %c0_84 = arith.constant 0 : index
    %c0_85 = arith.constant 0 : index
    %220 = vector.load %arg9[%c0_84, %c0_85] : memref<16x32xf32, #tpu.memory_space<vmem>>, vector<16x32xf32>
    tpu.vector_store %arg9[%c0_84, %c0_85], %219 {strides = array<i32>} : memref<16x32xf32, #tpu.memory_space<vmem>>, vector<16x32xf32>,
    %c0_86 = arith.constant 0 : index
    %c0_87 = arith.constant 0 : index
    %221 = vector.load %arg7[%c0_86, %c0_87] : memref<16x32xf32, #tpu.memory_space<vmem>>, vector<16x32xf32>
    tpu.vector_store %arg7[%c0_86, %c0_87], %219 {strides = array<i32>} : memref<16x32xf32, #tpu.memory_space<vmem>>, vector<16x32xf32>,
    %c1_i32_88 = arith.constant 1 : i32
    %222 = arith.cmpi eq, %arg0, %c1_i32_88 : i32
    %223 = arith.extui %222 : i1 to i32
    %c0_i32_89 = arith.constant 0 : i32
    %224 = arith.cmpi ne, %223, %c0_i32_89 : i32
    scf.if %224 {
      %c0_90 = arith.constant 0 : index
      %c0_91 = arith.constant 0 : index
      %225 = vector.load %arg6[%c0_90, %c0_91] : memref<8x32xf32, #tpu.memory_space<vmem>>, vector<1x32xf32>
      %c1_92 = arith.constant 1 : index
      %c0_93 = arith.constant 0 : index
      %226 = vector.load %arg6[%c1_92, %c0_93] : memref<8x32xf32, #tpu.memory_space<vmem>>, vector<1x32xf32>
      %c2_94 = arith.constant 2 : index
      %c0_95 = arith.constant 0 : index
      %227 = vector.load %arg6[%c2_94, %c0_95] : memref<8x32xf32, #tpu.memory_space<vmem>>, vector<1x32xf32>
      %c3_96 = arith.constant 3 : index
      %c0_97 = arith.constant 0 : index
      %228 = vector.load %arg6[%c3_96, %c0_97] : memref<8x32xf32, #tpu.memory_space<vmem>>, vector<1x32xf32>
      %c4_98 = arith.constant 4 : index
      %c0_99 = arith.constant 0 : index
      %229 = vector.load %arg6[%c4_98, %c0_99] : memref<8x32xf32, #tpu.memory_space<vmem>>, vector<1x32xf32>
      %c5_100 = arith.constant 5 : index
      %c0_101 = arith.constant 0 : index
      %230 = vector.load %arg6[%c5_100, %c0_101] : memref<8x32xf32, #tpu.memory_space<vmem>>, vector<1x32xf32>
      %c6_102 = arith.constant 6 : index
      %c0_103 = arith.constant 0 : index
      %231 = vector.load %arg6[%c6_102, %c0_103] : memref<8x32xf32, #tpu.memory_space<vmem>>, vector<1x32xf32>
      %c7_104 = arith.constant 7 : index
      %c0_105 = arith.constant 0 : index
      %232 = vector.load %arg6[%c7_104, %c0_105] : memref<8x32xf32, #tpu.memory_space<vmem>>, vector<1x1xf32>
      %c1_i32_106 = arith.constant 1 : i32
      %233 = tpu.dynamic_rotate %219 by %c1_i32_106 dim 0 : vector<16x32xf32>, i32 -> vector<16x32xf32>
      %234 = vector.broadcast %33 : vector<16x1xf32> to vector<16x32xf32>
      %235 = arith.mulf %233, %234 : vector<16x32xf32>
      %c0_107 = arith.constant 0 : index
      %c0_108 = arith.constant 0 : index
      %236 = vector.load %arg10[%c0_107, %c0_108] : memref<16x96xf32, #tpu.memory_space<vmem>>, vector<16x32xf32>
      tpu.vector_store %arg10[%c0_107, %c0_108], %235 {strides = array<i32>} : memref<16x96xf32, #tpu.memory_space<vmem>>, vector<16x32xf32>,
      %c0_109 = arith.constant 0 : index
      %c32_110 = arith.constant 32 : index
      %237 = vector.load %arg10[%c0_109, %c32_110] : memref<16x96xf32, #tpu.memory_space<vmem>>, vector<16x32xf32>
      tpu.vector_store %arg10[%c0_109, %c32_110], %219 {strides = array<i32>} : memref<16x96xf32, #tpu.memory_space<vmem>>, vector<16x32xf32>,
      %c15_i32_111 = arith.constant 15 : i32
      %238 = tpu.dynamic_rotate %219 by %c15_i32_111 dim 0 : vector<16x32xf32>, i32 -> vector<16x32xf32>
      %239 = vector.broadcast %37 : vector<16x1xf32> to vector<16x32xf32>
      %240 = arith.mulf %238, %239 : vector<16x32xf32>
      %c0_112 = arith.constant 0 : index
      %c64_113 = arith.constant 64 : index
      %241 = vector.load %arg10[%c0_112, %c64_113] : memref<16x96xf32, #tpu.memory_space<vmem>>, vector<16x32xf32>
      tpu.vector_store %arg10[%c0_112, %c64_113], %240 {strides = array<i32>} : memref<16x96xf32, #tpu.memory_space<vmem>>, vector<16x32xf32>,
      %c0_114 = arith.constant 0 : index
      %c0_115 = arith.constant 0 : index
      %242 = vector.load %arg5[%c0_114, %c0_115] : memref<192x32xbf16, #tpu.memory_space<vmem>>, vector<96x32xbf16>
      %c0_116 = arith.constant 0 : index
      %c0_117 = arith.constant 0 : index
      %243 = vector.load %arg10[%c0_116, %c0_117] : memref<16x96xf32, #tpu.memory_space<vmem>>, vector<16x96xf32>
      %244 = arith.truncf %243 : vector<16x96xf32> to vector<16x96xbf16>
      %cst_118 = arith.constant dense<0.000000e+00> : vector<16x32xf32>
      %245 = tpu.matmul %244, %242, %cst_118 {dimension_numbers = #tpu.dot_dimension_numbers<[1], [0], [0], [1], [0, 0, 1, 1], [], []>} : vector<16x96xbf16>, vector<96x32xbf16>, vector<16x32xf32> -> vector<16x32xf32>
      %246 = vector.broadcast %225 : vector<1x32xf32> to vector<16x32xf32>
      %247 = arith.addf %245, %246 : vector<16x32xf32>
      %cst_119 = arith.constant 0.000000e+00 : f32
      %248 = vector.broadcast %cst_119 : f32 to vector<16x32xf32>
      %249 = arith.maximumf %247, %248 : vector<16x32xf32>
      %cst_120 = arith.constant dense<0.000000e+00> : vector<16xf32>
      %250 = vector.multi_reduction <add>, %249, %cst_120 [1] : vector<16x32xf32> to vector<16xf32>
      %251 = vector.shape_cast %250 : vector<16xf32> to vector<16x1xf32>
      %cst_121 = arith.constant 3.200000e+01 : f32
      %252 = vector.broadcast %cst_121 : f32 to vector<16x1xf32>
      %253 = arith.divf %251, %252 : vector<16x1xf32>
      %254 = vector.broadcast %253 : vector<16x1xf32> to vector<16x32xf32>
      %255 = arith.subf %249, %254 : vector<16x32xf32>
      %256 = arith.mulf %255, %255 : vector<16x32xf32>
      %cst_122 = arith.constant dense<0.000000e+00> : vector<16xf32>
      %257 = vector.multi_reduction <add>, %256, %cst_122 [1] : vector<16x32xf32> to vector<16xf32>
      %258 = vector.shape_cast %257 : vector<16xf32> to vector<16x1xf32>
      %cst_123 = arith.constant 3.200000e+01 : f32
      %259 = vector.broadcast %cst_123 : f32 to vector<16x1xf32>
      %260 = arith.divf %258, %259 : vector<16x1xf32>
      %261 = vector.broadcast %253 : vector<16x1xf32> to vector<16x32xf32>
      %262 = arith.subf %249, %261 : vector<16x32xf32>
      %cst_124 = arith.constant 9.99999974E-6 : f32
      %263 = vector.broadcast %cst_124 : f32 to vector<16x1xf32>
      %264 = arith.addf %260, %263 : vector<16x1xf32>
      %265 = math.rsqrt %264 : vector<16x1xf32>
      %266 = vector.broadcast %265 : vector<16x1xf32> to vector<16x32xf32>
      %267 = arith.mulf %262, %266 : vector<16x32xf32>
      %268 = vector.broadcast %226 : vector<1x32xf32> to vector<16x32xf32>
      %269 = arith.mulf %267, %268 : vector<16x32xf32>
      %270 = vector.broadcast %227 : vector<1x32xf32> to vector<16x32xf32>
      %271 = arith.addf %269, %270 : vector<16x32xf32>
      %c1_i32_125 = arith.constant 1 : i32
      %272 = tpu.dynamic_rotate %271 by %c1_i32_125 dim 0 : vector<16x32xf32>, i32 -> vector<16x32xf32>
      %273 = vector.broadcast %33 : vector<16x1xf32> to vector<16x32xf32>
      %274 = arith.mulf %272, %273 : vector<16x32xf32>
      %c0_126 = arith.constant 0 : index
      %c0_127 = arith.constant 0 : index
      %275 = vector.load %arg10[%c0_126, %c0_127] : memref<16x96xf32, #tpu.memory_space<vmem>>, vector<16x32xf32>
      tpu.vector_store %arg10[%c0_126, %c0_127], %274 {strides = array<i32>} : memref<16x96xf32, #tpu.memory_space<vmem>>, vector<16x32xf32>,
      %c0_128 = arith.constant 0 : index
      %c32_129 = arith.constant 32 : index
      %276 = vector.load %arg10[%c0_128, %c32_129] : memref<16x96xf32, #tpu.memory_space<vmem>>, vector<16x32xf32>
      tpu.vector_store %arg10[%c0_128, %c32_129], %271 {strides = array<i32>} : memref<16x96xf32, #tpu.memory_space<vmem>>, vector<16x32xf32>,
      %c15_i32_130 = arith.constant 15 : i32
      %277 = tpu.dynamic_rotate %271 by %c15_i32_130 dim 0 : vector<16x32xf32>, i32 -> vector<16x32xf32>
      %278 = vector.broadcast %37 : vector<16x1xf32> to vector<16x32xf32>
      %279 = arith.mulf %277, %278 : vector<16x32xf32>
      %c0_131 = arith.constant 0 : index
      %c64_132 = arith.constant 64 : index
      %280 = vector.load %arg10[%c0_131, %c64_132] : memref<16x96xf32, #tpu.memory_space<vmem>>, vector<16x32xf32>
      tpu.vector_store %arg10[%c0_131, %c64_132], %279 {strides = array<i32>} : memref<16x96xf32, #tpu.memory_space<vmem>>, vector<16x32xf32>,
      %c96 = arith.constant 96 : index
      %c0_133 = arith.constant 0 : index
      %281 = vector.load %arg5[%c96, %c0_133] : memref<192x32xbf16, #tpu.memory_space<vmem>>, vector<96x32xbf16>
      %c0_134 = arith.constant 0 : index
      %c0_135 = arith.constant 0 : index
      %282 = vector.load %arg10[%c0_134, %c0_135] : memref<16x96xf32, #tpu.memory_space<vmem>>, vector<16x96xf32>
      %283 = arith.truncf %282 : vector<16x96xf32> to vector<16x96xbf16>
      %cst_136 = arith.constant dense<0.000000e+00> : vector<16x32xf32>
      %284 = tpu.matmul %283, %281, %cst_136 {dimension_numbers = #tpu.dot_dimension_numbers<[1], [0], [0], [1], [0, 0, 1, 1], [], []>} : vector<16x96xbf16>, vector<96x32xbf16>, vector<16x32xf32> -> vector<16x32xf32>
      %285 = vector.broadcast %228 : vector<1x32xf32> to vector<16x32xf32>
      %286 = arith.addf %284, %285 : vector<16x32xf32>
      %cst_137 = arith.constant 0.000000e+00 : f32
      %287 = vector.broadcast %cst_137 : f32 to vector<16x32xf32>
      %288 = arith.maximumf %286, %287 : vector<16x32xf32>
      %cst_138 = arith.constant dense<0.000000e+00> : vector<16xf32>
      %289 = vector.multi_reduction <add>, %288, %cst_138 [1] : vector<16x32xf32> to vector<16xf32>
      %290 = vector.shape_cast %289 : vector<16xf32> to vector<16x1xf32>
      %cst_139 = arith.constant 3.200000e+01 : f32
      %291 = vector.broadcast %cst_139 : f32 to vector<16x1xf32>
      %292 = arith.divf %290, %291 : vector<16x1xf32>
      %293 = vector.broadcast %292 : vector<16x1xf32> to vector<16x32xf32>
      %294 = arith.subf %288, %293 : vector<16x32xf32>
      %295 = arith.mulf %294, %294 : vector<16x32xf32>
      %cst_140 = arith.constant dense<0.000000e+00> : vector<16xf32>
      %296 = vector.multi_reduction <add>, %295, %cst_140 [1] : vector<16x32xf32> to vector<16xf32>
      %297 = vector.shape_cast %296 : vector<16xf32> to vector<16x1xf32>
      %cst_141 = arith.constant 3.200000e+01 : f32
      %298 = vector.broadcast %cst_141 : f32 to vector<16x1xf32>
      %299 = arith.divf %297, %298 : vector<16x1xf32>
      %300 = vector.broadcast %292 : vector<16x1xf32> to vector<16x32xf32>
      %301 = arith.subf %288, %300 : vector<16x32xf32>
      %cst_142 = arith.constant 9.99999974E-6 : f32
      %302 = vector.broadcast %cst_142 : f32 to vector<16x1xf32>
      %303 = arith.addf %299, %302 : vector<16x1xf32>
      %304 = math.rsqrt %303 : vector<16x1xf32>
      %305 = vector.broadcast %304 : vector<16x1xf32> to vector<16x32xf32>
      %306 = arith.mulf %301, %305 : vector<16x32xf32>
      %307 = vector.broadcast %229 : vector<1x32xf32> to vector<16x32xf32>
      %308 = arith.mulf %306, %307 : vector<16x32xf32>
      %309 = vector.broadcast %230 : vector<1x32xf32> to vector<16x32xf32>
      %310 = arith.addf %308, %309 : vector<16x32xf32>
      %311 = vector.broadcast %231 : vector<1x32xf32> to vector<16x32xf32>
      %312 = arith.mulf %310, %311 : vector<16x32xf32>
      %cst_143 = arith.constant dense<0.000000e+00> : vector<16xf32>
      %313 = vector.multi_reduction <add>, %312, %cst_143 [1] : vector<16x32xf32> to vector<16xf32>
      %314 = vector.shape_cast %313 : vector<16xf32> to vector<16x1xf32>
      %315 = vector.broadcast %232 : vector<1x1xf32> to vector<16x1xf32>
      %316 = arith.addf %314, %315 : vector<16x1xf32>
      %317 = arith.mulf %316, %29 : vector<16x1xf32>
      %c0_144 = arith.constant 0 : index
      %c0_145 = arith.constant 0 : index
      %318 = vector.load %arg8[%c0_144, %c0_145] : memref<16x1xf32, #tpu.memory_space<vmem>>, vector<16x1xf32>
      tpu.vector_store %arg8[%c0_144, %c0_145], %317 {strides = array<i32>} : memref<16x1xf32, #tpu.memory_space<vmem>>, vector<16x1xf32>,
    } else {
    }
    return
  }
  func.func @transform_0(%arg0: i32, %arg1: memref<2xi32, #tpu.memory_space<smem>>) -> (i32, i32) {
    %c0_i32 = arith.constant 0 : i32
    %c0_i32_0 = arith.constant 0 : i32
    %c0_i32_1 = arith.constant 0 : i32
    return %c0_i32, %c0_i32_0 : i32, i32
  }
  func.func @transform_1(%arg0: i32, %arg1: memref<2xi32, #tpu.memory_space<smem>>) -> (i32, i32, i32) {
    %c0_i32 = arith.constant 0 : i32
    %c0_i32_0 = arith.constant 0 : i32
    %c0_i32_1 = arith.constant 0 : i32
    return %arg0, %c0_i32, %c0_i32_0 : i32, i32, i32
  }
  func.func @transform_2(%arg0: i32, %arg1: memref<2xi32, #tpu.memory_space<smem>>) -> (i32, i32, i32) {
    %c0_i32 = arith.constant 0 : i32
    %c0_i32_0 = arith.constant 0 : i32
    %c0_i32_1 = arith.constant 0 : i32
    return %arg0, %c0_i32, %c0_i32_0 : i32, i32, i32
  }
  func.func @transform_3(%arg0: i32, %arg1: memref<2xi32, #tpu.memory_space<smem>>) -> (i32, i32) {
    %c0_i32 = arith.constant 0 : i32
    %c0_i32_0 = arith.constant 0 : i32
    %c0_i32_1 = arith.constant 0 : i32
    return %c0_i32, %c0_i32_0 : i32, i32
  }
  func.func @transform_4(%arg0: i32, %arg1: memref<2xi32, #tpu.memory_space<smem>>) -> (i32, i32) {
    %c0_i32 = arith.constant 0 : i32
    %c0_i32_0 = arith.constant 0 : i32
    %c0_i32_1 = arith.constant 0 : i32
    return %c0_i32, %c0_i32_0 : i32, i32
  }
  func.func @transform_5(%arg0: i32, %arg1: memref<2xi32, #tpu.memory_space<smem>>) -> (i32, i32) {
    %c0_i32 = arith.constant 0 : i32
    %c0_i32_0 = arith.constant 0 : i32
    %c0_i32_1 = arith.constant 0 : i32
    return %c0_i32, %c0_i32_0 : i32, i32
  }
  func.func @transform_6(%arg0: i32, %arg1: memref<2xi32, #tpu.memory_space<smem>>) -> (i32, i32) {
    %c0_i32 = arith.constant 0 : i32
    %c0_i32_0 = arith.constant 0 : i32
    %c0_i32_1 = arith.constant 0 : i32
    return %c0_i32, %c0_i32_0 : i32, i32
  }
}

module attributes {stable_mosaic.version = 11 : i64} {
  func.func @_decoder_stack_kernel(%arg0: i32, %arg1: memref<2xi32, #tpu.memory_space<smem>>, %arg2: memref<48x32xf32, #tpu.memory_space<vmem>>, %arg3: memref<1x224x96xbf16, #tpu.memory_space<vmem>>, %arg4: memref<1x8x96xf32, #tpu.memory_space<vmem>>, %arg5: memref<48x32xf32, #tpu.memory_space<vmem>>, %arg6: memref<48x32xf32, #tpu.memory_space<vmem>>, %arg7: memref<48x96xf32, #tpu.memory_space<vmem>>) attributes {dimension_semantics = [#tpu.dimension_semantics<arbitrary>], iteration_bounds = array<i64: 2>, scalar_prefetch = 1 : i64, scratch_operands = 2 : i64, tpu.core_type = #tpu.core_type<tc>, window_params = [{pipeline_mode = #tpu.pipeline_mode<synchronous>, transform_indices = @transform_0, window_bounds = array<i64: 48, 32>}, {transform_indices = @transform_1, window_bounds = array<i64: 1, 224, 96>}, {transform_indices = @transform_2, window_bounds = array<i64: 1, 8, 96>}, {pipeline_mode = #tpu.pipeline_mode<synchronous>, transform_indices = @transform_3, window_bounds = array<i64: 48, 32>}]} {
    %c0_i32 = arith.constant 0 : i32
    %0 = arith.cmpi eq, %arg0, %c0_i32 : i32
    %1 = arith.extui %0 : i1 to i32
    %c0_i32_0 = arith.constant 0 : i32
    %2 = arith.cmpi ne, %1, %c0_i32_0 : i32
    scf.if %2 {
      %c0_88 = arith.constant 0 : index
      %c0_89 = arith.constant 0 : index
      %222 = vector.load %arg2[%c0_88, %c0_89] : memref<48x32xf32, #tpu.memory_space<vmem>>, vector<48x32xf32>
      %c0_90 = arith.constant 0 : index
      %c0_91 = arith.constant 0 : index
      %223 = vector.load %arg6[%c0_90, %c0_91] : memref<48x32xf32, #tpu.memory_space<vmem>>, vector<48x32xf32>
      tpu.vector_store %arg6[%c0_90, %c0_91], %222 {strides = array<i32>} : memref<48x32xf32, #tpu.memory_space<vmem>>, vector<48x32xf32>,
    } else {
    }
    %3 = tpu.iota {dimensions = array<i32: 0>} : vector<48x1xi32>
    %c24_i32 = arith.constant 24 : i32
    %4 = vector.broadcast %c24_i32 : i32 to vector<48x1xi32>
    %5 = arith.cmpi sge, %3, %4 : vector<48x1xi32>
    %c24_i32_1 = arith.constant 24 : i32
    %6 = vector.broadcast %c24_i32_1 : i32 to vector<48x1xi32>
    %7 = arith.subi %3, %6 : vector<48x1xi32>
    %8 = arith.select %5, %7, %3 : vector<48x1xi1>, vector<48x1xi32>
    %c0_i32_2 = arith.constant 0 : i32
    %9 = vector.broadcast %c0_i32_2 : i32 to vector<48x1xi32>
    %10 = arith.cmpi sge, %3, %9 : vector<48x1xi32>
    %c24_i32_3 = arith.constant 24 : i32
    %11 = vector.broadcast %c24_i32_3 : i32 to vector<48x1xi32>
    %12 = arith.cmpi slt, %3, %11 : vector<48x1xi32>
    %13 = arith.andi %10, %12 : vector<48x1xi1>
    %c0 = arith.constant 0 : index
    %14 = memref.load %arg1[%c0] : memref<2xi32, #tpu.memory_space<smem>>
    %15 = vector.broadcast %14 : i32 to vector<48x1xi32>
    %16 = arith.cmpi slt, %8, %15 : vector<48x1xi32>
    %17 = arith.andi %13, %16 : vector<48x1xi1>
    %c24_i32_4 = arith.constant 24 : i32
    %18 = vector.broadcast %c24_i32_4 : i32 to vector<48x1xi32>
    %19 = arith.cmpi sge, %3, %18 : vector<48x1xi32>
    %c48_i32 = arith.constant 48 : i32
    %20 = vector.broadcast %c48_i32 : i32 to vector<48x1xi32>
    %21 = arith.cmpi slt, %3, %20 : vector<48x1xi32>
    %22 = arith.andi %19, %21 : vector<48x1xi1>
    %c1 = arith.constant 1 : index
    %23 = memref.load %arg1[%c1] : memref<2xi32, #tpu.memory_space<smem>>
    %24 = vector.broadcast %23 : i32 to vector<48x1xi32>
    %25 = arith.cmpi slt, %8, %24 : vector<48x1xi32>
    %26 = arith.andi %22, %25 : vector<48x1xi1>
    %27 = arith.ori %17, %26 : vector<48x1xi1>
    %28 = arith.extui %27 : vector<48x1xi1> to vector<48x1xi32>
    %29 = arith.sitofp %28 : vector<48x1xi32> to vector<48x1xf32>
    %c1_i32 = arith.constant 1 : i32
    %30 = vector.broadcast %c1_i32 : i32 to vector<48x1xi32>
    %31 = arith.cmpi sge, %8, %30 : vector<48x1xi32>
    %32 = arith.extui %31 : vector<48x1xi1> to vector<48x1xi32>
    %33 = arith.sitofp %32 : vector<48x1xi32> to vector<48x1xf32>
    %c22_i32 = arith.constant 22 : i32
    %34 = vector.broadcast %c22_i32 : i32 to vector<48x1xi32>
    %35 = arith.cmpi sle, %8, %34 : vector<48x1xi32>
    %36 = arith.extui %35 : vector<48x1xi1> to vector<48x1xi32>
    %37 = arith.sitofp %36 : vector<48x1xi32> to vector<48x1xf32>
    %38 = tpu.iota {dimensions = array<i32: 0>} : vector<48x48xi32>
    %39 = tpu.iota {dimensions = array<i32: 1>} : vector<48x48xi32>
    %c0_i32_5 = arith.constant 0 : i32
    %40 = vector.broadcast %c0_i32_5 : i32 to vector<48x48xi32>
    %41 = arith.cmpi sge, %38, %40 : vector<48x48xi32>
    %c24_i32_6 = arith.constant 24 : i32
    %42 = vector.broadcast %c24_i32_6 : i32 to vector<48x48xi32>
    %43 = arith.cmpi slt, %38, %42 : vector<48x48xi32>
    %44 = arith.andi %41, %43 : vector<48x48xi1>
    %c0_i32_7 = arith.constant 0 : i32
    %45 = vector.broadcast %c0_i32_7 : i32 to vector<48x48xi32>
    %46 = arith.cmpi sge, %39, %45 : vector<48x48xi32>
    %c0_8 = arith.constant 0 : index
    %47 = memref.load %arg1[%c0_8] : memref<2xi32, #tpu.memory_space<smem>>
    %c0_i32_9 = arith.constant 0 : i32
    %48 = arith.addi %c0_i32_9, %47 : i32
    %49 = vector.broadcast %48 : i32 to vector<48x48xi32>
    %50 = arith.cmpi slt, %39, %49 : vector<48x48xi32>
    %51 = arith.andi %46, %50 : vector<48x48xi1>
    %52 = arith.andi %44, %51 : vector<48x48xi1>
    %c24_i32_10 = arith.constant 24 : i32
    %53 = vector.broadcast %c24_i32_10 : i32 to vector<48x48xi32>
    %54 = arith.cmpi sge, %38, %53 : vector<48x48xi32>
    %c48_i32_11 = arith.constant 48 : i32
    %55 = vector.broadcast %c48_i32_11 : i32 to vector<48x48xi32>
    %56 = arith.cmpi slt, %38, %55 : vector<48x48xi32>
    %57 = arith.andi %54, %56 : vector<48x48xi1>
    %c24_i32_12 = arith.constant 24 : i32
    %58 = vector.broadcast %c24_i32_12 : i32 to vector<48x48xi32>
    %59 = arith.cmpi sge, %39, %58 : vector<48x48xi32>
    %c1_13 = arith.constant 1 : index
    %60 = memref.load %arg1[%c1_13] : memref<2xi32, #tpu.memory_space<smem>>
    %c24_i32_14 = arith.constant 24 : i32
    %61 = arith.addi %c24_i32_14, %60 : i32
    %62 = vector.broadcast %61 : i32 to vector<48x48xi32>
    %63 = arith.cmpi slt, %39, %62 : vector<48x48xi32>
    %64 = arith.andi %59, %63 : vector<48x48xi1>
    %65 = arith.andi %57, %64 : vector<48x48xi1>
    %66 = arith.ori %52, %65 : vector<48x48xi1>
    %cst = arith.constant 0.000000e+00 : f32
    %cst_15 = arith.constant -1.000000e+09 : f32
    %67 = vector.broadcast %cst : f32 to vector<48x48xf32>
    %68 = vector.broadcast %cst_15 : f32 to vector<48x48xf32>
    %69 = arith.select %66, %67, %68 : vector<48x48xi1>, vector<48x48xf32>
    %c0_16 = arith.constant 0 : index
    %c0_17 = arith.constant 0 : index
    %70 = vector.load %arg6[%c0_16, %c0_17] : memref<48x32xf32, #tpu.memory_space<vmem>>, vector<48x32xf32>
    %c0_18 = arith.constant 0 : index
    %c0_19 = arith.constant 0 : index
    %c0_20 = arith.constant 0 : index
    %71 = vector.load %arg3[%c0_18, %c0_19, %c0_20] : memref<1x224x96xbf16, #tpu.memory_space<vmem>>, vector<1x32x96xbf16>
    %72 = vector.shape_cast %71 : vector<1x32x96xbf16> to vector<32x96xbf16>
    %c0_21 = arith.constant 0 : index
    %c32 = arith.constant 32 : index
    %c0_22 = arith.constant 0 : index
    %73 = vector.load %arg3[%c0_21, %c32, %c0_22] : memref<1x224x96xbf16, #tpu.memory_space<vmem>>, vector<1x32x32xbf16>
    %74 = vector.shape_cast %73 : vector<1x32x32xbf16> to vector<32x32xbf16>
    %c0_23 = arith.constant 0 : index
    %c64 = arith.constant 64 : index
    %c0_24 = arith.constant 0 : index
    %75 = vector.load %arg3[%c0_23, %c64, %c0_24] : memref<1x224x96xbf16, #tpu.memory_space<vmem>>, vector<1x96x64xbf16>
    %76 = vector.shape_cast %75 : vector<1x96x64xbf16> to vector<96x64xbf16>
    %c0_25 = arith.constant 0 : index
    %c160 = arith.constant 160 : index
    %c0_26 = arith.constant 0 : index
    %77 = vector.load %arg3[%c0_25, %c160, %c0_26] : memref<1x224x96xbf16, #tpu.memory_space<vmem>>, vector<1x64x32xbf16>
    %78 = vector.shape_cast %77 : vector<1x64x32xbf16> to vector<64x32xbf16>
    %c0_27 = arith.constant 0 : index
    %c0_28 = arith.constant 0 : index
    %c0_29 = arith.constant 0 : index
    %79 = vector.load %arg4[%c0_27, %c0_28, %c0_29] : memref<1x8x96xf32, #tpu.memory_space<vmem>>, vector<1x1x96xf32>
    %80 = vector.shape_cast %79 : vector<1x1x96xf32> to vector<1x96xf32>
    %c0_30 = arith.constant 0 : index
    %c1_31 = arith.constant 1 : index
    %c0_32 = arith.constant 0 : index
    %81 = vector.load %arg4[%c0_30, %c1_31, %c0_32] : memref<1x8x96xf32, #tpu.memory_space<vmem>>, vector<1x1x32xf32>
    %82 = vector.shape_cast %81 : vector<1x1x32xf32> to vector<1x32xf32>
    %c0_33 = arith.constant 0 : index
    %c2 = arith.constant 2 : index
    %c0_34 = arith.constant 0 : index
    %83 = vector.load %arg4[%c0_33, %c2, %c0_34] : memref<1x8x96xf32, #tpu.memory_space<vmem>>, vector<1x1x32xf32>
    %84 = vector.shape_cast %83 : vector<1x1x32xf32> to vector<1x32xf32>
    %c0_35 = arith.constant 0 : index
    %c3 = arith.constant 3 : index
    %c0_36 = arith.constant 0 : index
    %85 = vector.load %arg4[%c0_35, %c3, %c0_36] : memref<1x8x96xf32, #tpu.memory_space<vmem>>, vector<1x1x32xf32>
    %86 = vector.shape_cast %85 : vector<1x1x32xf32> to vector<1x32xf32>
    %c0_37 = arith.constant 0 : index
    %c4 = arith.constant 4 : index
    %c0_38 = arith.constant 0 : index
    %87 = vector.load %arg4[%c0_37, %c4, %c0_38] : memref<1x8x96xf32, #tpu.memory_space<vmem>>, vector<1x1x64xf32>
    %88 = vector.shape_cast %87 : vector<1x1x64xf32> to vector<1x64xf32>
    %c0_39 = arith.constant 0 : index
    %c5 = arith.constant 5 : index
    %c0_40 = arith.constant 0 : index
    %89 = vector.load %arg4[%c0_39, %c5, %c0_40] : memref<1x8x96xf32, #tpu.memory_space<vmem>>, vector<1x1x32xf32>
    %90 = vector.shape_cast %89 : vector<1x1x32xf32> to vector<1x32xf32>
    %c0_41 = arith.constant 0 : index
    %c6 = arith.constant 6 : index
    %c0_42 = arith.constant 0 : index
    %91 = vector.load %arg4[%c0_41, %c6, %c0_42] : memref<1x8x96xf32, #tpu.memory_space<vmem>>, vector<1x1x32xf32>
    %92 = vector.shape_cast %91 : vector<1x1x32xf32> to vector<1x32xf32>
    %c0_43 = arith.constant 0 : index
    %c7 = arith.constant 7 : index
    %c0_44 = arith.constant 0 : index
    %93 = vector.load %arg4[%c0_43, %c7, %c0_44] : memref<1x8x96xf32, #tpu.memory_space<vmem>>, vector<1x1x32xf32>
    %94 = vector.shape_cast %93 : vector<1x1x32xf32> to vector<1x32xf32>
    %95 = arith.truncf %70 : vector<48x32xf32> to vector<48x32xbf16>
    %cst_45 = arith.constant dense<0.000000e+00> : vector<48x96xf32>
    %96 = tpu.matmul %95, %72, %cst_45 {dimension_numbers = #tpu.dot_dimension_numbers<[1], [0], [0], [1], [0, 0, 1, 1], [], []>} : vector<48x32xbf16>, vector<32x96xbf16>, vector<48x96xf32> -> vector<48x96xf32>
    %97 = vector.broadcast %80 : vector<1x96xf32> to vector<48x96xf32>
    %98 = arith.addf %96, %97 : vector<48x96xf32>
    %99 = vector.extract_strided_slice %98 {offsets = [0, 0], sizes = [48, 16], strides = [1, 1]} : vector<48x96xf32> to vector<48x16xf32>
    %100 = vector.extract_strided_slice %98 {offsets = [0, 32], sizes = [48, 16], strides = [1, 1]} : vector<48x96xf32> to vector<48x16xf32>
    %101 = vector.extract_strided_slice %98 {offsets = [0, 64], sizes = [48, 16], strides = [1, 1]} : vector<48x96xf32> to vector<48x16xf32>
    %102 = arith.truncf %99 : vector<48x16xf32> to vector<48x16xbf16>
    %103 = arith.truncf %100 : vector<48x16xf32> to vector<48x16xbf16>
    %cst_46 = arith.constant dense<0.000000e+00> : vector<48x48xf32>
    %104 = tpu.matmul %102, %103, %cst_46 {dimension_numbers = #tpu.dot_dimension_numbers<[1], [1], [0], [0], [0, 0, 1, 0], [], []>} : vector<48x16xbf16>, vector<48x16xbf16>, vector<48x48xf32> -> vector<48x48xf32>
    %cst_47 = arith.constant 2.500000e-01 : f32
    %105 = vector.broadcast %cst_47 : f32 to vector<48x48xf32>
    %106 = arith.mulf %104, %105 : vector<48x48xf32>
    %107 = arith.addf %106, %69 : vector<48x48xf32>
    %cst_48 = arith.constant dense<0xFF800000> : vector<48xf32>
    %108 = vector.multi_reduction <maximumf>, %107, %cst_48 [1] : vector<48x48xf32> to vector<48xf32>
    %109 = vector.shape_cast %108 : vector<48xf32> to vector<48x1xf32>
    %110 = vector.broadcast %109 : vector<48x1xf32> to vector<48x48xf32>
    %111 = arith.subf %107, %110 : vector<48x48xf32>
    %112 = math.exp %111 : vector<48x48xf32>
    %cst_49 = arith.constant dense<0.000000e+00> : vector<48xf32>
    %113 = vector.multi_reduction <add>, %112, %cst_49 [1] : vector<48x48xf32> to vector<48xf32>
    %114 = vector.shape_cast %113 : vector<48xf32> to vector<48x1xf32>
    %115 = tpu.reciprocal %114 {approx = true} : vector<48x1xf32> -> vector<48x1xf32>
    %116 = vector.broadcast %115 : vector<48x1xf32> to vector<48x48xf32>
    %117 = arith.mulf %112, %116 : vector<48x48xf32>
    %118 = arith.truncf %117 : vector<48x48xf32> to vector<48x48xbf16>
    %119 = arith.truncf %101 : vector<48x16xf32> to vector<48x16xbf16>
    %cst_50 = arith.constant dense<0.000000e+00> : vector<48x16xf32>
    %120 = tpu.matmul %118, %119, %cst_50 {dimension_numbers = #tpu.dot_dimension_numbers<[1], [0], [0], [1], [0, 0, 1, 1], [], []>} : vector<48x48xbf16>, vector<48x16xbf16>, vector<48x16xf32> -> vector<48x16xf32>
    %c0_51 = arith.constant 0 : index
    %c0_52 = arith.constant 0 : index
    %121 = vector.load %arg7[%c0_51, %c0_52] : memref<48x96xf32, #tpu.memory_space<vmem>>, vector<48x16xf32>
    tpu.vector_store %arg7[%c0_51, %c0_52], %120 {strides = array<i32>} : memref<48x96xf32, #tpu.memory_space<vmem>>, vector<48x16xf32>,
    %122 = vector.extract_strided_slice %98 {offsets = [0, 16], sizes = [48, 16], strides = [1, 1]} : vector<48x96xf32> to vector<48x16xf32>
    %123 = vector.extract_strided_slice %98 {offsets = [0, 48], sizes = [48, 16], strides = [1, 1]} : vector<48x96xf32> to vector<48x16xf32>
    %124 = vector.extract_strided_slice %98 {offsets = [0, 80], sizes = [48, 16], strides = [1, 1]} : vector<48x96xf32> to vector<48x16xf32>
    %125 = arith.truncf %122 : vector<48x16xf32> to vector<48x16xbf16>
    %126 = arith.truncf %123 : vector<48x16xf32> to vector<48x16xbf16>
    %cst_53 = arith.constant dense<0.000000e+00> : vector<48x48xf32>
    %127 = tpu.matmul %125, %126, %cst_53 {dimension_numbers = #tpu.dot_dimension_numbers<[1], [1], [0], [0], [0, 0, 1, 0], [], []>} : vector<48x16xbf16>, vector<48x16xbf16>, vector<48x48xf32> -> vector<48x48xf32>
    %cst_54 = arith.constant 2.500000e-01 : f32
    %128 = vector.broadcast %cst_54 : f32 to vector<48x48xf32>
    %129 = arith.mulf %127, %128 : vector<48x48xf32>
    %130 = arith.addf %129, %69 : vector<48x48xf32>
    %cst_55 = arith.constant dense<0xFF800000> : vector<48xf32>
    %131 = vector.multi_reduction <maximumf>, %130, %cst_55 [1] : vector<48x48xf32> to vector<48xf32>
    %132 = vector.shape_cast %131 : vector<48xf32> to vector<48x1xf32>
    %133 = vector.broadcast %132 : vector<48x1xf32> to vector<48x48xf32>
    %134 = arith.subf %130, %133 : vector<48x48xf32>
    %135 = math.exp %134 : vector<48x48xf32>
    %cst_56 = arith.constant dense<0.000000e+00> : vector<48xf32>
    %136 = vector.multi_reduction <add>, %135, %cst_56 [1] : vector<48x48xf32> to vector<48xf32>
    %137 = vector.shape_cast %136 : vector<48xf32> to vector<48x1xf32>
    %138 = tpu.reciprocal %137 {approx = true} : vector<48x1xf32> -> vector<48x1xf32>
    %139 = vector.broadcast %138 : vector<48x1xf32> to vector<48x48xf32>
    %140 = arith.mulf %135, %139 : vector<48x48xf32>
    %141 = arith.truncf %140 : vector<48x48xf32> to vector<48x48xbf16>
    %142 = arith.truncf %124 : vector<48x16xf32> to vector<48x16xbf16>
    %cst_57 = arith.constant dense<0.000000e+00> : vector<48x16xf32>
    %143 = tpu.matmul %141, %142, %cst_57 {dimension_numbers = #tpu.dot_dimension_numbers<[1], [0], [0], [1], [0, 0, 1, 1], [], []>} : vector<48x48xbf16>, vector<48x16xbf16>, vector<48x16xf32> -> vector<48x16xf32>
    %c0_58 = arith.constant 0 : index
    %c16 = arith.constant 16 : index
    %144 = vector.load %arg7[%c0_58, %c16] : memref<48x96xf32, #tpu.memory_space<vmem>>, vector<48x16xf32>
    tpu.vector_store %arg7[%c0_58, %c16], %143 {strides = array<i32>} : memref<48x96xf32, #tpu.memory_space<vmem>>, vector<48x16xf32>,
    %c0_59 = arith.constant 0 : index
    %c0_60 = arith.constant 0 : index
    %145 = vector.load %arg7[%c0_59, %c0_60] : memref<48x96xf32, #tpu.memory_space<vmem>>, vector<48x32xf32>
    %146 = arith.truncf %145 : vector<48x32xf32> to vector<48x32xbf16>
    %cst_61 = arith.constant dense<0.000000e+00> : vector<48x32xf32>
    %147 = tpu.matmul %146, %74, %cst_61 {dimension_numbers = #tpu.dot_dimension_numbers<[1], [0], [0], [1], [0, 0, 1, 1], [], []>} : vector<48x32xbf16>, vector<32x32xbf16>, vector<48x32xf32> -> vector<48x32xf32>
    %148 = vector.broadcast %82 : vector<1x32xf32> to vector<48x32xf32>
    %149 = arith.addf %147, %148 : vector<48x32xf32>
    %150 = arith.addf %149, %70 : vector<48x32xf32>
    %cst_62 = arith.constant dense<0.000000e+00> : vector<48xf32>
    %151 = vector.multi_reduction <add>, %150, %cst_62 [1] : vector<48x32xf32> to vector<48xf32>
    %152 = vector.shape_cast %151 : vector<48xf32> to vector<48x1xf32>
    %cst_63 = arith.constant 3.200000e+01 : f32
    %153 = vector.broadcast %cst_63 : f32 to vector<48x1xf32>
    %154 = arith.divf %152, %153 : vector<48x1xf32>
    %155 = vector.broadcast %154 : vector<48x1xf32> to vector<48x32xf32>
    %156 = arith.subf %150, %155 : vector<48x32xf32>
    %157 = arith.mulf %156, %156 : vector<48x32xf32>
    %cst_64 = arith.constant dense<0.000000e+00> : vector<48xf32>
    %158 = vector.multi_reduction <add>, %157, %cst_64 [1] : vector<48x32xf32> to vector<48xf32>
    %159 = vector.shape_cast %158 : vector<48xf32> to vector<48x1xf32>
    %cst_65 = arith.constant 3.200000e+01 : f32
    %160 = vector.broadcast %cst_65 : f32 to vector<48x1xf32>
    %161 = arith.divf %159, %160 : vector<48x1xf32>
    %162 = vector.broadcast %154 : vector<48x1xf32> to vector<48x32xf32>
    %163 = arith.subf %150, %162 : vector<48x32xf32>
    %cst_66 = arith.constant 9.99999974E-6 : f32
    %164 = vector.broadcast %cst_66 : f32 to vector<48x1xf32>
    %165 = arith.addf %161, %164 : vector<48x1xf32>
    %166 = math.rsqrt %165 : vector<48x1xf32>
    %167 = vector.broadcast %166 : vector<48x1xf32> to vector<48x32xf32>
    %168 = arith.mulf %163, %167 : vector<48x32xf32>
    %169 = vector.broadcast %84 : vector<1x32xf32> to vector<48x32xf32>
    %170 = arith.mulf %168, %169 : vector<48x32xf32>
    %171 = vector.broadcast %86 : vector<1x32xf32> to vector<48x32xf32>
    %172 = arith.addf %170, %171 : vector<48x32xf32>
    %173 = vector.broadcast %29 : vector<48x1xf32> to vector<48x32xf32>
    %174 = arith.mulf %172, %173 : vector<48x32xf32>
    %c1_i32_67 = arith.constant 1 : i32
    %175 = tpu.dynamic_rotate %174 by %c1_i32_67 dim 0 : vector<48x32xf32>, i32 -> vector<48x32xf32>
    %176 = vector.broadcast %33 : vector<48x1xf32> to vector<48x32xf32>
    %177 = arith.mulf %175, %176 : vector<48x32xf32>
    %c0_68 = arith.constant 0 : index
    %c0_69 = arith.constant 0 : index
    %178 = vector.load %arg7[%c0_68, %c0_69] : memref<48x96xf32, #tpu.memory_space<vmem>>, vector<48x32xf32>
    tpu.vector_store %arg7[%c0_68, %c0_69], %177 {strides = array<i32>} : memref<48x96xf32, #tpu.memory_space<vmem>>, vector<48x32xf32>,
    %c0_70 = arith.constant 0 : index
    %c32_71 = arith.constant 32 : index
    %179 = vector.load %arg7[%c0_70, %c32_71] : memref<48x96xf32, #tpu.memory_space<vmem>>, vector<48x32xf32>
    tpu.vector_store %arg7[%c0_70, %c32_71], %174 {strides = array<i32>} : memref<48x96xf32, #tpu.memory_space<vmem>>, vector<48x32xf32>,
    %c47_i32 = arith.constant 47 : i32
    %180 = tpu.dynamic_rotate %174 by %c47_i32 dim 0 : vector<48x32xf32>, i32 -> vector<48x32xf32>
    %181 = vector.broadcast %37 : vector<48x1xf32> to vector<48x32xf32>
    %182 = arith.mulf %180, %181 : vector<48x32xf32>
    %c0_72 = arith.constant 0 : index
    %c64_73 = arith.constant 64 : index
    %183 = vector.load %arg7[%c0_72, %c64_73] : memref<48x96xf32, #tpu.memory_space<vmem>>, vector<48x32xf32>
    tpu.vector_store %arg7[%c0_72, %c64_73], %182 {strides = array<i32>} : memref<48x96xf32, #tpu.memory_space<vmem>>, vector<48x32xf32>,
    %c0_74 = arith.constant 0 : index
    %c0_75 = arith.constant 0 : index
    %184 = vector.load %arg7[%c0_74, %c0_75] : memref<48x96xf32, #tpu.memory_space<vmem>>, vector<48x96xf32>
    %185 = arith.truncf %184 : vector<48x96xf32> to vector<48x96xbf16>
    %cst_76 = arith.constant dense<0.000000e+00> : vector<48x64xf32>
    %186 = tpu.matmul %185, %76, %cst_76 {dimension_numbers = #tpu.dot_dimension_numbers<[1], [0], [0], [1], [0, 0, 1, 1], [], []>} : vector<48x96xbf16>, vector<96x64xbf16>, vector<48x64xf32> -> vector<48x64xf32>
    %187 = vector.broadcast %88 : vector<1x64xf32> to vector<48x64xf32>
    %188 = arith.addf %186, %187 : vector<48x64xf32>
    %cst_77 = arith.constant 0.000000e+00 : f32
    %189 = vector.broadcast %cst_77 : f32 to vector<48x64xf32>
    %190 = arith.maximumf %188, %189 : vector<48x64xf32>
    %191 = arith.truncf %190 : vector<48x64xf32> to vector<48x64xbf16>
    %cst_78 = arith.constant dense<0.000000e+00> : vector<48x32xf32>
    %192 = tpu.matmul %191, %78, %cst_78 {dimension_numbers = #tpu.dot_dimension_numbers<[1], [0], [0], [1], [0, 0, 1, 1], [], []>} : vector<48x64xbf16>, vector<64x32xbf16>, vector<48x32xf32> -> vector<48x32xf32>
    %193 = vector.broadcast %90 : vector<1x32xf32> to vector<48x32xf32>
    %194 = arith.addf %192, %193 : vector<48x32xf32>
    %195 = arith.addf %194, %174 : vector<48x32xf32>
    %cst_79 = arith.constant dense<0.000000e+00> : vector<48xf32>
    %196 = vector.multi_reduction <add>, %195, %cst_79 [1] : vector<48x32xf32> to vector<48xf32>
    %197 = vector.shape_cast %196 : vector<48xf32> to vector<48x1xf32>
    %cst_80 = arith.constant 3.200000e+01 : f32
    %198 = vector.broadcast %cst_80 : f32 to vector<48x1xf32>
    %199 = arith.divf %197, %198 : vector<48x1xf32>
    %200 = vector.broadcast %199 : vector<48x1xf32> to vector<48x32xf32>
    %201 = arith.subf %195, %200 : vector<48x32xf32>
    %202 = arith.mulf %201, %201 : vector<48x32xf32>
    %cst_81 = arith.constant dense<0.000000e+00> : vector<48xf32>
    %203 = vector.multi_reduction <add>, %202, %cst_81 [1] : vector<48x32xf32> to vector<48xf32>
    %204 = vector.shape_cast %203 : vector<48xf32> to vector<48x1xf32>
    %cst_82 = arith.constant 3.200000e+01 : f32
    %205 = vector.broadcast %cst_82 : f32 to vector<48x1xf32>
    %206 = arith.divf %204, %205 : vector<48x1xf32>
    %207 = vector.broadcast %199 : vector<48x1xf32> to vector<48x32xf32>
    %208 = arith.subf %195, %207 : vector<48x32xf32>
    %cst_83 = arith.constant 9.99999974E-6 : f32
    %209 = vector.broadcast %cst_83 : f32 to vector<48x1xf32>
    %210 = arith.addf %206, %209 : vector<48x1xf32>
    %211 = math.rsqrt %210 : vector<48x1xf32>
    %212 = vector.broadcast %211 : vector<48x1xf32> to vector<48x32xf32>
    %213 = arith.mulf %208, %212 : vector<48x32xf32>
    %214 = vector.broadcast %92 : vector<1x32xf32> to vector<48x32xf32>
    %215 = arith.mulf %213, %214 : vector<48x32xf32>
    %216 = vector.broadcast %94 : vector<1x32xf32> to vector<48x32xf32>
    %217 = arith.addf %215, %216 : vector<48x32xf32>
    %218 = vector.broadcast %29 : vector<48x1xf32> to vector<48x32xf32>
    %219 = arith.mulf %217, %218 : vector<48x32xf32>
    %c0_84 = arith.constant 0 : index
    %c0_85 = arith.constant 0 : index
    %220 = vector.load %arg6[%c0_84, %c0_85] : memref<48x32xf32, #tpu.memory_space<vmem>>, vector<48x32xf32>
    tpu.vector_store %arg6[%c0_84, %c0_85], %219 {strides = array<i32>} : memref<48x32xf32, #tpu.memory_space<vmem>>, vector<48x32xf32>,
    %c0_86 = arith.constant 0 : index
    %c0_87 = arith.constant 0 : index
    %221 = vector.load %arg5[%c0_86, %c0_87] : memref<48x32xf32, #tpu.memory_space<vmem>>, vector<48x32xf32>
    tpu.vector_store %arg5[%c0_86, %c0_87], %219 {strides = array<i32>} : memref<48x32xf32, #tpu.memory_space<vmem>>, vector<48x32xf32>,
    return
  }
  func.func @transform_0(%arg0: i32, %arg1: memref<2xi32, #tpu.memory_space<smem>>) -> (i32, i32) {
    %c0_i32 = arith.constant 0 : i32
    %c0_i32_0 = arith.constant 0 : i32
    %c0_i32_1 = arith.constant 0 : i32
    return %c0_i32, %c0_i32_0 : i32, i32
  }
  func.func @transform_1(%arg0: i32, %arg1: memref<2xi32, #tpu.memory_space<smem>>) -> (i32, i32, i32) {
    %c0_i32 = arith.constant 0 : i32
    %c0_i32_0 = arith.constant 0 : i32
    %c0_i32_1 = arith.constant 0 : i32
    return %arg0, %c0_i32, %c0_i32_0 : i32, i32, i32
  }
  func.func @transform_2(%arg0: i32, %arg1: memref<2xi32, #tpu.memory_space<smem>>) -> (i32, i32, i32) {
    %c0_i32 = arith.constant 0 : i32
    %c0_i32_0 = arith.constant 0 : i32
    %c0_i32_1 = arith.constant 0 : i32
    return %arg0, %c0_i32, %c0_i32_0 : i32, i32, i32
  }
  func.func @transform_3(%arg0: i32, %arg1: memref<2xi32, #tpu.memory_space<smem>>) -> (i32, i32) {
    %c0_i32 = arith.constant 0 : i32
    %c0_i32_0 = arith.constant 0 : i32
    %c0_i32_1 = arith.constant 0 : i32
    return %c0_i32, %c0_i32_0 : i32, i32
  }
}

module attributes {stable_mosaic.version = 11 : i64} {
  func.func @_mel_postnet_kernel(%arg0: i32, %arg1: memref<48x32xf32, #tpu.memory_space<vmem>>, %arg2: memref<32x16xbf16, #tpu.memory_space<vmem>>, %arg3: memref<1x16xf32, #tpu.memory_space<vmem>>, %arg4: memref<5x160x32xbf16, #tpu.memory_space<vmem>>, %arg5: memref<5x32xf32, #tpu.memory_space<vmem>>, %arg6: memref<48x16xf32, #tpu.memory_space<vmem>>, %arg7: memref<48x16xf32, #tpu.memory_space<vmem>>, %arg8: memref<48x160xf32, #tpu.memory_space<vmem>>) attributes {dimension_semantics = [#tpu.dimension_semantics<arbitrary>], iteration_bounds = array<i64: 1>, scalar_prefetch = 0 : i64, scratch_operands = 1 : i64, tpu.core_type = #tpu.core_type<tc>, window_params = [{pipeline_mode = #tpu.pipeline_mode<synchronous>, transform_indices = @transform_0, window_bounds = array<i64: 48, 32>}, {pipeline_mode = #tpu.pipeline_mode<synchronous>, transform_indices = @transform_1, window_bounds = array<i64: 32, 16>}, {pipeline_mode = #tpu.pipeline_mode<synchronous>, transform_indices = @transform_2, window_bounds = array<i64: 1, 16>}, {pipeline_mode = #tpu.pipeline_mode<synchronous>, transform_indices = @transform_3, window_bounds = array<i64: 5, 160, 32>}, {pipeline_mode = #tpu.pipeline_mode<synchronous>, transform_indices = @transform_4, window_bounds = array<i64: 5, 32>}, {pipeline_mode = #tpu.pipeline_mode<synchronous>, transform_indices = @transform_5, window_bounds = array<i64: 48, 16>}, {pipeline_mode = #tpu.pipeline_mode<synchronous>, transform_indices = @transform_6, window_bounds = array<i64: 48, 16>}]} {
    %0 = tpu.iota {dimensions = array<i32: 0>} : vector<48x1xi32>
    %c24_i32 = arith.constant 24 : i32
    %1 = vector.broadcast %c24_i32 : i32 to vector<48x1xi32>
    %2 = arith.cmpi sge, %0, %1 : vector<48x1xi32>
    %c24_i32_0 = arith.constant 24 : i32
    %3 = vector.broadcast %c24_i32_0 : i32 to vector<48x1xi32>
    %4 = arith.subi %0, %3 : vector<48x1xi32>
    %5 = arith.select %2, %4, %0 : vector<48x1xi1>, vector<48x1xi32>
    %c2_i32 = arith.constant 2 : i32
    %6 = vector.broadcast %c2_i32 : i32 to vector<48x1xi32>
    %7 = arith.cmpi sge, %5, %6 : vector<48x1xi32>
    %8 = arith.extui %7 : vector<48x1xi1> to vector<48x1xi32>
    %9 = arith.sitofp %8 : vector<48x1xi32> to vector<48x1xf32>
    %c1_i32 = arith.constant 1 : i32
    %10 = vector.broadcast %c1_i32 : i32 to vector<48x1xi32>
    %11 = arith.cmpi sge, %5, %10 : vector<48x1xi32>
    %12 = arith.extui %11 : vector<48x1xi1> to vector<48x1xi32>
    %13 = arith.sitofp %12 : vector<48x1xi32> to vector<48x1xf32>
    %c22_i32 = arith.constant 22 : i32
    %14 = vector.broadcast %c22_i32 : i32 to vector<48x1xi32>
    %15 = arith.cmpi sle, %5, %14 : vector<48x1xi32>
    %16 = arith.extui %15 : vector<48x1xi1> to vector<48x1xi32>
    %17 = arith.sitofp %16 : vector<48x1xi32> to vector<48x1xf32>
    %c21_i32 = arith.constant 21 : i32
    %18 = vector.broadcast %c21_i32 : i32 to vector<48x1xi32>
    %19 = arith.cmpi sle, %5, %18 : vector<48x1xi32>
    %20 = arith.extui %19 : vector<48x1xi1> to vector<48x1xi32>
    %21 = arith.sitofp %20 : vector<48x1xi32> to vector<48x1xf32>
    %c0 = arith.constant 0 : index
    %c0_1 = arith.constant 0 : index
    %22 = vector.load %arg1[%c0, %c0_1] : memref<48x32xf32, #tpu.memory_space<vmem>>, vector<48x32xf32>
    %23 = arith.truncf %22 : vector<48x32xf32> to vector<48x32xbf16>
    %c0_2 = arith.constant 0 : index
    %c0_3 = arith.constant 0 : index
    %24 = vector.load %arg2[%c0_2, %c0_3] : memref<32x16xbf16, #tpu.memory_space<vmem>>, vector<32x16xbf16>
    %cst = arith.constant dense<0.000000e+00> : vector<48x16xf32>
    %25 = tpu.matmul %23, %24, %cst {dimension_numbers = #tpu.dot_dimension_numbers<[1], [0], [0], [1], [0, 0, 1, 1], [], []>} : vector<48x32xbf16>, vector<32x16xbf16>, vector<48x16xf32> -> vector<48x16xf32>
    %c0_4 = arith.constant 0 : index
    %c0_5 = arith.constant 0 : index
    %26 = vector.load %arg3[%c0_4, %c0_5] : memref<1x16xf32, #tpu.memory_space<vmem>>, vector<1x16xf32>
    %27 = vector.broadcast %26 : vector<1x16xf32> to vector<48x16xf32>
    %28 = arith.addf %25, %27 : vector<48x16xf32>
    %c0_6 = arith.constant 0 : index
    %c0_7 = arith.constant 0 : index
    %29 = vector.load %arg6[%c0_6, %c0_7] : memref<48x16xf32, #tpu.memory_space<vmem>>, vector<48x16xf32>
    tpu.vector_store %arg6[%c0_6, %c0_7], %28 {strides = array<i32>} : memref<48x16xf32, #tpu.memory_space<vmem>>, vector<48x16xf32>,
    %c2_i32_8 = arith.constant 2 : i32
    %30 = tpu.dynamic_rotate %28 by %c2_i32_8 dim 0 : vector<48x16xf32>, i32 -> vector<48x16xf32>
    %31 = vector.broadcast %9 : vector<48x1xf32> to vector<48x16xf32>
    %32 = arith.mulf %30, %31 : vector<48x16xf32>
    %c0_9 = arith.constant 0 : index
    %c0_10 = arith.constant 0 : index
    %33 = vector.load %arg8[%c0_9, %c0_10] : memref<48x160xf32, #tpu.memory_space<vmem>>, vector<48x16xf32>
    tpu.vector_store %arg8[%c0_9, %c0_10], %32 {strides = array<i32>} : memref<48x160xf32, #tpu.memory_space<vmem>>, vector<48x16xf32>,
    %c1_i32_11 = arith.constant 1 : i32
    %34 = tpu.dynamic_rotate %28 by %c1_i32_11 dim 0 : vector<48x16xf32>, i32 -> vector<48x16xf32>
    %35 = vector.broadcast %13 : vector<48x1xf32> to vector<48x16xf32>
    %36 = arith.mulf %34, %35 : vector<48x16xf32>
    %c0_12 = arith.constant 0 : index
    %c16 = arith.constant 16 : index
    %37 = vector.load %arg8[%c0_12, %c16] : memref<48x160xf32, #tpu.memory_space<vmem>>, vector<48x16xf32>
    tpu.vector_store %arg8[%c0_12, %c16], %36 {strides = array<i32>} : memref<48x160xf32, #tpu.memory_space<vmem>>, vector<48x16xf32>,
    %c0_13 = arith.constant 0 : index
    %c32 = arith.constant 32 : index
    %38 = vector.load %arg8[%c0_13, %c32] : memref<48x160xf32, #tpu.memory_space<vmem>>, vector<48x16xf32>
    tpu.vector_store %arg8[%c0_13, %c32], %28 {strides = array<i32>} : memref<48x160xf32, #tpu.memory_space<vmem>>, vector<48x16xf32>,
    %c47_i32 = arith.constant 47 : i32
    %39 = tpu.dynamic_rotate %28 by %c47_i32 dim 0 : vector<48x16xf32>, i32 -> vector<48x16xf32>
    %40 = vector.broadcast %17 : vector<48x1xf32> to vector<48x16xf32>
    %41 = arith.mulf %39, %40 : vector<48x16xf32>
    %c0_14 = arith.constant 0 : index
    %c48 = arith.constant 48 : index
    %42 = vector.load %arg8[%c0_14, %c48] : memref<48x160xf32, #tpu.memory_space<vmem>>, vector<48x16xf32>
    tpu.vector_store %arg8[%c0_14, %c48], %41 {strides = array<i32>} : memref<48x160xf32, #tpu.memory_space<vmem>>, vector<48x16xf32>,
    %c46_i32 = arith.constant 46 : i32
    %43 = tpu.dynamic_rotate %28 by %c46_i32 dim 0 : vector<48x16xf32>, i32 -> vector<48x16xf32>
    %44 = vector.broadcast %21 : vector<48x1xf32> to vector<48x16xf32>
    %45 = arith.mulf %43, %44 : vector<48x16xf32>
    %c0_15 = arith.constant 0 : index
    %c64 = arith.constant 64 : index
    %46 = vector.load %arg8[%c0_15, %c64] : memref<48x160xf32, #tpu.memory_space<vmem>>, vector<48x16xf32>
    tpu.vector_store %arg8[%c0_15, %c64], %45 {strides = array<i32>} : memref<48x160xf32, #tpu.memory_space<vmem>>, vector<48x16xf32>,
    %c0_16 = arith.constant 0 : index
    %c0_17 = arith.constant 0 : index
    %c0_18 = arith.constant 0 : index
    %47 = vector.load %arg4[%c0_16, %c0_17, %c0_18] : memref<5x160x32xbf16, #tpu.memory_space<vmem>>, vector<1x80x32xbf16>
    %48 = vector.shape_cast %47 : vector<1x80x32xbf16> to vector<80x32xbf16>
    %c0_19 = arith.constant 0 : index
    %c0_20 = arith.constant 0 : index
    %49 = vector.load %arg5[%c0_19, %c0_20] : memref<5x32xf32, #tpu.memory_space<vmem>>, vector<1x32xf32>
    %c0_21 = arith.constant 0 : index
    %c0_22 = arith.constant 0 : index
    %50 = vector.load %arg8[%c0_21, %c0_22] : memref<48x160xf32, #tpu.memory_space<vmem>>, vector<48x80xf32>
    %51 = arith.truncf %50 : vector<48x80xf32> to vector<48x80xbf16>
    %cst_23 = arith.constant dense<0.000000e+00> : vector<48x32xf32>
    %52 = tpu.matmul %51, %48, %cst_23 {dimension_numbers = #tpu.dot_dimension_numbers<[1], [0], [0], [1], [0, 0, 1, 1], [], []>} : vector<48x80xbf16>, vector<80x32xbf16>, vector<48x32xf32> -> vector<48x32xf32>
    %53 = vector.broadcast %49 : vector<1x32xf32> to vector<48x32xf32>
    %54 = arith.addf %52, %53 : vector<48x32xf32>
    %55 = math.tanh %54 : vector<48x32xf32>
    %c2_i32_24 = arith.constant 2 : i32
    %56 = tpu.dynamic_rotate %55 by %c2_i32_24 dim 0 : vector<48x32xf32>, i32 -> vector<48x32xf32>
    %57 = vector.broadcast %9 : vector<48x1xf32> to vector<48x32xf32>
    %58 = arith.mulf %56, %57 : vector<48x32xf32>
    %c0_25 = arith.constant 0 : index
    %c0_26 = arith.constant 0 : index
    %59 = vector.load %arg8[%c0_25, %c0_26] : memref<48x160xf32, #tpu.memory_space<vmem>>, vector<48x32xf32>
    tpu.vector_store %arg8[%c0_25, %c0_26], %58 {strides = array<i32>} : memref<48x160xf32, #tpu.memory_space<vmem>>, vector<48x32xf32>,
    %c1_i32_27 = arith.constant 1 : i32
    %60 = tpu.dynamic_rotate %55 by %c1_i32_27 dim 0 : vector<48x32xf32>, i32 -> vector<48x32xf32>
    %61 = vector.broadcast %13 : vector<48x1xf32> to vector<48x32xf32>
    %62 = arith.mulf %60, %61 : vector<48x32xf32>
    %c0_28 = arith.constant 0 : index
    %c32_29 = arith.constant 32 : index
    %63 = vector.load %arg8[%c0_28, %c32_29] : memref<48x160xf32, #tpu.memory_space<vmem>>, vector<48x32xf32>
    tpu.vector_store %arg8[%c0_28, %c32_29], %62 {strides = array<i32>} : memref<48x160xf32, #tpu.memory_space<vmem>>, vector<48x32xf32>,
    %c0_30 = arith.constant 0 : index
    %c64_31 = arith.constant 64 : index
    %64 = vector.load %arg8[%c0_30, %c64_31] : memref<48x160xf32, #tpu.memory_space<vmem>>, vector<48x32xf32>
    tpu.vector_store %arg8[%c0_30, %c64_31], %55 {strides = array<i32>} : memref<48x160xf32, #tpu.memory_space<vmem>>, vector<48x32xf32>,
    %c47_i32_32 = arith.constant 47 : i32
    %65 = tpu.dynamic_rotate %55 by %c47_i32_32 dim 0 : vector<48x32xf32>, i32 -> vector<48x32xf32>
    %66 = vector.broadcast %17 : vector<48x1xf32> to vector<48x32xf32>
    %67 = arith.mulf %65, %66 : vector<48x32xf32>
    %c0_33 = arith.constant 0 : index
    %c96 = arith.constant 96 : index
    %68 = vector.load %arg8[%c0_33, %c96] : memref<48x160xf32, #tpu.memory_space<vmem>>, vector<48x32xf32>
    tpu.vector_store %arg8[%c0_33, %c96], %67 {strides = array<i32>} : memref<48x160xf32, #tpu.memory_space<vmem>>, vector<48x32xf32>,
    %c46_i32_34 = arith.constant 46 : i32
    %69 = tpu.dynamic_rotate %55 by %c46_i32_34 dim 0 : vector<48x32xf32>, i32 -> vector<48x32xf32>
    %70 = vector.broadcast %21 : vector<48x1xf32> to vector<48x32xf32>
    %71 = arith.mulf %69, %70 : vector<48x32xf32>
    %c0_35 = arith.constant 0 : index
    %c128 = arith.constant 128 : index
    %72 = vector.load %arg8[%c0_35, %c128] : memref<48x160xf32, #tpu.memory_space<vmem>>, vector<48x32xf32>
    tpu.vector_store %arg8[%c0_35, %c128], %71 {strides = array<i32>} : memref<48x160xf32, #tpu.memory_space<vmem>>, vector<48x32xf32>,
    %c1 = arith.constant 1 : index
    %c0_36 = arith.constant 0 : index
    %c0_37 = arith.constant 0 : index
    %73 = vector.load %arg4[%c1, %c0_36, %c0_37] : memref<5x160x32xbf16, #tpu.memory_space<vmem>>, vector<1x160x32xbf16>
    %74 = vector.shape_cast %73 : vector<1x160x32xbf16> to vector<160x32xbf16>
    %c1_38 = arith.constant 1 : index
    %c0_39 = arith.constant 0 : index
    %75 = vector.load %arg5[%c1_38, %c0_39] : memref<5x32xf32, #tpu.memory_space<vmem>>, vector<1x32xf32>
    %c0_40 = arith.constant 0 : index
    %c0_41 = arith.constant 0 : index
    %76 = vector.load %arg8[%c0_40, %c0_41] : memref<48x160xf32, #tpu.memory_space<vmem>>, vector<48x160xf32>
    %77 = arith.truncf %76 : vector<48x160xf32> to vector<48x160xbf16>
    %cst_42 = arith.constant dense<0.000000e+00> : vector<48x32xf32>
    %78 = tpu.matmul %77, %74, %cst_42 {dimension_numbers = #tpu.dot_dimension_numbers<[1], [0], [0], [1], [0, 0, 1, 1], [], []>} : vector<48x160xbf16>, vector<160x32xbf16>, vector<48x32xf32> -> vector<48x32xf32>
    %79 = vector.broadcast %75 : vector<1x32xf32> to vector<48x32xf32>
    %80 = arith.addf %78, %79 : vector<48x32xf32>
    %81 = math.tanh %80 : vector<48x32xf32>
    %c2_i32_43 = arith.constant 2 : i32
    %82 = tpu.dynamic_rotate %81 by %c2_i32_43 dim 0 : vector<48x32xf32>, i32 -> vector<48x32xf32>
    %83 = vector.broadcast %9 : vector<48x1xf32> to vector<48x32xf32>
    %84 = arith.mulf %82, %83 : vector<48x32xf32>
    %c0_44 = arith.constant 0 : index
    %c0_45 = arith.constant 0 : index
    %85 = vector.load %arg8[%c0_44, %c0_45] : memref<48x160xf32, #tpu.memory_space<vmem>>, vector<48x32xf32>
    tpu.vector_store %arg8[%c0_44, %c0_45], %84 {strides = array<i32>} : memref<48x160xf32, #tpu.memory_space<vmem>>, vector<48x32xf32>,
    %c1_i32_46 = arith.constant 1 : i32
    %86 = tpu.dynamic_rotate %81 by %c1_i32_46 dim 0 : vector<48x32xf32>, i32 -> vector<48x32xf32>
    %87 = vector.broadcast %13 : vector<48x1xf32> to vector<48x32xf32>
    %88 = arith.mulf %86, %87 : vector<48x32xf32>
    %c0_47 = arith.constant 0 : index
    %c32_48 = arith.constant 32 : index
    %89 = vector.load %arg8[%c0_47, %c32_48] : memref<48x160xf32, #tpu.memory_space<vmem>>, vector<48x32xf32>
    tpu.vector_store %arg8[%c0_47, %c32_48], %88 {strides = array<i32>} : memref<48x160xf32, #tpu.memory_space<vmem>>, vector<48x32xf32>,
    %c0_49 = arith.constant 0 : index
    %c64_50 = arith.constant 64 : index
    %90 = vector.load %arg8[%c0_49, %c64_50] : memref<48x160xf32, #tpu.memory_space<vmem>>, vector<48x32xf32>
    tpu.vector_store %arg8[%c0_49, %c64_50], %81 {strides = array<i32>} : memref<48x160xf32, #tpu.memory_space<vmem>>, vector<48x32xf32>,
    %c47_i32_51 = arith.constant 47 : i32
    %91 = tpu.dynamic_rotate %81 by %c47_i32_51 dim 0 : vector<48x32xf32>, i32 -> vector<48x32xf32>
    %92 = vector.broadcast %17 : vector<48x1xf32> to vector<48x32xf32>
    %93 = arith.mulf %91, %92 : vector<48x32xf32>
    %c0_52 = arith.constant 0 : index
    %c96_53 = arith.constant 96 : index
    %94 = vector.load %arg8[%c0_52, %c96_53] : memref<48x160xf32, #tpu.memory_space<vmem>>, vector<48x32xf32>
    tpu.vector_store %arg8[%c0_52, %c96_53], %93 {strides = array<i32>} : memref<48x160xf32, #tpu.memory_space<vmem>>, vector<48x32xf32>,
    %c46_i32_54 = arith.constant 46 : i32
    %95 = tpu.dynamic_rotate %81 by %c46_i32_54 dim 0 : vector<48x32xf32>, i32 -> vector<48x32xf32>
    %96 = vector.broadcast %21 : vector<48x1xf32> to vector<48x32xf32>
    %97 = arith.mulf %95, %96 : vector<48x32xf32>
    %c0_55 = arith.constant 0 : index
    %c128_56 = arith.constant 128 : index
    %98 = vector.load %arg8[%c0_55, %c128_56] : memref<48x160xf32, #tpu.memory_space<vmem>>, vector<48x32xf32>
    tpu.vector_store %arg8[%c0_55, %c128_56], %97 {strides = array<i32>} : memref<48x160xf32, #tpu.memory_space<vmem>>, vector<48x32xf32>,
    %c2 = arith.constant 2 : index
    %c0_57 = arith.constant 0 : index
    %c0_58 = arith.constant 0 : index
    %99 = vector.load %arg4[%c2, %c0_57, %c0_58] : memref<5x160x32xbf16, #tpu.memory_space<vmem>>, vector<1x160x32xbf16>
    %100 = vector.shape_cast %99 : vector<1x160x32xbf16> to vector<160x32xbf16>
    %c2_59 = arith.constant 2 : index
    %c0_60 = arith.constant 0 : index
    %101 = vector.load %arg5[%c2_59, %c0_60] : memref<5x32xf32, #tpu.memory_space<vmem>>, vector<1x32xf32>
    %c0_61 = arith.constant 0 : index
    %c0_62 = arith.constant 0 : index
    %102 = vector.load %arg8[%c0_61, %c0_62] : memref<48x160xf32, #tpu.memory_space<vmem>>, vector<48x160xf32>
    %103 = arith.truncf %102 : vector<48x160xf32> to vector<48x160xbf16>
    %cst_63 = arith.constant dense<0.000000e+00> : vector<48x32xf32>
    %104 = tpu.matmul %103, %100, %cst_63 {dimension_numbers = #tpu.dot_dimension_numbers<[1], [0], [0], [1], [0, 0, 1, 1], [], []>} : vector<48x160xbf16>, vector<160x32xbf16>, vector<48x32xf32> -> vector<48x32xf32>
    %105 = vector.broadcast %101 : vector<1x32xf32> to vector<48x32xf32>
    %106 = arith.addf %104, %105 : vector<48x32xf32>
    %107 = math.tanh %106 : vector<48x32xf32>
    %c2_i32_64 = arith.constant 2 : i32
    %108 = tpu.dynamic_rotate %107 by %c2_i32_64 dim 0 : vector<48x32xf32>, i32 -> vector<48x32xf32>
    %109 = vector.broadcast %9 : vector<48x1xf32> to vector<48x32xf32>
    %110 = arith.mulf %108, %109 : vector<48x32xf32>
    %c0_65 = arith.constant 0 : index
    %c0_66 = arith.constant 0 : index
    %111 = vector.load %arg8[%c0_65, %c0_66] : memref<48x160xf32, #tpu.memory_space<vmem>>, vector<48x32xf32>
    tpu.vector_store %arg8[%c0_65, %c0_66], %110 {strides = array<i32>} : memref<48x160xf32, #tpu.memory_space<vmem>>, vector<48x32xf32>,
    %c1_i32_67 = arith.constant 1 : i32
    %112 = tpu.dynamic_rotate %107 by %c1_i32_67 dim 0 : vector<48x32xf32>, i32 -> vector<48x32xf32>
    %113 = vector.broadcast %13 : vector<48x1xf32> to vector<48x32xf32>
    %114 = arith.mulf %112, %113 : vector<48x32xf32>
    %c0_68 = arith.constant 0 : index
    %c32_69 = arith.constant 32 : index
    %115 = vector.load %arg8[%c0_68, %c32_69] : memref<48x160xf32, #tpu.memory_space<vmem>>, vector<48x32xf32>
    tpu.vector_store %arg8[%c0_68, %c32_69], %114 {strides = array<i32>} : memref<48x160xf32, #tpu.memory_space<vmem>>, vector<48x32xf32>,
    %c0_70 = arith.constant 0 : index
    %c64_71 = arith.constant 64 : index
    %116 = vector.load %arg8[%c0_70, %c64_71] : memref<48x160xf32, #tpu.memory_space<vmem>>, vector<48x32xf32>
    tpu.vector_store %arg8[%c0_70, %c64_71], %107 {strides = array<i32>} : memref<48x160xf32, #tpu.memory_space<vmem>>, vector<48x32xf32>,
    %c47_i32_72 = arith.constant 47 : i32
    %117 = tpu.dynamic_rotate %107 by %c47_i32_72 dim 0 : vector<48x32xf32>, i32 -> vector<48x32xf32>
    %118 = vector.broadcast %17 : vector<48x1xf32> to vector<48x32xf32>
    %119 = arith.mulf %117, %118 : vector<48x32xf32>
    %c0_73 = arith.constant 0 : index
    %c96_74 = arith.constant 96 : index
    %120 = vector.load %arg8[%c0_73, %c96_74] : memref<48x160xf32, #tpu.memory_space<vmem>>, vector<48x32xf32>
    tpu.vector_store %arg8[%c0_73, %c96_74], %119 {strides = array<i32>} : memref<48x160xf32, #tpu.memory_space<vmem>>, vector<48x32xf32>,
    %c46_i32_75 = arith.constant 46 : i32
    %121 = tpu.dynamic_rotate %107 by %c46_i32_75 dim 0 : vector<48x32xf32>, i32 -> vector<48x32xf32>
    %122 = vector.broadcast %21 : vector<48x1xf32> to vector<48x32xf32>
    %123 = arith.mulf %121, %122 : vector<48x32xf32>
    %c0_76 = arith.constant 0 : index
    %c128_77 = arith.constant 128 : index
    %124 = vector.load %arg8[%c0_76, %c128_77] : memref<48x160xf32, #tpu.memory_space<vmem>>, vector<48x32xf32>
    tpu.vector_store %arg8[%c0_76, %c128_77], %123 {strides = array<i32>} : memref<48x160xf32, #tpu.memory_space<vmem>>, vector<48x32xf32>,
    %c3 = arith.constant 3 : index
    %c0_78 = arith.constant 0 : index
    %c0_79 = arith.constant 0 : index
    %125 = vector.load %arg4[%c3, %c0_78, %c0_79] : memref<5x160x32xbf16, #tpu.memory_space<vmem>>, vector<1x160x32xbf16>
    %126 = vector.shape_cast %125 : vector<1x160x32xbf16> to vector<160x32xbf16>
    %c3_80 = arith.constant 3 : index
    %c0_81 = arith.constant 0 : index
    %127 = vector.load %arg5[%c3_80, %c0_81] : memref<5x32xf32, #tpu.memory_space<vmem>>, vector<1x32xf32>
    %c0_82 = arith.constant 0 : index
    %c0_83 = arith.constant 0 : index
    %128 = vector.load %arg8[%c0_82, %c0_83] : memref<48x160xf32, #tpu.memory_space<vmem>>, vector<48x160xf32>
    %129 = arith.truncf %128 : vector<48x160xf32> to vector<48x160xbf16>
    %cst_84 = arith.constant dense<0.000000e+00> : vector<48x32xf32>
    %130 = tpu.matmul %129, %126, %cst_84 {dimension_numbers = #tpu.dot_dimension_numbers<[1], [0], [0], [1], [0, 0, 1, 1], [], []>} : vector<48x160xbf16>, vector<160x32xbf16>, vector<48x32xf32> -> vector<48x32xf32>
    %131 = vector.broadcast %127 : vector<1x32xf32> to vector<48x32xf32>
    %132 = arith.addf %130, %131 : vector<48x32xf32>
    %133 = math.tanh %132 : vector<48x32xf32>
    %c2_i32_85 = arith.constant 2 : i32
    %134 = tpu.dynamic_rotate %133 by %c2_i32_85 dim 0 : vector<48x32xf32>, i32 -> vector<48x32xf32>
    %135 = vector.broadcast %9 : vector<48x1xf32> to vector<48x32xf32>
    %136 = arith.mulf %134, %135 : vector<48x32xf32>
    %c0_86 = arith.constant 0 : index
    %c0_87 = arith.constant 0 : index
    %137 = vector.load %arg8[%c0_86, %c0_87] : memref<48x160xf32, #tpu.memory_space<vmem>>, vector<48x32xf32>
    tpu.vector_store %arg8[%c0_86, %c0_87], %136 {strides = array<i32>} : memref<48x160xf32, #tpu.memory_space<vmem>>, vector<48x32xf32>,
    %c1_i32_88 = arith.constant 1 : i32
    %138 = tpu.dynamic_rotate %133 by %c1_i32_88 dim 0 : vector<48x32xf32>, i32 -> vector<48x32xf32>
    %139 = vector.broadcast %13 : vector<48x1xf32> to vector<48x32xf32>
    %140 = arith.mulf %138, %139 : vector<48x32xf32>
    %c0_89 = arith.constant 0 : index
    %c32_90 = arith.constant 32 : index
    %141 = vector.load %arg8[%c0_89, %c32_90] : memref<48x160xf32, #tpu.memory_space<vmem>>, vector<48x32xf32>
    tpu.vector_store %arg8[%c0_89, %c32_90], %140 {strides = array<i32>} : memref<48x160xf32, #tpu.memory_space<vmem>>, vector<48x32xf32>,
    %c0_91 = arith.constant 0 : index
    %c64_92 = arith.constant 64 : index
    %142 = vector.load %arg8[%c0_91, %c64_92] : memref<48x160xf32, #tpu.memory_space<vmem>>, vector<48x32xf32>
    tpu.vector_store %arg8[%c0_91, %c64_92], %133 {strides = array<i32>} : memref<48x160xf32, #tpu.memory_space<vmem>>, vector<48x32xf32>,
    %c47_i32_93 = arith.constant 47 : i32
    %143 = tpu.dynamic_rotate %133 by %c47_i32_93 dim 0 : vector<48x32xf32>, i32 -> vector<48x32xf32>
    %144 = vector.broadcast %17 : vector<48x1xf32> to vector<48x32xf32>
    %145 = arith.mulf %143, %144 : vector<48x32xf32>
    %c0_94 = arith.constant 0 : index
    %c96_95 = arith.constant 96 : index
    %146 = vector.load %arg8[%c0_94, %c96_95] : memref<48x160xf32, #tpu.memory_space<vmem>>, vector<48x32xf32>
    tpu.vector_store %arg8[%c0_94, %c96_95], %145 {strides = array<i32>} : memref<48x160xf32, #tpu.memory_space<vmem>>, vector<48x32xf32>,
    %c46_i32_96 = arith.constant 46 : i32
    %147 = tpu.dynamic_rotate %133 by %c46_i32_96 dim 0 : vector<48x32xf32>, i32 -> vector<48x32xf32>
    %148 = vector.broadcast %21 : vector<48x1xf32> to vector<48x32xf32>
    %149 = arith.mulf %147, %148 : vector<48x32xf32>
    %c0_97 = arith.constant 0 : index
    %c128_98 = arith.constant 128 : index
    %150 = vector.load %arg8[%c0_97, %c128_98] : memref<48x160xf32, #tpu.memory_space<vmem>>, vector<48x32xf32>
    tpu.vector_store %arg8[%c0_97, %c128_98], %149 {strides = array<i32>} : memref<48x160xf32, #tpu.memory_space<vmem>>, vector<48x32xf32>,
    %c4 = arith.constant 4 : index
    %c0_99 = arith.constant 0 : index
    %c0_100 = arith.constant 0 : index
    %151 = vector.load %arg4[%c4, %c0_99, %c0_100] : memref<5x160x32xbf16, #tpu.memory_space<vmem>>, vector<1x160x16xbf16>
    %152 = vector.shape_cast %151 : vector<1x160x16xbf16> to vector<160x16xbf16>
    %c4_101 = arith.constant 4 : index
    %c0_102 = arith.constant 0 : index
    %153 = vector.load %arg5[%c4_101, %c0_102] : memref<5x32xf32, #tpu.memory_space<vmem>>, vector<1x16xf32>
    %c0_103 = arith.constant 0 : index
    %c0_104 = arith.constant 0 : index
    %154 = vector.load %arg8[%c0_103, %c0_104] : memref<48x160xf32, #tpu.memory_space<vmem>>, vector<48x160xf32>
    %155 = arith.truncf %154 : vector<48x160xf32> to vector<48x160xbf16>
    %cst_105 = arith.constant dense<0.000000e+00> : vector<48x16xf32>
    %156 = tpu.matmul %155, %152, %cst_105 {dimension_numbers = #tpu.dot_dimension_numbers<[1], [0], [0], [1], [0, 0, 1, 1], [], []>} : vector<48x160xbf16>, vector<160x16xbf16>, vector<48x16xf32> -> vector<48x16xf32>
    %157 = vector.broadcast %153 : vector<1x16xf32> to vector<48x16xf32>
    %158 = arith.addf %156, %157 : vector<48x16xf32>
    %159 = arith.addf %158, %28 : vector<48x16xf32>
    %c0_106 = arith.constant 0 : index
    %c0_107 = arith.constant 0 : index
    %160 = vector.load %arg7[%c0_106, %c0_107] : memref<48x16xf32, #tpu.memory_space<vmem>>, vector<48x16xf32>
    tpu.vector_store %arg7[%c0_106, %c0_107], %159 {strides = array<i32>} : memref<48x16xf32, #tpu.memory_space<vmem>>, vector<48x16xf32>,
    return
  }
  func.func @transform_0(%arg0: i32) -> (i32, i32) {
    %c0_i32 = arith.constant 0 : i32
    %c0_i32_0 = arith.constant 0 : i32
    %c0_i32_1 = arith.constant 0 : i32
    return %c0_i32, %c0_i32_0 : i32, i32
  }
  func.func @transform_1(%arg0: i32) -> (i32, i32) {
    %c0_i32 = arith.constant 0 : i32
    %c0_i32_0 = arith.constant 0 : i32
    %c0_i32_1 = arith.constant 0 : i32
    return %c0_i32, %c0_i32_0 : i32, i32
  }
  func.func @transform_2(%arg0: i32) -> (i32, i32) {
    %c0_i32 = arith.constant 0 : i32
    %c0_i32_0 = arith.constant 0 : i32
    %c0_i32_1 = arith.constant 0 : i32
    return %c0_i32, %c0_i32_0 : i32, i32
  }
  func.func @transform_3(%arg0: i32) -> (i32, i32, i32) {
    %c0_i32 = arith.constant 0 : i32
    %c0_i32_0 = arith.constant 0 : i32
    %c0_i32_1 = arith.constant 0 : i32
    %c0_i32_2 = arith.constant 0 : i32
    return %c0_i32, %c0_i32_0, %c0_i32_1 : i32, i32, i32
  }
  func.func @transform_4(%arg0: i32) -> (i32, i32) {
    %c0_i32 = arith.constant 0 : i32
    %c0_i32_0 = arith.constant 0 : i32
    %c0_i32_1 = arith.constant 0 : i32
    return %c0_i32, %c0_i32_0 : i32, i32
  }
  func.func @transform_5(%arg0: i32) -> (i32, i32) {
    %c0_i32 = arith.constant 0 : i32
    %c0_i32_0 = arith.constant 0 : i32
    %c0_i32_1 = arith.constant 0 : i32
    return %c0_i32, %c0_i32_0 : i32, i32
  }
  func.func @transform_6(%arg0: i32) -> (i32, i32) {
    %c0_i32 = arith.constant 0 : i32
    %c0_i32_0 = arith.constant 0 : i32
    %c0_i32_1 = arith.constant 0 : i32
    return %c0_i32, %c0_i32_0 : i32, i32
  }
}

</mosaic_0001>

<bundles_post_ra>
// kernel: fastspeech2_forward.3
= control target key start
LH: loop header
LB: loop body
LE: loop exit
PB: predicated region body
PF: predicated region fallthrough
CT: control target
= control target key end

     0   :  { %s2199_s0 = inlined_call_operand.vmem [shape: s32[2], index: 0, kind: input, shape index: {}]   ;;  %s2200_s1 = inlined_call_operand.vmem [shape: f32[16,32], index: 1, kind: input, shape index: {}]   ;;  %s2201_s2 = inlined_call_operand.vmem [shape: bf16[2,224,96], index: 2, kind: input, shape index: {}]   ;;  %s2202_s3 = inlined_call_operand.vmem [shape: f32[2,8,96], index: 3, kind: input, shape index: {}]   ;;  %s2203_s4 = inlined_call_operand.vmem [shape: bf16[192,32], index: 4, kind: input, shape index: {}]   ;;  %s2204_s5 = inlined_call_operand.vmem [shape: f32[8,32], index: 5, kind: input, shape index: {}]   ;;  %s2205_s6 = inlined_call_operand.vmem [shape: f32[16,32], index: 6, kind: output, shape index: {0}]   ;;  %s2206_s7 = inlined_call_operand.vmem [shape: f32[16,1], index: 7, kind: output, shape index: {1}]  }
   0x1   :  { %s13_s26 = sshll.u32 %s2199_s0, 4  ;;  %s14_s26 = int_to_ptr.vmem [resolvable:$true] %s13_s26 }
   0x2   :  { %s1772_s27 = scalar_lea.vmem %s14_s26, 16  ;;  %p1777_p1 = scmp.lt.s32.totalorder %s14_s26, %s14_s26 }
   0x3   :  { %p1773_p0 = scmp.ne.s32.totalorder %s14_s26, %s1772_s27  ;;  %p1778_p2 = scmp.lt.s32.totalorder %s1772_s27, %s1772_s27 }
   0x5   :  { %p1779_p3 = por %p1778_p2, %p1777_p1 }
   0x7   :  { %p1780_p4 = pnand %p1779_p3, %p1773_p0 }
   0x9   :  { %1783 = shalt.err (!%p1780_p4)  }
   0xa   :  { %s1794_s28 = smov [#allocation5]  }
   0xb   :  { %16 = dma.vmem_to_smem %s14_s26, 16, %s1794_s28, [#allocation4] }
   0xc   :  { %1788 = dma.done.wait [#allocation4], 16 }
   0xd   :  { %1789 = vsyncadd [#allocation4], 4294967280 }
   0xe   :  { %18 = sfence }
   0xf   :  { %s1852_s29 = smov 0  }
  0x10 LB: > { %s1858_s0 = sadd.s32 4294967295, %s1792_s29   ;;  %p1483_p5 = scmp.ge.s32.totalorder %s1792_s29, 1  ;;  %s1792_s29 = sphi %s1852_s29, %s24_s29  }
  0x11   : > { %p221_p6 = scmp.lt.s32.totalorder %s1792_s29, 3 }
  0x13   : > { %p222_p7 = pnand %p1483_p5, %p221_p6 }
  0x14   : > { %p250_p8 = scmp.lt.s32.totalorder (!%p222_p7), %s1858_s0, 1  ;;  %p1486_p9 = scmp.ne.s32.totalorder (!%p222_p7), %s1858_s0, 0 }
  0x15   : > { %225 = sbr.rel (%p222_p7) target bundleno = 4167 (0x1047), region = 40 }
  0x1c   : > { %s251_s30 = scalar_select %p250_p8, %s1858_s0, 1 }
  0x1d   : > { %263 = sbr.rel (%p1486_p9) target bundleno = 36 (0x24), region = 44  ;;  %v264_v0 = vld [vmem:[%s2200_s1] sm:$0xff] (!%p1486_p9)  ;;  %vm266_vm0 = vcmask (!%p1486_p9), 261120   ;;  %v265_v1 = vld [vmem:[%s2200_s1 + $0x8] sm:$0xff] (!%p1486_p9) }
  0x1e   : > { %s1690_s8 = smul.u32 112, %s251_s30  ;;  %s1485_s9 = sshll.u32 %s251_s30, 3  ;;  %267 = vst.msk [vmem:[#allocation2] sm:$0xff] (!%p1486_p9), %vm266_vm0, %v264_v0  ;;  %268 = vst.msk [vmem:[#allocation2 + $0x8] sm:$0xff] (!%p1486_p9), %vm266_vm0, %v265_v1 }
  0x1f   : > { %s1867_s12 = scalar_lea.vmem %s2202_s3, %s1485_s9 }
  0x20   : > { %s1872_s15 = scalar_lea.vmem %s2201_s2, %s1690_s8 }
  0x24 PF: > { %v1714_v2 = vld [vmem:[%s1872_s15] sm:$0xff]   ;;  %v1795_v3 = vmov 0.0   ;;  %v1715_v4 = vld [vmem:[%s1872_s15 + $0x8] sm:$0xff]   ;;  %vm1796_vm1 = vmmov 0   ;;  %vm390_vm2 = vcmask 261120   ;;  %s1797_s20 = smov 112   ;;  %v269_v21 = vlaneseq }
  0x25   : > { %1590 = vmatprep.subr.bf16.mxu0 %v1795_v3  ;;  %1598 = vmatprep.subr.bf16.mxu1 %v1795_v3  ;;  %v1887_v5 = vld [vmem:[#allocation2] sm:$0xff]  ;;  %v1889_v6 = vld [vmem:[#allocation2 + $0x8] sm:$0xff]  ;;  %s1798_s21 = smov 96   ;;  %s1799_s22 = smov 80   ;;  %vm439_vm3 = vcmask 130048   ;;  %vm696_vm9 = vcmask 261248  }
  0x26   : > { %1591 = vmatpush3.bf16.msra.mxu0 %v1714_v2  ;;  %1594 = vmatprep.mubr.msk.bf16.mxu0 %vm1796_vm1, %v1795_v3  ;;  %v373_v7 = vpack.c.bf16 %v1889_v6, %v1887_v5  ;;  %v1495_v8 = vld [vmem:[%s1867_s12] ss:$0 sm:$0xff]  ;;  %s283_s23 = sld [smem:[#allocation5]]  ;;  %v1917_v22 = vshrl.u32 %v269_v21, 7  ;;  %s1924_s24 = sld [smem:[#allocation5 + $0x1]]  ;;  %v318_v25 = vand.u32 127, %v269_v21 }
  0x27   : > { %1592 = vmatprep.subr.bf16.mxu0 %v1795_v3  ;;  %1600 = vmatprep.mubr.msk.bf16.mxu1 %vm1796_vm1, %v1795_v3  ;;  %v1800_v28 = vmov -1e+09   ;;  %s1801_s26 = smov 48   ;;  %s1802_s27 = smov 64   ;;  %vm822_vm15 = vcmask 523520   ;;  %vm840_vm0 = vcmask 785920  }
  0x28   : > { %vm324_vm5 = vcmp.ge.s32.totalorder %v318_v25, 8  ;;  %s1803_s28 = smov 16   ;;  %vm311_vm11 = vcmp.le.s32.totalorder %v1917_v22, 6  ;;  %vm305_vm12 = vcmp.ge.s32.totalorder %v1917_v22, 1  ;;  %s1804_s30 = smov 32   ;;  %vm827_vm13 = vcmp.lt.s32.totalorder %v1917_v22, 7 }
  0x29   : > { %vm807_vm14 = vcmp.lt.s32.totalorder %v1917_v22, 1  ;;  %p1525_p10 = scmp.ne.s32.totalorder %s1858_s0, 1 }
  0x2a   : > { %1593 = vmatpush3.bf16.msra.mxu0 %v1715_v4  ;;  %s1805_s14 = smov (!%p1525_p10), 32   ;;  %s1807_s16 = smov (!%p1525_p10), 64  }
  0x2b   : > { %1604 = vmatprep.subr.bf16.mxu0 %v1795_v3 }
  0x2c   : > { %v284_v23 = vstv %s283_s23  ;;  %s325_s25 = sadd.s32 8, %s1924_s24 }
  0x2d   : > { %1595 = vmatmul.mubr.msk.bf16.vlgmr.msra.gmra.mrb[0].mxu0 %vm390_vm2, %v373_v7  ;;  %vm1920_vm4 = vcmp.lt.s32.totalorder %v1917_v22, %v284_v23  ;;  %v326_v26 = vstv %s325_s25  ;;  %vm320_vm7 = vcmp.lt.s32.totalorder %v318_v25, %v284_v23 }
  0x2e   : > { %1606 = vmatprep.mubr.msk.bf16.mxu0 %vm1796_vm1, %v1795_v3  ;;  %vm327_vm6 = vcmp.lt.s32.totalorder %v318_v25, %v326_v26  ;;  %v333_v29 = vsel %vm320_vm7, 0.0, %v1800_v28 }
  0x2f   : > { %vm328_vm8 = vmand %vm324_vm5, %vm327_vm6  ;;  %vm1431_vm5 = vcmask (!%p1525_p10), 7168  }
  0x30   : > { %v334_v33 = vsel %vm328_vm8, 0.0, %v1800_v28 }
 0x100   : > { %v428_v9 = vpop.f32.mrb[0].mxu0 }
 0x101   : > { %v1596_v10 = vpop.f32.mrb[1].mxu0  ;;  %v429_v12 = vadd.f32 %v1495_v8, %v428_v9 }
 0x102   : > { %v431_v11 = vpop.f32.mrb[2].mxu0 }
 0x103   : > { %v432_v13 = vadd.f32 %v1495_v8, %v431_v11  ;;  %v1597_v14 = vpop.f32.mrb[3].mxu0 }
 0x105   : > { %v1901_v15 = vpack.c.bf16 %v432_v13, %v429_v12 }
 0x107   : > { %563 = vrot.lane.b32.xlu1 %v1901_v15, %s1797_s20  ;;  %437 = vrot.lane.b32.xlu0 %v1901_v15, %s1798_s21 }
 0x10b   : > { %565 = vrot.lane.b32.xlu0 %v1901_v15, %s1799_s22 }
 0x179   : > { %v438_v16 = vpop.permute.xlu0 %437  ;;  %v564_v20 = vpop.permute.xlu1 %563 }
 0x17a   : > { %v444_v17 = vsel %vm439_vm3, %v438_v16, 0 }
 0x17b   : > { %1599 = vmatpush3.bf16.xpose.msra.mxu1 %v444_v17 }
 0x17c   : > { %1610 = vmatprep.subr.bf16.mxu1 %v1795_v3 }
 0x17d   : > { %v566_v18 = vpop.permute.xlu0 %565 }
 0x17e   : > { %v571_v19 = vsel %vm439_vm3, %v566_v18, 0 }
 0x182   : > { %1601 = vmatmul.mubr.msk.bf16.vlgmr.msra.gmra.mrb[0].mxu1 %vm439_vm3, %v1901_v15 }
 0x183   : > { %1611 = vmatpush3.bf16.xpose.msra.mxu1 %v571_v19  ;;  %1612 = vmatprep.mubr.msk.bf16.mxu1 %vm1796_vm1, %v1795_v3 }
 0x184   : > { %1622 = vmatprep.subr.bf16.mxu1 %v1795_v3 }
 0x18a   : > { %1613 = vmatmul.mubr.msk.bf16.vlgmr.msra.gmra.mrb[4].mxu1 %vm439_vm3, %v564_v20 }
 0x18b   : > { %1626 = vmatprep.mubr.msk.bf16.mxu1 %vm1796_vm1, %v1795_v3 }
 0x255   : > { %v480_v27 = vpop.f32.mrb[0].mxu1 }
 0x256   : > { %v487_v30 = vmul.f32 0.25, %v480_v27  ;;  %v1602_v31 = vpop.f32.mrb[1].mxu1  ;;  %v1716_v27 = vld [vmem:[%s1872_s15 + $0x10] sm:$0xff]  }
 0x257   : > { %v483_v32 = vpop.f32.mrb[2].mxu1  ;;  %1623 = vmatpush3.bf16.msra.mxu1 %v1716_v27  ;;  %v1723_v27 = vld [vmem:[%s1872_s15 + $0x48] sm:$0xff]  }
 0x258   : > { %v488_v34 = vmul.f32 0.25, %v483_v32  ;;  %v1603_v35 = vpop.f32.mrb[3].mxu1  ;;  %v489_v36 = vadd.f32 %v487_v30, %v333_v29  ;;  %1624 = vmatprep.subr.bf16.mxu1 %v1795_v3 }
 0x25a   : > { %v491_v37 = vsel %vm439_vm3, %v489_v36, -inf  ;;  %v490_v38 = vadd.f32 %v488_v34, %v334_v33 }
 0x25b   : > { %492 = vmax.xlane.f32.xlu1 %v491_v37 }
 0x25c   : > { %v494_v39 = vsel %vm439_vm3, %v490_v38, -inf }
 0x25d   : > { %v607_v40 = vpop.f32.mrb[4].mxu1  ;;  %495 = vmax.xlane.f32.xlu0 %v494_v39 }
 0x25e   : > { %v614_v41 = vmul.f32 0.25, %v607_v40  ;;  %v1614_v42 = vpop.f32.mrb[5].mxu1 }
 0x25f   : > { %v610_v43 = vpop.f32.mrb[6].mxu1  ;;  %v1503_v42 = vld [vmem:[%s1867_s12 + $0x1] ss:$0 sm:$0xff] }
 0x260   : > { %v615_v44 = vmul.f32 0.25, %v610_v43  ;;  %v1615_v45 = vpop.f32.mrb[7].mxu1  ;;  %v616_v46 = vadd.f32 %v614_v41, %v333_v29  ;;  %v1717_v29 = vld [vmem:[%s1872_s15 + $0x18] sm:$0xff]  }
 0x261   : > { %1625 = vmatpush3.bf16.msra.mxu1 %v1717_v29  ;;  %v1999_v29 = vsel %vm305_vm12, 1.0, %v1795_v3 }
 0x262   : > { %v618_v47 = vsel %vm439_vm3, %v616_v46, -inf  ;;  %v617_v48 = vadd.f32 %v615_v44, %v334_v33  ;;  %1646 = vmatprep.subr.bf16.mxu1 %v1795_v3 }
 0x263   : > { %619 = vmax.xlane.f32.xlu0 %v618_v47 }
 0x264   : > { %v621_v49 = vsel %vm439_vm3, %v617_v48, -inf }
 0x265   : > { %622 = vmax.xlane.f32.xlu1 %v621_v49 }
 0x2e8   : > { %v493_v50 = vpop.xlane.xlu1 %492 }
 0x2e9   : > { %v497_v51 = vsub.f32 %v489_v36, %v493_v50 }
 0x2ea   : > { %v496_v52 = vpop.xlane.xlu0 %495 }
 0x2eb   : > { %v499_v53 = vmul.f32 1.442695, %v497_v51  ;;  %v498_v54 = vsub.f32 %v490_v38, %v496_v52 }
 0x2ed   : > { %1728 = vpow2.f32 %v499_v53  ;;  %v501_v55 = vmul.f32 1.442695, %v498_v54 }
 0x2ef   : > { %1730 = vpow2.f32 %v501_v55 }
 0x2f0   : > { %v620_v56 = vpop.xlane.xlu0 %619 }
 0x2f1   : > { %v624_v57 = vsub.f32 %v616_v46, %v620_v56 }
 0x2f2   : > { %v623_v58 = vpop.xlane.xlu1 %622 }
 0x2f3   : > { %v626_v59 = vmul.f32 1.442695, %v624_v57  ;;  %v625_v60 = vsub.f32 %v617_v48, %v623_v58 }
 0x2f5   : > { %1732 = vpow2.f32 %v626_v59  ;;  %v628_v61 = vmul.f32 1.442695, %v625_v60 }
 0x2f7   : > { %v1729_v62 = vpop.eup %1728  ;;  %1734 = vpow2.f32 %v628_v61 }
 0x2f8   : > { %v503_v63 = vsel %vm439_vm3, %v1729_v62, 0.0 }
 0x2f9   : > { %v1731_v0 = vpop.eup %1730  ;;  %504 = vadd.xlane.f32.xlu0 %v503_v63 }
 0x2fa   : > { %v506_v1 = vsel %vm439_vm3, %v1731_v0, 0.0 }
 0x2fb   : > { %507 = vadd.xlane.f32.xlu1 %v506_v1 }
 0x2ff   : > { %v1733_v2 = vpop.eup %1732 }
 0x300   : > { %v630_v4 = vsel %vm439_vm3, %v1733_v2, 0.0 }
 0x301   : > { %v1735_v7 = vpop.eup %1734  ;;  %631 = vadd.xlane.f32.xlu0 %v630_v4 }
 0x302   : > { %v633_v8 = vsel %vm439_vm3, %v1735_v7, 0.0 }
 0x303   : > { %634 = vadd.xlane.f32.xlu1 %v633_v8  ;;  %v1720_v8 = vld [vmem:[%s1872_s15 + $0x30] sm:$0xff]  }
 0x314   : > { %641 = vrot.lane.b32.xlu1 %v1901_v15, %s1801_s26 }
 0x317   : > { %514 = vrot.lane.b32.xlu0 %v1901_v15, %s1802_s27 }
 0x386   : > { %v505_v9 = vpop.xlane.xlu0 %504 }
 0x387   : > { %1736 = vrcp.f32 %v505_v9  ;;  %v1721_v9 = vld [vmem:[%s1872_s15 + $0x38] sm:$0xff]  }
 0x388   : > { %v508_v10 = vpop.xlane.xlu1 %507 }
 0x389   : > { %1738 = vrcp.f32 %v508_v10 }
 0x38e   : > { %v632_v11 = vpop.xlane.xlu0 %631 }
 0x38f   : > { %1740 = vrcp.f32 %v632_v11  ;;  %v1507_v11 = vld [vmem:[%s1867_s12 + $0x2] ss:$0 sm:$0xff] }
 0x390   : > { %v635_v12 = vpop.xlane.xlu1 %634 }
 0x391   : > { %v1737_v13 = vpop.eup %1736  ;;  %1742 = vrcp.f32 %v635_v12  ;;  %v294_v12 = vstv %s1924_s24 }
 0x392   : > { %v515_v14 = vpop.permute.xlu0 %514  ;;  %v511_v17 = vmul.f32 %v1737_v13, %v1729_v62  ;;  %v1719_v62 = vld [vmem:[%s1872_s15 + $0x28] sm:$0xff]   ;;  %vm296_vm10 = vcmp.lt.s32.totalorder %v1917_v22, %v294_v12 }
 0x393   : > { %v1739_v16 = vpop.eup %1738  ;;  %1605 = vmatpush3.bf16.msra.mxu0 %v515_v14 }
 0x394   : > { %v512_v18 = vmul.f32 %v1739_v16, %v1731_v0  ;;  %1616 = vmatprep.subr.bf16.mxu0 %v1795_v3  ;;  %v642_v15 = vpop.permute.xlu1 %641  ;;  %v1508_v16 = vld [vmem:[%s1867_s12 + $0x3] ss:$0 sm:$0xff] }
 0x396   : > { %v513_v19 = vpack.c.bf16 %v512_v18, %v511_v17 }
 0x398   : > { %1607 = vmatmul.mubr.msk.bf16.vlgmr.msra.gmra.mrb[4].mxu0 %vm439_vm3, %v513_v19  ;;  %v1722_v19 = vld [vmem:[%s1872_s15 + $0x40] sm:$0xff]  }
 0x399   : > { %v1741_v20 = vpop.eup %1740  ;;  %1617 = vmatpush3.bf16.msra.mxu0 %v642_v15  ;;  %1618 = vmatprep.mubr.msk.bf16.mxu0 %vm1796_vm1, %v1795_v3  ;;  %v1977_v15 = vsel %vm1920_vm4, 1.0, %v1795_v3  ;;  %vm1808_vm4 = vmmov (!%p1525_p10), 0  }
 0x39a   : > { %1630 = vmatprep.subr.bf16.mxu0 %v1795_v3  ;;  %v638_v23 = vmul.f32 %v1741_v20, %v1733_v2 }
 0x39b   : > { %v1743_v21 = vpop.eup %1742 }
 0x39c   : > { %v639_v25 = vmul.f32 %v1743_v21, %v1735_v7 }
 0x39e   : > { %v640_v26 = vpack.c.bf16 %v639_v25, %v638_v23  ;;  %v1981_v23 = vsel %vm296_vm10, 1.0, %v1795_v3 }
 0x3a0   : > { %1619 = vmatmul.mubr.msk.bf16.vlgmr.msra.gmra.mrb[8].mxu0 %vm439_vm3, %v640_v26 }
 0x3a1   : > { %1642 = vmatprep.mubr.msk.bf16.mxu0 %vm1796_vm1, %v1795_v3 }
 0x46b   : > { %v554_v28 = vpop.f32.mrb[4].mxu0 }
 0x46c   : > { %561 = vst.msk [vmem:[#allocation3] sm:$0xff] %vm439_vm3, %v554_v28  ;;  %v1608_v30 = vpop.f32.mrb[5].mxu0  ;;  %v1995_v28 = vsel %vm311_vm11, 1.0, %v1795_v3 }
 0x46d   : > { %v557_v31 = vpop.f32.mrb[6].mxu0 }
 0x46e   : > { %562 = vst.msk [vmem:[#allocation3 + $0x8] sm:$0xff] %vm439_vm3, %v557_v31  ;;  %v1609_v32 = vpop.f32.mrb[7].mxu0  ;;  %vm962_vm3 = vcmask 523264  }
 0x473   : > { %v681_v33 = vpop.f32.mrb[8].mxu0 }
 0x474   : > { %690 = vrot.lane.b32.xlu1 %v681_v33, %s1803_s28  ;;  %v1620_v34 = vpop.f32.mrb[9].mxu0 }
 0x475   : > { %v684_v35 = vpop.f32.mrb[10].mxu0 }
 0x476   : > { %692 = vrot.lane.b32.xlu0 %v684_v35, %s1803_s28  ;;  %v1621_v36 = vpop.f32.mrb[11].mxu0 }
 0x4e6   : > { %v691_v37 = vpop.permute.xlu1 %690 }
 0x4e7   : > { %697 = vst.msk [vmem:[#allocation3] sm:$0xff] %vm696_vm9, %v691_v37 }
 0x4e8   : > { %v693_v38 = vpop.permute.xlu0 %692 }
 0x4e9   : > { %698 = vst.msk [vmem:[#allocation3 + $0x8] sm:$0xff] %vm696_vm9, %v693_v38  ;;  %v1724_v38 = vld [vmem:[%s1872_s15 + $0x50] sm:$0xff]  }
 0x4ee   : > { %v699_v39 = vld [vmem:[#allocation3] sm:$0xff] }
 0x4f0   : > { %v700_v40 = vld [vmem:[#allocation3 + $0x8] sm:$0xff] }
 0x4f1   : > { %v701_v41 = vpack.c.bf16 %v700_v40, %v699_v39 }
 0x4f3   : > { %1627 = vmatmul.mubr.msk.bf16.vlgmr.msra.gmra.mrb[8].mxu1 %vm390_vm2, %v701_v41 }
 0x4f4   : > { %1654 = vmatprep.mubr.msk.bf16.mxu1 %vm1796_vm1, %v1795_v3  ;;  %1647 = vmatpush3.bf16.msra.mxu1 %v1724_v38  ;;  %vm886_vm1 = vcmask 785408  }
 0x4f5   : > { %1648 = vmatprep.subr.bf16.mxu1 %v1795_v3 }
 0x5c6   : > { %v755_v43 = vpop.f32.mrb[8].mxu1 }
 0x5c7   : > { %v756_v44 = vadd.f32 %v1503_v42, %v755_v43  ;;  %v1628_v45 = vpop.f32.mrb[9].mxu1  ;;  %v1725_v43 = vld [vmem:[%s1872_s15 + $0x58] sm:$0xff]  }
 0x5c8   : > { %v758_v46 = vpop.f32.mrb[10].mxu1  ;;  %1649 = vmatpush3.bf16.msra.mxu1 %v1725_v43 }
 0x5c9   : > { %v759_v47 = vadd.f32 %v1503_v42, %v758_v46  ;;  %v1629_v48 = vpop.f32.mrb[11].mxu1  ;;  %v762_v49 = vadd.f32 %v756_v44, %v1887_v5  ;;  %1650 = vmatprep.subr.bf16.mxu1 %v1795_v3 }
 0x5cb   : > { %v764_v50 = vsel %vm390_vm2, %v762_v49, 0.0  ;;  %v763_v51 = vadd.f32 %v759_v47, %v1889_v6  ;;  %v1718_v6 = vld [vmem:[%s1872_s15 + $0x20] sm:$0xff]  }
 0x5cc   : > { %765 = vadd.xlane.f32.xlu1 %v764_v50  ;;  %1631 = vmatpush3.bf16.msra.mxu0 %v1718_v6  ;;  %v1517_v6 = vld [vmem:[%s1867_s12 + $0x5] ss:$0 sm:$0xff] }
 0x5cd   : > { %v767_v52 = vsel %vm390_vm2, %v763_v51, 0.0  ;;  %1632 = vmatprep.subr.bf16.mxu0 %v1795_v3 }
 0x5ce   : > { %768 = vadd.xlane.f32.xlu0 %v767_v52  ;;  %v1727_v52 = vld [vmem:[%s1872_s15 + $0x68] sm:$0xff]  }
 0x5d0   : > { %1633 = vmatpush3.bf16.msra.mxu0 %v1719_v62 }
 0x5d1   : > { %1634 = vmatprep.subr.bf16.mxu0 %v1795_v3 }
 0x5d4   : > { %1635 = vmatpush3.bf16.msra.mxu0 %v1720_v8 }
 0x5d5   : > { %1636 = vmatprep.subr.bf16.mxu0 %v1795_v3 }
 0x5d8   : > { %1637 = vmatpush3.bf16.msra.mxu0 %v1721_v9 }
 0x5d9   : > { %1638 = vmatprep.subr.bf16.mxu0 %v1795_v3 }
 0x5dc   : > { %1639 = vmatpush3.bf16.msra.mxu0 %v1722_v19 }
 0x5dd   : > { %1640 = vmatprep.subr.bf16.mxu0 %v1795_v3 }
 0x5e0   : > { %1641 = vmatpush3.bf16.msra.mxu0 %v1723_v27 }
 0x659   : > { %v766_v53 = vpop.xlane.xlu1 %765 }
 0x65a   : > { %v771_v54 = vmul.f32 0.03125, %v766_v53  ;;  %v1509_v53 = vld [vmem:[%s1867_s12 + $0x4] ss:$0 sm:$0xff] }
 0x65b   : > { %v769_v55 = vpop.xlane.xlu0 %768 }
 0x65c   : > { %v773_v56 = vsub.f32 %v762_v49, %v771_v54  ;;  %v772_v57 = vmul.f32 0.03125, %v769_v55 }
 0x65e   : > { %v774_v58 = vsub.f32 %v763_v51, %v772_v57  ;;  %v775_v59 = vmul.f32 %v773_v56, %v773_v56  ;;  %v1726_v51 = vld [vmem:[%s1872_s15 + $0x60] sm:$0xff]  }
 0x65f   : > { %1651 = vmatpush3.bf16.msra.mxu1 %v1726_v51 }
 0x660   : > { %v777_v60 = vsel %vm390_vm2, %v775_v59, 0.0  ;;  %v776_v5 = vmul.f32 %v774_v58, %v774_v58  ;;  %1652 = vmatprep.subr.bf16.mxu1 %v1795_v3 }
 0x661   : > { %778 = vadd.xlane.f32.xlu0 %v777_v60 }
 0x662   : > { %v780_v61 = vsel %vm390_vm2, %v776_v5, 0.0 }
 0x663   : > { %781 = vadd.xlane.f32.xlu1 %v780_v61  ;;  %1653 = vmatpush3.bf16.msra.mxu1 %v1727_v52 }
 0x6ee   : > { %v779_v63 = vpop.xlane.xlu0 %778 }
 0x6ef   : > { %v783_v0 = vmul.f32 0.03125, %v779_v63 }
 0x6f0   : > { %v782_v1 = vpop.xlane.xlu1 %781 }
 0x6f1   : > { %v785_v2 = vadd.f32 1e-05, %v783_v0  ;;  %v784_v4 = vmul.f32 0.03125, %v782_v1 }
 0x6f3   : > { %1744 = vrsqrt.f32 %v785_v2  ;;  %v786_v7 = vadd.f32 1e-05, %v784_v4 }
 0x6f5   : > { %1746 = vrsqrt.f32 %v786_v7 }
 0x6fd   : > { %v1745_v10 = vpop.eup %1744 }
 0x6fe   : > { %v789_v13 = vmul.f32 %v1745_v10, %v773_v56 }
 0x6ff   : > { %v1747_v14 = vpop.eup %1746 }
 0x700   : > { %v790_v17 = vmul.f32 %v1747_v14, %v774_v58  ;;  %v795_v18 = vmul.f32 %v1507_v11, %v789_v13 }
 0x702   : > { %v801_v20 = vadd.f32 %v1508_v16, %v795_v18  ;;  %v796_v21 = vmul.f32 %v1507_v11, %v790_v17 }
 0x704   : > { %v1984_v25 = vmul.f32 %v1977_v15, %v801_v20  ;;  %v802_v26 = vadd.f32 %v1508_v16, %v796_v21 }
 0x706   : > { %816 = vrot.lane.b32.xlu0 %v1984_v25, %s1804_s30  ;;  %v1992_v24 = vmul.f32 %v1981_v23, %v802_v26  ;;  %v805_v30 = vrot.slane %v1984_v25, 7  ;;  %v825_v32 = vrot.slane %v1984_v25, 1 }
 0x708   : > { %818 = vrot.lane.b32.xlu1 %v1992_v24, %s1804_s30  ;;  %v806_v31 = vrot.slane %v1992_v24, 7  ;;  %v826_v33 = vrot.slane %v1992_v24, 1 }
 0x70a   : > { %v829_v34 = vsel %vm827_vm13, %v826_v33, %v825_v32  ;;  %v828_v35 = vsel %vm827_vm13, %v825_v32, %v826_v33  ;;  %v809_v36 = vsel %vm807_vm14, %v806_v31, %v805_v30  ;;  %v808_v37 = vsel %vm807_vm14, %v805_v30, %v806_v31  ;;  %v1523_v32 = vld [vmem:[%s1867_s12 + $0x6] ss:$0 sm:$0xff] }
 0x70b   : > { %v831_v39 = vmul.f32 %v1995_v28, %v829_v34  ;;  %v830_v40 = vmul.f32 %v1995_v28, %v828_v35  ;;  %v810_v41 = vmul.f32 %v1999_v29, %v809_v36  ;;  %v811_v42 = vmul.f32 %v1999_v29, %v808_v37  ;;  %v1524_v35 = vld [vmem:[%s1867_s12 + $0x7] ss:$0 sm:$0xff] }
 0x70d   : > { %836 = vrot.lane.b32.xlu0 %v831_v39, %s1802_s27  ;;  %834 = vrot.lane.b32.xlu1 %v830_v40, %s1802_s27  ;;  %812 = vst.msk [vmem:[#allocation3] sm:$0xff] %vm390_vm2, %v810_v41  ;;  %813 = vst.msk [vmem:[#allocation3 + $0x8] sm:$0xff] %vm390_vm2, %v811_v42 }
 0x778   : > { %v817_v44 = vpop.permute.xlu0 %816 }
 0x779   : > { %823 = vst.msk [vmem:[#allocation3] sm:$0xff] %vm822_vm15, %v817_v44 }
 0x77a   : > { %v819_v45 = vpop.permute.xlu1 %818 }
 0x77b   : > { %824 = vst.msk [vmem:[#allocation3 + $0x8] sm:$0xff] %vm822_vm15, %v819_v45  ;;  %v1752_v45 = vld [vmem:[%s2203_s4] sm:$0xff] (!%p1525_p10)  }
 0x77f   : > { %v837_v46 = vpop.permute.xlu0 %836  ;;  %v835_v47 = vpop.permute.xlu1 %834 }
 0x780   : > { %842 = vst.msk [vmem:[#allocation3 + $0x8] sm:$0xff] %vm840_vm0, %v837_v46  ;;  %841 = vst.msk [vmem:[#allocation3] sm:$0xff] %vm840_vm0, %v835_v47  ;;  %v1806_v46 = vmov (!%p1525_p10), 0.0  }
 0x781   : > { %1658 = vmatprep.subr.bf16.mxu0 (!%p1525_p10), %v1806_v46  ;;  %1674 = vmatprep.subr.bf16.mxu1 (!%p1525_p10), %v1806_v46 }
 0x787   : > { %v843_v48 = vld [vmem:[#allocation3] sm:$0xff]  ;;  %v844_v49 = vld [vmem:[#allocation3 + $0x8] sm:$0xff] }
 0x788   : > { %v845_v50 = vpack.c.bf16 %v844_v49, %v843_v48  ;;  %v1753_v49 = vld [vmem:[%s2203_s4 + $0x8] sm:$0xff] (!%p1525_p10)  }
 0x78a   : > { %1643 = vmatmul.mubr.msk.bf16.vlgmr.msra.gmra.mrb[12].mxu0 %vm886_vm1, %v845_v50 }
 0x78b   : > { %1659 = vmatpush3.bf16.msra.mxu0 (!%p1525_p10), %v1752_v45  ;;  %1670 = vmatprep.mubr.msk.bf16.mxu0 (!%p1525_p10), %vm1808_vm4, %v1806_v46  ;;  %v1761_v45 = vld [vmem:[%s2203_s4 + $0x48] sm:$0xff] (!%p1525_p10)  }
 0x78c   : > { %1660 = vmatprep.subr.bf16.mxu0 (!%p1525_p10), %v1806_v46 }
 0x78f   : > { %1661 = vmatpush3.bf16.msra.mxu0 (!%p1525_p10), %v1753_v49 }
 0x790   : > { %1662 = vmatprep.subr.bf16.mxu0 (!%p1525_p10), %v1806_v46 }
 0x85d   : > { %v924_v54 = vpop.f32.mrb[12].mxu0 }
 0x85e   : > { %v925_v55 = vadd.f32 %v1509_v53, %v924_v54  ;;  %v1644_v56 = vpop.f32.mrb[13].mxu0 }
 0x85f   : > { %v927_v57 = vpop.f32.mrb[14].mxu0 }
 0x860   : > { %v928_v58 = vadd.f32 %v1509_v53, %v927_v57  ;;  %v1645_v59 = vpop.f32.mrb[15].mxu0  ;;  %v931_v60 = vmax.f32 %v925_v55, 0.0 }
 0x861   : > { %v1755_v59 = vld [vmem:[%s2203_s4 + $0x18] sm:$0xff] (!%p1525_p10)  }
 0x862   : > { %v932_v5 = vmax.f32 %v928_v58, 0.0  ;;  %v1754_v58 = vld [vmem:[%s2203_s4 + $0x10] sm:$0xff] (!%p1525_p10)  }
 0x863   : > { %1663 = vmatpush3.bf16.msra.mxu0 (!%p1525_p10), %v1754_v58 }
 0x864   : > { %v933_v61 = vpack.c.bf16 %v932_v5, %v931_v60  ;;  %1664 = vmatprep.subr.bf16.mxu0 (!%p1525_p10), %v1806_v46  ;;  %v1756_v60 = vld [vmem:[%s2203_s4 + $0x20] sm:$0xff] (!%p1525_p10)   ;;  %v1757_v5 = vld [vmem:[%s2203_s4 + $0x28] sm:$0xff] (!%p1525_p10)  }
 0x866   : > { %1655 = vmatmul.mubr.msk.bf16.vlgmr.msra.gmra.mrb[12].mxu1 %vm962_vm3, %v933_v61 }
 0x867   : > { %1686 = vmatprep.mubr.msk.bf16.mxu1 (!%p1525_p10), %vm1808_vm4, %v1806_v46  ;;  %1665 = vmatpush3.bf16.msra.mxu0 (!%p1525_p10), %v1755_v59 }
 0x868   : > { %1666 = vmatprep.subr.bf16.mxu0 (!%p1525_p10), %v1806_v46 }
 0x86b   : > { %1667 = vmatpush3.bf16.msra.mxu0 (!%p1525_p10), %v1756_v60 }
 0x86c   : > { %1668 = vmatprep.subr.bf16.mxu0 (!%p1525_p10), %v1806_v46 }
 0x86f   : > { %1669 = vmatpush3.bf16.msra.mxu0 (!%p1525_p10), %v1757_v5 }
 0x939   : > { %v1000_v62 = vpop.f32.mrb[12].mxu1 }
 0x93a   : > { %v1001_v63 = vadd.f32 %v1517_v6, %v1000_v62  ;;  %v1656_v0 = vpop.f32.mrb[13].mxu1 }
 0x93b   : > { %v1003_v1 = vpop.f32.mrb[14].mxu1 }
 0x93c   : > { %v1004_v3 = vadd.f32 %v1517_v6, %v1003_v1  ;;  %v1657_v2 = vpop.f32.mrb[15].mxu1  ;;  %v1007_v4 = vadd.f32 %v1001_v63, %v1984_v25 }
 0x93d   : > { %v1526_v2 = vld [vmem:[%s2204_s5] ss:$0 sm:$0xff] (!%p1525_p10) }
 0x93e   : > { %v1009_v7 = vsel %vm390_vm2, %v1007_v4, 0.0  ;;  %v1008_v8 = vadd.f32 %v1004_v3, %v1992_v24 }
 0x93f   : > { %1010 = vadd.xlane.f32.xlu1 %v1009_v7 }
 0x940   : > { %v1012_v9 = vsel %vm390_vm2, %v1008_v8, 0.0 }
 0x941   : > { %1013 = vadd.xlane.f32.xlu0 %v1012_v9 }
 0x9cc   : > { %v1011_v10 = vpop.xlane.xlu1 %1010 }
 0x9cd   : > { %v1015_v11 = vmul.f32 0.03125, %v1011_v10 }
 0x9ce   : > { %v1014_v12 = vpop.xlane.xlu0 %1013 }
 0x9cf   : > { %v1017_v13 = vsub.f32 %v1007_v4, %v1015_v11  ;;  %v1016_v14 = vmul.f32 0.03125, %v1014_v12 }
 0x9d1   : > { %v1018_v16 = vsub.f32 %v1008_v8, %v1016_v14  ;;  %v1019_v17 = vmul.f32 %v1017_v13, %v1017_v13 }
 0x9d3   : > { %v1021_v18 = vsel %vm390_vm2, %v1019_v17, 0.0  ;;  %v1020_v19 = vmul.f32 %v1018_v16, %v1018_v16 }
 0x9d4   : > { %1022 = vadd.xlane.f32.xlu0 %v1021_v18 }
 0x9d5   : > { %v1024_v20 = vsel %vm390_vm2, %v1020_v19, 0.0 }
 0x9d6   : > { %1025 = vadd.xlane.f32.xlu1 %v1024_v20 }
 0xa61   : > { %v1023_v21 = vpop.xlane.xlu0 %1022 }
 0xa62   : > { %v1027_v25 = vmul.f32 0.03125, %v1023_v21 }
 0xa63   : > { %v1026_v26 = vpop.xlane.xlu1 %1025 }
 0xa64   : > { %v1029_v27 = vadd.f32 1e-05, %v1027_v25  ;;  %v1028_v24 = vmul.f32 0.03125, %v1026_v26 }
 0xa66   : > { %1748 = vrsqrt.f32 %v1029_v27  ;;  %v1030_v30 = vadd.f32 1e-05, %v1028_v24 }
 0xa68   : > { %1750 = vrsqrt.f32 %v1030_v30 }
 0xa70   : > { %v1749_v31 = vpop.eup %1748 }
 0xa71   : > { %v1033_v33 = vmul.f32 %v1749_v31, %v1017_v13 }
 0xa72   : > { %v1751_v34 = vpop.eup %1750 }
 0xa73   : > { %v1039_v36 = vmul.f32 %v1523_v32, %v1033_v33  ;;  %v1034_v37 = vmul.f32 %v1751_v34, %v1018_v16 }
 0xa75   : > { %v1045_v38 = vadd.f32 %v1524_v35, %v1039_v36  ;;  %v1040_v39 = vmul.f32 %v1523_v32, %v1034_v37  ;;  %1056 = sbr.rel (%p1525_p10) target bundleno = 4167 (0x1047), region = 48  ;;  %v1758_v37 = vld [vmem:[%s2203_s4 + $0x30] sm:$0xff] (!%p1525_p10)  }
 0xa76   : > { %1675 = vmatpush3.bf16.msra.mxu1 (!%p1525_p10), %v1758_v37 }
 0xa77   : > { %v1047_v40 = vmul.f32 %v1977_v15, %v1045_v38  ;;  %v1046_v41 = vadd.f32 %v1524_v35, %v1040_v39  ;;  %1676 = vmatprep.subr.bf16.mxu1 (!%p1525_p10), %v1806_v46  ;;  %v1759_v38 = vld [vmem:[%s2203_s4 + $0x38] sm:$0xff] (!%p1525_p10)   ;;  %v1760_v39 = vld [vmem:[%s2203_s4 + $0x40] sm:$0xff] (!%p1525_p10)  }
 0xa79   : > { %1049 = vst.msk [vmem:[#allocation2] sm:$0xff] %vm390_vm2, %v1047_v40  ;;  %1051 = vst.msk [vmem:[%s2205_s6] sm:$0xff] %vm390_vm2, %v1047_v40  ;;  %v1048_v42 = vmul.f32 %v1981_v23, %v1046_v41  ;;  %v1083_v43 = vrot.slane (!%p1525_p10), %v1047_v40, 1  ;;  %1075 = vrot.lane.b32.xlu0 (!%p1525_p10), %v1047_v40, %s1805_s14  ;;  %v1065_v50 = vrot.slane (!%p1525_p10), %v1047_v40, 7  ;;  %v1534_v41 = vld [vmem:[%s2204_s5 + $0x1] ss:$0 sm:$0xff] (!%p1525_p10) }
 0xa7a   : > { %1677 = vmatpush3.bf16.msra.mxu1 (!%p1525_p10), %v1759_v38  ;;  %v1544_v38 = vld [vmem:[%s2204_s5 + $0x4] ss:$0 sm:$0xff] (!%p1525_p10) }
 0xa7b   : > { %1050 = vst.msk [vmem:[#allocation2 + $0x8] sm:$0xff] %vm390_vm2, %v1048_v42  ;;  %1052 = vst.msk [vmem:[%s2205_s6 + $0x8] sm:$0xff] %vm390_vm2, %v1048_v42  ;;  %v1084_v44 = vrot.slane (!%p1525_p10), %v1048_v42, 1  ;;  %v1066_v51 = vrot.slane (!%p1525_p10), %v1048_v42, 7  ;;  %1678 = vmatprep.subr.bf16.mxu1 (!%p1525_p10), %v1806_v46 }
 0xa7d   : > { %v1085_v47 = vsel %vm827_vm13, %v1083_v43, %v1084_v44  ;;  %v1086_v48 = vsel %vm827_vm13, %v1084_v44, %v1083_v43  ;;  %v1068_v53 = vsel %vm807_vm14, %v1066_v51, %v1065_v50  ;;  %v1067_v54 = vsel %vm807_vm14, %v1065_v50, %v1066_v51  ;;  %1077 = vrot.lane.b32.xlu0 %v1048_v42, %s1805_s14  ;;  %v1535_v43 = vld [vmem:[%s2204_s5 + $0x2] ss:$0 sm:$0xff]  ;;  %v1762_v51 = vld [vmem:[%s2203_s4 + $0x50] sm:$0xff]  }
 0xa7e   : > { %v1087_v52 = vmul.f32 %v1995_v28, %v1085_v47  ;;  %v1088_v55 = vmul.f32 %v1995_v28, %v1086_v48  ;;  %v1069_v56 = vmul.f32 %v1999_v29, %v1068_v53  ;;  %v1070_v57 = vmul.f32 %v1999_v29, %v1067_v54  ;;  %1679 = vmatpush3.bf16.msra.mxu1 %v1760_v39  ;;  %v1763_v53 = vld [vmem:[%s2203_s4 + $0x58] sm:$0xff]  }
 0xa7f   : > { %1680 = vmatprep.subr.bf16.mxu1 %v1806_v46 }
 0xa80   : > { %1091 = vrot.lane.b32.xlu1 %v1087_v52, %s1807_s16  ;;  %1071 = vst.msk [vmem:[#allocation3] sm:$0xff] %vm390_vm2, %v1069_v56  ;;  %1072 = vst.msk [vmem:[#allocation3 + $0x8] sm:$0xff] %vm390_vm2, %v1070_v57 }
 0xa82   : > { %1681 = vmatpush3.bf16.msra.mxu1 %v1761_v45 }
 0xa83   : > { %1682 = vmatprep.subr.bf16.mxu1 %v1806_v46 }
 0xa84   : > { %1093 = vrot.lane.b32.xlu1 %v1088_v55, %s1807_s16 }
 0xa86   : > { %1683 = vmatpush3.bf16.msra.mxu1 %v1762_v51 }
 0xa87   : > { %1684 = vmatprep.subr.bf16.mxu1 %v1806_v46 }
 0xa8a   : > { %1685 = vmatpush3.bf16.msra.mxu1 %v1763_v53  ;;  %v1547_v53 = vld [vmem:[%s2204_s5 + $0x7] ss:$0 sm:$0xff] }
 0xaeb   : > { %v1076_v61 = vpop.permute.xlu0 %1075 }
 0xaec   : > { %1081 = vst.msk [vmem:[#allocation3] sm:$0xff] %vm822_vm15, %v1076_v61 }
 0xaef   : > { %v1078_v62 = vpop.permute.xlu0 %1077 }
 0xaf0   : > { %1082 = vst.msk [vmem:[#allocation3 + $0x8] sm:$0xff] %vm822_vm15, %v1078_v62 }
 0xaf2   : > { %v1092_v6 = vpop.permute.xlu1 %1091 }
 0xaf3   : > { %1097 = vst.msk [vmem:[#allocation3] sm:$0xff] %vm840_vm0, %v1092_v6 }
 0xaf6   : > { %v1094_v63 = vpop.permute.xlu1 %1093 }
 0xaf7   : > { %1098 = vst.msk [vmem:[#allocation3 + $0x8] sm:$0xff] %vm840_vm0, %v1094_v63 }
 0xafa   : > { %v1111_v0 = vld [vmem:[#allocation3] sm:$0xff] }
 0xafe   : > { %v1112_v1 = vld [vmem:[#allocation3 + $0x8] sm:$0xff] }
 0xaff   : > { %v1113_v3 = vpack.c.bf16 %v1112_v1, %v1111_v0 }
 0xb01   : > { %1671 = vmatmul.mubr.msk.bf16.vlgmr.msra.gmra.mrb[0].mxu0 %vm886_vm1, %v1113_v3 }
 0xbd4   : > { %v1191_v4 = vpop.f32.mrb[0].mxu0 }
 0xbd5   : > { %v1192_v7 = vadd.f32 %v1526_v2, %v1191_v4  ;;  %v1672_v8 = vpop.f32.mrb[1].mxu0 }
 0xbd6   : > { %v1194_v9 = vpop.f32.mrb[2].mxu0 }
 0xbd7   : > { %v1198_v10 = vmax.f32 %v1192_v7, 0.0  ;;  %v1195_v11 = vadd.f32 %v1526_v2, %v1194_v9  ;;  %v1673_v12 = vpop.f32.mrb[3].mxu0 }
 0xbd9   : > { %v1199_v13 = vmax.f32 %v1195_v11, 0.0  ;;  %v1200_v14 = vsel %vm390_vm2, %v1198_v10, 0.0 }
 0xbda   : > { %1201 = vadd.xlane.f32.xlu0 %v1200_v14 }
 0xbdb   : > { %v1203_v16 = vsel %vm390_vm2, %v1199_v13, 0.0 }
 0xbdc   : > { %1204 = vadd.xlane.f32.xlu1 %v1203_v16 }
 0xc67   : > { %v1202_v17 = vpop.xlane.xlu0 %1201 }
 0xc68   : > { %v1206_v18 = vmul.f32 0.03125, %v1202_v17 }
 0xc69   : > { %v1205_v19 = vpop.xlane.xlu1 %1204 }
 0xc6a   : > { %v1208_v20 = vsub.f32 %v1198_v10, %v1206_v18  ;;  %v1207_v21 = vmul.f32 0.03125, %v1205_v19 }
 0xc6c   : > { %v1209_v25 = vsub.f32 %v1199_v13, %v1207_v21  ;;  %v1210_v26 = vmul.f32 %v1208_v20, %v1208_v20 }
 0xc6e   : > { %v1212_v27 = vsel %vm390_vm2, %v1210_v26, 0.0  ;;  %v1211_v24 = vmul.f32 %v1209_v25, %v1209_v25 }
 0xc6f   : > { %1213 = vadd.xlane.f32.xlu0 %v1212_v27 }
 0xc70   : > { %v1215_v30 = vsel %vm390_vm2, %v1211_v24, 0.0 }
 0xc73   : > { %1216 = vadd.xlane.f32.xlu0 %v1215_v30 }
 0xcfc   : > { %v1214_v31 = vpop.xlane.xlu0 %1213 }
 0xcfd   : > { %v1218_v32 = vmul.f32 0.03125, %v1214_v31 }
 0xcff   : > { %v1220_v33 = vadd.f32 1e-05, %v1218_v32 }
 0xd00   : > { %v1217_v34 = vpop.xlane.xlu0 %1216 }
 0xd01   : > { %1764 = vrsqrt.f32 %v1220_v33  ;;  %v1219_v35 = vmul.f32 0.03125, %v1217_v34 }
 0xd03   : > { %v1221_v36 = vadd.f32 1e-05, %v1219_v35 }
 0xd05   : > { %1766 = vrsqrt.f32 %v1221_v36 }
 0xd0b   : > { %v1765_v40 = vpop.eup %1764 }
 0xd0c   : > { %v1224_v42 = vmul.f32 %v1765_v40, %v1208_v20  ;;  %v1545_v40 = vld [vmem:[%s2204_s5 + $0x5] ss:$0 sm:$0xff] }
 0xd0e   : > { %v1230_v44 = vmul.f32 %v1534_v41, %v1224_v42 }
 0xd0f   : > { %v1767_v47 = vpop.eup %1766 }
 0xd10   : > { %v1236_v48 = vadd.f32 %v1535_v43, %v1230_v44  ;;  %v1225_v49 = vmul.f32 %v1767_v47, %v1209_v25 }
 0xd12   : > { %1248 = vrot.lane.b32.xlu1 %v1236_v48, %s1805_s14  ;;  %v1231_v50 = vmul.f32 %v1534_v41, %v1225_v49  ;;  %v1256_v54 = vrot.slane %v1236_v48, 1  ;;  %v1238_v56 = vrot.slane %v1236_v48, 7 }
 0xd14   : > { %v1237_v52 = vadd.f32 %v1535_v43, %v1231_v50  ;;  %v1546_v43 = vld [vmem:[%s2204_s5 + $0x6] ss:$0 sm:$0xff] }
 0xd16   : > { %1250 = vrot.lane.b32.xlu0 %v1237_v52, %s1805_s14  ;;  %v1257_v55 = vrot.slane %v1237_v52, 1  ;;  %v1239_v57 = vrot.slane %v1237_v52, 7 }
 0xd18   : > { %v1258_v58 = vsel %vm827_vm13, %v1256_v54, %v1257_v55  ;;  %v1241_v59 = vsel %vm807_vm14, %v1239_v57, %v1238_v56  ;;  %v1240_v60 = vsel %vm807_vm14, %v1238_v56, %v1239_v57  ;;  %v1259_v62 = vsel %vm827_vm13, %v1257_v55, %v1256_v54 }
 0xd19   : > { %v1260_v5 = vmul.f32 %v1995_v28, %v1258_v58  ;;  %v1242_v61 = vmul.f32 %v1999_v29, %v1241_v59  ;;  %v1243_v6 = vmul.f32 %v1999_v29, %v1240_v60  ;;  %v1261_v46 = vmul.f32 %v1995_v28, %v1259_v62  ;;  %v1536_v28 = vld [vmem:[%s2204_s5 + $0x3] ss:$0 sm:$0xff] }
 0xd1b   : > { %1264 = vrot.lane.b32.xlu1 %v1260_v5, %s1807_s16  ;;  %1244 = vst.msk [vmem:[#allocation3] sm:$0xff] %vm390_vm2, %v1242_v61  ;;  %1245 = vst.msk [vmem:[#allocation3 + $0x8] sm:$0xff] %vm390_vm2, %v1243_v6 }
 0xd1f   : > { %1266 = vrot.lane.b32.xlu1 %v1261_v46, %s1807_s16 }
 0xd84   : > { %v1249_v63 = vpop.permute.xlu1 %1248 }
 0xd85   : > { %1254 = vst.msk [vmem:[#allocation3] sm:$0xff] %vm822_vm15, %v1249_v63 }
 0xd88   : > { %v1251_v0 = vpop.permute.xlu0 %1250 }
 0xd89   : > { %1255 = vst.msk [vmem:[#allocation3 + $0x8] sm:$0xff] %vm822_vm15, %v1251_v0 }
 0xd8d   : > { %v1265_v29 = vpop.permute.xlu1 %1264 }
 0xd8e   : > { %1270 = vst.msk [vmem:[#allocation3] sm:$0xff] %vm840_vm0, %v1265_v29 }
 0xd91   : > { %v1267_v22 = vpop.permute.xlu1 %1266 }
 0xd92   : > { %1271 = vst.msk [vmem:[#allocation3 + $0x8] sm:$0xff] %vm840_vm0, %v1267_v22 }
 0xd95   : > { %v1284_v1 = vld [vmem:[#allocation3] sm:$0xff] }
 0xd99   : > { %v1285_v3 = vld [vmem:[#allocation3 + $0x8] sm:$0xff] }
 0xd9a   : > { %v1286_v2 = vpack.c.bf16 %v1285_v3, %v1284_v1 }
 0xd9c   : > { %1687 = vmatmul.mubr.msk.bf16.vlgmr.msra.gmra.mrb[0].mxu1 %vm886_vm1, %v1286_v2 }
 0xe6f   : > { %v1364_v4 = vpop.f32.mrb[0].mxu1 }
 0xe70   : > { %v1365_v7 = vadd.f32 %v1536_v28, %v1364_v4  ;;  %v1688_v8 = vpop.f32.mrb[1].mxu1 }
 0xe71   : > { %v1367_v9 = vpop.f32.mrb[2].mxu1 }
 0xe72   : > { %v1371_v10 = vmax.f32 %v1365_v7, 0.0  ;;  %v1368_v11 = vadd.f32 %v1536_v28, %v1367_v9  ;;  %v1689_v12 = vpop.f32.mrb[3].mxu1 }
 0xe74   : > { %v1372_v13 = vmax.f32 %v1368_v11, 0.0  ;;  %v1373_v14 = vsel %vm390_vm2, %v1371_v10, 0.0 }
 0xe75   : > { %1374 = vadd.xlane.f32.xlu0 %v1373_v14 }
 0xe76   : > { %v1376_v16 = vsel %vm390_vm2, %v1372_v13, 0.0 }
 0xe77   : > { %1377 = vadd.xlane.f32.xlu1 %v1376_v16 }
 0xf02   : > { %v1375_v17 = vpop.xlane.xlu0 %1374 }
 0xf03   : > { %v1379_v18 = vmul.f32 0.03125, %v1375_v17 }
 0xf04   : > { %v1378_v19 = vpop.xlane.xlu1 %1377 }
 0xf05   : > { %v1381_v20 = vsub.f32 %v1371_v10, %v1379_v18  ;;  %v1380_v21 = vmul.f32 0.03125, %v1378_v19 }
 0xf07   : > { %v1382_v25 = vsub.f32 %v1372_v13, %v1380_v21  ;;  %v1383_v26 = vmul.f32 %v1381_v20, %v1381_v20 }
 0xf09   : > { %v1385_v27 = vsel %vm390_vm2, %v1383_v26, 0.0  ;;  %v1384_v24 = vmul.f32 %v1382_v25, %v1382_v25 }
 0xf0a   : > { %1386 = vadd.xlane.f32.xlu0 %v1385_v27 }
 0xf0b   : > { %v1388_v30 = vsel %vm390_vm2, %v1384_v24, 0.0 }
 0xf0e   : > { %1389 = vadd.xlane.f32.xlu0 %v1388_v30 }
 0xf97   : > { %v1387_v31 = vpop.xlane.xlu0 %1386 }
 0xf98   : > { %v1391_v32 = vmul.f32 0.03125, %v1387_v31 }
 0xf9a   : > { %v1393_v33 = vadd.f32 1e-05, %v1391_v32 }
 0xf9b   : > { %v1390_v34 = vpop.xlane.xlu0 %1389 }
 0xf9c   : > { %1768 = vrsqrt.f32 %v1393_v33  ;;  %v1392_v35 = vmul.f32 0.03125, %v1390_v34 }
 0xf9e   : > { %v1394_v36 = vadd.f32 1e-05, %v1392_v35 }
 0xfa0   : > { %1770 = vrsqrt.f32 %v1394_v36 }
 0xfa6   : > { %v1769_v37 = vpop.eup %1768 }
 0xfa7   : > { %v1397_v39 = vmul.f32 %v1769_v37, %v1381_v20 }
 0xfa9   : > { %v1403_v41 = vmul.f32 %v1544_v38, %v1397_v39 }
 0xfaa   : > { %v1771_v42 = vpop.eup %1770 }
 0xfab   : > { %v1409_v44 = vadd.f32 %v1545_v40, %v1403_v41  ;;  %v1398_v45 = vmul.f32 %v1771_v42, %v1382_v25 }
 0xfad   : > { %v1415_v47 = vmul.f32 %v1546_v43, %v1409_v44  ;;  %v1404_v48 = vmul.f32 %v1544_v38, %v1398_v45 }
 0xfaf   : > { %v1417_v49 = vsel %vm390_vm2, %v1415_v47, 0.0  ;;  %v1410_v50 = vadd.f32 %v1545_v40, %v1404_v48 }
 0xfb0   : > { %1418 = vadd.xlane.f32.xlu1 %v1417_v49 }
 0xfb1   : > { %v1416_v51 = vmul.f32 %v1546_v43, %v1410_v50 }
 0xfb3   : > { %v1420_v52 = vsel %vm390_vm2, %v1416_v51, 0.0 }
 0xfb4   : > { %1421 = vadd.xlane.f32.xlu0 %v1420_v52 }
0x103d   : > { %v1419_v54 = vpop.xlane.xlu1 %1418 }
0x103e   : > { %v1427_v55 = vadd.f32 %v1547_v53, %v1419_v54 }
0x1040   : > { %v1429_v56 = vmul.f32 %v1977_v15, %v1427_v55 }
0x1041   : > { %v1422_v57 = vpop.xlane.xlu0 %1421 }
0x1042   : > { %1432 = vst.msk [vmem:[%s2206_s7] sm:$0xff] %vm1431_vm5, %v1429_v56  ;;  %v1428_v58 = vadd.f32 %v1547_v53, %v1422_v57 }
0x1044   : > { %v1430_v59 = vmul.f32 %v1981_v23, %v1428_v58 }
0x1046   : > { %1433 = vst.msk [vmem:[%s2206_s7 + $0x8] sm:$0xff] %vm1431_vm5, %v1430_v59 }
0x1047 PF: > { %s24_s29 = sadd.s32 1, %s1792_s29  }
0x1048   : > { %p21_p11 = scmp.ge.s32.totalorder %s24_s29, 4  }
0x104a   :  { %23 = sbr.rel (!%p21_p11) target bundleno = 16 (0x10), region = 85 }

// kernel: fastspeech2_forward.4
= control target key start
LH: loop header
LB: loop body
LE: loop exit
PB: predicated region body
PF: predicated region fallthrough
CT: control target
= control target key end

     0   :  { %s2760_s0 = inlined_call_operand.vmem [shape: s32[2], index: 0, kind: input, shape index: {}]   ;;  %s2761_s1 = inlined_call_operand.vmem [shape: f32[48,32], index: 1, kind: input, shape index: {}]   ;;  %s2762_s2 = inlined_call_operand.vmem [shape: bf16[2,224,96], index: 2, kind: input, shape index: {}]   ;;  %s2763_s3 = inlined_call_operand.vmem [shape: f32[2,8,96], index: 3, kind: input, shape index: {}]   ;;  %s2764_s4 = inlined_call_operand.vmem [shape: f32[48,32], index: 4, kind: output, shape index: {}]  }
   0x1   :  { %s9_s17 = sshll.u32 %s2760_s0, 4  ;;  %s10_s17 = int_to_ptr.vmem [resolvable:$true] %s9_s17 }
   0x2   :  { %s2094_s18 = scalar_lea.vmem %s10_s17, 16  ;;  %p2099_p1 = scmp.lt.s32.totalorder %s10_s17, %s10_s17 }
   0x3   :  { %p2095_p0 = scmp.ne.s32.totalorder %s10_s17, %s2094_s18  ;;  %p2100_p2 = scmp.lt.s32.totalorder %s2094_s18, %s2094_s18 }
   0x5   :  { %p2101_p3 = por %p2100_p2, %p2099_p1 }
   0x7   :  { %p2102_p4 = pnand %p2101_p3, %p2095_p0 }
   0x9   :  { %2105 = shalt.err (!%p2102_p4)  }
   0xa   :  { %s2116_s19 = smov [#allocation5]  }
   0xb   :  { %12 = dma.vmem_to_smem %s10_s17, 16, %s2116_s19, [#allocation4] }
   0xc   :  { %2110 = dma.done.wait [#allocation4], 16 }
   0xd   :  { %2111 = vsyncadd [#allocation4], 4294967280 }
   0xe   :  { %14 = sfence }
   0xf   :  { %s2155_s20 = smov 0  }
  0x10 LB: > { %s1711_s0 = sadd.s32 4294967295, %s2114_s20   ;;  %p1714_p5 = scmp.ge.s32.totalorder %s2114_s20, 1  ;;  %s2114_s20 = sphi %s2155_s20, %s20_s20  }
  0x11   : > { %p148_p6 = scmp.lt.s32.totalorder %s2114_s20, 3 }
  0x13   : > { %p149_p7 = pnand %p1714_p5, %p148_p6 }
  0x14   : > { %p171_p8 = scmp.lt.s32.totalorder (!%p149_p7), %s1711_s0, 1  ;;  %p1717_p9 = scmp.ne.s32.totalorder (!%p149_p7), %s1711_s0, 0 }
  0x15   : > { %152 = sbr.rel (%p149_p7) target bundleno = 2802 (0xaf2), region = 32 }
  0x1c   : > { %s172_s21 = scalar_select %p171_p8, %s1711_s0, 1 }
  0x1d   : > { %184 = sbr.rel (%p1717_p9) target bundleno = 36 (0x24), region = 36  ;;  %v185_v0 = vld [vmem:[%s2761_s1] sm:$0xff] (!%p1717_p9)  ;;  %vm191_vm0 = vcmask (!%p1717_p9), 261120   ;;  %v186_v1 = vld [vmem:[%s2761_s1 + $0x8] sm:$0xff] (!%p1717_p9)  ;;  %v187_v2 = vld [vmem:[%s2761_s1 + $0x10] sm:$0xff] (!%p1717_p9) }
  0x1e   : > { %s1988_s22 = smul.u32 112, %s172_s21  ;;  %s1716_s23 = sshll.u32 %s172_s21, 3  ;;  %192 = vst.msk [vmem:[#allocation2] sm:$0xff] (!%p1717_p9), %vm191_vm0, %v185_v0  ;;  %193 = vst.msk [vmem:[#allocation2 + $0x8] sm:$0xff] (!%p1717_p9), %vm191_vm0, %v186_v1  ;;  %v188_v3 = vld [vmem:[%s2761_s1 + $0x18] sm:$0xff] (!%p1717_p9)  ;;  %v189_v4 = vld [vmem:[%s2761_s1 + $0x20] sm:$0xff] (!%p1717_p9) }
  0x1f   : > { %s2166_s26 = scalar_lea.vmem %s2763_s3, %s1716_s23  ;;  %194 = vst.msk [vmem:[#allocation2 + $0x10] sm:$0xff] (!%p1717_p9), %vm191_vm0, %v187_v2  ;;  %v190_v5 = vld [vmem:[%s2761_s1 + $0x28] sm:$0xff] (!%p1717_p9)  ;;  %195 = vst.msk [vmem:[#allocation2 + $0x18] sm:$0xff] (!%p1717_p9), %vm191_vm0, %v188_v3 }
  0x20   : > { %s2171_s29 = scalar_lea.vmem %s2762_s2, %s1988_s22  ;;  %196 = vst.msk [vmem:[#allocation2 + $0x20] sm:$0xff] (!%p1717_p9), %vm191_vm0, %v189_v4  ;;  %197 = vst.msk [vmem:[#allocation2 + $0x28] sm:$0xff] (!%p1717_p9), %vm191_vm0, %v190_v5 }
  0x24 PF: > { %v2008_v6 = vld [vmem:[%s2171_s29] sm:$0xff]   ;;  %v2117_v7 = vmov 0.0   ;;  %v2009_v8 = vld [vmem:[%s2171_s29 + $0x8] sm:$0xff]   ;;  %vm2118_vm1 = vmmov 0   ;;  %vm429_vm2 = vcmask 261120   ;;  %s2119_s16 = smov 96   ;;  %v198_v55 = vlaneseq }
  0x25   : > { %1832 = vmatprep.subr.bf16.mxu0 %v2117_v7  ;;  %1848 = vmatprep.subr.bf16.mxu1 %v2117_v7  ;;  %v2197_v9 = vld [vmem:[#allocation2] sm:$0xff]  ;;  %v2199_v10 = vld [vmem:[#allocation2 + $0x8] sm:$0xff]  ;;  %s2120_s17 = smov 80   ;;  %s2121_s18 = smov 112   ;;  %vm508_vm3 = vcmask 130048   ;;  %vm596_vm5 = vcmask 392192  }
  0x26   : > { %1833 = vmatpush3.bf16.msra.mxu0 %v2008_v6  ;;  %1836 = vmatprep.mubr.msk.bf16.mxu0 %vm2118_vm1, %v2117_v7  ;;  %v410_v11 = vpack.c.bf16 %v2199_v10, %v2197_v9  ;;  %v2207_v12 = vld [vmem:[#allocation2 + $0x10] sm:$0xff]  ;;  %v2209_v13 = vld [vmem:[#allocation2 + $0x18] sm:$0xff]  ;;  %v1734_v18 = vld [vmem:[%s2166_s26] ss:$0 sm:$0xff]  ;;  %s240_s19 = sld [smem:[#allocation5]]  ;;  %s2277_s0 = sld [smem:[#allocation5 + $0x1]] }
  0x27   : > { %1834 = vmatprep.subr.bf16.mxu0 %v2117_v7  ;;  %1854 = vmatprep.mubr.msk.bf16.mxu1 %vm2118_vm1, %v2117_v7  ;;  %v411_v14 = vpack.c.bf16 %v2209_v13, %v2207_v12  ;;  %v2219_v15 = vld [vmem:[#allocation2 + $0x20] sm:$0xff]  ;;  %v2221_v16 = vld [vmem:[#allocation2 + $0x28] sm:$0xff]  ;;  %v335_v56 = vand.u32 127, %v198_v55  ;;  %v2122_v59 = vmov -1e+09   ;;  %s2123_s22 = smov 64  }
  0x28   : > { %v412_v17 = vpack.c.bf16 %v2221_v16, %v2219_v15  ;;  %s2124_s23 = smov 48   ;;  %s2125_s24 = smov 16   ;;  %vm1014_vm9 = vcmask 261248  }
  0x29   : > { %vm345_vm6 = vcmp.ge.s32.totalorder %v335_v56, 24  ;;  %s2126_s25 = smov 32  }
  0x2a   : > { %1835 = vmatpush3.bf16.msra.mxu0 %v2009_v8 }
  0x2b   : > { %1866 = vmatprep.subr.bf16.mxu0 %v2117_v7 }
  0x2c   : > { %v2280_v57 = vstv %s240_s19  ;;  %s346_s21 = sadd.s32 24, %s2277_s0 }
  0x2d   : > { %1837 = vmatmul.mubr.msk.bf16.vlgmr.msra.gmra.mrb[0].mxu0 %vm429_vm2, %v410_v11  ;;  %vm337_vm4 = vcmp.lt.s32.totalorder %v335_v56, %v2280_v57  ;;  %v347_v63 = vstv %s346_s21 }
  0x2e   : > { %1840 = vmatprep.mubr.msk.bf16.mxu0 %vm2118_vm1, %v2117_v7  ;;  %v362_v60 = vsel %vm337_vm4, 0.0, %v2122_v59  ;;  %vm348_vm7 = vcmp.lt.s32.totalorder %v335_v56, %v347_v63 }
  0x2f   : > { %vm349_vm8 = vmand %vm345_vm6, %vm348_vm7  ;;  %vm1272_vm7 = vcmask 523520  }
  0x35   : > { %1841 = vmatmul.mubr.msk.bf16.gmra.mrb[4].mxu0 %vm429_vm2, %v411_v14 }
  0x36   : > { %1844 = vmatprep.mubr.msk.bf16.mxu0 %vm2118_vm1, %v2117_v7 }
  0x3d   : > { %1845 = vmatmul.mubr.msk.bf16.gmra.mrb[8].mxu0 %vm429_vm2, %v412_v17 }
  0x3e   : > { %1872 = vmatprep.mubr.msk.bf16.mxu0 %vm2118_vm1, %v2117_v7 }
 0x100   : > { %v473_v19 = vpop.f32.mrb[0].mxu0 }
 0x101   : > { %v1838_v20 = vpop.f32.mrb[1].mxu0  ;;  %v474_v22 = vadd.f32 %v1734_v18, %v473_v19 }
 0x102   : > { %v476_v21 = vpop.f32.mrb[2].mxu0 }
 0x103   : > { %v477_v23 = vadd.f32 %v1734_v18, %v476_v21  ;;  %v1839_v24 = vpop.f32.mrb[3].mxu0 }
 0x105   : > { %v2229_v25 = vpack.c.bf16 %v477_v23, %v474_v22 }
 0x107   : > { %502 = vrot.lane.b32.xlu0 %v2229_v25, %s2119_s16 }
 0x108   : > { %v481_v26 = vpop.f32.mrb[4].mxu0 }
 0x109   : > { %v1842_v27 = vpop.f32.mrb[5].mxu0  ;;  %v482_v29 = vadd.f32 %v1734_v18, %v481_v26 }
 0x10a   : > { %v484_v28 = vpop.f32.mrb[6].mxu0 }
 0x10b   : > { %v485_v30 = vadd.f32 %v1734_v18, %v484_v28  ;;  %v1843_v31 = vpop.f32.mrb[7].mxu0 }
 0x10d   : > { %v2232_v32 = vpack.c.bf16 %v485_v30, %v482_v29 }
 0x10f   : > { %504 = vrot.lane.b32.xlu0 %v2232_v32, %s2119_s16 }
 0x110   : > { %v489_v33 = vpop.f32.mrb[8].mxu0 }
 0x111   : > { %v1846_v34 = vpop.f32.mrb[9].mxu0  ;;  %v490_v36 = vadd.f32 %v1734_v18, %v489_v33 }
 0x112   : > { %v492_v35 = vpop.f32.mrb[10].mxu0 }
 0x113   : > { %v493_v37 = vadd.f32 %v1734_v18, %v492_v35  ;;  %755 = vrot.lane.b32.xlu0 %v2232_v32, %s2120_s17  ;;  %v1847_v38 = vpop.f32.mrb[11].mxu0  ;;  %v365_v18 = vsel %vm349_vm8, 0.0, %v2122_v59  ;;  %vm1322_vm8 = vcmask 785920  }
 0x115   : > { %v2236_v39 = vpack.c.bf16 %v493_v37, %v490_v36 }
 0x117   : > { %747 = vrot.lane.b32.xlu0 %v2229_v25, %s2121_s18  ;;  %506 = vrot.lane.b32.xlu1 %v2236_v39, %s2119_s16 }
 0x11b   : > { %751 = vrot.lane.b32.xlu0 %v2236_v39, %s2121_s18  ;;  %753 = vrot.lane.b32.xlu1 %v2229_v25, %s2120_s17 }
 0x11f   : > { %757 = vrot.lane.b32.xlu1 %v2236_v39, %s2120_s17 }
 0x123   : > { %749 = vrot.lane.b32.xlu1 %v2232_v32, %s2121_s18 }
 0x179   : > { %v503_v40 = vpop.permute.xlu0 %502 }
 0x17a   : > { %v519_v41 = vsel %vm508_vm3, %v503_v40, 0 }
 0x17b   : > { %1849 = vmatpush3.bf16.xpose.msra.mxu1 %v519_v41 }
 0x17c   : > { %1850 = vmatprep.subr.bf16.mxu1 %v2117_v7 }
 0x181   : > { %v505_v42 = vpop.permute.xlu0 %504 }
 0x182   : > { %v522_v43 = vsel %vm508_vm3, %v505_v42, 0 }
 0x183   : > { %1851 = vmatpush3.bf16.xpose.msra.mxu1 %v522_v43 }
 0x184   : > { %1852 = vmatprep.subr.bf16.mxu1 %v2117_v7 }
 0x185   : > { %v756_v48 = vpop.permute.xlu0 %755 }
 0x186   : > { %v772_v49 = vsel %vm508_vm3, %v756_v48, 0 }
 0x189   : > { %v507_v44 = vpop.permute.xlu1 %506  ;;  %v748_v52 = vpop.permute.xlu0 %747 }
 0x18a   : > { %v525_v45 = vsel %vm508_vm3, %v507_v44, 0 }
 0x18b   : > { %1853 = vmatpush3.bf16.xpose.msra.mxu1 %v525_v45 }
 0x18c   : > { %1884 = vmatprep.subr.bf16.mxu1 %v2117_v7 }
 0x18d   : > { %v754_v46 = vpop.permute.xlu1 %753  ;;  %v752_v54 = vpop.permute.xlu0 %751 }
 0x18e   : > { %v769_v47 = vsel %vm508_vm3, %v754_v46, 0 }
 0x191   : > { %v758_v50 = vpop.permute.xlu1 %757 }
 0x192   : > { %1855 = vmatmul.mubr.msk.bf16.vlgmr.msra.gmra.mrb[0].mxu1 %vm508_vm3, %v2229_v25  ;;  %v775_v51 = vsel %vm508_vm3, %v758_v50, 0 }
 0x193   : > { %1885 = vmatpush3.bf16.xpose.msra.mxu1 %v769_v47  ;;  %1858 = vmatprep.mubr.msk.bf16.mxu1 %vm2118_vm1, %v2117_v7 }
 0x194   : > { %1886 = vmatprep.subr.bf16.mxu1 %v2117_v7 }
 0x195   : > { %v750_v53 = vpop.permute.xlu1 %749 }
 0x19a   : > { %1859 = vmatmul.mubr.msk.bf16.gmra.mrb[4].mxu1 %vm508_vm3, %v2232_v32 }
 0x19b   : > { %1887 = vmatpush3.bf16.xpose.msra.mxu1 %v772_v49  ;;  %1862 = vmatprep.mubr.msk.bf16.mxu1 %vm2118_vm1, %v2117_v7 }
 0x19c   : > { %1888 = vmatprep.subr.bf16.mxu1 %v2117_v7 }
 0x1a2   : > { %1863 = vmatmul.mubr.msk.bf16.gmra.mrb[8].mxu1 %vm508_vm3, %v2236_v39 }
 0x1a3   : > { %1889 = vmatpush3.bf16.xpose.msra.mxu1 %v775_v51  ;;  %1890 = vmatprep.mubr.msk.bf16.mxu1 %vm2118_vm1, %v2117_v7 }
 0x1a4   : > { %1920 = vmatprep.subr.bf16.mxu1 %v2117_v7 }
 0x1aa   : > { %1891 = vmatmul.mubr.msk.bf16.vlgmr.msra.gmra.mrb[12].mxu1 %vm508_vm3, %v748_v52 }
 0x1ab   : > { %1894 = vmatprep.mubr.msk.bf16.mxu1 %vm2118_vm1, %v2117_v7 }
 0x1b2   : > { %1895 = vmatmul.mubr.msk.bf16.gmra.mrb[16].mxu1 %vm508_vm3, %v750_v53 }
 0x1b3   : > { %1898 = vmatprep.mubr.msk.bf16.mxu1 %vm2118_vm1, %v2117_v7 }
 0x1ba   : > { %1899 = vmatmul.mubr.msk.bf16.gmra.mrb[20].mxu1 %vm508_vm3, %v752_v54 }
 0x1bb   : > { %1924 = vmatprep.mubr.msk.bf16.mxu1 %vm2118_vm1, %v2117_v7 }
 0x265   : > { %v561_v58 = vpop.f32.mrb[0].mxu1 }
 0x266   : > { %v584_v61 = vmul.f32 0.25, %v561_v58  ;;  %v1856_v62 = vpop.f32.mrb[1].mxu1 }
 0x267   : > { %v564_v0 = vpop.f32.mrb[2].mxu1 }
 0x268   : > { %v585_v1 = vmul.f32 0.25, %v564_v0  ;;  %v1857_v2 = vpop.f32.mrb[3].mxu1  ;;  %v2284_v3 = vadd.f32 %v584_v61, %v362_v60 }
 0x26a   : > { %v597_v4 = vsel %vm596_vm5, %v2284_v3, -inf  ;;  %v2288_v5 = vadd.f32 %v585_v1, %v362_v60 }
 0x26b   : > { %598 = vmax.xlane.f32.xlu1 %v597_v4 }
 0x26c   : > { %v600_v6 = vsel %vm596_vm5, %v2288_v5, -inf }
 0x26d   : > { %v569_v8 = vpop.f32.mrb[4].mxu1  ;;  %601 = vmax.xlane.f32.xlu0 %v600_v6 }
 0x26e   : > { %v586_v11 = vmul.f32 0.25, %v569_v8  ;;  %v1860_v14 = vpop.f32.mrb[5].mxu1 }
 0x26f   : > { %v572_v17 = vpop.f32.mrb[6].mxu1 }
 0x270   : > { %v587_v19 = vmul.f32 0.25, %v572_v17  ;;  %v1861_v20 = vpop.f32.mrb[7].mxu1  ;;  %v2292_v21 = vadd.f32 %v586_v11, %v362_v60 }
 0x272   : > { %v603_v22 = vsel %vm596_vm5, %v2292_v21, -inf  ;;  %v2296_v23 = vadd.f32 %v587_v19, %v365_v18 }
 0x273   : > { %604 = vmax.xlane.f32.xlu0 %v603_v22 }
 0x274   : > { %v606_v24 = vsel %vm596_vm5, %v2296_v23, -inf }
 0x275   : > { %v577_v26 = vpop.f32.mrb[8].mxu1  ;;  %607 = vmax.xlane.f32.xlu1 %v606_v24 }
 0x276   : > { %v588_v27 = vmul.f32 0.25, %v577_v26  ;;  %v1864_v28 = vpop.f32.mrb[9].mxu1 }
 0x277   : > { %v580_v29 = vpop.f32.mrb[10].mxu1 }
 0x278   : > { %v589_v30 = vmul.f32 0.25, %v580_v29  ;;  %v1865_v31 = vpop.f32.mrb[11].mxu1  ;;  %v2300_v33 = vadd.f32 %v588_v27, %v365_v18 }
 0x27a   : > { %v609_v34 = vsel %vm596_vm5, %v2300_v33, -inf  ;;  %v2304_v35 = vadd.f32 %v589_v30, %v365_v18 }
 0x27b   : > { %610 = vmax.xlane.f32.xlu0 %v609_v34 }
 0x27c   : > { %v612_v36 = vsel %vm596_vm5, %v2304_v35, -inf }
 0x27d   : > { %v811_v37 = vpop.f32.mrb[12].mxu1  ;;  %613 = vmax.xlane.f32.xlu1 %v612_v36 }
 0x27e   : > { %v834_v38 = vmul.f32 0.25, %v811_v37  ;;  %v1892_v40 = vpop.f32.mrb[13].mxu1 }
 0x27f   : > { %v814_v41 = vpop.f32.mrb[14].mxu1 }
 0x280   : > { %v835_v42 = vmul.f32 0.25, %v814_v41  ;;  %v1893_v43 = vpop.f32.mrb[15].mxu1  ;;  %v840_v44 = vadd.f32 %v834_v38, %v362_v60 }
 0x282   : > { %v846_v45 = vsel %vm596_vm5, %v840_v44, -inf  ;;  %v2309_v46 = vadd.f32 %v835_v42, %v362_v60 }
 0x283   : > { %847 = vmax.xlane.f32.xlu0 %v846_v45 }
 0x284   : > { %v849_v47 = vsel %vm596_vm5, %v2309_v46, -inf }
 0x285   : > { %v819_v48 = vpop.f32.mrb[16].mxu1  ;;  %850 = vmax.xlane.f32.xlu1 %v849_v47 }
 0x286   : > { %v836_v49 = vmul.f32 0.25, %v819_v48  ;;  %v1896_v50 = vpop.f32.mrb[17].mxu1 }
 0x287   : > { %v822_v51 = vpop.f32.mrb[18].mxu1 }
 0x288   : > { %v837_v52 = vmul.f32 0.25, %v822_v51  ;;  %v1897_v53 = vpop.f32.mrb[19].mxu1  ;;  %v842_v54 = vadd.f32 %v836_v49, %v362_v60 }
 0x28a   : > { %v852_v56 = vsel %vm596_vm5, %v842_v54, -inf  ;;  %v843_v58 = vadd.f32 %v837_v52, %v365_v18 }
 0x28b   : > { %853 = vmax.xlane.f32.xlu0 %v852_v56 }
 0x28c   : > { %v855_v59 = vsel %vm596_vm5, %v843_v58, -inf }
 0x28d   : > { %v827_v61 = vpop.f32.mrb[20].mxu1  ;;  %856 = vmax.xlane.f32.xlu1 %v855_v59 }
 0x28e   : > { %v838_v62 = vmul.f32 0.25, %v827_v61  ;;  %v1900_v63 = vpop.f32.mrb[21].mxu1 }
 0x28f   : > { %v830_v0 = vpop.f32.mrb[22].mxu1 }
 0x290   : > { %v839_v1 = vmul.f32 0.25, %v830_v0  ;;  %v1901_v2 = vpop.f32.mrb[23].mxu1  ;;  %v2315_v4 = vadd.f32 %v838_v62, %v365_v18 }
 0x292   : > { %v2317_v6 = vadd.f32 %v839_v1, %v365_v18  ;;  %v858_v8 = vsel %vm596_vm5, %v2315_v4, -inf }
 0x294   : > { %v861_v60 = vsel %vm596_vm5, %v2317_v6, -inf }
 0x295   : > { %862 = vmax.xlane.f32.xlu1 %v861_v60 }
 0x2a1   : > { %666 = vrot.lane.b32.xlu0 %v2229_v25, %s2123_s22 }
 0x2a6   : > { %668 = vrot.lane.b32.xlu1 %v2232_v32, %s2123_s22 }
 0x2c0   : > { %859 = vmax.xlane.f32.xlu0 %v858_v8 }
 0x2f8   : > { %v599_v11 = vpop.xlane.xlu1 %598 }
 0x2f9   : > { %v615_v14 = vsub.f32 %v2284_v3, %v599_v11 }
 0x2fa   : > { %v602_v17 = vpop.xlane.xlu0 %601 }
 0x2fb   : > { %v621_v18 = vmul.f32 1.442695, %v615_v14  ;;  %v616_v19 = vsub.f32 %v2288_v5, %v602_v17 }
 0x2fd   : > { %2022 = vpow2.f32 %v621_v18  ;;  %v623_v20 = vmul.f32 1.442695, %v616_v19 }
 0x2ff   : > { %2024 = vpow2.f32 %v623_v20 }
 0x300   : > { %v605_v28 = vpop.xlane.xlu0 %604 }
 0x301   : > { %v617_v59 = vsub.f32 %v2292_v21, %v605_v28 }
 0x302   : > { %v608_v22 = vpop.xlane.xlu1 %607 }
 0x303   : > { %v618_v24 = vsub.f32 %v2296_v23, %v608_v22  ;;  %v625_v63 = vmul.f32 1.442695, %v617_v59 }
 0x305   : > { %v627_v26 = vmul.f32 1.442695, %v618_v24 }
 0x307   : > { %v2330_v27 = vpop.eup %2022  ;;  %2026 = vpow2.f32 %v627_v26 }
 0x308   : > { %v633_v29 = vsel %vm596_vm5, %v2330_v27, 0.0  ;;  %v611_v34 = vpop.xlane.xlu0 %610 }
 0x309   : > { %v2334_v30 = vpop.eup %2024  ;;  %634 = vadd.xlane.f32.xlu0 %v633_v29  ;;  %v619_v0 = vsub.f32 %v2300_v33, %v611_v34 }
 0x30a   : > { %v614_v3 = vpop.xlane.xlu1 %613  ;;  %v636_v5 = vsel %vm596_vm5, %v2334_v30, 0.0 }
 0x30b   : > { %v620_v31 = vsub.f32 %v2304_v35, %v614_v3  ;;  %637 = vadd.xlane.f32.xlu1 %v636_v5  ;;  %v629_v2 = vmul.f32 1.442695, %v619_v0 }
 0x30d   : > { %v631_v23 = vmul.f32 1.442695, %v620_v31 }
 0x30f   : > { %2028 = vpow2.f32 %v631_v23 }
 0x310   : > { %v848_v36 = vpop.xlane.xlu0 %847 }
 0x311   : > { %v2339_v37 = vpop.eup %2026  ;;  %v864_v38 = vsub.f32 %v840_v44, %v848_v36 }
 0x312   : > { %v642_v40 = vsel %vm596_vm5, %v2339_v37, 0.0  ;;  %v851_v42 = vpop.xlane.xlu1 %850 }
 0x313   : > { %v870_v41 = vmul.f32 1.442695, %v864_v38  ;;  %643 = vadd.xlane.f32.xlu1 %v642_v40  ;;  %v865_v60 = vsub.f32 %v2309_v46, %v851_v42 }
 0x315   : > { %2030 = vpow2.f32 %v870_v41  ;;  %v872_v21 = vmul.f32 1.442695, %v865_v60 }
 0x318   : > { %v854_v43 = vpop.xlane.xlu0 %853 }
 0x319   : > { %v2343_v45 = vpop.eup %2028  ;;  %v866_v47 = vsub.f32 %v842_v54, %v854_v43 }
 0x31a   : > { %v857_v35 = vpop.xlane.xlu1 %856  ;;  %v648_v48 = vsel %vm596_vm5, %v2343_v45, 0.0 }
 0x31b   : > { %v874_v49 = vmul.f32 1.442695, %v866_v47  ;;  %v867_v50 = vsub.f32 %v843_v58, %v857_v35  ;;  %649 = vadd.xlane.f32.xlu1 %v648_v48 }
 0x31c   : > { %v667_v51 = vpop.permute.xlu0 %666 }
 0x31d   : > { %2032 = vpow2.f32 %v874_v49  ;;  %v876_v44 = vmul.f32 1.442695, %v867_v50  ;;  %1867 = vmatpush3.bf16.msra.mxu0 %v667_v51 }
 0x31e   : > { %1868 = vmatprep.subr.bf16.mxu0 %v2117_v7 }
 0x31f   : > { %v2348_v52 = vpop.eup %2030  ;;  %2034 = vpow2.f32 %v876_v44  ;;  %670 = vrot.lane.b32.xlu0 %v2236_v39, %s2123_s22 }
 0x320   : > { %v882_v53 = vsel %vm596_vm5, %v2348_v52, 0.0  ;;  %2036 = vpow2.f32 %v625_v63 }
 0x321   : > { %883 = vadd.xlane.f32.xlu1 %v882_v53  ;;  %2038 = vpow2.f32 %v629_v2 }
 0x322   : > { %v863_v54 = vpop.xlane.xlu1 %862  ;;  %2040 = vpow2.f32 %v872_v21 }
 0x323   : > { %v869_v19 = vsub.f32 %v2317_v6, %v863_v54 }
 0x325   : > { %v880_v22 = vmul.f32 1.442695, %v869_v19 }
 0x326   : > { %v669_v56 = vpop.permute.xlu1 %668 }
 0x327   : > { %v2354_v58 = vpop.eup %2032  ;;  %1869 = vmatpush3.bf16.msra.mxu0 %v669_v56 }
 0x328   : > { %v888_v61 = vsel %vm596_vm5, %v2354_v58, 0.0  ;;  %1870 = vmatprep.subr.bf16.mxu0 %v2117_v7 }
 0x329   : > { %v2360_v62 = vpop.eup %2034  ;;  %889 = vadd.xlane.f32.xlu1 %v888_v61 }
 0x32a   : > { %v891_v1 = vsel %vm596_vm5, %v2360_v62, 0.0  ;;  %v2037_v8 = vpop.eup %2036 }
 0x32b   : > { %v639_v11 = vsel %vm596_vm5, %v2037_v8, 0.0  ;;  %v2039_v14 = vpop.eup %2038 }
 0x32c   : > { %v645_v17 = vsel %vm596_vm5, %v2039_v14, 0.0  ;;  %v2368_v18 = vpop.eup %2040 }
 0x32d   : > { %892 = vadd.xlane.f32.xlu1 %v891_v1  ;;  %v885_v33 = vsel %vm596_vm5, %v2368_v18, 0.0 }
 0x33e   : > { %640 = vadd.xlane.f32.xlu0 %v639_v11 }
 0x342   : > { %646 = vadd.xlane.f32.xlu0 %v645_v17 }
 0x346   : > { %886 = vadd.xlane.f32.xlu0 %v885_v33 }
 0x34d   : > { %v860_v46 = vpop.xlane.xlu0 %859 }
 0x34e   : > { %v868_v20 = vsub.f32 %v2315_v4, %v860_v46 }
 0x350   : > { %v878_v24 = vmul.f32 1.442695, %v868_v20 }
 0x352   : > { %2042 = vpow2.f32 %v878_v24 }
 0x353   : > { %2044 = vpow2.f32 %v880_v22 }
 0x35c   : > { %v2374_v26 = vpop.eup %2042  ;;  %917 = vrot.lane.b32.xlu0 %v2232_v32, %s2124_s23 }
 0x35d   : > { %v894_v28 = vsel %vm596_vm5, %v2374_v26, 0.0  ;;  %v2379_v29 = vpop.eup %2044 }
 0x35e   : > { %895 = vadd.xlane.f32.xlu1 %v894_v28  ;;  %v897_v4 = vsel %vm596_vm5, %v2379_v29, 0.0 }
 0x360   : > { %919 = vrot.lane.b32.xlu0 %v2236_v39, %s2124_s23 }
 0x362   : > { %898 = vadd.xlane.f32.xlu1 %v897_v4 }
 0x373   : > { %915 = vrot.lane.b32.xlu1 %v2229_v25, %s2124_s23 }
 0x396   : > { %v635_v6 = vpop.xlane.xlu0 %634 }
 0x397   : > { %2046 = vrcp.f32 %v635_v6 }
 0x398   : > { %v638_v3 = vpop.xlane.xlu1 %637 }
 0x399   : > { %2048 = vrcp.f32 %v638_v3 }
 0x39a   : > { %v671_v5 = vpop.permute.xlu0 %670 }
 0x39b   : > { %1871 = vmatpush3.bf16.msra.mxu0 %v671_v5 }
 0x39c   : > { %1902 = vmatprep.subr.bf16.mxu0 %v2117_v7 }
 0x3a0   : > { %v644_v25 = vpop.xlane.xlu1 %643 }
 0x3a1   : > { %v2047_v32 = vpop.eup %2046  ;;  %2050 = vrcp.f32 %v644_v25 }
 0x3a2   : > { %v657_v34 = vmul.f32 %v2047_v32, %v2330_v27  ;;  %v2010_v32 = vld [vmem:[%s2171_s29 + $0x10] sm:$0xff]  }
 0x3a3   : > { %v2049_v31 = vpop.eup %2048  ;;  %1921 = vmatpush3.bf16.msra.mxu1 %v2010_v32 }
 0x3a4   : > { %v658_v39 = vmul.f32 %v2049_v31, %v2334_v30  ;;  %1922 = vmatprep.subr.bf16.mxu1 %v2117_v7  ;;  %v2011_v31 = vld [vmem:[%s2171_s29 + $0x18] sm:$0xff]  }
 0x3a6   : > { %v663_v23 = vpack.c.bf16 %v658_v39, %v657_v34 }
 0x3a7   : > { %1923 = vmatpush3.bf16.msra.mxu1 %v2011_v31 }
 0x3a8   : > { %1873 = vmatmul.mubr.msk.bf16.vlgmr.msra.gmra.mrb[12].mxu0 %vm596_vm5, %v663_v23  ;;  %v650_v38 = vpop.xlane.xlu1 %649  ;;  %1980 = vmatprep.subr.bf16.mxu1 %v2117_v7 }
 0x3a9   : > { %1876 = vmatprep.mubr.msk.bf16.mxu0 %vm2118_vm1, %v2117_v7 }
 0x3ab   : > { %v2051_v41 = vpop.eup %2050 }
 0x3ac   : > { %v660_v27 = vmul.f32 %v2051_v41, %v2339_v37 }
 0x3ae   : > { %v884_v48 = vpop.xlane.xlu1 %883 }
 0x3b6   : > { %v890_v51 = vpop.xlane.xlu1 %889 }
 0x3ba   : > { %v893_v37 = vpop.xlane.xlu1 %892 }
 0x3cb   : > { %v641_v36 = vpop.xlane.xlu0 %640 }
 0x3cc   : > { %2052 = vrcp.f32 %v641_v36 }
 0x3cf   : > { %v647_v40 = vpop.xlane.xlu0 %646 }
 0x3d0   : > { %2054 = vrcp.f32 %v647_v40 }
 0x3d1   : > { %2056 = vrcp.f32 %v650_v38 }
 0x3d3   : > { %v887_v53 = vpop.xlane.xlu0 %886 }
 0x3d4   : > { %2058 = vrcp.f32 %v887_v53 }
 0x3d5   : > { %2060 = vrcp.f32 %v884_v48 }
 0x3d6   : > { %v2053_v42 = vpop.eup %2052  ;;  %2062 = vrcp.f32 %v893_v37 }
 0x3d7   : > { %v659_v43 = vmul.f32 %v2053_v42, %v2037_v8  ;;  %v918_v61 = vpop.permute.xlu0 %917  ;;  %2064 = vrcp.f32 %v890_v51 }
 0x3d9   : > { %v664_v30 = vpack.c.bf16 %v660_v27, %v659_v43 }
 0x3da   : > { %v2055_v47 = vpop.eup %2054 }
 0x3db   : > { %1877 = vmatmul.mubr.msk.bf16.gmra.mrb[16].mxu0 %vm596_vm5, %v664_v30  ;;  %v2057_v35 = vpop.eup %2056  ;;  %v661_v49 = vmul.f32 %v2055_v47, %v2039_v14  ;;  %v920_v2 = vpop.permute.xlu0 %919 }
 0x3dc   : > { %1880 = vmatprep.mubr.msk.bf16.mxu0 %vm2118_vm1, %v2117_v7  ;;  %v662_v50 = vmul.f32 %v2057_v35, %v2343_v45 }
 0x3de   : > { %v665_v44 = vpack.c.bf16 %v662_v50, %v661_v49  ;;  %v2059_v45 = vpop.eup %2058 }
 0x3df   : > { %v2061_v63 = vpop.eup %2060  ;;  %v907_v0 = vmul.f32 %v2059_v45, %v2368_v18 }
 0x3e0   : > { %v906_v1 = vmul.f32 %v2061_v63, %v2348_v52  ;;  %v2063_v21 = vpop.eup %2062 }
 0x3e1   : > { %v2065_v8 = vpop.eup %2064  ;;  %v909_v11 = vmul.f32 %v2063_v21, %v2360_v62 }
 0x3e2   : > { %v912_v60 = vpack.c.bf16 %v907_v0, %v906_v1  ;;  %v908_v14 = vmul.f32 %v2065_v8, %v2354_v58  ;;  %v1752_v0 = vld [vmem:[%s2166_s26 + $0x1] ss:$0 sm:$0xff] }
 0x3e3   : > { %1881 = vmatmul.mubr.msk.bf16.gmra.mrb[20].mxu0 %vm596_vm5, %v665_v44 }
 0x3e4   : > { %1908 = vmatprep.mubr.msk.bf16.mxu0 %vm2118_vm1, %v2117_v7  ;;  %v913_v17 = vpack.c.bf16 %v909_v11, %v908_v14 }
 0x3eb   : > { %v896_v54 = vpop.xlane.xlu1 %895 }
 0x3ef   : > { %v899_v56 = vpop.xlane.xlu1 %898 }
 0x3f0   : > { %2066 = vrcp.f32 %v899_v56 }
 0x3f1   : > { %2068 = vrcp.f32 %v896_v54 }
 0x3f3   : > { %v916_v59 = vpop.permute.xlu1 %915 }
 0x3f4   : > { %1903 = vmatpush3.bf16.msra.mxu0 %v916_v59 }
 0x3f5   : > { %1904 = vmatprep.subr.bf16.mxu0 %v2117_v7 }
 0x3f8   : > { %1905 = vmatpush3.bf16.msra.mxu0 %v918_v61 }
 0x3f9   : > { %1906 = vmatprep.subr.bf16.mxu0 %v2117_v7 }
 0x3fa   : > { %v2067_v52 = vpop.eup %2066 }
 0x3fb   : > { %v2069_v18 = vpop.eup %2068  ;;  %v911_v33 = vmul.f32 %v2067_v52, %v2379_v29 }
 0x3fc   : > { %1907 = vmatpush3.bf16.msra.mxu0 %v920_v2  ;;  %v910_v19 = vmul.f32 %v2069_v18, %v2374_v26 }
 0x3fd   : > { %1936 = vmatprep.subr.bf16.mxu0 %v2117_v7 }
 0x3fe   : > { %v914_v46 = vpack.c.bf16 %v911_v33, %v910_v19 }
 0x3ff   : > { %1909 = vmatmul.mubr.msk.bf16.vlgmr.msra.gmra.mrb[24].mxu0 %vm596_vm5, %v912_v60 }
 0x400   : > { %1912 = vmatprep.mubr.msk.bf16.mxu0 %vm2118_vm1, %v2117_v7 }
 0x407   : > { %1913 = vmatmul.mubr.msk.bf16.gmra.mrb[28].mxu0 %vm596_vm5, %v913_v17 }
 0x408   : > { %1916 = vmatprep.mubr.msk.bf16.mxu0 %vm2118_vm1, %v2117_v7 }
 0x40f   : > { %1917 = vmatmul.mubr.msk.bf16.gmra.mrb[32].mxu0 %vm596_vm5, %v914_v46 }
 0x410   : > { %1948 = vmatprep.mubr.msk.bf16.mxu0 %vm2118_vm1, %v2117_v7 }
 0x47b   : > { %v718_v62 = vpop.f32.mrb[12].mxu0 }
 0x47c   : > { %741 = vst.msk [vmem:[#allocation3] sm:$0xff] %vm508_vm3, %v718_v62  ;;  %v1874_v58 = vpop.f32.mrb[13].mxu0 }
 0x47d   : > { %v721_v20 = vpop.f32.mrb[14].mxu0 }
 0x47e   : > { %742 = vst.msk [vmem:[#allocation3 + $0x8] sm:$0xff] %vm508_vm3, %v721_v20  ;;  %v1875_v22 = vpop.f32.mrb[15].mxu0 }
 0x4ae   : > { %v726_v24 = vpop.f32.mrb[16].mxu0 }
 0x4af   : > { %743 = vst.msk [vmem:[#allocation3 + $0x10] sm:$0xff] %vm508_vm3, %v726_v24  ;;  %v1878_v26 = vpop.f32.mrb[17].mxu0 }
 0x4b0   : > { %v729_v28 = vpop.f32.mrb[18].mxu0 }
 0x4b1   : > { %744 = vst.msk [vmem:[#allocation3 + $0x18] sm:$0xff] %vm508_vm3, %v729_v28  ;;  %v1879_v29 = vpop.f32.mrb[19].mxu0 }
 0x4b6   : > { %v734_v4 = vpop.f32.mrb[20].mxu0 }
 0x4b7   : > { %745 = vst.msk [vmem:[#allocation3 + $0x20] sm:$0xff] %vm508_vm3, %v734_v4  ;;  %v1882_v6 = vpop.f32.mrb[21].mxu0 }
 0x4b8   : > { %v737_v3 = vpop.f32.mrb[22].mxu0 }
 0x4b9   : > { %746 = vst.msk [vmem:[#allocation3 + $0x28] sm:$0xff] %vm508_vm3, %v737_v3  ;;  %v1883_v5 = vpop.f32.mrb[23].mxu0 }
 0x4d2   : > { %v967_v34 = vpop.f32.mrb[24].mxu0 }
 0x4d3   : > { %996 = vrot.lane.b32.xlu0 %v967_v34, %s2125_s24  ;;  %v1910_v39 = vpop.f32.mrb[25].mxu0 }
 0x4d4   : > { %v970_v23 = vpop.f32.mrb[26].mxu0 }
 0x4d5   : > { %v1911_v25 = vpop.f32.mrb[27].mxu0 }
 0x4d7   : > { %998 = vrot.lane.b32.xlu0 %v970_v23, %s2125_s24 }
 0x4da   : > { %v975_v36 = vpop.f32.mrb[28].mxu0 }
 0x4db   : > { %1000 = vrot.lane.b32.xlu1 %v975_v36, %s2125_s24  ;;  %v1914_v38 = vpop.f32.mrb[29].mxu0 }
 0x4dc   : > { %v978_v40 = vpop.f32.mrb[30].mxu0 }
 0x4dd   : > { %1002 = vrot.lane.b32.xlu0 %v978_v40, %s2125_s24  ;;  %v1915_v41 = vpop.f32.mrb[31].mxu0 }
 0x4e2   : > { %v983_v42 = vpop.f32.mrb[32].mxu0 }
 0x4e3   : > { %1004 = vrot.lane.b32.xlu1 %v983_v42, %s2125_s24  ;;  %v1918_v43 = vpop.f32.mrb[33].mxu0 }
 0x4e4   : > { %v986_v27 = vpop.f32.mrb[34].mxu0 }
 0x4e5   : > { %1006 = vrot.lane.b32.xlu0 %v986_v27, %s2125_s24  ;;  %v1919_v30 = vpop.f32.mrb[35].mxu0 }
 0x545   : > { %v997_v47 = vpop.permute.xlu0 %996 }
 0x546   : > { %1015 = vst.msk [vmem:[#allocation3] sm:$0xff] %vm1014_vm9, %v997_v47 }
 0x549   : > { %v999_v35 = vpop.permute.xlu0 %998 }
 0x54a   : > { %1016 = vst.msk [vmem:[#allocation3 + $0x8] sm:$0xff] %vm1014_vm9, %v999_v35 }
 0x54d   : > { %v1001_v48 = vpop.permute.xlu1 %1000  ;;  %v1021_v50 = vld [vmem:[#allocation3] sm:$0xff] }
 0x54e   : > { %1017 = vst.msk [vmem:[#allocation3 + $0x10] sm:$0xff] %vm1014_vm9, %v1001_v48 }
 0x54f   : > { %v1003_v49 = vpop.permute.xlu0 %1002 }
 0x550   : > { %1018 = vst.msk [vmem:[#allocation3 + $0x18] sm:$0xff] %vm1014_vm9, %v1003_v49 }
 0x551   : > { %v1022_v51 = vld [vmem:[#allocation3 + $0x8] sm:$0xff] }
 0x552   : > { %v1027_v44 = vpack.c.bf16 %v1022_v51, %v1021_v50 }
 0x554   : > { %1925 = vmatmul.mubr.msk.bf16.vlgmr.msra.gmra.mrb[24].mxu1 %vm429_vm2, %v1027_v44 }
 0x555   : > { %v1005_v37 = vpop.permute.xlu1 %1004  ;;  %1928 = vmatprep.mubr.msk.bf16.mxu1 %vm2118_vm1, %v2117_v7  ;;  %v1023_v56 = vld [vmem:[#allocation3 + $0x10] sm:$0xff] }
 0x556   : > { %1019 = vst.msk [vmem:[#allocation3 + $0x20] sm:$0xff] %vm1014_vm9, %v1005_v37 }
 0x557   : > { %v1007_v53 = vpop.permute.xlu0 %1006  ;;  %v1024_v54 = vld [vmem:[#allocation3 + $0x18] sm:$0xff] }
 0x558   : > { %1020 = vst.msk [vmem:[#allocation3 + $0x28] sm:$0xff] %vm1014_vm9, %v1007_v53  ;;  %v1028_v59 = vpack.c.bf16 %v1024_v54, %v1023_v56  ;;  %vm1378_vm9 = vcmask 785408  }
 0x55c   : > { %1929 = vmatmul.mubr.msk.bf16.gmra.mrb[28].mxu1 %vm429_vm2, %v1028_v59 }
 0x55d   : > { %1932 = vmatprep.mubr.msk.bf16.mxu1 %vm2118_vm1, %v2117_v7  ;;  %v1025_v45 = vld [vmem:[#allocation3 + $0x20] sm:$0xff] }
 0x55f   : > { %v1026_v61 = vld [vmem:[#allocation3 + $0x28] sm:$0xff] }
 0x560   : > { %v1029_v63 = vpack.c.bf16 %v1026_v61, %v1025_v45 }
 0x564   : > { %1933 = vmatmul.mubr.msk.bf16.gmra.mrb[32].mxu1 %vm429_vm2, %v1029_v63 }
 0x565   : > { %1972 = vmatprep.mubr.msk.bf16.mxu1 %vm2118_vm1, %v2117_v7 }
 0x627   : > { %v1089_v1 = vpop.f32.mrb[24].mxu1 }
 0x628   : > { %v1090_v2 = vadd.f32 %v1752_v0, %v1089_v1  ;;  %v1926_v60 = vpop.f32.mrb[25].mxu1 }
 0x629   : > { %v1092_v21 = vpop.f32.mrb[26].mxu1 }
 0x62a   : > { %v1093_v8 = vadd.f32 %v1752_v0, %v1092_v21  ;;  %v1927_v11 = vpop.f32.mrb[27].mxu1  ;;  %v1112_v14 = vadd.f32 %v1090_v2, %v2197_v9 }
 0x62c   : > { %v1118_v17 = vsel %vm429_vm2, %v1112_v14, 0.0  ;;  %v1113_v52 = vadd.f32 %v1093_v8, %v2199_v10 }
 0x62d   : > { %1119 = vadd.xlane.f32.xlu1 %v1118_v17 }
 0x62e   : > { %v1121_v18 = vsel %vm429_vm2, %v1113_v52, 0.0 }
 0x62f   : > { %v1097_v33 = vpop.f32.mrb[28].mxu1  ;;  %1122 = vadd.xlane.f32.xlu0 %v1121_v18 }
 0x630   : > { %v1098_v19 = vadd.f32 %v1752_v0, %v1097_v33  ;;  %v1930_v46 = vpop.f32.mrb[29].mxu1 }
 0x631   : > { %v1100_v62 = vpop.f32.mrb[30].mxu1  ;;  %v2013_v46 = vld [vmem:[%s2171_s29 + $0x28] sm:$0xff]  }
 0x632   : > { %v1101_v58 = vadd.f32 %v1752_v0, %v1100_v62  ;;  %v1931_v20 = vpop.f32.mrb[31].mxu1  ;;  %v1114_v22 = vadd.f32 %v1098_v19, %v2207_v12 }
 0x634   : > { %v1124_v24 = vsel %vm429_vm2, %v1114_v22, 0.0  ;;  %v1115_v9 = vadd.f32 %v1101_v58, %v2209_v13 }
 0x635   : > { %1125 = vadd.xlane.f32.xlu0 %v1124_v24  ;;  %v2014_v24 = vld [vmem:[%s2171_s29 + $0x30] sm:$0xff]  }
 0x636   : > { %v1127_v26 = vsel %vm429_vm2, %v1115_v9, 0.0 }
 0x637   : > { %1128 = vadd.xlane.f32.xlu1 %v1127_v26  ;;  %v1105_v10 = vpop.f32.mrb[32].mxu1 }
 0x638   : > { %v1106_v28 = vadd.f32 %v1752_v0, %v1105_v10  ;;  %v1934_v29 = vpop.f32.mrb[33].mxu1  ;;  %v2496_v10 = vld [vmem:[%s2166_s26 + $0x3] ss:$0 sm:$0xff] }
 0x639   : > { %v1108_v4 = vpop.f32.mrb[34].mxu1 }
 0x63a   : > { %v1109_v6 = vadd.f32 %v1752_v0, %v1108_v4  ;;  %v1935_v3 = vpop.f32.mrb[35].mxu1  ;;  %v1116_v5 = vadd.f32 %v1106_v28, %v2219_v15  ;;  %v2012_v0 = vld [vmem:[%s2171_s29 + $0x20] sm:$0xff]  }
 0x63b   : > { %1937 = vmatpush3.bf16.msra.mxu0 %v2012_v0 }
 0x63c   : > { %v1130_v32 = vsel %vm429_vm2, %v1116_v5, 0.0  ;;  %v1117_v12 = vadd.f32 %v1109_v6, %v2221_v16  ;;  %1938 = vmatprep.subr.bf16.mxu0 %v2117_v7 }
 0x63d   : > { %1131 = vadd.xlane.f32.xlu0 %v1130_v32 }
 0x63e   : > { %v1133_v31 = vsel %vm429_vm2, %v1117_v12, 0.0 }
 0x63f   : > { %1134 = vadd.xlane.f32.xlu1 %v1133_v31  ;;  %1939 = vmatpush3.bf16.msra.mxu0 %v2013_v46 }
 0x640   : > { %1940 = vmatprep.subr.bf16.mxu0 %v2117_v7 }
 0x643   : > { %1941 = vmatpush3.bf16.msra.mxu0 %v2014_v24 }
 0x644   : > { %1942 = vmatprep.subr.bf16.mxu0 %v2117_v7 }
 0x6ba   : > { %v1120_v13 = vpop.xlane.xlu1 %1119 }
 0x6bb   : > { %v1137_v34 = vmul.f32 0.03125, %v1120_v13 }
 0x6bc   : > { %v1123_v39 = vpop.xlane.xlu0 %1122 }
 0x6bd   : > { %v1143_v23 = vsub.f32 %v1112_v14, %v1137_v34  ;;  %v1138_v25 = vmul.f32 0.03125, %v1123_v39  ;;  %v2015_v34 = vld [vmem:[%s2171_s29 + $0x38] sm:$0xff]  }
 0x6be   : > { %1943 = vmatpush3.bf16.msra.mxu0 %v2015_v34 }
 0x6bf   : > { %v2455_v36 = vsub.f32 %v1113_v52, %v1138_v25  ;;  %v1149_v38 = vmul.f32 %v1143_v23, %v1143_v23  ;;  %v2484_v52 = vshrl.u32 %v198_v55, 7  ;;  %1944 = vmatprep.subr.bf16.mxu0 %v2117_v7 }
 0x6c1   : > { %v1155_v40 = vsel %vm429_vm2, %v1149_v38, 0.0  ;;  %v1150_v15 = vmul.f32 %v2455_v36, %v2455_v36  ;;  %v200_v58 = vadd.s32 8, %v2484_v52  ;;  %vm242_vm10 = vcmp.lt.s32.totalorder %v2484_v52, %v2280_v57 }
 0x6c2   : > { %1156 = vadd.xlane.f32.xlu0 %v1155_v40  ;;  %v1126_v41 = vpop.xlane.xlu0 %1125  ;;  %v2503_v32 = vsel %vm242_vm10, 1.0, %v2117_v7  ;;  %v201_v13 = vadd.s32 16, %v2484_v52  ;;  %v2517_v38 = vstv %s2277_s0  ;;  %v2016_v40 = vld [vmem:[%s2171_s29 + $0x40] sm:$0xff]   ;;  %vm1285_vm12 = vcmp.lt.s32.totalorder %v2484_v52, 7 }
 0x6c3   : > { %v1139_v16 = vmul.f32 0.03125, %v1126_v41  ;;  %v1158_v42 = vsel %vm429_vm2, %v1150_v15, 0.0  ;;  %vm243_vm11 = vcmp.lt.s32.totalorder %v200_v58, %v2280_v57  ;;  %v203_v41 = vadd.s32 32, %v2484_v52  ;;  %1945 = vmatpush3.bf16.msra.mxu0 %v2016_v40 }
 0x6c4   : > { %v1129_v43 = vpop.xlane.xlu1 %1128  ;;  %1159 = vadd.xlane.f32.xlu1 %v1158_v42  ;;  %vm244_vm13 = vcmp.lt.s32.totalorder %v201_v13, %v2280_v57  ;;  %vm1229_vm14 = vcmp.lt.s32.totalorder %v2484_v52, 1  ;;  %vm271_vm15 = vcmp.lt.s32.totalorder %v2484_v52, %v2517_v38  ;;  %1946 = vmatprep.subr.bf16.mxu0 %v2117_v7  ;;  %vm318_vm0 = vcmp.le.s32.totalorder %v201_v13, 22 }
 0x6c5   : > { %v2461_v27 = vsub.f32 %v1114_v22, %v1139_v16  ;;  %v1140_v30 = vmul.f32 0.03125, %v1129_v43  ;;  %v2490_v22 = vld [vmem:[%s2166_s26 + $0x2] ss:$0 sm:$0xff]  ;;  %vm298_vm4 = vcmp.ge.s32.totalorder %v2484_v52, 1  ;;  %vm1482_vm10 = vcmask 523264  }
 0x6c7   : > { %v2463_v47 = vsub.f32 %v1115_v9, %v1140_v30  ;;  %v1151_v35 = vmul.f32 %v2461_v27, %v2461_v27 }
 0x6c9   : > { %v1161_v48 = vsel %vm429_vm2, %v1151_v35, 0.0  ;;  %v1152_v49 = vmul.f32 %v2463_v47, %v2463_v47 }
 0x6ca   : > { %1162 = vadd.xlane.f32.xlu0 %v1161_v48  ;;  %v1132_v50 = vpop.xlane.xlu0 %1131 }
 0x6cb   : > { %v1141_v51 = vmul.f32 0.03125, %v1132_v50  ;;  %v1164_v44 = vsel %vm429_vm2, %v1152_v49, 0.0 }
 0x6cc   : > { %v1135_v37 = vpop.xlane.xlu1 %1134  ;;  %1165 = vadd.xlane.f32.xlu1 %v1164_v44  ;;  %v2544_v44 = vsel %vm244_vm13, 1.0, %v2117_v7 }
 0x6cd   : > { %v2471_v53 = vsub.f32 %v1116_v5, %v1141_v51  ;;  %v1142_v54 = vmul.f32 0.03125, %v1135_v37  ;;  %v2017_v51 = vld [vmem:[%s2171_s29 + $0x48] sm:$0xff]   ;;  %v1721_v37 = vadd.s32 4294967272, %v203_v41  ;;  %v2018_v41 = vld [vmem:[%s2171_s29 + $0x50] sm:$0xff]  }
 0x6ce   : > { %1947 = vmatpush3.bf16.msra.mxu0 %v2017_v51  ;;  %1984 = vmatpush3.bf16.msra.mxu1 %v2018_v41 }
 0x6cf   : > { %v2473_v56 = vsub.f32 %v1117_v12, %v1142_v54  ;;  %v1153_v59 = vmul.f32 %v2471_v53, %v2471_v53  ;;  %vm272_vm3 = vcmp.lt.s32.totalorder %v1721_v37, %v2517_v38  ;;  %1960 = vmatprep.subr.bf16.mxu0 %v2117_v7  ;;  %1981 = vmatprep.subr.bf16.mxu1 %v2117_v7 }
 0x6d0   : > { %v2591_v46 = vsel %vm272_vm3, 1.0, %v2117_v7 }
 0x6d1   : > { %v1167_v61 = vsel %vm429_vm2, %v1153_v59, 0.0  ;;  %v1154_v45 = vmul.f32 %v2473_v56, %v2473_v56 }
 0x6d2   : > { %1168 = vadd.xlane.f32.xlu0 %v1167_v61 }
 0x6d3   : > { %v1170_v63 = vsel %vm429_vm2, %v1154_v45, 0.0  ;;  %v2561_v45 = vsel %vm271_vm15, 1.0, %v2117_v7 }
 0x6d4   : > { %1171 = vadd.xlane.f32.xlu1 %v1170_v63 }
 0x74f   : > { %v1157_v1 = vpop.xlane.xlu0 %1156 }
 0x750   : > { %v1173_v2 = vmul.f32 0.03125, %v1157_v1 }
 0x751   : > { %v1160_v60 = vpop.xlane.xlu1 %1159 }
 0x752   : > { %v1179_v21 = vadd.f32 1e-05, %v1173_v2  ;;  %v1174_v8 = vmul.f32 0.03125, %v1160_v60 }
 0x754   : > { %2070 = vrsqrt.f32 %v1179_v21  ;;  %v1180_v11 = vadd.f32 1e-05, %v1174_v8 }
 0x756   : > { %2072 = vrsqrt.f32 %v1180_v11 }
 0x757   : > { %v1163_v14 = vpop.xlane.xlu0 %1162 }
 0x758   : > { %v1175_v17 = vmul.f32 0.03125, %v1163_v14 }
 0x759   : > { %v1166_v18 = vpop.xlane.xlu1 %1165 }
 0x75a   : > { %v1181_v33 = vadd.f32 1e-05, %v1175_v17  ;;  %v1176_v19 = vmul.f32 0.03125, %v1166_v18  ;;  %v1732_v17 = vsel %vm318_vm0, 1.0, %v2117_v7 }
 0x75c   : > { %2074 = vrsqrt.f32 %v1181_v33  ;;  %v1182_v62 = vadd.f32 1e-05, %v1176_v19 }
 0x75e   : > { %v2071_v20 = vpop.eup %2070  ;;  %2076 = vrsqrt.f32 %v1182_v62 }
 0x75f   : > { %v1191_v9 = vmul.f32 %v2071_v20, %v1143_v23  ;;  %v1169_v55 = vpop.xlane.xlu0 %1168  ;;  %v2510_v23 = vsel %vm243_vm11, 1.0, %v2117_v7 }
 0x760   : > { %v2073_v26 = vpop.eup %2072  ;;  %v1177_v28 = vmul.f32 0.03125, %v1169_v55 }
 0x761   : > { %v1192_v29 = vmul.f32 %v2073_v26, %v2455_v36  ;;  %v1172_v4 = vpop.xlane.xlu1 %1171  ;;  %v1201_v6 = vmul.f32 %v2490_v22, %v1191_v9 }
 0x762   : > { %v1183_v3 = vadd.f32 1e-05, %v1177_v28  ;;  %v1178_v5 = vmul.f32 0.03125, %v1172_v4 }
 0x763   : > { %v1211_v12 = vadd.f32 %v2496_v10, %v1201_v6  ;;  %v1202_v31 = vmul.f32 %v2490_v22, %v1192_v29 }
 0x764   : > { %2078 = vrsqrt.f32 %v1183_v3  ;;  %v1184_v39 = vadd.f32 1e-05, %v1178_v5 }
 0x765   : > { %v2513_v25 = vmul.f32 %v2503_v32, %v1211_v12  ;;  %v1212_v36 = vadd.f32 %v2496_v10, %v1202_v31 }
 0x766   : > { %v2075_v15 = vpop.eup %2074  ;;  %2080 = vrsqrt.f32 %v1184_v39 }
 0x767   : > { %v1193_v16 = vmul.f32 %v2075_v15, %v2461_v27  ;;  %1254 = vrot.lane.b32.xlu0 %v2513_v25, %s2126_s25  ;;  %v2527_v42 = vmul.f32 %v2510_v23, %v1212_v36  ;;  %v1223_v30 = vrot.slane %v2513_v25, 7  ;;  %v1279_v35 = vrot.slane %v2513_v25, 1 }
 0x768   : > { %v2077_v43 = vpop.eup %2076  ;;  %v204_v27 = vadd.s32 40, %v2484_v52 }
 0x769   : > { %v1194_v48 = vmul.f32 %v2077_v43, %v2463_v47  ;;  %1256 = vrot.lane.b32.xlu1 %v2527_v42, %s2126_s25  ;;  %v1280_v49 = vrot.slane %v2527_v42, 1  ;;  %v1203_v57 = vmul.f32 %v2490_v22, %v1193_v16  ;;  %v1224_v50 = vrot.slane %v2527_v42, 7  ;;  %v2019_v43 = vld [vmem:[%s2171_s29 + $0x58] sm:$0xff]  }
 0x76a   : > { %v1722_v63 = vadd.s32 4294967272, %v204_v27  ;;  %1985 = vmatpush3.bf16.msra.mxu1 %v2019_v43 }
 0x76b   : > { %v1204_v54 = vmul.f32 %v2490_v22, %v1194_v48  ;;  %v1290_v47 = vsel %vm1285_vm12, %v1279_v35, %v1280_v49  ;;  %v1213_v59 = vadd.f32 %v2496_v10, %v1203_v57  ;;  %v1234_v61 = vsel %vm1229_vm14, %v1223_v30, %v1224_v50  ;;  %1982 = vmatprep.subr.bf16.mxu1 %v2117_v7 }
 0x76c   : > { %1243 = vst.msk [vmem:[#allocation3 + $0x8] sm:$0xff] %vm429_vm2, %v1234_v61  ;;  %vm273_vm5 = vcmp.lt.s32.totalorder %v1722_v63, %v2517_v38  ;;  %vm321_vm6 = vcmp.le.s32.totalorder %v1722_v63, 22 }
 0x76d   : > { %v1214_v0 = vadd.f32 %v2496_v10, %v1204_v54  ;;  %1304 = vrot.lane.b32.xlu1 %v1290_v47, %s2123_s22  ;;  %v2567_v1 = vmul.f32 %v2544_v44, %v1213_v59  ;;  %v2607_v26 = vsel %vm273_vm5, 1.0, %v2117_v7  ;;  %v1733_v40 = vsel %vm321_vm6, 1.0, %v2117_v7 }
 0x76e   : > { %v2079_v2 = vpop.eup %2078 }
 0x76f   : > { %v1195_v60 = vmul.f32 %v2079_v2, %v2471_v53  ;;  %v1281_v21 = vrot.slane %v2567_v1, 1  ;;  %v2575_v8 = vmul.f32 %v2561_v45, %v1214_v0  ;;  %v1225_v11 = vrot.slane %v2567_v1, 7 }
 0x770   : > { %v2081_v14 = vpop.eup %2080 }
 0x771   : > { %v1196_v18 = vmul.f32 %v2081_v14, %v2473_v56  ;;  %1258 = vrot.lane.b32.xlu1 %v2567_v1, %s2126_s25  ;;  %v1289_v53 = vsel %vm1285_vm12, %v1280_v49, %v1281_v21  ;;  %v1282_v33 = vrot.slane %v2575_v8, 1  ;;  %v1205_v19 = vmul.f32 %v2490_v22, %v1195_v60 }
 0x772   : > { %1306 = vrot.lane.b32.xlu0 %v1289_v53, %s2123_s22  ;;  %v1730_v56 = vsel %vm298_vm4, 1.0, %v2117_v7  ;;  %v1233_v62 = vsel %vm1229_vm14, %v1224_v50, %v1225_v11  ;;  %v1226_v58 = vrot.slane %v2575_v8, 7  ;;  %v1760_v53 = vld [vmem:[%s2166_s26 + $0x4] ss:$0 sm:$0xff] }
 0x773   : > { %v1206_v20 = vmul.f32 %v2490_v22, %v1196_v18  ;;  %v1288_v24 = vsel %vm1285_vm12, %v1281_v21, %v1282_v33  ;;  %v1215_v9 = vadd.f32 %v2496_v10, %v1205_v19  ;;  %1244 = vst.msk [vmem:[#allocation3 + $0x10] sm:$0xff] %vm429_vm2, %v1233_v62  ;;  %v2021_v18 = vld [vmem:[%s2171_s29 + $0x68] sm:$0xff]  }
 0x774   : > { %v1294_v55 = vmul.f32 %v1732_v17, %v1288_v24  ;;  %v1232_v28 = vsel %vm1229_vm14, %v1225_v11, %v1226_v58  ;;  %v2020_v17 = vld [vmem:[%s2171_s29 + $0x60] sm:$0xff]  }
 0x775   : > { %v2612_v29 = vmul.f32 %v2591_v46, %v1215_v9  ;;  %v1216_v22 = vadd.f32 %v2496_v10, %v1206_v20  ;;  %v1239_v4 = vmul.f32 %v1730_v56, %v1232_v28  ;;  %1986 = vmatpush3.bf16.msra.mxu1 %v2020_v17 }
 0x776   : > { %1308 = vrot.lane.b32.xlu1 %v1294_v55, %s2123_s22  ;;  %1260 = vrot.lane.b32.xlu0 %v2575_v8, %s2126_s25 }
 0x777   : > { %v1283_v6 = vrot.slane %v2612_v29, 1  ;;  %v2620_v3 = vmul.f32 %v2607_v26, %v1216_v22  ;;  %1245 = vst.msk [vmem:[#allocation3 + $0x18] sm:$0xff] %vm429_vm2, %v1239_v4  ;;  %v1227_v5 = vrot.slane %v2612_v29, 7  ;;  %1983 = vmatprep.subr.bf16.mxu1 %v2117_v7 }
 0x779   : > { %v1287_v12 = vsel %vm1285_vm12, %v1282_v33, %v1283_v6  ;;  %v1284_v10 = vrot.slane %v2620_v3, 1  ;;  %v1228_v31 = vrot.slane %v2620_v3, 7  ;;  %v1231_v13 = vsel %vm1229_vm14, %v1226_v58, %v1227_v5  ;;  %1987 = vmatpush3.bf16.msra.mxu1 %v2021_v18 }
 0x77a   : > { %1262 = vrot.lane.b32.xlu1 %v2612_v29, %s2126_s25  ;;  %1310 = vrot.lane.b32.xlu0 %v1287_v12, %s2123_s22  ;;  %1246 = vst.msk [vmem:[#allocation3 + $0x20] sm:$0xff] %vm429_vm2, %v1231_v13 }
 0x77b   : > { %v1235_v34 = vsel %vm1229_vm14, %v1228_v31, %v1223_v30  ;;  %v1230_v39 = vsel %vm1229_vm14, %v1227_v5, %v1228_v31  ;;  %v1286_v38 = vsel %vm1285_vm12, %v1283_v6, %v1284_v10  ;;  %v1291_v15 = vsel %vm1285_vm12, %v1284_v10, %v1279_v35 }
 0x77c   : > { %v1236_v36 = vmul.f32 %v1730_v56, %v1235_v34  ;;  %1247 = vst.msk [vmem:[#allocation3 + $0x28] sm:$0xff] %vm429_vm2, %v1230_v39  ;;  %v1297_v16 = vmul.f32 %v1733_v40, %v1291_v15 }
 0x77e   : > { %1312 = vrot.lane.b32.xlu1 %v1286_v38, %s2123_s22  ;;  %1264 = vrot.lane.b32.xlu0 %v2620_v3, %s2126_s25  ;;  %1242 = vst.msk [vmem:[#allocation3] sm:$0xff] %vm429_vm2, %v1236_v36 }
 0x782   : > { %1314 = vrot.lane.b32.xlu0 %v1297_v16, %s2123_s22 }
 0x7d9   : > { %v1255_v52 = vpop.permute.xlu0 %1254 }
 0x7da   : > { %1273 = vst.msk [vmem:[#allocation3] sm:$0xff] %vm1272_vm7, %v1255_v52  ;;  %v1770_v52 = vld [vmem:[%s2166_s26 + $0x5] ss:$0 sm:$0xff] }
 0x7db   : > { %v1257_v30 = vpop.permute.xlu1 %1256 }
 0x7dc   : > { %1274 = vst.msk [vmem:[#allocation3 + $0x8] sm:$0xff] %vm1272_vm7, %v1257_v30 }
 0x7df   : > { %v1305_v35 = vpop.permute.xlu1 %1304 }
 0x7e0   : > { %1323 = vst.msk [vmem:[#allocation3] sm:$0xff] %vm1322_vm8, %v1305_v35 }
 0x7e3   : > { %v1259_v27 = vpop.permute.xlu1 %1258 }
 0x7e4   : > { %1275 = vst.msk [vmem:[#allocation3 + $0x10] sm:$0xff] %vm1272_vm7, %v1259_v27  ;;  %v1307_v48 = vpop.permute.xlu0 %1306 }
 0x7e5   : > { %1324 = vst.msk [vmem:[#allocation3 + $0x8] sm:$0xff] %vm1322_vm8, %v1307_v48 }
 0x7e7   : > { %v1329_v37 = vld [vmem:[#allocation3] sm:$0xff] }
 0x7e8   : > { %v1309_v49 = vpop.permute.xlu1 %1308  ;;  %v1261_v57 = vpop.permute.xlu0 %1260 }
 0x7e9   : > { %1325 = vst.msk [vmem:[#allocation3 + $0x10] sm:$0xff] %vm1322_vm8, %v1309_v49 }
 0x7ea   : > { %1276 = vst.msk [vmem:[#allocation3 + $0x18] sm:$0xff] %vm1272_vm7, %v1261_v57 }
 0x7ec   : > { %v1263_v50 = vpop.permute.xlu1 %1262  ;;  %v1311_v51 = vpop.permute.xlu0 %1310  ;;  %v1330_v54 = vld [vmem:[#allocation3 + $0x8] sm:$0xff] }
 0x7ed   : > { %1277 = vst.msk [vmem:[#allocation3 + $0x20] sm:$0xff] %vm1272_vm7, %v1263_v50  ;;  %v1335_v47 = vpack.c.bf16 %v1330_v54, %v1329_v37 }
 0x7ee   : > { %1326 = vst.msk [vmem:[#allocation3 + $0x18] sm:$0xff] %vm1322_vm8, %v1311_v51 }
 0x7ef   : > { %1949 = vmatmul.mubr.msk.bf16.vlgmr.msra.gmra.mrb[36].mxu0 %vm1378_vm9, %v1335_v47 }
 0x7f0   : > { %v1313_v59 = vpop.permute.xlu1 %1312  ;;  %v1265_v61 = vpop.permute.xlu0 %1264  ;;  %1952 = vmatprep.mubr.msk.bf16.mxu0 %vm2118_vm1, %v2117_v7  ;;  %1961 = vmatpush3.bf16.msra.mxu0 %v2018_v41  ;;  %v1331_v0 = vld [vmem:[#allocation3 + $0x10] sm:$0xff] }
 0x7f1   : > { %1327 = vst.msk [vmem:[#allocation3 + $0x20] sm:$0xff] %vm1322_vm8, %v1313_v59  ;;  %1962 = vmatprep.subr.bf16.mxu0 %v2117_v7 }
 0x7f2   : > { %1278 = vst.msk [vmem:[#allocation3 + $0x28] sm:$0xff] %vm1272_vm7, %v1265_v61 }
 0x7f4   : > { %v1315_v63 = vpop.permute.xlu0 %1314  ;;  %1963 = vmatpush3.bf16.msra.mxu0 %v2019_v43 }
 0x7f5   : > { %v1332_v2 = vld [vmem:[#allocation3 + $0x18] sm:$0xff]  ;;  %1328 = vst.msk [vmem:[#allocation3 + $0x28] sm:$0xff] %vm1322_vm8, %v1315_v63  ;;  %1964 = vmatprep.subr.bf16.mxu0 %v2117_v7 }
 0x7f6   : > { %v1336_v60 = vpack.c.bf16 %v1332_v2, %v1331_v0 }
 0x7f8   : > { %1953 = vmatmul.mubr.msk.bf16.gmra.mrb[40].mxu0 %vm1378_vm9, %v1336_v60  ;;  %v1333_v21 = vld [vmem:[#allocation3 + $0x20] sm:$0xff] }
 0x7f9   : > { %1956 = vmatprep.mubr.msk.bf16.mxu0 %vm2118_vm1, %v2117_v7  ;;  %1965 = vmatpush3.bf16.msra.mxu0 %v2020_v17 }
 0x7fa   : > { %1966 = vmatprep.subr.bf16.mxu0 %v2117_v7 }
 0x7fc   : > { %v1334_v11 = vld [vmem:[#allocation3 + $0x28] sm:$0xff] }
 0x7fd   : > { %v1337_v14 = vpack.c.bf16 %v1334_v11, %v1333_v21  ;;  %1967 = vmatpush3.bf16.msra.mxu0 %v2021_v18 }
 0x800   : > { %1957 = vmatmul.mubr.msk.bf16.gmra.mrb[44].mxu0 %vm1378_vm9, %v1337_v14 }
 0x801   : > { %1968 = vmatprep.mubr.msk.bf16.mxu0 %vm2118_vm1, %v2117_v7 }
 0x8c2   : > { %v1422_v33 = vpop.f32.mrb[36].mxu0 }
 0x8c3   : > { %v1423_v19 = vadd.f32 %v1760_v53, %v1422_v33  ;;  %v1950_v56 = vpop.f32.mrb[37].mxu0 }
 0x8c4   : > { %v1425_v62 = vpop.f32.mrb[38].mxu0 }
 0x8c5   : > { %v1426_v58 = vadd.f32 %v1760_v53, %v1425_v62  ;;  %v1951_v20 = vpop.f32.mrb[39].mxu0  ;;  %v1445_v24 = vmax.f32 %v1423_v19, 0.0 }
 0x8c7   : > { %v1446_v9 = vmax.f32 %v1426_v58, 0.0 }
 0x8c9   : > { %v1451_v55 = vpack.c.bf16 %v1446_v9, %v1445_v24 }
 0x8cb   : > { %v1430_v28 = vpop.f32.mrb[40].mxu0  ;;  %1969 = vmatmul.mubr.msk.bf16.vlgmr.msra.gmra.mrb[48].mxu0 %vm1482_vm10, %v1451_v55 }
 0x8cc   : > { %v1431_v22 = vadd.f32 %v1760_v53, %v1430_v28  ;;  %v1954_v4 = vpop.f32.mrb[41].mxu0 }
 0x8cd   : > { %v1433_v6 = vpop.f32.mrb[42].mxu0 }
 0x8ce   : > { %v1434_v5 = vadd.f32 %v1760_v53, %v1433_v6  ;;  %v1955_v12 = vpop.f32.mrb[43].mxu0  ;;  %v1447_v10 = vmax.f32 %v1431_v22, 0.0 }
 0x8d0   : > { %v1448_v31 = vmax.f32 %v1434_v5, 0.0 }
 0x8d2   : > { %v1452_v13 = vpack.c.bf16 %v1448_v31, %v1447_v10 }
 0x8d3   : > { %v1438_v34 = vpop.f32.mrb[44].mxu0 }
 0x8d4   : > { %v1439_v39 = vadd.f32 %v1760_v53, %v1438_v34  ;;  %v1958_v36 = vpop.f32.mrb[45].mxu0  ;;  %1973 = vmatmul.mubr.msk.bf16.vlgmr.msra.gmra.mrb[36].mxu1 %vm1482_vm10, %v1452_v13 }
 0x8d5   : > { %v1441_v38 = vpop.f32.mrb[46].mxu0  ;;  %1976 = vmatprep.mubr.msk.bf16.mxu1 %vm2118_vm1, %v2117_v7 }
 0x8d6   : > { %v1442_v40 = vadd.f32 %v1760_v53, %v1441_v38  ;;  %v1959_v15 = vpop.f32.mrb[47].mxu0  ;;  %v1449_v41 = vmax.f32 %v1439_v39, 0.0 }
 0x8d8   : > { %v1450_v16 = vmax.f32 %v1442_v40, 0.0 }
 0x8da   : > { %v1453_v43 = vpack.c.bf16 %v1450_v16, %v1449_v41 }
 0x8dc   : > { %1977 = vmatmul.mubr.msk.bf16.gmra.mrb[40].mxu1 %vm1482_vm10, %v1453_v43 }
 0x99e   : > { %v1526_v30 = vpop.f32.mrb[48].mxu0 }
 0x99f   : > { %v1527_v35 = vadd.f32 %v1770_v52, %v1526_v30  ;;  %v1970_v27 = vpop.f32.mrb[49].mxu0 }
 0x9a0   : > { %v1529_v48 = vpop.f32.mrb[50].mxu0 }
 0x9a1   : > { %v1530_v49 = vadd.f32 %v1770_v52, %v1529_v48  ;;  %v1971_v57 = vpop.f32.mrb[51].mxu0  ;;  %v1549_v50 = vadd.f32 %v1527_v35, %v2513_v25 }
 0x9a3   : > { %v1555_v51 = vsel %vm429_vm2, %v1549_v50, 0.0  ;;  %v1550_v7 = vadd.f32 %v1530_v49, %v2527_v42 }
 0x9a4   : > { %1556 = vadd.xlane.f32.xlu1 %v1555_v51 }
 0x9a5   : > { %v1558_v37 = vsel %vm429_vm2, %v1550_v7, 0.0 }
 0x9a6   : > { %1559 = vadd.xlane.f32.xlu0 %v1558_v37 }
 0x9a7   : > { %v1534_v54 = vpop.f32.mrb[36].mxu1 }
 0x9a8   : > { %v1535_v47 = vadd.f32 %v1770_v52, %v1534_v54  ;;  %v1974_v59 = vpop.f32.mrb[37].mxu1 }
 0x9a9   : > { %v1537_v61 = vpop.f32.mrb[38].mxu1 }
 0x9aa   : > { %v1538_v63 = vadd.f32 %v1770_v52, %v1537_v61  ;;  %v1975_v0 = vpop.f32.mrb[39].mxu1  ;;  %v1551_v2 = vadd.f32 %v1535_v47, %v2567_v1 }
 0x9ab   : > { %v1778_v0 = vld [vmem:[%s2166_s26 + $0x6] ss:$0 sm:$0xff] }
 0x9ac   : > { %v1561_v60 = vsel %vm429_vm2, %v1551_v2, 0.0  ;;  %v1552_v25 = vadd.f32 %v1538_v63, %v2575_v8 }
 0x9ad   : > { %1562 = vadd.xlane.f32.xlu0 %v1561_v60 }
 0x9ae   : > { %v1564_v21 = vsel %vm429_vm2, %v1552_v25, 0.0 }
 0x9af   : > { %v1542_v42 = vpop.f32.mrb[40].mxu1  ;;  %1565 = vadd.xlane.f32.xlu1 %v1564_v21  ;;  %v1779_v21 = vld [vmem:[%s2166_s26 + $0x7] ss:$0 sm:$0xff] }
 0x9b0   : > { %v1543_v11 = vadd.f32 %v1770_v52, %v1542_v42  ;;  %v1978_v14 = vpop.f32.mrb[41].mxu1 }
 0x9b1   : > { %v1545_v17 = vpop.f32.mrb[42].mxu1 }
 0x9b2   : > { %v1546_v18 = vadd.f32 %v1770_v52, %v1545_v17  ;;  %v1979_v53 = vpop.f32.mrb[43].mxu1  ;;  %v1553_v33 = vadd.f32 %v1543_v11, %v2612_v29 }
 0x9b4   : > { %v1567_v19 = vsel %vm429_vm2, %v1553_v33, 0.0  ;;  %v1554_v1 = vadd.f32 %v1546_v18, %v2620_v3 }
 0x9b5   : > { %1568 = vadd.xlane.f32.xlu0 %v1567_v19 }
 0x9b6   : > { %v1570_v56 = vsel %vm429_vm2, %v1554_v1, 0.0 }
 0x9b7   : > { %1571 = vadd.xlane.f32.xlu1 %v1570_v56 }
 0xa31   : > { %v1557_v8 = vpop.xlane.xlu1 %1556 }
 0xa32   : > { %v1573_v62 = vmul.f32 0.03125, %v1557_v8 }
 0xa33   : > { %v1560_v58 = vpop.xlane.xlu0 %1559 }
 0xa34   : > { %v1579_v20 = vsub.f32 %v1549_v50, %v1573_v62  ;;  %v1574_v24 = vmul.f32 0.03125, %v1560_v58 }
 0xa36   : > { %v1580_v9 = vsub.f32 %v1550_v7, %v1574_v24  ;;  %v1585_v55 = vmul.f32 %v1579_v20, %v1579_v20 }
 0xa38   : > { %v1591_v28 = vsel %vm429_vm2, %v1585_v55, 0.0  ;;  %v1586_v22 = vmul.f32 %v1580_v9, %v1580_v9 }
 0xa39   : > { %1592 = vadd.xlane.f32.xlu0 %v1591_v28 }
 0xa3a   : > { %v1563_v29 = vpop.xlane.xlu0 %1562  ;;  %v1594_v6 = vsel %vm429_vm2, %v1586_v22, 0.0 }
 0xa3b   : > { %v1575_v4 = vmul.f32 0.03125, %v1563_v29  ;;  %1595 = vadd.xlane.f32.xlu1 %v1594_v6 }
 0xa3c   : > { %v1566_v3 = vpop.xlane.xlu1 %1565 }
 0xa3d   : > { %v1581_v5 = vsub.f32 %v1551_v2, %v1575_v4  ;;  %v1576_v12 = vmul.f32 0.03125, %v1566_v3 }
 0xa3f   : > { %v2705_v10 = vsub.f32 %v1552_v25, %v1576_v12  ;;  %v1587_v31 = vmul.f32 %v1581_v5, %v1581_v5 }
 0xa41   : > { %v1597_v13 = vsel %vm429_vm2, %v1587_v31, 0.0  ;;  %v1588_v34 = vmul.f32 %v2705_v10, %v2705_v10 }
 0xa42   : > { %1598 = vadd.xlane.f32.xlu0 %v1597_v13  ;;  %v1569_v39 = vpop.xlane.xlu0 %1568 }
 0xa43   : > { %v1577_v36 = vmul.f32 0.03125, %v1569_v39  ;;  %v1600_v38 = vsel %vm429_vm2, %v1588_v34, 0.0 }
 0xa44   : > { %v1572_v40 = vpop.xlane.xlu1 %1571  ;;  %1601 = vadd.xlane.f32.xlu1 %v1600_v38 }
 0xa45   : > { %v1583_v15 = vsub.f32 %v1553_v33, %v1577_v36  ;;  %v1578_v41 = vmul.f32 0.03125, %v1572_v40 }
 0xa47   : > { %v2711_v16 = vsub.f32 %v1554_v1, %v1578_v41  ;;  %v1589_v43 = vmul.f32 %v1583_v15, %v1583_v15 }
 0xa49   : > { %v1603_v52 = vsel %vm429_vm2, %v1589_v43, 0.0  ;;  %v1590_v30 = vmul.f32 %v2711_v16, %v2711_v16 }
 0xa4a   : > { %1604 = vadd.xlane.f32.xlu0 %v1603_v52 }
 0xa4b   : > { %v1606_v35 = vsel %vm429_vm2, %v1590_v30, 0.0 }
 0xa4c   : > { %1607 = vadd.xlane.f32.xlu1 %v1606_v35 }
 0xac6   : > { %v1593_v27 = vpop.xlane.xlu0 %1592 }
 0xac7   : > { %v1609_v48 = vmul.f32 0.03125, %v1593_v27 }
 0xac8   : > { %v1596_v49 = vpop.xlane.xlu1 %1595 }
 0xac9   : > { %v1615_v57 = vadd.f32 1e-05, %v1609_v48  ;;  %v1610_v50 = vmul.f32 0.03125, %v1596_v49 }
 0xacb   : > { %2082 = vrsqrt.f32 %v1615_v57  ;;  %v1616_v51 = vadd.f32 1e-05, %v1610_v50 }
 0xacd   : > { %2084 = vrsqrt.f32 %v1616_v51 }
 0xacf   : > { %v1599_v7 = vpop.xlane.xlu0 %1598 }
 0xad0   : > { %v1611_v37 = vmul.f32 0.03125, %v1599_v7 }
 0xad1   : > { %v1602_v54 = vpop.xlane.xlu1 %1601 }
 0xad2   : > { %v1617_v47 = vadd.f32 1e-05, %v1611_v37  ;;  %v1612_v59 = vmul.f32 0.03125, %v1602_v54 }
 0xad4   : > { %2086 = vrsqrt.f32 %v1617_v47  ;;  %v1618_v61 = vadd.f32 1e-05, %v1612_v59 }
 0xad5   : > { %v2083_v63 = vpop.eup %2082 }
 0xad6   : > { %2088 = vrsqrt.f32 %v1618_v61  ;;  %v1627_v2 = vmul.f32 %v2083_v63, %v1579_v20 }
 0xad7   : > { %v1605_v60 = vpop.xlane.xlu0 %1604  ;;  %v2085_v25 = vpop.eup %2084 }
 0xad8   : > { %v1613_v42 = vmul.f32 0.03125, %v1605_v60  ;;  %v1637_v11 = vmul.f32 %v1778_v0, %v1627_v2  ;;  %v1628_v14 = vmul.f32 %v2085_v25, %v1580_v9 }
 0xad9   : > { %v1608_v17 = vpop.xlane.xlu1 %1607 }
 0xada   : > { %v1619_v18 = vadd.f32 1e-05, %v1613_v42  ;;  %v1614_v53 = vmul.f32 0.03125, %v1608_v17  ;;  %v1647_v33 = vadd.f32 %v1779_v21, %v1637_v11  ;;  %v1638_v19 = vmul.f32 %v1778_v0, %v1628_v14 }
 0xadc   : > { %2090 = vrsqrt.f32 %v1619_v18  ;;  %v1620_v1 = vadd.f32 1e-05, %v1614_v53  ;;  %v1653_v56 = vmul.f32 %v2503_v32, %v1647_v33  ;;  %v1648_v8 = vadd.f32 %v1779_v21, %v1638_v19 }
 0xade   : > { %v2087_v62 = vpop.eup %2086  ;;  %2092 = vrsqrt.f32 %v1620_v1  ;;  %1659 = vst.msk [vmem:[#allocation2] sm:$0xff] %vm429_vm2, %v1653_v56  ;;  %1665 = vst.msk [vmem:[%s2764_s4] sm:$0xff] %vm429_vm2, %v1653_v56  ;;  %v1654_v58 = vmul.f32 %v2510_v23, %v1648_v8 }
 0xadf   : > { %v1629_v20 = vmul.f32 %v2087_v62, %v1581_v5 }
 0xae0   : > { %v2089_v24 = vpop.eup %2088  ;;  %1660 = vst.msk [vmem:[#allocation2 + $0x8] sm:$0xff] %vm429_vm2, %v1654_v58  ;;  %1666 = vst.msk [vmem:[%s2764_s4 + $0x8] sm:$0xff] %vm429_vm2, %v1654_v58 }
 0xae1   : > { %v1639_v32 = vmul.f32 %v1778_v0, %v1629_v20  ;;  %v1630_v9 = vmul.f32 %v2089_v24, %v2705_v10 }
 0xae3   : > { %v1649_v55 = vadd.f32 %v1779_v21, %v1639_v32  ;;  %v1640_v28 = vmul.f32 %v1778_v0, %v1630_v9 }
 0xae5   : > { %v1655_v22 = vmul.f32 %v2544_v44, %v1649_v55  ;;  %v1650_v29 = vadd.f32 %v1779_v21, %v1640_v28 }
 0xae6   : > { %v2091_v4 = vpop.eup %2090 }
 0xae7   : > { %1661 = vst.msk [vmem:[#allocation2 + $0x10] sm:$0xff] %vm429_vm2, %v1655_v22  ;;  %1667 = vst.msk [vmem:[%s2764_s4 + $0x10] sm:$0xff] %vm429_vm2, %v1655_v22  ;;  %v1656_v23 = vmul.f32 %v2561_v45, %v1650_v29  ;;  %v1631_v6 = vmul.f32 %v2091_v4, %v1583_v15 }
 0xae8   : > { %v2093_v3 = vpop.eup %2092 }
 0xae9   : > { %1662 = vst.msk [vmem:[#allocation2 + $0x18] sm:$0xff] %vm429_vm2, %v1656_v23  ;;  %1668 = vst.msk [vmem:[%s2764_s4 + $0x18] sm:$0xff] %vm429_vm2, %v1656_v23  ;;  %v1641_v44 = vmul.f32 %v1778_v0, %v1631_v6  ;;  %v1632_v5 = vmul.f32 %v2093_v3, %v2711_v16 }
 0xaeb   : > { %v1651_v12 = vadd.f32 %v1779_v21, %v1641_v44  ;;  %v1642_v10 = vmul.f32 %v1778_v0, %v1632_v5 }
 0xaed   : > { %v1657_v31 = vmul.f32 %v2591_v46, %v1651_v12  ;;  %v1652_v13 = vadd.f32 %v1779_v21, %v1642_v10 }
 0xaef   : > { %1663 = vst.msk [vmem:[#allocation2 + $0x20] sm:$0xff] %vm429_vm2, %v1657_v31  ;;  %1669 = vst.msk [vmem:[%s2764_s4 + $0x20] sm:$0xff] %vm429_vm2, %v1657_v31  ;;  %v1658_v45 = vmul.f32 %v2607_v26, %v1652_v13 }
 0xaf1   : > { %1664 = vst.msk [vmem:[#allocation2 + $0x28] sm:$0xff] %vm429_vm2, %v1658_v45  ;;  %1670 = vst.msk [vmem:[%s2764_s4 + $0x28] sm:$0xff] %vm429_vm2, %v1658_v45 }
 0xaf2 PF: > { %s20_s20 = sadd.s32 1, %s2114_s20  }
 0xaf3   : > { %p17_p10 = scmp.ge.s32.totalorder %s20_s20, 4  }
 0xaf5   :  { %19 = sbr.rel (!%p17_p10) target bundleno = 16 (0x10), region = 65 }

// kernel: fastspeech2_forward.5
= control target key start
LH: loop header
LB: loop body
LE: loop exit
PB: predicated region body
PF: predicated region fallthrough
CT: control target
= control target key end

     0   :  { %v2293_v0 = vmov 0.0   ;;  %vm2294_vm0 = vmmov 0   ;;  %vm151_vm1 = vcmask 261120   ;;  %v23_v12 = vlaneseq  ;;  %s2296_s17 = smov 16   ;;  %s2297_s20 = smov 48   ;;  %s3414_s1 = inlined_call_operand.vmem [shape: bf16[32,16], index: 1, kind: input, shape index: {}]   ;;  %s3415_s0 = inlined_call_operand.vmem [shape: f32[48,32], index: 0, kind: input, shape index: {}]   ;;  %s3416_s2 = inlined_call_operand.vmem [shape: f32[1,16], index: 2, kind: input, shape index: {}]   ;;  %s3417_s5 = inlined_call_operand.vmem [shape: f32[48,16], index: 5, kind: output, shape index: {0}]   ;;  %s3418_s3 = inlined_call_operand.vmem [shape: bf16[5,160,32], index: 3, kind: input, shape index: {}]   ;;  %s3419_s4 = inlined_call_operand.vmem [shape: f32[5,32], index: 4, kind: input, shape index: {}]   ;;  %s3420_s6 = inlined_call_operand.vmem [shape: f32[48,16], index: 6, kind: output, shape index: {1}]  }
   0x1   :  { %2152 = vmatprep.subr.bf16.mxu0 %v2293_v0  ;;  %v2198_v1 = vld [vmem:[%s3414_s1] sm:$0xff]   ;;  %2156 = vmatprep.mubr.msk.bf16.mxu0 %vm2294_vm0, %v2293_v0  ;;  %v2199_v2 = vld [vmem:[%s3414_s1 + $0x8] sm:$0xff]   ;;  %v121_v6 = vld [vmem:[%s3415_s0 + $0x10] sm:$0xff]  ;;  %vm218_vm2 = vcmask 130048   ;;  %s2298_s25 = smov 64   ;;  %vm293_vm13 = vcmask 261248  }
   0x2   :  { %2168 = vmatprep.subr.bf16.mxu1 %v2293_v0  ;;  %2178 = vmatprep.mubr.msk.bf16.mxu1 %vm2294_vm0, %v2293_v0  ;;  %v119_v3 = vld [vmem:[%s3415_s0] sm:$0xff]  ;;  %v120_v4 = vld [vmem:[%s3415_s0 + $0x8] sm:$0xff]  ;;  %v122_v7 = vld [vmem:[%s3415_s0 + $0x18] sm:$0xff]  ;;  %v2379_v15 = vshrl.u32 %v23_v12, 7  ;;  %vm324_vm14 = vcmask 392448   ;;  %vm374_vm15 = vcmask 523648  }
   0x3   :  { %2153 = vmatpush3.bf16.msra.mxu0 %v2198_v1  ;;  %v125_v5 = vpack.c.bf16 %v120_v4, %v119_v3  ;;  %v126_v8 = vpack.c.bf16 %v122_v7, %v121_v6  ;;  %v123_v9 = vld [vmem:[%s3415_s0 + $0x20] sm:$0xff]  ;;  %v124_v10 = vld [vmem:[%s3415_s0 + $0x28] sm:$0xff]  ;;  %s2300_s26 = smov 96  }
   0x4   :  { %2154 = vmatprep.subr.bf16.mxu0 %v2293_v0  ;;  %v127_v11 = vpack.c.bf16 %v124_v10, %v123_v9  ;;  %v2377_v13 = vld [vmem:[%s3416_s2] ss:$0 sm:$0xff]  ;;  %v2385_v19 = vadd.s32 16, %v2379_v15  ;;  %s2295_s2 = smov 32   ;;  %vm256_vm3 = vcmp.lt.s32.totalorder %v2379_v15, 1  ;;  %v29_v22 = vadd.s32 40, %v2379_v15 }
   0x5   :  { %vm231_vm4 = vcmp.lt.s32.totalorder %v2379_v15, 2  ;;  %vm65_vm5 = vcmp.ge.s32.totalorder %v2379_v15, 1  ;;  %vm47_vm7 = vcmp.ge.s32.totalorder %v2379_v15, 2  ;;  %vm337_vm8 = vcmp.lt.s32.totalorder %v2379_v15, 7  ;;  %v2200_v45 = vld [vmem:[%s3418_s3] sm:$0xff]   ;;  %v2201_v55 = vld [vmem:[%s3418_s3 + $0x8] sm:$0xff]  }
   0x6   :  { %vm85_vm6 = vcmp.le.s32.totalorder %v2385_v19, 22  ;;  %vm387_vm9 = vcmp.lt.s32.totalorder %v2379_v15, 6  ;;  %v1979_v34 = vadd.s32 4294967272, %v29_v22  ;;  %v2436_v36 = vsel %vm65_vm5, 1.0, %v2293_v0  ;;  %2169 = vmatpush3.bf16.msra.mxu1 %v2200_v45 }
   0x7   :  { %2155 = vmatpush3.bf16.msra.mxu0 %v2199_v2  ;;  %v2441_v37 = vsel %vm85_vm6, 1.0, %v2293_v0  ;;  %vm103_vm10 = vcmp.le.s32.totalorder %v2385_v19, 21  ;;  %v2445_v38 = vsel %vm47_vm7, 1.0, %v2293_v0  ;;  %2170 = vmatprep.subr.bf16.mxu1 %v2293_v0  ;;  %v2203_v19 = vld [vmem:[%s3418_s3 + $0x18] sm:$0xff]   ;;  %vm424_vm5 = vcmask 654848  }
   0x8   :  { %vm88_vm11 = vcmp.le.s32.totalorder %v1979_v34, 22  ;;  %vm106_vm12 = vcmp.le.s32.totalorder %v1979_v34, 21  ;;  %v2511_v1 = vsel %vm103_vm10, 1.0, %v2293_v0  ;;  %vm485_vm6 = vcmask 654336  }
   0x9   :  { %v2515_v2 = vsel %vm88_vm11, 1.0, %v2293_v0  ;;  %vm655_vm7 = vcmask 785920   ;;  %vm704_vm10 = vcmask 1048320  }
   0xa   :  { %2157 = vmatmul.mubr.msk.bf16.vlgmr.msra.gmra.mrb[0].mxu0 %vm151_vm1, %v125_v5  ;;  %2171 = vmatpush3.bf16.msra.mxu1 %v2201_v55  ;;  %v2531_v5 = vsel %vm106_vm12, 1.0, %v2293_v0 }
   0xb   :  { %2160 = vmatprep.mubr.msk.bf16.mxu0 %vm2294_vm0, %v2293_v0  ;;  %2172 = vmatprep.subr.bf16.mxu1 %v2293_v0 }
  0x12   :  { %2161 = vmatmul.mubr.msk.bf16.gmra.mrb[4].mxu0 %vm151_vm1, %v126_v8  ;;  %v2202_v8 = vld [vmem:[%s3418_s3 + $0x10] sm:$0xff]  }
  0x13   :  { %2164 = vmatprep.mubr.msk.bf16.mxu0 %vm2294_vm0, %v2293_v0  ;;  %2173 = vmatpush3.bf16.msra.mxu1 %v2202_v8 }
  0x14   :  { %2174 = vmatprep.subr.bf16.mxu1 %v2293_v0 }
  0x17   :  { %2175 = vmatpush3.bf16.msra.mxu1 %v2203_v19 }
  0x18   :  { %2176 = vmatprep.subr.bf16.mxu1 %v2293_v0 }
  0x1a   :  { %2165 = vmatmul.mubr.msk.bf16.gmra.mrb[8].mxu0 %vm151_vm1, %v127_v11 }
  0xdd   :  { %v195_v14 = vpop.f32.mrb[0].mxu0 }
  0xde   :  { %v2382_v16 = vadd.f32 %v2377_v13, %v195_v14  ;;  %v2158_v17 = vpop.f32.mrb[1].mxu0 }
  0xdf   :  { %v198_v18 = vpop.f32.mrb[2].mxu0 }
  0xe0   :  { %219 = vst.msk [vmem:[%s3417_s5] sm:$0xff] %vm218_vm2, %v2382_v16  ;;  %v2393_v20 = vadd.f32 %v2377_v13, %v198_v18  ;;  %306 = vrot.lane.b32.xlu1 %v2382_v16, %s2295_s2  ;;  %v2159_v21 = vpop.f32.mrb[3].mxu0  ;;  %v250_v23 = vrot.slane %v2382_v16, 7  ;;  %v225_v25 = vrot.slane %v2382_v16, 6  ;;  %v331_v33 = vrot.slane %v2382_v16, 1 }
  0xe1   :  { %v381_v46 = vrot.slane %v2382_v16, 2 }
  0xe2   :  { %220 = vst.msk [vmem:[%s3417_s5 + $0x8] sm:$0xff] %vm218_vm2, %v2393_v20  ;;  %v251_v24 = vrot.slane %v2393_v20, 7  ;;  %v226_v26 = vrot.slane %v2393_v20, 6  ;;  %v332_v28 = vrot.slane %v2393_v20, 1  ;;  %v382_v42 = vrot.slane %v2393_v20, 2 }
  0xe4   :  { %308 = vrot.lane.b32.xlu1 %v2393_v20, %s2295_s2  ;;  %v261_v27 = vsel %vm256_vm3, %v250_v23, %v251_v24  ;;  %v236_v29 = vsel %vm231_vm4, %v225_v25, %v226_v26  ;;  %v342_v41 = vsel %vm337_vm8, %v331_v33, %v332_v28  ;;  %v392_v51 = vsel %vm387_vm9, %v381_v46, %v382_v42 }
  0xe5   :  { %277 = vrot.lane.b32.xlu0 %v261_v27, %s2296_s17  ;;  %v203_v30 = vpop.f32.mrb[4].mxu0  ;;  %245 = vst.msk [vmem:[#allocation2 + $0x10] sm:$0xff] %vm218_vm2, %v236_v29  ;;  %v2204_v29 = vld [vmem:[%s3418_s3 + $0x20] sm:$0xff]  }
  0xe6   :  { %v2429_v31 = vadd.f32 %v2377_v13, %v203_v30  ;;  %v2162_v32 = vpop.f32.mrb[5].mxu0  ;;  %2177 = vmatpush3.bf16.msra.mxu1 %v2204_v29 }
  0xe7   :  { %v206_v35 = vpop.f32.mrb[6].mxu0 }
  0xe8   :  { %221 = vst.msk [vmem:[%s3417_s5 + $0x10] sm:$0xff] %vm218_vm2, %v2429_v31  ;;  %v2453_v39 = vadd.f32 %v2377_v13, %v206_v35  ;;  %v2163_v40 = vpop.f32.mrb[7].mxu0  ;;  %v333_v43 = vrot.slane %v2429_v31, 1  ;;  %v227_v44 = vrot.slane %v2429_v31, 6  ;;  %v383_v47 = vrot.slane %v2429_v31, 2 }
  0xe9   :  { %356 = vrot.lane.b32.xlu0 %v342_v41, %s2297_s20  ;;  %v252_v60 = vrot.slane %v2429_v31, 7 }
  0xea   :  { %222 = vst.msk [vmem:[%s3417_s5 + $0x18] sm:$0xff] %vm218_vm2, %v2453_v39  ;;  %312 = vrot.lane.b32.xlu1 %v2453_v39, %s2295_s2  ;;  %v253_v48 = vrot.slane %v2453_v39, 7  ;;  %v235_v49 = vsel %vm231_vm4, %v226_v26, %v227_v44  ;;  %v228_v50 = vrot.slane %v2453_v39, 6  ;;  %v341_v53 = vsel %vm337_vm8, %v332_v28, %v333_v43 }
  0xeb   :  { %246 = vst.msk [vmem:[#allocation2 + $0x20] sm:$0xff] %vm218_vm2, %v235_v49  ;;  %v334_v63 = vrot.slane %v2453_v39, 1  ;;  %v391_v3 = vsel %vm387_vm9, %v382_v42, %v383_v47  ;;  %v384_v7 = vrot.slane %v2453_v39, 2 }
  0xec   :  { %v234_v54 = vsel %vm231_vm4, %v227_v44, %v228_v50  ;;  %v259_v4 = vsel %vm256_vm3, %v252_v60, %v253_v48 }
  0xed   :  { %406 = vrot.lane.b32.xlu0 %v392_v51, %s2298_s25  ;;  %v211_v52 = vpop.f32.mrb[8].mxu0  ;;  %v241_v58 = vmul.f32 %v2445_v38, %v234_v54  ;;  %v266_v14 = vmul.f32 %v2436_v36, %v259_v4  ;;  %v340_v17 = vsel %vm337_vm8, %v333_v43, %v334_v63  ;;  %v390_v30 = vsel %vm387_vm9, %v383_v47, %v384_v7 }
  0xee   :  { %v2494_v56 = vadd.f32 %v2377_v13, %v211_v52  ;;  %358 = vrot.lane.b32.xlu1 %v341_v53, %s2297_s20  ;;  %v2166_v57 = vpop.f32.mrb[9].mxu0  ;;  %v346_v22 = vmul.f32 %v2441_v37, %v340_v17  ;;  %v396_v40 = vmul.f32 %v2511_v1, %v390_v30 }
  0xef   :  { %v214_v59 = vpop.f32.mrb[10].mxu0  ;;  %247 = vst.msk [vmem:[#allocation2 + $0x30] sm:$0xff] %vm218_vm2, %v241_v58 }
  0xf0   :  { %223 = vst.msk [vmem:[%s3417_s5 + $0x20] sm:$0xff] %vm218_vm2, %v2494_v56  ;;  %v2505_v61 = vadd.f32 %v2377_v13, %v214_v59  ;;  %v2167_v62 = vpop.f32.mrb[11].mxu0  ;;  %v229_v6 = vrot.slane %v2494_v56, 6  ;;  %v335_v9 = vrot.slane %v2494_v56, 1  ;;  %v260_v13 = vsel %vm256_vm3, %v251_v24, %v252_v60 }
  0xf1   :  { %310 = vrot.lane.b32.xlu0 %v2429_v31, %s2295_s2  ;;  %v385_v18 = vrot.slane %v2494_v56, 2  ;;  %v254_v28 = vrot.slane %v2494_v56, 7 }
  0xf2   :  { %224 = vst.msk [vmem:[%s3417_s5 + $0x28] sm:$0xff] %vm218_vm2, %v2505_v61  ;;  %408 = vrot.lane.b32.xlu1 %v391_v3, %s2298_s25  ;;  %v255_v10 = vrot.slane %v2505_v61, 7  ;;  %v230_v11 = vrot.slane %v2505_v61, 6  ;;  %v233_v12 = vsel %vm231_vm4, %v228_v50, %v229_v6  ;;  %v336_v34 = vrot.slane %v2505_v61, 1 }
  0xf3   :  { %248 = vst.msk [vmem:[#allocation2 + $0x40] sm:$0xff] %vm218_vm2, %v233_v12  ;;  %v389_v32 = vsel %vm387_vm9, %v384_v7, %v385_v18  ;;  %v386_v35 = vrot.slane %v2505_v61, 2  ;;  %v258_v42 = vsel %vm256_vm3, %v253_v48, %v254_v28 }
  0xf4   :  { %v237_v21 = vsel %vm231_vm4, %v230_v11, %v225_v25  ;;  %v232_v26 = vsel %vm231_vm4, %v229_v6, %v230_v11  ;;  %v262_v27 = vsel %vm256_vm3, %v255_v10, %v250_v23  ;;  %v339_v25 = vsel %vm337_vm8, %v334_v63, %v335_v9 }
  0xf5   :  { %279 = vrot.lane.b32.xlu0 %v260_v13, %s2296_s17  ;;  %v238_v24 = vmul.f32 %v2445_v38, %v237_v21  ;;  %249 = vst.msk [vmem:[#allocation2 + $0x50] sm:$0xff] %vm218_vm2, %v232_v26  ;;  %v263_v23 = vmul.f32 %v2436_v36, %v262_v27  ;;  %v257_v41 = vsel %vm256_vm3, %v254_v28, %v255_v10  ;;  %v2299_v28 = vmov 0  }
  0xf6   :  { %281 = vrot.lane.b32.xlu1 %v266_v14, %s2296_s17  ;;  %v343_v43 = vsel %vm337_vm8, %v336_v34, %v331_v33  ;;  %v393_v45 = vsel %vm387_vm9, %v386_v35, %v381_v46  ;;  %v338_v47 = vsel %vm337_vm8, %v335_v9, %v336_v34  ;;  %v388_v48 = vsel %vm387_vm9, %v385_v18, %v386_v35 }
  0xf7   :  { %244 = vst.msk [vmem:[#allocation2] sm:$0xff] %vm218_vm2, %v238_v24  ;;  %v349_v44 = vmul.f32 %v2515_v2, %v343_v43  ;;  %v399_v33 = vmul.f32 %v2531_v5, %v393_v45  ;;  %848 = vmatprep.subr.bf16.mxu0 %v2299_v28  ;;  %1198 = vmatprep.subr.bf16.mxu1 %v2299_v28 }
  0xf9   :  { %360 = vrot.lane.b32.xlu0 %v346_v22, %s2297_s20 }
  0xfa   :  { %362 = vrot.lane.b32.xlu1 %v339_v25, %s2297_s20  ;;  %v2205_v25 = vld [vmem:[%s3418_s3 + $0x50] sm:$0xff]  }
  0xfb   :  { %849 = vmatpush1.bf16.msra.mxu0 %v2205_v25 }
  0xfc   :  { %850 = vmatprep.subr.bf16.mxu0 %v2299_v28 }
  0xfd   :  { %275 = vrot.lane.b32.xlu0 %v263_v23, %s2296_s17  ;;  %v2206_v23 = vld [vmem:[%s3418_s3 + $0x58] sm:$0xff]  }
  0xfe   :  { %412 = vrot.lane.b32.xlu1 %v389_v32, %s2298_s25 }
  0xff   :  { %851 = vmatpush1.bf16.msra.mxu0 %v2206_v23 }
 0x100   :  { %852 = vmatprep.subr.bf16.mxu0 %v2299_v28 }
 0x101   :  { %410 = vrot.lane.b32.xlu0 %v396_v40, %s2298_s25 }
 0x102   :  { %285 = vrot.lane.b32.xlu1 %v257_v41, %s2296_s17  ;;  %v2207_v41 = vld [vmem:[%s3418_s3 + $0x60] sm:$0xff]  }
 0x103   :  { %853 = vmatpush1.bf16.msra.mxu0 %v2207_v41 }
 0x104   :  { %854 = vmatprep.subr.bf16.mxu0 %v2299_v28 }
 0x105   :  { %283 = vrot.lane.b32.xlu0 %v258_v42, %s2296_s17  ;;  %v2208_v42 = vld [vmem:[%s3418_s3 + $0x68] sm:$0xff]  }
 0x106   :  { %316 = vrot.lane.b32.xlu1 %v2505_v61, %s2295_s2 }
 0x107   :  { %855 = vmatpush1.bf16.msra.mxu0 %v2208_v42 }
 0x108   :  { %856 = vmatprep.subr.bf16.mxu0 %v2299_v28 }
 0x109   :  { %314 = vrot.lane.b32.xlu0 %v2494_v56, %s2295_s2 }
 0x10a   :  { %366 = vrot.lane.b32.xlu1 %v349_v44, %s2297_s20 }
 0x10d   :  { %364 = vrot.lane.b32.xlu0 %v338_v47, %s2297_s20 }
 0x10e   :  { %416 = vrot.lane.b32.xlu1 %v399_v33, %s2298_s25 }
 0x111   :  { %414 = vrot.lane.b32.xlu0 %v388_v48, %s2298_s25 }
 0x152   :  { %v307_v49 = vpop.permute.xlu1 %306 }
 0x156   :  { %v309_v50 = vpop.permute.xlu1 %308 }
 0x157   :  { %v278_v46 = vpop.permute.xlu0 %277 }
 0x158   :  { %295 = vst.msk [vmem:[#allocation2 + $0x10] sm:$0xff] %vm293_vm13, %v278_v46 }
 0x159   :  { %326 = vst.msk [vmem:[#allocation2 + $0x10] sm:$0xff] %vm324_vm14, %v309_v50 }
 0x15b   :  { %v357_v51 = vpop.permute.xlu0 %356 }
 0x15c   :  { %v313_v52 = vpop.permute.xlu1 %312 }
 0x15f   :  { %v407_v53 = vpop.permute.xlu0 %406 }
 0x160   :  { %v359_v54 = vpop.permute.xlu1 %358 }
 0x161   :  { %376 = vst.msk [vmem:[#allocation2 + $0x10] sm:$0xff] %vm374_vm15, %v359_v54 }
 0x163   :  { %v311_v55 = vpop.permute.xlu0 %310 }
 0x164   :  { %v409_v57 = vpop.permute.xlu1 %408 }
 0x165   :  { %426 = vst.msk [vmem:[#allocation2 + $0x10] sm:$0xff] %vm424_vm5, %v409_v57 }
 0x167   :  { %v280_v58 = vpop.permute.xlu0 %279 }
 0x168   :  { %296 = vst.msk [vmem:[#allocation2 + $0x20] sm:$0xff] %vm293_vm13, %v280_v58  ;;  %v282_v59 = vpop.permute.xlu1 %281 }
 0x169   :  { %327 = vst.msk [vmem:[#allocation2 + $0x20] sm:$0xff] %vm324_vm14, %v311_v55 }
 0x16a   :  { %297 = vst.msk [vmem:[#allocation2 + $0x30] sm:$0xff] %vm293_vm13, %v282_v59  ;;  %v2210_v59 = vld [vmem:[%s3418_s3 + $0x78] sm:$0xff]  }
 0x16b   :  { %328 = vst.msk [vmem:[#allocation2 + $0x30] sm:$0xff] %vm324_vm14, %v313_v52  ;;  %v361_v60 = vpop.permute.xlu0 %360 }
 0x16c   :  { %377 = vst.msk [vmem:[#allocation2 + $0x20] sm:$0xff] %vm374_vm15, %v361_v60  ;;  %v363_v62 = vpop.permute.xlu1 %362  ;;  %v443_v10 = vld [vmem:[#allocation2 + $0x10] sm:$0xff] }
 0x16d   :  { %378 = vst.msk [vmem:[#allocation2 + $0x30] sm:$0xff] %vm374_vm15, %v363_v62 }
 0x16f   :  { %v276_v63 = vpop.permute.xlu0 %275 }
 0x170   :  { %294 = vst.msk [vmem:[#allocation2] sm:$0xff] %vm293_vm13, %v276_v63  ;;  %v413_v3 = vpop.permute.xlu1 %412 }
 0x171   :  { %325 = vst.msk [vmem:[#allocation2] sm:$0xff] %vm324_vm14, %v307_v49  ;;  %v2209_v49 = vld [vmem:[%s3418_s3 + $0x70] sm:$0xff]  }
 0x172   :  { %428 = vst.msk [vmem:[#allocation2 + $0x30] sm:$0xff] %vm424_vm5, %v413_v3  ;;  %857 = vmatpush1.bf16.msra.mxu0 %v2209_v49 }
 0x173   :  { %375 = vst.msk [vmem:[#allocation2] sm:$0xff] %vm374_vm15, %v357_v51  ;;  %v411_v4 = vpop.permute.xlu0 %410  ;;  %858 = vmatprep.subr.bf16.mxu0 %v2299_v28 }
 0x174   :  { %425 = vst.msk [vmem:[#allocation2] sm:$0xff] %vm424_vm5, %v407_v53  ;;  %427 = vst.msk [vmem:[#allocation2 + $0x20] sm:$0xff] %vm424_vm5, %v411_v4  ;;  %v286_v6 = vpop.permute.xlu1 %285 }
 0x175   :  { %299 = vst.msk [vmem:[#allocation2 + $0x50] sm:$0xff] %vm293_vm13, %v286_v6 }
 0x176   :  { %859 = vmatpush1.bf16.msra.mxu0 %v2210_v59 }
 0x177   :  { %v284_v7 = vpop.permute.xlu0 %283  ;;  %860 = vmatprep.subr.bf16.mxu0 %v2299_v28 }
 0x178   :  { %298 = vst.msk [vmem:[#allocation2 + $0x40] sm:$0xff] %vm293_vm13, %v284_v7  ;;  %v317_v8 = vpop.permute.xlu1 %316 }
 0x179   :  { %330 = vst.msk [vmem:[#allocation2 + $0x50] sm:$0xff] %vm324_vm14, %v317_v8  ;;  %v445_v19 = vld [vmem:[#allocation2 + $0x30] sm:$0xff] }
 0x17b   :  { %v442_v9 = vld [vmem:[#allocation2] sm:$0xff]  ;;  %v315_v11 = vpop.permute.xlu0 %314 }
 0x17c   :  { %v448_v12 = vpack.c.bf16 %v443_v10, %v442_v9  ;;  %329 = vst.msk [vmem:[#allocation2 + $0x40] sm:$0xff] %vm324_vm14, %v315_v11  ;;  %v367_v13 = vpop.permute.xlu1 %366  ;;  %v444_v18 = vld [vmem:[#allocation2 + $0x20] sm:$0xff] }
 0x17d   :  { %380 = vst.msk [vmem:[#allocation2 + $0x50] sm:$0xff] %vm374_vm15, %v367_v13  ;;  %v449_v22 = vpack.c.bf16 %v445_v19, %v444_v18 }
 0x17e   :  { %2179 = vmatmul.mubr.msk.bf16.vlgmr.msra.gmra.mrb[0].mxu1 %vm485_vm6, %v448_v12  ;;  %v2211_v12 = vld [vmem:[%s3418_s3 + $0x80] sm:$0xff]  }
 0x17f   :  { %2182 = vmatprep.mubr.msk.bf16.mxu1 %vm2294_vm0, %v2293_v0  ;;  %v365_v14 = vpop.permute.xlu0 %364  ;;  %861 = vmatpush1.bf16.msra.mxu0 %v2211_v12 }
 0x180   :  { %379 = vst.msk [vmem:[#allocation2 + $0x40] sm:$0xff] %vm374_vm15, %v365_v14  ;;  %v417_v17 = vpop.permute.xlu1 %416  ;;  %862 = vmatprep.subr.bf16.mxu0 %v2299_v28 }
 0x181   :  { %430 = vst.msk [vmem:[#allocation2 + $0x50] sm:$0xff] %vm424_vm5, %v417_v17 }
 0x183   :  { %v415_v21 = vpop.permute.xlu0 %414 }
 0x184   :  { %429 = vst.msk [vmem:[#allocation2 + $0x40] sm:$0xff] %vm424_vm5, %v415_v21 }
 0x186   :  { %2183 = vmatmul.mubr.msk.bf16.gmra.mrb[4].mxu1 %vm485_vm6, %v449_v22 }
 0x187   :  { %2186 = vmatprep.mubr.msk.bf16.mxu1 %vm2294_vm0, %v2293_v0  ;;  %v1994_v0 = vld [vmem:[%s3419_s4] ss:$0 sm:$0xff]  ;;  %vm624_vm0 = vcmask 523520  }
 0x188   :  { %v447_v26 = vld [vmem:[#allocation2 + $0x50] sm:$0xff] }
 0x18b   :  { %v446_v24 = vld [vmem:[#allocation2 + $0x40] sm:$0xff] }
 0x18c   :  { %v450_v27 = vpack.c.bf16 %v447_v26, %v446_v24 }
 0x18e   :  { %2187 = vmatmul.mubr.msk.bf16.gmra.mrb[8].mxu1 %vm485_vm6, %v450_v27 }
 0x251   :  { %v529_v29 = vpop.f32.mrb[0].mxu1 }
 0x252   :  { %v530_v30 = vadd.f32 %v1994_v0, %v529_v29  ;;  %v2180_v32 = vpop.f32.mrb[1].mxu1 }
 0x253   :  { %v532_v34 = vpop.f32.mrb[2].mxu1  ;;  %v2212_v32 = vld [vmem:[%s3418_s3 + $0x88] sm:$0xff]  }
 0x254   :  { %2245 = vtanh.f32 %v530_v30  ;;  %v533_v35 = vadd.f32 %v1994_v0, %v532_v34  ;;  %v2181_v40 = vpop.f32.mrb[3].mxu1  ;;  %863 = vmatpush1.bf16.msra.mxu0 %v2212_v32 }
 0x255   :  { %864 = vmatprep.subr.bf16.mxu0 %v2299_v28 }
 0x256   :  { %2247 = vtanh.f32 %v533_v35 }
 0x259   :  { %v537_v43 = vpop.f32.mrb[4].mxu1 }
 0x25a   :  { %v538_v44 = vadd.f32 %v1994_v0, %v537_v43  ;;  %v2184_v45 = vpop.f32.mrb[5].mxu1 }
 0x25b   :  { %v540_v47 = vpop.f32.mrb[6].mxu1 }
 0x25c   :  { %2249 = vtanh.f32 %v538_v44  ;;  %v541_v33 = vadd.f32 %v1994_v0, %v540_v47  ;;  %v2185_v48 = vpop.f32.mrb[7].mxu1  ;;  %v2213_v44 = vld [vmem:[%s3418_s3 + $0x90] sm:$0xff]  }
 0x25d   :  { %865 = vmatpush1.bf16.msra.mxu0 %v2213_v44 }
 0x25e   :  { %v2685_v46 = vpop.eup %2245  ;;  %2251 = vtanh.f32 %v541_v33  ;;  %866 = vmatprep.subr.bf16.mxu0 %v2299_v28 }
 0x25f   :  { %637 = vrot.lane.b32.xlu0 %v2685_v46, %s2298_s25  ;;  %v662_v51 = vrot.slane %v2685_v46, 1  ;;  %v582_v52 = vrot.slane %v2685_v46, 7  ;;  %v711_v53 = vrot.slane %v2685_v46, 2  ;;  %v558_v62 = vrot.slane %v2685_v46, 6 }
 0x260   :  { %v2248_v50 = vpop.eup %2247 }
 0x261   :  { %639 = vrot.lane.b32.xlu1 %v2248_v50, %s2298_s25  ;;  %v663_v54 = vrot.slane %v2248_v50, 1  ;;  %v583_v55 = vrot.slane %v2248_v50, 7  ;;  %v712_v57 = vrot.slane %v2248_v50, 2  ;;  %v559_v58 = vrot.slane %v2248_v50, 6  ;;  %v545_v60 = vpop.f32.mrb[8].mxu1 }
 0x262   :  { %v546_v63 = vadd.f32 %v1994_v0, %v545_v60  ;;  %v2188_v3 = vpop.f32.mrb[9].mxu1 }
 0x263   :  { %v672_v4 = vsel %vm337_vm8, %v662_v51, %v663_v54  ;;  %v592_v6 = vsel %vm256_vm3, %v582_v52, %v583_v55  ;;  %v721_v7 = vsel %vm387_vm9, %v711_v53, %v712_v57  ;;  %v548_v8 = vpop.f32.mrb[10].mxu1  ;;  %v568_v9 = vsel %vm231_vm4, %v558_v62, %v559_v58 }
 0x264   :  { %686 = vrot.lane.b32.xlu0 %v672_v4, %s2300_s26  ;;  %729 = vst.msk [vmem:[#allocation2 + $0x8] sm:$0xff] %vm151_vm1, %v721_v7  ;;  %2253 = vtanh.f32 %v546_v63  ;;  %v549_v10 = vadd.f32 %v1994_v0, %v548_v8  ;;  %v2189_v11 = vpop.f32.mrb[11].mxu1  ;;  %577 = vst.msk [vmem:[#allocation2 + $0x10] sm:$0xff] %vm151_vm1, %v568_v9  ;;  %v2214_v63 = vld [vmem:[%s3418_s3 + $0x98] sm:$0xff]  }
 0x265   :  { %608 = vrot.lane.b32.xlu1 %v592_v6, %s2295_s2  ;;  %867 = vmatpush1.bf16.msra.mxu0 %v2214_v63 }
 0x266   :  { %v2722_v13 = vpop.eup %2249  ;;  %2255 = vtanh.f32 %v549_v10  ;;  %1548 = vmatprep.subr.bf16.mxu0 %v2299_v28 }
 0x267   :  { %v664_v14 = vrot.slane %v2722_v13, 1  ;;  %v584_v17 = vrot.slane %v2722_v13, 7  ;;  %v713_v18 = vrot.slane %v2722_v13, 2  ;;  %v560_v21 = vrot.slane %v2722_v13, 6 }
 0x268   :  { %v2252_v19 = vpop.eup %2251 }
 0x269   :  { %v671_v22 = vsel %vm337_vm8, %v663_v54, %v664_v14  ;;  %v591_v24 = vsel %vm256_vm3, %v583_v55, %v584_v17  ;;  %v585_v26 = vrot.slane %v2252_v19, 7  ;;  %v720_v27 = vsel %vm387_vm9, %v712_v57, %v713_v18 }
 0x26a   :  { %688 = vrot.lane.b32.xlu1 %v671_v22, %s2300_s26  ;;  %610 = vrot.lane.b32.xlu0 %v591_v24, %s2295_s2  ;;  %730 = vst.msk [vmem:[#allocation2 + $0x18] sm:$0xff] %vm151_vm1, %v720_v27  ;;  %v665_v25 = vrot.slane %v2252_v19, 1  ;;  %v567_v0 = vsel %vm231_vm4, %v559_v58, %v560_v21  ;;  %v561_v29 = vrot.slane %v2252_v19, 6  ;;  %v714_v23 = vrot.slane %v2252_v19, 2 }
 0x26b   :  { %v590_v30 = vsel %vm256_vm3, %v584_v17, %v585_v26  ;;  %578 = vst.msk [vmem:[#allocation2 + $0x20] sm:$0xff] %vm151_vm1, %v567_v0  ;;  %v758_v54 = vld [vmem:[#allocation2 + $0x8] sm:$0xff] }
 0x26c   :  { %v597_v34 = vmul.f32 %v2436_v36, %v590_v30  ;;  %v670_v35 = vsel %vm337_vm8, %v664_v14, %v665_v25  ;;  %v566_v40 = vsel %vm231_vm4, %v560_v21, %v561_v29  ;;  %v719_v41 = vsel %vm387_vm9, %v713_v18, %v714_v23 }
 0x26d   :  { %v573_v42 = vmul.f32 %v2445_v38, %v566_v40  ;;  %v725_v43 = vmul.f32 %v2511_v1, %v719_v41  ;;  %v676_v21 = vmul.f32 %v2441_v37, %v670_v35 }
 0x26e   :  { %612 = vrot.lane.b32.xlu1 %v597_v34, %s2295_s2  ;;  %v2254_v45 = vpop.eup %2253 }
 0x26f   :  { %579 = vst.msk [vmem:[#allocation2 + $0x30] sm:$0xff] %vm151_vm1, %v573_v42  ;;  %731 = vst.msk [vmem:[#allocation2 + $0x28] sm:$0xff] %vm151_vm1, %v725_v43  ;;  %v666_v47 = vrot.slane %v2254_v45, 1  ;;  %v586_v33 = vrot.slane %v2254_v45, 7  ;;  %v562_v48 = vrot.slane %v2254_v45, 6  ;;  %v715_v49 = vrot.slane %v2254_v45, 2 }
 0x270   :  { %v2256_v50 = vpop.eup %2255 }
 0x271   :  { %v760_v55 = vld [vmem:[#allocation2 + $0x18] sm:$0xff]  ;;  %v669_v58 = vsel %vm337_vm8, %v665_v25, %v666_v47  ;;  %v587_v59 = vrot.slane %v2256_v50, 7  ;;  %v667_v60 = vrot.slane %v2256_v50, 1  ;;  %v589_v3 = vsel %vm256_vm3, %v585_v26, %v586_v33 }
 0x272   :  { %643 = vrot.lane.b32.xlu1 %v2252_v19, %s2298_s25  ;;  %v770_v57 = vpack.c.bf16 %v760_v55, %v758_v54  ;;  %v563_v4 = vrot.slane %v2256_v50, 6  ;;  %v565_v6 = vsel %vm231_vm4, %v561_v29, %v562_v48  ;;  %v718_v7 = vsel %vm387_vm9, %v714_v23, %v715_v49 }
 0x273   :  { %v593_v8 = vsel %vm256_vm3, %v587_v59, %v582_v52  ;;  %v588_v9 = vsel %vm256_vm3, %v586_v33, %v587_v59  ;;  %v673_v10 = vsel %vm337_vm8, %v667_v60, %v662_v51  ;;  %v668_v11 = vsel %vm337_vm8, %v666_v47, %v667_v60  ;;  %580 = vst.msk [vmem:[#allocation2 + $0x40] sm:$0xff] %vm151_vm1, %v565_v6  ;;  %v2023_v6 = vld [vmem:[%s3419_s4 + $0x1] ss:$0 sm:$0xff] }
 0x274   :  { %2034 = vmatprep.mubr.msk.bf16.mxu0 %vm151_vm1, %v770_v57  ;;  %732 = vst.msk [vmem:[#allocation2 + $0x38] sm:$0xff] %vm151_vm1, %v718_v7  ;;  %v594_v12 = vmul.f32 %v2436_v36, %v593_v8  ;;  %v569_v52 = vsel %vm231_vm4, %v563_v4, %v558_v62  ;;  %v564_v14 = vsel %vm231_vm4, %v562_v48, %v563_v4  ;;  %v716_v17 = vrot.slane %v2256_v50, 2  ;;  %v2215_v4 = vld [vmem:[%s3418_s3 + $0xa0] sm:$0xff]  }
 0x275   :  { %v570_v51 = vmul.f32 %v2445_v38, %v569_v52  ;;  %581 = vst.msk [vmem:[#allocation2 + $0x50] sm:$0xff] %vm151_vm1, %v564_v14  ;;  %v679_v46 = vmul.f32 %v2515_v2, %v673_v10  ;;  %1199 = vmatpush1.bf16.msra.mxu1 %v2215_v4 }
 0x276   :  { %692 = vrot.lane.b32.xlu1 %v669_v58, %s2300_s26  ;;  %606 = vrot.lane.b32.xlu0 %v594_v12, %s2295_s2  ;;  %v717_v62 = vsel %vm387_vm9, %v715_v49, %v716_v17  ;;  %v722_v18 = vsel %vm387_vm9, %v716_v17, %v711_v53 }
 0x277   :  { %576 = vst.msk [vmem:[#allocation2] sm:$0xff] %vm151_vm1, %v570_v51  ;;  %v728_v19 = vmul.f32 %v2531_v5, %v722_v18  ;;  %733 = vst.msk [vmem:[#allocation2 + $0x48] sm:$0xff] %vm151_vm1, %v717_v62  ;;  %1200 = vmatprep.subr.bf16.mxu1 %v2299_v28  ;;  %v2217_v51 = vld [vmem:[%s3418_s3 + $0xb0] sm:$0xff]  }
 0x279   :  { %734 = vst.msk [vmem:[#allocation2 + $0x58] sm:$0xff] %vm151_vm1, %v728_v19  ;;  %v2218_v19 = vld [vmem:[%s3418_s3 + $0xb8] sm:$0xff]  }
 0x27a   :  { %616 = vrot.lane.b32.xlu1 %v588_v9, %s2295_s2  ;;  %641 = vrot.lane.b32.xlu0 %v2722_v13, %s2298_s25 }
 0x27b   :  { %v764_v40 = vld [vmem:[#allocation2 + $0x38] sm:$0xff] }
 0x27e   :  { %647 = vrot.lane.b32.xlu1 %v2256_v50, %s2298_s25  ;;  %690 = vrot.lane.b32.xlu0 %v676_v21, %s2300_s26  ;;  %v766_v57 = vld [vmem:[#allocation2 + $0x48] sm:$0xff] }
 0x280   :  { %v768_v50 = vld [vmem:[#allocation2 + $0x58] sm:$0xff] }
 0x281   :  { %v774_v59 = vpack.c.bf16 %v768_v50, %v766_v57  ;;  %v2221_v57 = vld [vmem:[%s3418_s3 + $0xd0] sm:$0xff]  }
 0x282   :  { %696 = vrot.lane.b32.xlu1 %v679_v46, %s2300_s26  ;;  %614 = vrot.lane.b32.xlu0 %v589_v3, %s2295_s2 }
 0x286   :  { %645 = vrot.lane.b32.xlu0 %v2254_v45, %s2298_s25  ;;  %v762_v45 = vld [vmem:[#allocation2 + $0x28] sm:$0xff] }
 0x287   :  { %v772_v33 = vpack.c.bf16 %v764_v40, %v762_v45 }
 0x28a   :  { %694 = vrot.lane.b32.xlu0 %v668_v11, %s2300_s26  ;;  %v2216_v11 = vld [vmem:[%s3418_s3 + $0xa8] sm:$0xff]  }
 0x28b   :  { %1201 = vmatpush1.bf16.msra.mxu1 %v2216_v11 }
 0x28c   :  { %1202 = vmatprep.subr.bf16.mxu1 %v2299_v28 }
 0x28f   :  { %1203 = vmatpush1.bf16.msra.mxu1 %v2217_v51  ;;  %v2222_v51 = vld [vmem:[%s3418_s3 + $0xd8] sm:$0xff]  }
 0x290   :  { %1204 = vmatprep.subr.bf16.mxu1 %v2299_v28 }
 0x293   :  { %1205 = vmatpush1.bf16.msra.mxu1 %v2218_v19 }
 0x294   :  { %1206 = vmatprep.subr.bf16.mxu1 %v2299_v28 }
 0x2d1   :  { %v638_v53 = vpop.permute.xlu0 %637 }
 0x2d3   :  { %v640_v13 = vpop.permute.xlu1 %639 }
 0x2d6   :  { %v687_v24 = vpop.permute.xlu0 %686 }
 0x2d7   :  { %v609_v22 = vpop.permute.xlu1 %608 }
 0x2d8   :  { %626 = vst.msk [vmem:[#allocation2 + $0x10] sm:$0xff] %vm624_vm0, %v609_v22 }
 0x2d9   :  { %657 = vst.msk [vmem:[#allocation2 + $0x10] sm:$0xff] %vm655_vm7, %v640_v13  ;;  %v2219_v13 = vld [vmem:[%s3418_s3 + $0xc0] sm:$0xff]  }
 0x2da   :  { %1207 = vmatpush1.bf16.msra.mxu1 %v2219_v13 }
 0x2db   :  { %1208 = vmatprep.subr.bf16.mxu1 %v2299_v28 }
 0x2dc   :  { %v689_v26 = vpop.permute.xlu1 %688  ;;  %v611_v27 = vpop.permute.xlu0 %610 }
 0x2dd   :  { %706 = vst.msk [vmem:[#allocation2 + $0x10] sm:$0xff] %vm704_vm10, %v689_v26 }
 0x2de   :  { %627 = vst.msk [vmem:[#allocation2 + $0x20] sm:$0xff] %vm624_vm0, %v611_v27 }
 0x2e0   :  { %v613_v25 = vpop.permute.xlu1 %612 }
 0x2e1   :  { %628 = vst.msk [vmem:[#allocation2 + $0x30] sm:$0xff] %vm624_vm0, %v613_v25 }
 0x2e4   :  { %v644_v0 = vpop.permute.xlu1 %643  ;;  %v759_v42 = vld [vmem:[#allocation2 + $0x10] sm:$0xff] }
 0x2e5   :  { %659 = vst.msk [vmem:[#allocation2 + $0x30] sm:$0xff] %vm655_vm7, %v644_v0 }
 0x2e8   :  { %v693_v29 = vpop.permute.xlu1 %692  ;;  %v607_v23 = vpop.permute.xlu0 %606 }
 0x2e9   :  { %708 = vst.msk [vmem:[#allocation2 + $0x30] sm:$0xff] %vm704_vm10, %v693_v29 }
 0x2ea   :  { %625 = vst.msk [vmem:[#allocation2] sm:$0xff] %vm624_vm0, %v607_v23 }
 0x2eb   :  { %656 = vst.msk [vmem:[#allocation2] sm:$0xff] %vm655_vm7, %v638_v53 }
 0x2ec   :  { %705 = vst.msk [vmem:[#allocation2] sm:$0xff] %vm704_vm10, %v687_v24  ;;  %v617_v30 = vpop.permute.xlu1 %616  ;;  %v642_v32 = vpop.permute.xlu0 %641 }
 0x2ed   :  { %630 = vst.msk [vmem:[#allocation2 + $0x50] sm:$0xff] %vm624_vm0, %v617_v30 }
 0x2ee   :  { %658 = vst.msk [vmem:[#allocation2 + $0x20] sm:$0xff] %vm655_vm7, %v642_v32 }
 0x2f0   :  { %v648_v34 = vpop.permute.xlu1 %647  ;;  %v691_v35 = vpop.permute.xlu0 %690  ;;  %v763_v54 = vld [vmem:[#allocation2 + $0x30] sm:$0xff] }
 0x2f1   :  { %661 = vst.msk [vmem:[#allocation2 + $0x50] sm:$0xff] %vm655_vm7, %v648_v34 }
 0x2f2   :  { %707 = vst.msk [vmem:[#allocation2 + $0x20] sm:$0xff] %vm704_vm10, %v691_v35 }
 0x2f3   :  { %v757_v41 = vld [vmem:[#allocation2] sm:$0xff] }
 0x2f4   :  { %v697_v43 = vpop.permute.xlu1 %696  ;;  %v769_v44 = vpack.c.bf16 %v759_v42, %v757_v41  ;;  %v615_v47 = vpop.permute.xlu0 %614  ;;  %v2220_v42 = vld [vmem:[%s3418_s3 + $0xc8] sm:$0xff]  }
 0x2f5   :  { %710 = vst.msk [vmem:[#allocation2 + $0x50] sm:$0xff] %vm704_vm10, %v697_v43  ;;  %1209 = vmatpush1.bf16.msra.mxu1 %v2220_v42 }
 0x2f6   :  { %629 = vst.msk [vmem:[#allocation2 + $0x40] sm:$0xff] %vm624_vm0, %v615_v47  ;;  %881 = vmatmul.mubr.bf16.vlgmr.msra.gmra.mrb[12].mxu0 %v769_v44  ;;  %1210 = vmatprep.subr.bf16.mxu1 %v2299_v28 }
 0x2f7   :  { %2035 = vmatprep.mubr.msk.bf16.mxu0 %vm151_vm1, %v772_v33 }
 0x2f8   :  { %v646_v48 = vpop.permute.xlu0 %645 }
 0x2f9   :  { %v761_v49 = vld [vmem:[#allocation2 + $0x20] sm:$0xff]  ;;  %660 = vst.msk [vmem:[#allocation2 + $0x40] sm:$0xff] %vm655_vm7, %v646_v48  ;;  %1211 = vmatpush1.bf16.msra.mxu1 %v2221_v57 }
 0x2fa   :  { %v771_v55 = vpack.c.bf16 %v763_v54, %v761_v49  ;;  %1212 = vmatprep.subr.bf16.mxu1 %v2299_v28 }
 0x2fc   :  { %v695_v58 = vpop.permute.xlu0 %694  ;;  %v767_v63 = vld [vmem:[#allocation2 + $0x50] sm:$0xff] }
 0x2fd   :  { %709 = vst.msk [vmem:[#allocation2 + $0x40] sm:$0xff] %vm704_vm10, %v695_v58  ;;  %1213 = vmatpush1.bf16.msra.mxu1 %v2222_v51 }
 0x2fe   :  { %889 = vmatmul.mubr.bf16.gmra.mrb[16].mxu0 %v771_v55  ;;  %1214 = vmatprep.subr.bf16.mxu1 %v2299_v28 }
 0x2ff   :  { %2036 = vmatprep.mubr.msk.bf16.mxu0 %vm151_vm1, %v774_v59 }
 0x304   :  { %v765_v60 = vld [vmem:[#allocation2 + $0x40] sm:$0xff] }
 0x305   :  { %v773_v3 = vpack.c.bf16 %v767_v63, %v765_v60 }
 0x307   :  { %897 = vmatmul.mubr.bf16.gmra.mrb[20].mxu0 %v773_v3 }
 0x3c9   :  { %v882_v7 = vpop.f32.mrb[12].mxu0 }
 0x3ca   :  { %v883_v8 = vadd.f32 %v2023_v6, %v882_v7  ;;  %v884_v9 = vpop.f32.mrb[13].mxu0 }
 0x3cb   :  { %v885_v10 = vpop.f32.mrb[14].mxu0 }
 0x3cc   :  { %2257 = vtanh.f32 %v883_v8  ;;  %v886_v12 = vadd.f32 %v2023_v6, %v885_v10  ;;  %v887_v52 = vpop.f32.mrb[15].mxu0 }
 0x3ce   :  { %2259 = vtanh.f32 %v886_v12 }
 0x3d1   :  { %v890_v14 = vpop.f32.mrb[16].mxu0 }
 0x3d2   :  { %v891_v17 = vadd.f32 %v2023_v6, %v890_v14  ;;  %v892_v62 = vpop.f32.mrb[17].mxu0 }
 0x3d3   :  { %v893_v18 = vpop.f32.mrb[18].mxu0  ;;  %v2223_v62 = vld [vmem:[%s3418_s3 + $0xe0] sm:$0xff]  }
 0x3d4   :  { %2261 = vtanh.f32 %v891_v17  ;;  %v894_v21 = vadd.f32 %v2023_v6, %v893_v18  ;;  %v895_v46 = vpop.f32.mrb[19].mxu0  ;;  %1215 = vmatpush1.bf16.msra.mxu1 %v2223_v62 }
 0x3d5   :  { %1216 = vmatprep.subr.bf16.mxu1 %v2299_v28 }
 0x3d6   :  { %v2861_v53 = vpop.eup %2257  ;;  %2263 = vtanh.f32 %v894_v21 }
 0x3d7   :  { %989 = vrot.lane.b32.xlu0 %v2861_v53, %s2298_s25  ;;  %v1013_v24 = vrot.slane %v2861_v53, 1  ;;  %v935_v26 = vrot.slane %v2861_v53, 7  ;;  %v1061_v27 = vrot.slane %v2861_v53, 2  ;;  %v911_v25 = vrot.slane %v2861_v53, 6 }
 0x3d8   :  { %v2260_v22 = vpop.eup %2259 }
 0x3d9   :  { %991 = vrot.lane.b32.xlu1 %v2260_v22, %s2298_s25  ;;  %v1014_v0 = vrot.slane %v2260_v22, 1  ;;  %v936_v29 = vrot.slane %v2260_v22, 7  ;;  %v1062_v23 = vrot.slane %v2260_v22, 2  ;;  %v912_v30 = vrot.slane %v2260_v22, 6 }
 0x3da   :  { %v898_v32 = vpop.f32.mrb[20].mxu0 }
 0x3db   :  { %v1023_v34 = vsel %vm337_vm8, %v1013_v24, %v1014_v0  ;;  %v945_v35 = vsel %vm256_vm3, %v935_v26, %v936_v29  ;;  %v1071_v40 = vsel %vm387_vm9, %v1061_v27, %v1062_v23  ;;  %v921_v41 = vsel %vm231_vm4, %v911_v25, %v912_v30  ;;  %v900_v44 = vpop.f32.mrb[21].mxu0 }
 0x3dc   :  { %v899_v43 = vadd.f32 %v2023_v6, %v898_v32  ;;  %1037 = vrot.lane.b32.xlu0 %v1023_v34, %s2300_s26  ;;  %1079 = vst.msk [vmem:[#allocation2 + $0x8] sm:$0xff] %vm151_vm1, %v1071_v40  ;;  %930 = vst.msk [vmem:[#allocation2 + $0x10] sm:$0xff] %vm151_vm1, %v921_v41  ;;  %v901_v45 = vpop.f32.mrb[22].mxu0  ;;  %v2224_v40 = vld [vmem:[%s3418_s3 + $0xe8] sm:$0xff]  }
 0x3dd   :  { %961 = vrot.lane.b32.xlu1 %v945_v35, %s2295_s2  ;;  %v902_v33 = vadd.f32 %v2023_v6, %v901_v45  ;;  %v903_v48 = vpop.f32.mrb[23].mxu0  ;;  %1217 = vmatpush1.bf16.msra.mxu1 %v2224_v40 }
 0x3de   :  { %v2898_v47 = vpop.eup %2261  ;;  %2265 = vtanh.f32 %v899_v43  ;;  %1898 = vmatprep.subr.bf16.mxu1 %v2299_v28 }
 0x3df   :  { %v937_v49 = vrot.slane %v2898_v47, 7  ;;  %v1015_v50 = vrot.slane %v2898_v47, 1  ;;  %v1063_v54 = vrot.slane %v2898_v47, 2  ;;  %v913_v55 = vrot.slane %v2898_v47, 6 }
 0x3e0   :  { %v2264_v58 = vpop.eup %2263  ;;  %2267 = vtanh.f32 %v902_v33 }
 0x3e1   :  { %v944_v59 = vsel %vm256_vm3, %v936_v29, %v937_v49  ;;  %v1022_v60 = vsel %vm337_vm8, %v1014_v0, %v1015_v50  ;;  %v938_v63 = vrot.slane %v2264_v58, 7  ;;  %v1070_v3 = vsel %vm387_vm9, %v1062_v23, %v1063_v54 }
 0x3e2   :  { %963 = vrot.lane.b32.xlu0 %v944_v59, %s2295_s2  ;;  %1039 = vrot.lane.b32.xlu1 %v1022_v60, %s2300_s26  ;;  %1080 = vst.msk [vmem:[#allocation2 + $0x18] sm:$0xff] %vm151_vm1, %v1070_v3  ;;  %v1016_v4 = vrot.slane %v2264_v58, 1  ;;  %v920_v6 = vsel %vm231_vm4, %v912_v30, %v913_v55  ;;  %v914_v7 = vrot.slane %v2264_v58, 6  ;;  %v1064_v8 = vrot.slane %v2264_v58, 2 }
 0x3e3   :  { %v943_v9 = vsel %vm256_vm3, %v937_v49, %v938_v63  ;;  %931 = vst.msk [vmem:[#allocation2 + $0x20] sm:$0xff] %vm151_vm1, %v920_v6  ;;  %v1108_v19 = vld [vmem:[#allocation2 + $0x8] sm:$0xff] }
 0x3e4   :  { %v950_v10 = vmul.f32 %v2436_v36, %v943_v9  ;;  %v1021_v11 = vsel %vm337_vm8, %v1015_v50, %v1016_v4  ;;  %v919_v12 = vsel %vm231_vm4, %v913_v55, %v914_v7  ;;  %v1069_v52 = vsel %vm387_vm9, %v1063_v54, %v1064_v8 }
 0x3e5   :  { %v926_v14 = vmul.f32 %v2445_v38, %v919_v12  ;;  %v1075_v17 = vmul.f32 %v2511_v1, %v1069_v52  ;;  %v1027_v53 = vmul.f32 %v2441_v37, %v1021_v11 }
 0x3e6   :  { %965 = vrot.lane.b32.xlu1 %v950_v10, %s2295_s2 }
 0x3e7   :  { %932 = vst.msk [vmem:[#allocation2 + $0x30] sm:$0xff] %vm151_vm1, %v926_v14  ;;  %1081 = vst.msk [vmem:[#allocation2 + $0x28] sm:$0xff] %vm151_vm1, %v1075_v17 }
 0x3e8   :  { %v2266_v18 = vpop.eup %2265 }
 0x3e9   :  { %v1110_v21 = vld [vmem:[#allocation2 + $0x18] sm:$0xff]  ;;  %v1017_v46 = vrot.slane %v2266_v18, 1  ;;  %v939_v13 = vrot.slane %v2266_v18, 7  ;;  %v915_v22 = vrot.slane %v2266_v18, 6  ;;  %v1065_v0 = vrot.slane %v2266_v18, 2 }
 0x3ea   :  { %v2268_v29 = vpop.eup %2267  ;;  %995 = vrot.lane.b32.xlu1 %v2264_v58, %s2298_s25  ;;  %v1120_v23 = vpack.c.bf16 %v1110_v21, %v1108_v19 }
 0x3eb   :  { %v1020_v30 = vsel %vm337_vm8, %v1016_v4, %v1017_v46  ;;  %v940_v32 = vrot.slane %v2268_v29, 7  ;;  %v1018_v34 = vrot.slane %v2268_v29, 1  ;;  %v942_v35 = vsel %vm256_vm3, %v938_v63, %v939_v13 }
 0x3ec   :  { %2068 = vmatprep.mubr.msk.bf16.mxu1 %vm151_vm1, %v1120_v23  ;;  %v916_v41 = vrot.slane %v2268_v29, 6  ;;  %v918_v42 = vsel %vm231_vm4, %v914_v7, %v915_v22  ;;  %v1068_v43 = vsel %vm387_vm9, %v1064_v8, %v1065_v0  ;;  %v1066_v44 = vrot.slane %v2268_v29, 2 }
 0x3ed   :  { %v946_v45 = vsel %vm256_vm3, %v940_v32, %v935_v26  ;;  %v941_v33 = vsel %vm256_vm3, %v939_v13, %v940_v32  ;;  %v1024_v48 = vsel %vm337_vm8, %v1018_v34, %v1013_v24  ;;  %v1019_v49 = vsel %vm337_vm8, %v1017_v46, %v1018_v34  ;;  %933 = vst.msk [vmem:[#allocation2 + $0x40] sm:$0xff] %vm151_vm1, %v918_v42  ;;  %v2057_v42 = vld [vmem:[%s3419_s4 + $0x2] ss:$0 sm:$0xff] }
 0x3ee   :  { %1082 = vst.msk [vmem:[#allocation2 + $0x38] sm:$0xff] %vm151_vm1, %v1068_v43  ;;  %1043 = vrot.lane.b32.xlu1 %v1020_v30, %s2300_s26  ;;  %v947_v50 = vmul.f32 %v2436_v36, %v946_v45  ;;  %v922_v26 = vsel %vm231_vm4, %v916_v41, %v911_v25  ;;  %v917_v54 = vsel %vm231_vm4, %v915_v22, %v916_v41  ;;  %v2225_v41 = vld [vmem:[%s3418_s3 + $0xf0] sm:$0xff]  }
 0x3ef   :  { %v923_v24 = vmul.f32 %v2445_v38, %v922_v26  ;;  %934 = vst.msk [vmem:[#allocation2 + $0x50] sm:$0xff] %vm151_vm1, %v917_v54  ;;  %v1067_v55 = vsel %vm387_vm9, %v1065_v0, %v1066_v44  ;;  %v1072_v57 = vsel %vm387_vm9, %v1066_v44, %v1061_v27  ;;  %v1030_v27 = vmul.f32 %v2515_v2, %v1024_v48  ;;  %v2226_v48 = vld [vmem:[%s3418_s3 + $0xf8] sm:$0xff]   ;;  %v2227_v54 = vld [vmem:[%s3418_s3 + $0x100] sm:$0xff]  }
 0x3f0   :  { %959 = vrot.lane.b32.xlu0 %v947_v50, %s2295_s2  ;;  %v1078_v25 = vmul.f32 %v2531_v5, %v1072_v57  ;;  %1083 = vst.msk [vmem:[#allocation2 + $0x48] sm:$0xff] %vm151_vm1, %v1067_v55  ;;  %1549 = vmatpush1.bf16.msra.mxu0 %v2225_v41 }
 0x3f1   :  { %929 = vst.msk [vmem:[#allocation2] sm:$0xff] %vm151_vm1, %v923_v24  ;;  %1550 = vmatprep.subr.bf16.mxu0 %v2299_v28 }
 0x3f2   :  { %969 = vrot.lane.b32.xlu1 %v941_v33, %s2295_s2  ;;  %1084 = vst.msk [vmem:[#allocation2 + $0x58] sm:$0xff] %vm151_vm1, %v1078_v25  ;;  %v2228_v25 = vld [vmem:[%s3418_s3 + $0x108] sm:$0xff]  }
 0x3f4   :  { %993 = vrot.lane.b32.xlu0 %v2898_v47, %s2298_s25  ;;  %1551 = vmatpush1.bf16.msra.mxu0 %v2226_v48 }
 0x3f5   :  { %v1114_v52 = vld [vmem:[#allocation2 + $0x38] sm:$0xff]  ;;  %1552 = vmatprep.subr.bf16.mxu0 %v2299_v28 }
 0x3f6   :  { %999 = vrot.lane.b32.xlu1 %v2268_v29, %s2298_s25 }
 0x3f7   :  { %v1116_v23 = vld [vmem:[#allocation2 + $0x48] sm:$0xff] }
 0x3f8   :  { %1041 = vrot.lane.b32.xlu0 %v1027_v53, %s2300_s26  ;;  %1553 = vmatpush1.bf16.msra.mxu0 %v2227_v54  ;;  %v2232_v54 = vld [vmem:[%s3418_s3 + $0x128] sm:$0xff]  }
 0x3f9   :  { %v1118_v22 = vld [vmem:[#allocation2 + $0x58] sm:$0xff]  ;;  %1554 = vmatprep.subr.bf16.mxu0 %v2299_v28 }
 0x3fa   :  { %1047 = vrot.lane.b32.xlu1 %v1030_v27, %s2300_s26  ;;  %v1124_v32 = vpack.c.bf16 %v1118_v22, %v1116_v23  ;;  %v2231_v23 = vld [vmem:[%s3418_s3 + $0x120] sm:$0xff]  }
 0x3fc   :  { %967 = vrot.lane.b32.xlu0 %v942_v35, %s2295_s2  ;;  %1555 = vmatpush1.bf16.msra.mxu0 %v2228_v25 }
 0x3fd   :  { %1556 = vmatprep.subr.bf16.mxu0 %v2299_v28 }
 0x400   :  { %997 = vrot.lane.b32.xlu0 %v2266_v18, %s2298_s25  ;;  %v1112_v18 = vld [vmem:[#allocation2 + $0x28] sm:$0xff] }
 0x401   :  { %v1122_v21 = vpack.c.bf16 %v1114_v52, %v1112_v18 }
 0x404   :  { %1045 = vrot.lane.b32.xlu0 %v1019_v49, %s2300_s26 }
 0x449   :  { %v990_v58 = vpop.permute.xlu0 %989 }
 0x44b   :  { %v992_v59 = vpop.permute.xlu1 %991 }
 0x44e   :  { %v1038_v47 = vpop.permute.xlu0 %1037 }
 0x44f   :  { %v962_v60 = vpop.permute.xlu1 %961 }
 0x450   :  { %978 = vst.msk [vmem:[#allocation2 + $0x10] sm:$0xff] %vm624_vm0, %v962_v60 }
 0x451   :  { %1008 = vst.msk [vmem:[#allocation2 + $0x10] sm:$0xff] %vm655_vm7, %v992_v59  ;;  %v2229_v59 = vld [vmem:[%s3418_s3 + $0x110] sm:$0xff]  }
 0x452   :  { %1557 = vmatpush1.bf16.msra.mxu0 %v2229_v59 }
 0x453   :  { %1558 = vmatprep.subr.bf16.mxu0 %v2299_v28 }
 0x454   :  { %v964_v63 = vpop.permute.xlu0 %963  ;;  %v1040_v3 = vpop.permute.xlu1 %1039 }
 0x455   :  { %979 = vst.msk [vmem:[#allocation2 + $0x20] sm:$0xff] %vm624_vm0, %v964_v63 }
 0x456   :  { %1056 = vst.msk [vmem:[#allocation2 + $0x10] sm:$0xff] %vm704_vm10, %v1040_v3 }
 0x458   :  { %v966_v4 = vpop.permute.xlu1 %965 }
 0x459   :  { %980 = vst.msk [vmem:[#allocation2 + $0x30] sm:$0xff] %vm624_vm0, %v966_v4 }
 0x45c   :  { %v996_v6 = vpop.permute.xlu1 %995 }
 0x45d   :  { %1010 = vst.msk [vmem:[#allocation2 + $0x30] sm:$0xff] %vm655_vm7, %v996_v6  ;;  %v1109_v17 = vld [vmem:[#allocation2 + $0x10] sm:$0xff] }
 0x460   :  { %v1044_v7 = vpop.permute.xlu1 %1043 }
 0x461   :  { %1058 = vst.msk [vmem:[#allocation2 + $0x30] sm:$0xff] %vm704_vm10, %v1044_v7 }
 0x462   :  { %v960_v8 = vpop.permute.xlu0 %959 }
 0x463   :  { %977 = vst.msk [vmem:[#allocation2] sm:$0xff] %vm624_vm0, %v960_v8 }
 0x464   :  { %1007 = vst.msk [vmem:[#allocation2] sm:$0xff] %vm655_vm7, %v990_v58  ;;  %v970_v9 = vpop.permute.xlu1 %969 }
 0x465   :  { %1055 = vst.msk [vmem:[#allocation2] sm:$0xff] %vm704_vm10, %v1038_v47 }
 0x466   :  { %982 = vst.msk [vmem:[#allocation2 + $0x50] sm:$0xff] %vm624_vm0, %v970_v9  ;;  %v994_v10 = vpop.permute.xlu0 %993 }
 0x467   :  { %1009 = vst.msk [vmem:[#allocation2 + $0x20] sm:$0xff] %vm655_vm7, %v994_v10 }
 0x468   :  { %v1000_v11 = vpop.permute.xlu1 %999  ;;  %v1113_v0 = vld [vmem:[#allocation2 + $0x30] sm:$0xff] }
 0x469   :  { %1012 = vst.msk [vmem:[#allocation2 + $0x50] sm:$0xff] %vm655_vm7, %v1000_v11 }
 0x46a   :  { %v1042_v12 = vpop.permute.xlu0 %1041 }
 0x46b   :  { %1057 = vst.msk [vmem:[#allocation2 + $0x20] sm:$0xff] %vm704_vm10, %v1042_v12 }
 0x46c   :  { %v1048_v14 = vpop.permute.xlu1 %1047  ;;  %v1107_v51 = vld [vmem:[#allocation2] sm:$0xff] }
 0x46d   :  { %1060 = vst.msk [vmem:[#allocation2 + $0x50] sm:$0xff] %vm704_vm10, %v1048_v14  ;;  %v1119_v62 = vpack.c.bf16 %v1109_v17, %v1107_v51  ;;  %v2230_v51 = vld [vmem:[%s3418_s3 + $0x118] sm:$0xff]  }
 0x46e   :  { %v968_v19 = vpop.permute.xlu0 %967  ;;  %1559 = vmatpush1.bf16.msra.mxu0 %v2230_v51 }
 0x46f   :  { %981 = vst.msk [vmem:[#allocation2 + $0x40] sm:$0xff] %vm624_vm0, %v968_v19  ;;  %1231 = vmatmul.mubr.bf16.vlgmr.msra.gmra.mrb[12].mxu1 %v1119_v62  ;;  %1560 = vmatprep.subr.bf16.mxu0 %v2299_v28 }
 0x470   :  { %2069 = vmatprep.mubr.msk.bf16.mxu1 %vm151_vm1, %v1122_v21 }
 0x472   :  { %v998_v46 = vpop.permute.xlu0 %997  ;;  %v1111_v13 = vld [vmem:[#allocation2 + $0x20] sm:$0xff]  ;;  %1561 = vmatpush1.bf16.msra.mxu0 %v2231_v23 }
 0x473   :  { %1011 = vst.msk [vmem:[#allocation2 + $0x40] sm:$0xff] %vm655_vm7, %v998_v46  ;;  %v1121_v29 = vpack.c.bf16 %v1113_v0, %v1111_v13  ;;  %1562 = vmatprep.subr.bf16.mxu0 %v2299_v28 }
 0x474   :  { %v1117_v35 = vld [vmem:[#allocation2 + $0x50] sm:$0xff] }
 0x476   :  { %v1046_v30 = vpop.permute.xlu0 %1045  ;;  %1563 = vmatpush1.bf16.msra.mxu0 %v2232_v54 }
 0x477   :  { %1059 = vst.msk [vmem:[#allocation2 + $0x40] sm:$0xff] %vm704_vm10, %v1046_v30  ;;  %1239 = vmatmul.mubr.bf16.gmra.mrb[16].mxu1 %v1121_v29  ;;  %1564 = vmatprep.subr.bf16.mxu0 %v2299_v28 }
 0x478   :  { %2070 = vmatprep.mubr.msk.bf16.mxu1 %vm151_vm1, %v1124_v32 }
 0x47e   :  { %v1115_v34 = vld [vmem:[#allocation2 + $0x40] sm:$0xff] }
 0x47f   :  { %v1123_v40 = vpack.c.bf16 %v1117_v35, %v1115_v34 }
 0x481   :  { %1247 = vmatmul.mubr.bf16.gmra.mrb[20].mxu1 %v1123_v40 }
 0x542   :  { %v1232_v43 = vpop.f32.mrb[12].mxu1 }
 0x543   :  { %v1233_v44 = vadd.f32 %v2057_v42, %v1232_v43  ;;  %v1234_v45 = vpop.f32.mrb[13].mxu1 }
 0x544   :  { %v1235_v33 = vpop.f32.mrb[14].mxu1 }
 0x545   :  { %2269 = vtanh.f32 %v1233_v44  ;;  %v1236_v49 = vadd.f32 %v2057_v42, %v1235_v33  ;;  %v1237_v50 = vpop.f32.mrb[15].mxu1 }
 0x547   :  { %2271 = vtanh.f32 %v1236_v49 }
 0x54a   :  { %v1240_v26 = vpop.f32.mrb[16].mxu1 }
 0x54b   :  { %v1241_v24 = vadd.f32 %v2057_v42, %v1240_v26  ;;  %v1242_v55 = vpop.f32.mrb[17].mxu1 }
 0x54c   :  { %v1243_v57 = vpop.f32.mrb[18].mxu1  ;;  %v2233_v55 = vld [vmem:[%s3418_s3 + $0x130] sm:$0xff]  }
 0x54d   :  { %2273 = vtanh.f32 %v1241_v24  ;;  %v1244_v53 = vadd.f32 %v2057_v42, %v1243_v57  ;;  %v1245_v27 = vpop.f32.mrb[19].mxu1  ;;  %1565 = vmatpush1.bf16.msra.mxu0 %v2233_v55 }
 0x54e   :  { %1566 = vmatprep.subr.bf16.mxu0 %v2299_v28 }
 0x54f   :  { %v3041_v58 = vpop.eup %2269  ;;  %2275 = vtanh.f32 %v1244_v53 }
 0x550   :  { %1339 = vrot.lane.b32.xlu0 %v3041_v58, %s2298_s25  ;;  %v1363_v47 = vrot.slane %v3041_v58, 1  ;;  %v1285_v63 = vrot.slane %v3041_v58, 7  ;;  %v1411_v3 = vrot.slane %v3041_v58, 2  ;;  %v1261_v4 = vrot.slane %v3041_v58, 6 }
 0x551   :  { %v2272_v60 = vpop.eup %2271 }
 0x552   :  { %1341 = vrot.lane.b32.xlu1 %v2272_v60, %s2298_s25  ;;  %v1364_v6 = vrot.slane %v2272_v60, 1  ;;  %v1286_v7 = vrot.slane %v2272_v60, 7  ;;  %v1412_v8 = vrot.slane %v2272_v60, 2  ;;  %v1262_v9 = vrot.slane %v2272_v60, 6 }
 0x554   :  { %v1248_v10 = vpop.f32.mrb[20].mxu1  ;;  %v1373_v11 = vsel %vm337_vm8, %v1363_v47, %v1364_v6  ;;  %v1295_v12 = vsel %vm256_vm3, %v1285_v63, %v1286_v7  ;;  %v1421_v52 = vsel %vm387_vm9, %v1411_v3, %v1412_v8  ;;  %v1271_v14 = vsel %vm231_vm4, %v1261_v4, %v1262_v9 }
 0x555   :  { %v1249_v17 = vadd.f32 %v2057_v42, %v1248_v10  ;;  %v1250_v62 = vpop.f32.mrb[21].mxu1  ;;  %1387 = vrot.lane.b32.xlu0 %v1373_v11, %s2300_s26  ;;  %1429 = vst.msk [vmem:[#allocation2 + $0x8] sm:$0xff] %vm151_vm1, %v1421_v52  ;;  %1280 = vst.msk [vmem:[#allocation2 + $0x10] sm:$0xff] %vm151_vm1, %v1271_v14  ;;  %v2234_v52 = vld [vmem:[%s3418_s3 + $0x138] sm:$0xff]  }
 0x556   :  { %v1251_v18 = vpop.f32.mrb[22].mxu1  ;;  %1311 = vrot.lane.b32.xlu1 %v1295_v12, %s2295_s2  ;;  %1567 = vmatpush1.bf16.msra.mxu0 %v2234_v52 }
 0x557   :  { %v3078_v19 = vpop.eup %2273  ;;  %2277 = vtanh.f32 %v1249_v17  ;;  %v1252_v21 = vadd.f32 %v2057_v42, %v1251_v18  ;;  %v1253_v46 = vpop.f32.mrb[23].mxu1 }
 0x558   :  { %v1287_v13 = vrot.slane %v3078_v19, 7  ;;  %v1365_v22 = vrot.slane %v3078_v19, 1  ;;  %v1413_v0 = vrot.slane %v3078_v19, 2  ;;  %v1263_v29 = vrot.slane %v3078_v19, 6 }
 0x559   :  { %v2276_v30 = vpop.eup %2275  ;;  %2279 = vtanh.f32 %v1252_v21 }
 0x55a   :  { %v1294_v32 = vsel %vm256_vm3, %v1286_v7, %v1287_v13  ;;  %v1372_v34 = vsel %vm337_vm8, %v1364_v6, %v1365_v22  ;;  %v1288_v35 = vrot.slane %v2276_v30, 7  ;;  %v1420_v40 = vsel %vm387_vm9, %v1412_v8, %v1413_v0 }
 0x55b   :  { %1313 = vrot.lane.b32.xlu0 %v1294_v32, %s2295_s2  ;;  %1389 = vrot.lane.b32.xlu1 %v1372_v34, %s2300_s26  ;;  %1430 = vst.msk [vmem:[#allocation2 + $0x18] sm:$0xff] %vm151_vm1, %v1420_v40  ;;  %v1366_v41 = vrot.slane %v2276_v30, 1  ;;  %v1270_v42 = vsel %vm231_vm4, %v1262_v9, %v1263_v29  ;;  %v1264_v43 = vrot.slane %v2276_v30, 6  ;;  %v1414_v44 = vrot.slane %v2276_v30, 2 }
 0x55c   :  { %v1293_v45 = vsel %vm256_vm3, %v1287_v13, %v1288_v35  ;;  %1281 = vst.msk [vmem:[#allocation2 + $0x20] sm:$0xff] %vm151_vm1, %v1270_v42  ;;  %v1458_v25 = vld [vmem:[#allocation2 + $0x8] sm:$0xff] }
 0x55d   :  { %v1300_v33 = vmul.f32 %v2436_v36, %v1293_v45  ;;  %v1371_v48 = vsel %vm337_vm8, %v1365_v22, %v1366_v41  ;;  %v1269_v49 = vsel %vm231_vm4, %v1263_v29, %v1264_v43  ;;  %v1419_v50 = vsel %vm387_vm9, %v1413_v0, %v1414_v44 }
 0x55e   :  { %v1276_v26 = vmul.f32 %v2445_v38, %v1269_v49  ;;  %v1425_v24 = vmul.f32 %v2511_v1, %v1419_v50  ;;  %v1377_v58 = vmul.f32 %v2441_v37, %v1371_v48 }
 0x55f   :  { %1315 = vrot.lane.b32.xlu1 %v1300_v33, %s2295_s2 }
 0x560   :  { %1282 = vst.msk [vmem:[#allocation2 + $0x30] sm:$0xff] %vm151_vm1, %v1276_v26  ;;  %1431 = vst.msk [vmem:[#allocation2 + $0x28] sm:$0xff] %vm151_vm1, %v1425_v24 }
 0x561   :  { %v2278_v57 = vpop.eup %2277 }
 0x562   :  { %v1460_v53 = vld [vmem:[#allocation2 + $0x18] sm:$0xff]  ;;  %v1367_v27 = vrot.slane %v2278_v57, 1  ;;  %v1289_v59 = vrot.slane %v2278_v57, 7  ;;  %v1265_v60 = vrot.slane %v2278_v57, 6  ;;  %v1415_v6 = vrot.slane %v2278_v57, 2 }
 0x563   :  { %v2280_v7 = vpop.eup %2279  ;;  %1345 = vrot.lane.b32.xlu1 %v2276_v30, %s2298_s25  ;;  %v1470_v8 = vpack.c.bf16 %v1460_v53, %v1458_v25 }
 0x564   :  { %v1370_v9 = vsel %vm337_vm8, %v1366_v41, %v1367_v27  ;;  %v1290_v10 = vrot.slane %v2280_v7, 7  ;;  %v1368_v11 = vrot.slane %v2280_v7, 1  ;;  %v1292_v12 = vsel %vm256_vm3, %v1288_v35, %v1289_v59 }
 0x565   :  { %2102 = vmatprep.mubr.msk.bf16.mxu0 %vm151_vm1, %v1470_v8  ;;  %v1266_v14 = vrot.slane %v2280_v7, 6  ;;  %v1268_v51 = vsel %vm231_vm4, %v1264_v43, %v1265_v60  ;;  %v1418_v17 = vsel %vm387_vm9, %v1414_v44, %v1415_v6  ;;  %v1416_v62 = vrot.slane %v2280_v7, 2 }
 0x566   :  { %v1296_v18 = vsel %vm256_vm3, %v1290_v10, %v1285_v63  ;;  %v1291_v21 = vsel %vm256_vm3, %v1289_v59, %v1290_v10  ;;  %v1374_v46 = vsel %vm337_vm8, %v1368_v11, %v1363_v47  ;;  %v1369_v13 = vsel %vm337_vm8, %v1367_v27, %v1368_v11  ;;  %1283 = vst.msk [vmem:[#allocation2 + $0x40] sm:$0xff] %vm151_vm1, %v1268_v51  ;;  %v2091_v51 = vld [vmem:[%s3419_s4 + $0x3] ss:$0 sm:$0xff] }
 0x567   :  { %1432 = vst.msk [vmem:[#allocation2 + $0x38] sm:$0xff] %vm151_vm1, %v1418_v17  ;;  %1393 = vrot.lane.b32.xlu1 %v1370_v9, %s2300_s26  ;;  %v1297_v22 = vmul.f32 %v2436_v36, %v1296_v18  ;;  %v1272_v63 = vsel %vm231_vm4, %v1266_v14, %v1261_v4  ;;  %v1267_v0 = vsel %vm231_vm4, %v1265_v60, %v1266_v14  ;;  %v2235_v14 = vld [vmem:[%s3418_s3 + $0x140] sm:$0xff]  }
 0x568   :  { %v1273_v47 = vmul.f32 %v2445_v38, %v1272_v63  ;;  %1284 = vst.msk [vmem:[#allocation2 + $0x50] sm:$0xff] %vm151_vm1, %v1267_v0  ;;  %v1417_v29 = vsel %vm387_vm9, %v1415_v6, %v1416_v62  ;;  %v1422_v23 = vsel %vm387_vm9, %v1416_v62, %v1411_v3  ;;  %v1380_v3 = vmul.f32 %v2515_v2, %v1374_v46  ;;  %v2236_v46 = vld [vmem:[%s3418_s3 + $0x148] sm:$0xff]   ;;  %v2237_v0 = vld [vmem:[%s3418_s3 + $0x150] sm:$0xff]  }
 0x569   :  { %1309 = vrot.lane.b32.xlu0 %v1297_v22, %s2295_s2  ;;  %v1428_v4 = vmul.f32 %v2531_v5, %v1422_v23  ;;  %1433 = vst.msk [vmem:[#allocation2 + $0x48] sm:$0xff] %vm151_vm1, %v1417_v29  ;;  %1899 = vmatpush1.bf16.msra.mxu1 %v2235_v14 }
 0x56a   :  { %1279 = vst.msk [vmem:[#allocation2] sm:$0xff] %vm151_vm1, %v1273_v47  ;;  %1900 = vmatprep.subr.bf16.mxu1 %v2299_v28 }
 0x56b   :  { %1319 = vrot.lane.b32.xlu1 %v1291_v21, %s2295_s2  ;;  %1434 = vst.msk [vmem:[#allocation2 + $0x58] sm:$0xff] %vm151_vm1, %v1428_v4  ;;  %v2238_v4 = vld [vmem:[%s3418_s3 + $0x158] sm:$0xff]  }
 0x56d   :  { %1343 = vrot.lane.b32.xlu0 %v3078_v19, %s2298_s25  ;;  %1901 = vmatpush1.bf16.msra.mxu1 %v2236_v46 }
 0x56e   :  { %v1464_v50 = vld [vmem:[#allocation2 + $0x38] sm:$0xff]  ;;  %1902 = vmatprep.subr.bf16.mxu1 %v2299_v28 }
 0x56f   :  { %1349 = vrot.lane.b32.xlu1 %v2280_v7, %s2298_s25 }
 0x570   :  { %v1466_v8 = vld [vmem:[#allocation2 + $0x48] sm:$0xff] }
 0x571   :  { %1391 = vrot.lane.b32.xlu0 %v1377_v58, %s2300_s26  ;;  %1903 = vmatpush1.bf16.msra.mxu1 %v2237_v0  ;;  %v2242_v0 = vld [vmem:[%s3418_s3 + $0x178] sm:$0xff]  }
 0x572   :  { %v1468_v60 = vld [vmem:[#allocation2 + $0x58] sm:$0xff]  ;;  %1904 = vmatprep.subr.bf16.mxu1 %v2299_v28 }
 0x573   :  { %1397 = vrot.lane.b32.xlu1 %v1380_v3, %s2300_s26  ;;  %v1474_v10 = vpack.c.bf16 %v1468_v60, %v1466_v8  ;;  %v2241_v8 = vld [vmem:[%s3418_s3 + $0x170] sm:$0xff]  }
 0x575   :  { %1317 = vrot.lane.b32.xlu0 %v1292_v12, %s2295_s2  ;;  %1905 = vmatpush1.bf16.msra.mxu1 %v2238_v4 }
 0x576   :  { %1906 = vmatprep.subr.bf16.mxu1 %v2299_v28 }
 0x579   :  { %1347 = vrot.lane.b32.xlu0 %v2278_v57, %s2298_s25  ;;  %v1462_v57 = vld [vmem:[#allocation2 + $0x28] sm:$0xff] }
 0x57a   :  { %v1472_v53 = vpack.c.bf16 %v1464_v50, %v1462_v57 }
 0x57d   :  { %1395 = vrot.lane.b32.xlu0 %v1369_v13, %s2300_s26 }
 0x5c2   :  { %v1340_v30 = vpop.permute.xlu0 %1339 }
 0x5c4   :  { %v1342_v32 = vpop.permute.xlu1 %1341 }
 0x5c7   :  { %v1388_v19 = vpop.permute.xlu0 %1387 }
 0x5c8   :  { %v1312_v34 = vpop.permute.xlu1 %1311 }
 0x5c9   :  { %1328 = vst.msk [vmem:[#allocation2 + $0x10] sm:$0xff] %vm624_vm0, %v1312_v34 }
 0x5ca   :  { %1358 = vst.msk [vmem:[#allocation2 + $0x10] sm:$0xff] %vm655_vm7, %v1342_v32  ;;  %v2239_v32 = vld [vmem:[%s3418_s3 + $0x160] sm:$0xff]  }
 0x5cb   :  { %1907 = vmatpush1.bf16.msra.mxu1 %v2239_v32 }
 0x5cc   :  { %1908 = vmatprep.subr.bf16.mxu1 %v2299_v28 }
 0x5cd   :  { %v1314_v35 = vpop.permute.xlu0 %1313  ;;  %v1390_v40 = vpop.permute.xlu1 %1389 }
 0x5ce   :  { %1329 = vst.msk [vmem:[#allocation2 + $0x20] sm:$0xff] %vm624_vm0, %v1314_v35 }
 0x5cf   :  { %1406 = vst.msk [vmem:[#allocation2 + $0x10] sm:$0xff] %vm704_vm10, %v1390_v40 }
 0x5d1   :  { %v1316_v41 = vpop.permute.xlu1 %1315 }
 0x5d2   :  { %1330 = vst.msk [vmem:[#allocation2 + $0x30] sm:$0xff] %vm624_vm0, %v1316_v41 }
 0x5d5   :  { %v1346_v42 = vpop.permute.xlu1 %1345 }
 0x5d6   :  { %1360 = vst.msk [vmem:[#allocation2 + $0x30] sm:$0xff] %vm655_vm7, %v1346_v42  ;;  %v1459_v24 = vld [vmem:[#allocation2 + $0x10] sm:$0xff] }
 0x5d9   :  { %v1394_v43 = vpop.permute.xlu1 %1393 }
 0x5da   :  { %1408 = vst.msk [vmem:[#allocation2 + $0x30] sm:$0xff] %vm704_vm10, %v1394_v43 }
 0x5db   :  { %v1310_v44 = vpop.permute.xlu0 %1309 }
 0x5dc   :  { %1327 = vst.msk [vmem:[#allocation2] sm:$0xff] %vm624_vm0, %v1310_v44 }
 0x5dd   :  { %1357 = vst.msk [vmem:[#allocation2] sm:$0xff] %vm655_vm7, %v1340_v30  ;;  %v1320_v45 = vpop.permute.xlu1 %1319 }
 0x5de   :  { %1405 = vst.msk [vmem:[#allocation2] sm:$0xff] %vm704_vm10, %v1388_v19 }
 0x5df   :  { %1332 = vst.msk [vmem:[#allocation2 + $0x50] sm:$0xff] %vm624_vm0, %v1320_v45  ;;  %v1344_v33 = vpop.permute.xlu0 %1343 }
 0x5e0   :  { %1359 = vst.msk [vmem:[#allocation2 + $0x20] sm:$0xff] %vm655_vm7, %v1344_v33 }
 0x5e1   :  { %v1350_v48 = vpop.permute.xlu1 %1349  ;;  %v1463_v6 = vld [vmem:[#allocation2 + $0x30] sm:$0xff] }
 0x5e2   :  { %1362 = vst.msk [vmem:[#allocation2 + $0x50] sm:$0xff] %vm655_vm7, %v1350_v48 }
 0x5e3   :  { %v1392_v49 = vpop.permute.xlu0 %1391 }
 0x5e4   :  { %1407 = vst.msk [vmem:[#allocation2 + $0x20] sm:$0xff] %vm704_vm10, %v1392_v49 }
 0x5e5   :  { %v1398_v26 = vpop.permute.xlu1 %1397  ;;  %v1457_v54 = vld [vmem:[#allocation2] sm:$0xff] }
 0x5e6   :  { %1410 = vst.msk [vmem:[#allocation2 + $0x50] sm:$0xff] %vm704_vm10, %v1398_v26  ;;  %v1469_v55 = vpack.c.bf16 %v1459_v24, %v1457_v54  ;;  %v2240_v54 = vld [vmem:[%s3418_s3 + $0x168] sm:$0xff]  }
 0x5e7   :  { %v1318_v25 = vpop.permute.xlu0 %1317  ;;  %1909 = vmatpush1.bf16.msra.mxu1 %v2240_v54 }
 0x5e8   :  { %1331 = vst.msk [vmem:[#allocation2 + $0x40] sm:$0xff] %vm624_vm0, %v1318_v25  ;;  %1581 = vmatmul.mubr.bf16.vlgmr.msra.gmra.mrb[24].mxu0 %v1469_v55  ;;  %1910 = vmatprep.subr.bf16.mxu1 %v2299_v28 }
 0x5e9   :  { %2103 = vmatprep.mubr.msk.bf16.mxu0 %vm151_vm1, %v1472_v53 }
 0x5eb   :  { %v1348_v27 = vpop.permute.xlu0 %1347  ;;  %v1461_v59 = vld [vmem:[#allocation2 + $0x20] sm:$0xff]  ;;  %1911 = vmatpush1.bf16.msra.mxu1 %v2241_v8 }
 0x5ec   :  { %1361 = vst.msk [vmem:[#allocation2 + $0x40] sm:$0xff] %vm655_vm7, %v1348_v27  ;;  %v1471_v7 = vpack.c.bf16 %v1463_v6, %v1461_v59  ;;  %1912 = vmatprep.subr.bf16.mxu1 %v2299_v28 }
 0x5ed   :  { %v1467_v12 = vld [vmem:[#allocation2 + $0x50] sm:$0xff] }
 0x5ef   :  { %v1396_v9 = vpop.permute.xlu0 %1395  ;;  %1913 = vmatpush1.bf16.msra.mxu1 %v2242_v0 }
 0x5f0   :  { %1409 = vst.msk [vmem:[#allocation2 + $0x40] sm:$0xff] %vm704_vm10, %v1396_v9  ;;  %1589 = vmatmul.mubr.bf16.gmra.mrb[28].mxu0 %v1471_v7  ;;  %1914 = vmatprep.subr.bf16.mxu1 %v2299_v28 }
 0x5f1   :  { %2104 = vmatprep.mubr.msk.bf16.mxu0 %vm151_vm1, %v1474_v10 }
 0x5f7   :  { %v1465_v11 = vld [vmem:[#allocation2 + $0x40] sm:$0xff] }
 0x5f8   :  { %v1473_v52 = vpack.c.bf16 %v1467_v12, %v1465_v11 }
 0x5fa   :  { %1597 = vmatmul.mubr.bf16.gmra.mrb[32].mxu0 %v1473_v52 }
 0x6bb   :  { %v1582_v17 = vpop.f32.mrb[24].mxu0 }
 0x6bc   :  { %v1583_v62 = vadd.f32 %v2091_v51, %v1582_v17  ;;  %v1584_v18 = vpop.f32.mrb[25].mxu0 }
 0x6bd   :  { %v1585_v21 = vpop.f32.mrb[26].mxu0 }
 0x6be   :  { %2281 = vtanh.f32 %v1583_v62  ;;  %v1586_v13 = vadd.f32 %v2091_v51, %v1585_v21  ;;  %v1587_v22 = vpop.f32.mrb[27].mxu0 }
 0x6c0   :  { %2283 = vtanh.f32 %v1586_v13 }
 0x6c3   :  { %v1590_v63 = vpop.f32.mrb[28].mxu0 }
 0x6c4   :  { %v1591_v47 = vadd.f32 %v2091_v51, %v1590_v63  ;;  %v1592_v29 = vpop.f32.mrb[29].mxu0 }
 0x6c5   :  { %v1593_v23 = vpop.f32.mrb[30].mxu0  ;;  %v2243_v29 = vld [vmem:[%s3418_s3 + $0x180] sm:$0xff]  }
 0x6c6   :  { %2285 = vtanh.f32 %v1591_v47  ;;  %v1594_v58 = vadd.f32 %v2091_v51, %v1593_v23  ;;  %v1595_v3 = vpop.f32.mrb[31].mxu0  ;;  %1915 = vmatpush1.bf16.msra.mxu1 %v2243_v29 }
 0x6c7   :  { %1916 = vmatprep.subr.bf16.mxu1 %v2299_v28 }
 0x6c8   :  { %v3220_v30 = vpop.eup %2281  ;;  %2287 = vtanh.f32 %v1594_v58 }
 0x6c9   :  { %1689 = vrot.lane.b32.xlu0 %v3220_v30, %s2298_s25  ;;  %v1713_v19 = vrot.slane %v3220_v30, 1  ;;  %v1635_v35 = vrot.slane %v3220_v30, 7  ;;  %v1761_v40 = vrot.slane %v3220_v30, 2  ;;  %v1611_v41 = vrot.slane %v3220_v30, 6 }
 0x6ca   :  { %v2284_v34 = vpop.eup %2283 }
 0x6cb   :  { %1691 = vrot.lane.b32.xlu1 %v2284_v34, %s2298_s25  ;;  %v1714_v42 = vrot.slane %v2284_v34, 1  ;;  %v1636_v43 = vrot.slane %v2284_v34, 7  ;;  %v1762_v44 = vrot.slane %v2284_v34, 2  ;;  %v1612_v45 = vrot.slane %v2284_v34, 6 }
 0x6cd   :  { %v1598_v33 = vpop.f32.mrb[32].mxu0  ;;  %v1723_v48 = vsel %vm337_vm8, %v1713_v19, %v1714_v42  ;;  %v1645_v49 = vsel %vm256_vm3, %v1635_v35, %v1636_v43  ;;  %v1771_v50 = vsel %vm387_vm9, %v1761_v40, %v1762_v44  ;;  %v1621_v26 = vsel %vm231_vm4, %v1611_v41, %v1612_v45 }
 0x6ce   :  { %v1599_v24 = vadd.f32 %v2091_v51, %v1598_v33  ;;  %v1600_v55 = vpop.f32.mrb[33].mxu0  ;;  %1737 = vrot.lane.b32.xlu0 %v1723_v48, %s2300_s26  ;;  %1779 = vst.msk [vmem:[#allocation2 + $0x8] sm:$0xff] %vm151_vm1, %v1771_v50  ;;  %1630 = vst.msk [vmem:[#allocation2 + $0x10] sm:$0xff] %vm151_vm1, %v1621_v26 }
 0x6cf   :  { %v1601_v57 = vpop.f32.mrb[34].mxu0  ;;  %1661 = vrot.lane.b32.xlu1 %v1645_v49, %s2295_s2  ;;  %v2244_v49 = vld [vmem:[%s3418_s3 + $0x188] sm:$0xff]  }
 0x6d0   :  { %v3257_v25 = vpop.eup %2285  ;;  %2289 = vtanh.f32 %v1599_v24  ;;  %v1602_v53 = vadd.f32 %v2091_v51, %v1601_v57  ;;  %v1603_v27 = vpop.f32.mrb[35].mxu0  ;;  %1917 = vmatpush1.bf16.msra.mxu1 %v2244_v49 }
 0x6d1   :  { %v1637_v59 = vrot.slane %v3257_v25, 7  ;;  %v1715_v60 = vrot.slane %v3257_v25, 1  ;;  %v1763_v6 = vrot.slane %v3257_v25, 2  ;;  %v1613_v7 = vrot.slane %v3257_v25, 6 }
 0x6d2   :  { %v2288_v9 = vpop.eup %2287  ;;  %2291 = vtanh.f32 %v1602_v53 }
 0x6d3   :  { %v1644_v10 = vsel %vm256_vm3, %v1636_v43, %v1637_v59  ;;  %v1722_v11 = vsel %vm337_vm8, %v1714_v42, %v1715_v60  ;;  %v1638_v12 = vrot.slane %v2288_v9, 7  ;;  %v1770_v52 = vsel %vm387_vm9, %v1762_v44, %v1763_v6 }
 0x6d4   :  { %1663 = vrot.lane.b32.xlu0 %v1644_v10, %s2295_s2  ;;  %1739 = vrot.lane.b32.xlu1 %v1722_v11, %s2300_s26  ;;  %1780 = vst.msk [vmem:[#allocation2 + $0x18] sm:$0xff] %vm151_vm1, %v1770_v52  ;;  %v1716_v14 = vrot.slane %v2288_v9, 1  ;;  %v1620_v51 = vsel %vm231_vm4, %v1612_v45, %v1613_v7  ;;  %v1614_v17 = vrot.slane %v2288_v9, 6  ;;  %v1764_v62 = vrot.slane %v2288_v9, 2 }
 0x6d5   :  { %v1643_v18 = vsel %vm256_vm3, %v1637_v59, %v1638_v12  ;;  %1631 = vst.msk [vmem:[#allocation2 + $0x20] sm:$0xff] %vm151_vm1, %v1620_v51  ;;  %v1808_v4 = vld [vmem:[#allocation2 + $0x8] sm:$0xff] }
 0x6d6   :  { %v1650_v21 = vmul.f32 %v2436_v36, %v1643_v18  ;;  %v1721_v46 = vsel %vm337_vm8, %v1715_v60, %v1716_v14  ;;  %v1619_v13 = vsel %vm231_vm4, %v1613_v7, %v1614_v17  ;;  %v1769_v22 = vsel %vm387_vm9, %v1763_v6, %v1764_v62 }
 0x6d7   :  { %v1626_v63 = vmul.f32 %v2445_v38, %v1619_v13  ;;  %v1775_v47 = vmul.f32 %v2511_v1, %v1769_v22  ;;  %v1727_v15 = vmul.f32 %v2441_v37, %v1721_v46 }
 0x6d8   :  { %1665 = vrot.lane.b32.xlu1 %v1650_v21, %s2295_s2 }
 0x6d9   :  { %1632 = vst.msk [vmem:[#allocation2 + $0x30] sm:$0xff] %vm151_vm1, %v1626_v63  ;;  %1781 = vst.msk [vmem:[#allocation2 + $0x28] sm:$0xff] %vm151_vm1, %v1775_v47 }
 0x6da   :  { %v2290_v23 = vpop.eup %2289 }
 0x6db   :  { %v1810_v58 = vld [vmem:[#allocation2 + $0x18] sm:$0xff]  ;;  %v1717_v3 = vrot.slane %v2290_v23, 1  ;;  %v1639_v32 = vrot.slane %v2290_v23, 7  ;;  %v1615_v34 = vrot.slane %v2290_v23, 6  ;;  %v1765_v1 = vrot.slane %v2290_v23, 2 }
 0x6dc   :  { %v2292_v42 = vpop.eup %2291  ;;  %1695 = vrot.lane.b32.xlu1 %v2288_v9, %s2298_s25  ;;  %v1820_v43 = vpack.c.bf16 %v1810_v58, %v1808_v4 }
 0x6dd   :  { %v1720_v44 = vsel %vm337_vm8, %v1716_v14, %v1717_v3  ;;  %v1640_v45 = vrot.slane %v2292_v42, 7  ;;  %v1718_v33 = vrot.slane %v2292_v42, 1  ;;  %v1642_v48 = vsel %vm256_vm3, %v1638_v12, %v1639_v32 }
 0x6de   :  { %2136 = vmatprep.mubr.msk.bf16.mxu1 %vm151_vm1, %v1820_v43  ;;  %v1616_v50 = vrot.slane %v2292_v42, 6  ;;  %v1618_v26 = vsel %vm231_vm4, %v1614_v17, %v1615_v34  ;;  %v1768_v54 = vsel %vm387_vm9, %v1764_v62, %v1765_v1  ;;  %v1766_v24 = vrot.slane %v2292_v42, 2 }
 0x6df   :  { %v1646_v55 = vsel %vm256_vm3, %v1640_v45, %v1635_v35  ;;  %v1641_v57 = vsel %vm256_vm3, %v1639_v32, %v1640_v45  ;;  %v1724_v28 = vsel %vm337_vm8, %v1718_v33, %v1713_v19  ;;  %v1719_v53 = vsel %vm337_vm8, %v1717_v3, %v1718_v33  ;;  %1633 = vst.msk [vmem:[#allocation2 + $0x40] sm:$0xff] %vm151_vm1, %v1618_v26 }
 0x6e0   :  { %1782 = vst.msk [vmem:[#allocation2 + $0x38] sm:$0xff] %vm151_vm1, %v1768_v54  ;;  %1743 = vrot.lane.b32.xlu1 %v1720_v44, %s2300_s26  ;;  %v1647_v27 = vmul.f32 %v2436_v36, %v1646_v55  ;;  %v1622_v35 = vsel %vm231_vm4, %v1616_v50, %v1611_v41  ;;  %v1617_v59 = vsel %vm231_vm4, %v1615_v34, %v1616_v50  ;;  %v1812_v21 = vld [vmem:[#allocation2 + $0x28] sm:$0xff] }
 0x6e1   :  { %v1623_v19 = vmul.f32 %v2445_v38, %v1622_v35  ;;  %1634 = vst.msk [vmem:[#allocation2 + $0x50] sm:$0xff] %vm151_vm1, %v1617_v59  ;;  %v1767_v60 = vsel %vm387_vm9, %v1765_v1, %v1766_v24  ;;  %v1772_v36 = vsel %vm387_vm9, %v1766_v24, %v1761_v40  ;;  %v1730_v38 = vmul.f32 %v2515_v2, %v1724_v28  ;;  %v2125_v1 = vld [vmem:[%s3419_s4 + $0x4] ss:$0 sm:$0xff] }
 0x6e2   :  { %1659 = vrot.lane.b32.xlu0 %v1647_v27, %s2295_s2  ;;  %v1778_v41 = vmul.f32 %v2531_v5, %v1772_v36  ;;  %1783 = vst.msk [vmem:[#allocation2 + $0x48] sm:$0xff] %vm151_vm1, %v1767_v60 }
 0x6e3   :  { %1629 = vst.msk [vmem:[#allocation2] sm:$0xff] %vm151_vm1, %v1623_v19 }
 0x6e4   :  { %1669 = vrot.lane.b32.xlu1 %v1641_v57, %s2295_s2  ;;  %1784 = vst.msk [vmem:[#allocation2 + $0x58] sm:$0xff] %vm151_vm1, %v1778_v41 }
 0x6e6   :  { %1693 = vrot.lane.b32.xlu0 %v3257_v25, %s2298_s25 }
 0x6e7   :  { %v1814_v14 = vld [vmem:[#allocation2 + $0x38] sm:$0xff] }
 0x6e8   :  { %1699 = vrot.lane.b32.xlu1 %v2292_v42, %s2298_s25  ;;  %v1822_v13 = vpack.c.bf16 %v1814_v14, %v1812_v21 }
 0x6ea   :  { %1741 = vrot.lane.b32.xlu0 %v1727_v15, %s2300_s26 }
 0x6eb   :  { %v1818_v0 = vld [vmem:[#allocation2 + $0x58] sm:$0xff] }
 0x6ec   :  { %1747 = vrot.lane.b32.xlu1 %v1730_v38, %s2300_s26 }
 0x6ee   :  { %1667 = vrot.lane.b32.xlu0 %v1642_v48, %s2295_s2 }
 0x6f2   :  { %1697 = vrot.lane.b32.xlu0 %v2290_v23, %s2298_s25  ;;  %v1816_v23 = vld [vmem:[#allocation2 + $0x48] sm:$0xff] }
 0x6f3   :  { %v1824_v58 = vpack.c.bf16 %v1818_v0, %v1816_v23 }
 0x6f6   :  { %1745 = vrot.lane.b32.xlu0 %v1719_v53, %s2300_s26 }
 0x73b   :  { %v1690_v5 = vpop.permute.xlu0 %1689 }
 0x73d   :  { %v1692_v30 = vpop.permute.xlu1 %1691 }
 0x740   :  { %v1738_v25 = vpop.permute.xlu0 %1737 }
 0x741   :  { %v1662_v40 = vpop.permute.xlu1 %1661 }
 0x742   :  { %1678 = vst.msk [vmem:[#allocation2 + $0x10] sm:$0xff] %vm624_vm0, %v1662_v40 }
 0x743   :  { %1708 = vst.msk [vmem:[#allocation2 + $0x10] sm:$0xff] %vm655_vm7, %v1692_v30 }
 0x746   :  { %v1664_v37 = vpop.permute.xlu0 %1663  ;;  %v1740_v6 = vpop.permute.xlu1 %1739 }
 0x747   :  { %1679 = vst.msk [vmem:[#allocation2 + $0x20] sm:$0xff] %vm624_vm0, %v1664_v37 }
 0x748   :  { %1756 = vst.msk [vmem:[#allocation2 + $0x10] sm:$0xff] %vm704_vm10, %v1740_v6 }
 0x74a   :  { %v1666_v2 = vpop.permute.xlu1 %1665 }
 0x74b   :  { %1680 = vst.msk [vmem:[#allocation2 + $0x30] sm:$0xff] %vm624_vm0, %v1666_v2 }
 0x74e   :  { %v1696_v7 = vpop.permute.xlu1 %1695 }
 0x74f   :  { %1710 = vst.msk [vmem:[#allocation2 + $0x30] sm:$0xff] %vm655_vm7, %v1696_v7  ;;  %v1809_v62 = vld [vmem:[#allocation2 + $0x10] sm:$0xff] }
 0x752   :  { %v1744_v8 = vpop.permute.xlu1 %1743 }
 0x753   :  { %1758 = vst.msk [vmem:[#allocation2 + $0x30] sm:$0xff] %vm704_vm10, %v1744_v8 }
 0x754   :  { %v1660_v9 = vpop.permute.xlu0 %1659 }
 0x755   :  { %1677 = vst.msk [vmem:[#allocation2] sm:$0xff] %vm624_vm0, %v1660_v9 }
 0x756   :  { %1707 = vst.msk [vmem:[#allocation2] sm:$0xff] %vm655_vm7, %v1690_v5  ;;  %v1670_v10 = vpop.permute.xlu1 %1669 }
 0x757   :  { %1755 = vst.msk [vmem:[#allocation2] sm:$0xff] %vm704_vm10, %v1738_v25 }
 0x758   :  { %1682 = vst.msk [vmem:[#allocation2 + $0x50] sm:$0xff] %vm624_vm0, %v1670_v10  ;;  %v1694_v11 = vpop.permute.xlu0 %1693 }
 0x759   :  { %1709 = vst.msk [vmem:[#allocation2 + $0x20] sm:$0xff] %vm655_vm7, %v1694_v11 }
 0x75a   :  { %v1700_v12 = vpop.permute.xlu1 %1699  ;;  %v1813_v47 = vld [vmem:[#allocation2 + $0x30] sm:$0xff] }
 0x75b   :  { %1712 = vst.msk [vmem:[#allocation2 + $0x50] sm:$0xff] %vm655_vm7, %v1700_v12 }
 0x75c   :  { %v1742_v52 = vpop.permute.xlu0 %1741 }
 0x75d   :  { %1757 = vst.msk [vmem:[#allocation2 + $0x20] sm:$0xff] %vm704_vm10, %v1742_v52 }
 0x75e   :  { %v1748_v51 = vpop.permute.xlu1 %1747  ;;  %v1807_v17 = vld [vmem:[#allocation2] sm:$0xff] }
 0x75f   :  { %1760 = vst.msk [vmem:[#allocation2 + $0x50] sm:$0xff] %vm704_vm10, %v1748_v51  ;;  %v1819_v18 = vpack.c.bf16 %v1809_v62, %v1807_v17 }
 0x760   :  { %v1668_v46 = vpop.permute.xlu0 %1667 }
 0x761   :  { %1681 = vst.msk [vmem:[#allocation2 + $0x40] sm:$0xff] %vm624_vm0, %v1668_v46  ;;  %1931 = vmatmul.mubr.bf16.vlgmr.msra.gmra.mrb[24].mxu1 %v1819_v18 }
 0x762   :  { %2137 = vmatprep.mubr.msk.bf16.mxu1 %vm151_vm1, %v1822_v13 }
 0x764   :  { %v1698_v22 = vpop.permute.xlu0 %1697  ;;  %v1811_v63 = vld [vmem:[#allocation2 + $0x20] sm:$0xff] }
 0x765   :  { %1711 = vst.msk [vmem:[#allocation2 + $0x40] sm:$0xff] %vm655_vm7, %v1698_v22  ;;  %v1821_v29 = vpack.c.bf16 %v1813_v47, %v1811_v63 }
 0x766   :  { %v1817_v32 = vld [vmem:[#allocation2 + $0x50] sm:$0xff] }
 0x768   :  { %v1746_v4 = vpop.permute.xlu0 %1745 }
 0x769   :  { %1759 = vst.msk [vmem:[#allocation2 + $0x40] sm:$0xff] %vm704_vm10, %v1746_v4  ;;  %1939 = vmatmul.mubr.bf16.gmra.mrb[28].mxu1 %v1821_v29 }
 0x76a   :  { %2138 = vmatprep.mubr.msk.bf16.mxu1 %vm151_vm1, %v1824_v58 }
 0x770   :  { %v1815_v3 = vld [vmem:[#allocation2 + $0x40] sm:$0xff] }
 0x771   :  { %v1823_v34 = vpack.c.bf16 %v1817_v32, %v1815_v3 }
 0x773   :  { %1947 = vmatmul.mubr.bf16.gmra.mrb[32].mxu1 %v1823_v34 }
 0x834   :  { %v1932_v42 = vpop.f32.mrb[24].mxu1 }
 0x835   :  { %v1933_v43 = vadd.f32 %v2125_v1, %v1932_v42  ;;  %v1934_v44 = vpop.f32.mrb[25].mxu1 }
 0x836   :  { %v1935_v45 = vpop.f32.mrb[26].mxu1 }
 0x837   :  { %v1955_v33 = vadd.f32 %v1933_v43, %v2382_v16  ;;  %v1936_v48 = vadd.f32 %v2125_v1, %v1935_v45  ;;  %v1937_v49 = vpop.f32.mrb[27].mxu1 }
 0x839   :  { %1961 = vst.msk [vmem:[%s3420_s6] sm:$0xff] %vm218_vm2, %v1955_v33  ;;  %v1956_v50 = vadd.f32 %v1936_v48, %v2393_v20 }
 0x83b   :  { %1962 = vst.msk [vmem:[%s3420_s6 + $0x8] sm:$0xff] %vm218_vm2, %v1956_v50 }
 0x83c   :  { %v1940_v26 = vpop.f32.mrb[28].mxu1 }
 0x83d   :  { %v1941_v54 = vadd.f32 %v2125_v1, %v1940_v26  ;;  %v1942_v24 = vpop.f32.mrb[29].mxu1 }
 0x83e   :  { %v1943_v55 = vpop.f32.mrb[30].mxu1 }
 0x83f   :  { %v1957_v16 = vadd.f32 %v1941_v54, %v2429_v31  ;;  %v1944_v57 = vadd.f32 %v2125_v1, %v1943_v55  ;;  %v1945_v28 = vpop.f32.mrb[31].mxu1 }
 0x841   :  { %1963 = vst.msk [vmem:[%s3420_s6 + $0x10] sm:$0xff] %vm218_vm2, %v1957_v16  ;;  %v1958_v20 = vadd.f32 %v1944_v57, %v2453_v39 }
 0x843   :  { %1964 = vst.msk [vmem:[%s3420_s6 + $0x18] sm:$0xff] %vm218_vm2, %v1958_v20 }
 0x846   :  { %v1948_v53 = vpop.f32.mrb[32].mxu1 }
 0x847   :  { %v1949_v27 = vadd.f32 %v2125_v1, %v1948_v53  ;;  %v1950_v35 = vpop.f32.mrb[33].mxu1 }
 0x848   :  { %v1951_v59 = vpop.f32.mrb[34].mxu1 }
 0x849   :  { %v1959_v31 = vadd.f32 %v1949_v27, %v2494_v56  ;;  %v1952_v19 = vadd.f32 %v2125_v1, %v1951_v59  ;;  %v1953_v60 = vpop.f32.mrb[35].mxu1 }
 0x84b   :  { %1965 = vst.msk [vmem:[%s3420_s6 + $0x20] sm:$0xff] %vm218_vm2, %v1959_v31  ;;  %v1960_v39 = vadd.f32 %v1952_v19, %v2505_v61 }
 0x84d   :  { %1966 = vst.msk [vmem:[%s3420_s6 + $0x28] sm:$0xff] %vm218_vm2, %v1960_v39 }

</bundles_post_ra>
